<compile_context>
chip_gen: v7x
topology: tpu7x:2x2x1
jax: 0.10.0
libtpu: 0.0.40
codegen_flags: <defaults>
</compile_context>

<pallas_src>
import jax
import jax.numpy as jnp
from jax import lax
from jax.experimental import pallas as pl
from jax.experimental.pallas import tpu as pltpu


def _elu(x):
    # ELU(alpha=1): x if x > 0 else exp(x) - 1
    return jnp.where(x > 0, x, jnp.exp(x) - 1.0)


# ----------------------------------------------------------------------------
# Parameter handling
# ----------------------------------------------------------------------------
def init_params(key, inchan, layer, last):
    outchan = inchan // 2
    keys = iter(jax.random.split(key, 64))

    def bn(c):
        return dict(
            gamma=1.0 + 0.2 * jax.random.normal(next(keys), (c,), jnp.float32),
            beta=0.1 * jax.random.normal(next(keys), (c,), jnp.float32),
            mean=0.1 * jax.random.normal(next(keys), (c,), jnp.float32),
            var=0.5 + jax.random.uniform(next(keys), (c,), jnp.float32),
        )

    p = {
        # PyTorch ConvTranspose2d weight layout: (Cin, Cout, 4, 4)
        "up_w": 0.1 * jax.random.normal(next(keys), (inchan, outchan, 4, 4), jnp.float32),
        "up_b": 0.1 * jax.random.normal(next(keys), (outchan,), jnp.float32),
        "bn0": bn(outchan),
        "convs": [],
    }
    for _ in range(layer):
        p["convs"].append(dict(
            w=0.1 * jax.random.normal(next(keys), (outchan, outchan, 3, 3), jnp.float32),
            b=0.1 * jax.random.normal(next(keys), (outchan,), jnp.float32),
            bn=bn(outchan)))
    if last:
        p["c1_w"] = 0.1 * jax.random.normal(next(keys), (2, outchan, 1, 1), jnp.float32)
        p["c1_b"] = 0.1 * jax.random.normal(next(keys), (2,), jnp.float32)
    return p


def _fold_bn(bn, eps=1e-5):
    scale = bn["gamma"] / jnp.sqrt(bn["var"] + eps)
    shift = bn["beta"] - bn["mean"] * scale
    return scale, shift


def _pack_theta(p, layer, last):
    """Flatten all (tiny) parameters into one f32 vector for SMEM + offset table."""
    pieces, cursor = [], [0]

    def add(arr):
        arr = jnp.asarray(arr, jnp.float32).reshape(-1)
        o = cursor[0]
        pieces.append(arr)
        cursor[0] += int(arr.shape[0])
        return o

    off = {}
    # ConvTranspose2d(k=4,s=2,p=1) == regular conv on the zero-dilated input with
    # spatially flipped, (Cin,Cout)-swapped weights: Wc[co,ci,ky,kx] = Wt[ci,co,3-ky,3-kx]
    up_w_conv = jnp.flip(p["up_w"], axis=(2, 3)).transpose(1, 0, 2, 3)
    off["up_w"] = add(up_w_conv)
    off["up_b"] = add(p["up_b"])
    s0, h0 = _fold_bn(p["bn0"])
    off["bn0_scale"] = add(s0)
    off["bn0_shift"] = add(h0)
    off["conv_w"], off["conv_b"], off["bn_scale"], off["bn_shift"] = [], [], [], []
    for l in range(layer):
        c = p["convs"][l]
        off["conv_w"].append(add(c["w"]))
        off["conv_b"].append(add(c["b"]))
        sl, hl = _fold_bn(c["bn"])
        off["bn_scale"].append(add(sl))
        off["bn_shift"].append(add(hl))
    if last:
        off["c1_w"] = add(p["c1_w"].reshape(2, -1))
        off["c1_b"] = add(p["c1_b"])
    return jnp.concatenate(pieces), off


# ----------------------------------------------------------------------------
# Fused Pallas kernel
# ----------------------------------------------------------------------------
def _make_kernel(Cin, Cout, H, W, layer, last, off):
    OH, OW = 2 * H, 2 * W

    def kernel(xd_ref, theta_ref, out_ref):
        f32 = jnp.float32

        # --- zero-boundary shifted-window helper (for the 3x3 "same" convs) ---
        masks = {}
        if layer > 0:
            rows = lax.broadcasted_iota(jnp.int32, (OH, OW), 0)
            cols = lax.broadcasted_iota(jnp.int32, (OH, OW), 1)
            for oy in (-1, 0, 1):
                for ox in (-1, 0, 1):
                    if oy == 0 and ox == 0:
                        continue
                    masks[(oy, ox)] = ((rows + oy >= 0) & (rows + oy < OH) &
                                       (cols + ox >= 0) & (cols + ox < OW))

        def shifted(a, oy, ox):
            # a[y+oy, x+ox] with zero padding outside, same shape as a.
            r = a
            if oy != 0:
                r = pltpu.roll(r, shift=(-oy) % OH, axis=0)
            if ox != 0:
                r = pltpu.roll(r, shift=(-ox) % OW, axis=1)
            if oy == 0 and ox == 0:
                return r
            return jnp.where(masks[(oy, ox)], r, 0.0)

        # --- 1) ConvTranspose2d(k=4,s=2,p=1): dense 4x4 VALID conv over the
        #        zero-dilated + pad-2 input prepared by the wrapper, plus bias. ---
        out1 = []
        for co in range(Cout):
            acc = jnp.zeros((OH, OW), f32)
            for ci in range(Cin):
                for ky in range(4):
                    for kx in range(4):
                        w = theta_ref[off["up_w"] + ((co * Cin + ci) * 4 + ky) * 4 + kx]
                        win = xd_ref[ci, ky:ky + OH, kx:kx + OW].astype(f32)
                        acc = acc + w * win
            out1.append(acc + theta_ref[off["up_b"] + co])

        # --- 2) BatchNorm2d (inference affine) ---
        t = [out1[c] * theta_ref[off["bn0_scale"] + c] + theta_ref[off["bn0_shift"] + c]
             for c in range(Cout)]

        # --- 3) `layer` x (ELU -> Conv2d 3x3 pad=1 -> BatchNorm2d) ---
        for l in range(layer):
            a = [_elu(tc) for tc in t]
            wo, bo = off["conv_w"][l], off["conv_b"][l]
            so, ho = off["bn_scale"][l], off["bn_shift"][l]
            new_t = []
            for co in range(Cout):
                acc = jnp.zeros((OH, OW), f32)
                for ci in range(Cout):
                    for dy in range(3):
                        for dx in range(3):
                            w = theta_ref[wo + ((co * Cout + ci) * 3 + dy) * 3 + dx]
                            acc = acc + w * shifted(a[ci], dy - 1, dx - 1)
                acc = acc + theta_ref[bo + co]                      # conv bias
                new_t.append(acc * theta_ref[so + co] + theta_ref[ho + co])
            t = new_t

        # --- 4) residual add + ELU ---
        res = [_elu(out1[c] + t[c]) for c in range(Cout)]

        # --- 5) optional 1x1 conv to 2 classes + per-pixel channel softmax ---
        if last:
            logits = []
            for k in range(2):
                acc = jnp.zeros((OH, OW), f32)
                for c in range(Cout):
                    acc = acc + theta_ref[off["c1_w"] + k * Cout + c] * res[c]
                logits.append(acc + theta_ref[off["c1_b"] + k])
            m = jnp.maximum(logits[0], logits[1])
            e0 = jnp.exp(logits[0] - m)
            e1 = jnp.exp(logits[1] - m)
            inv = 1.0 / (e0 + e1)
            out_ref[0] = e0 * inv
            out_ref[1] = e1 * inv
        else:
            for c in range(Cout):
                out_ref[c] = res[c]

    return kernel


# ----------------------------------------------------------------------------
# Wrapper
# ----------------------------------------------------------------------------
def up_transition_forward(x, params, *, layer, last):
    N, Cin, H, W = x.shape
    Cout = Cin // 2
    OH, OW = 2 * H, 2 * W
    C_fin = 2 if last else Cout

    theta, off = _pack_theta(params, layer, last)

    # Stride-2 zero insertion + pad 2 (single lax.pad on the small pre-upsample
    # tensor, kept in its native dtype).  Turns the transposed conv into a dense
    # 4x4 VALID conv inside the kernel.
    xd = lax.pad(x, jnp.zeros((), x.dtype),
                 ((0, 0, 0), (0, 0, 0), (2, 2, 1), (2, 2, 1)))
    DH, DW = xd.shape[2], xd.shape[3]

    kernel = _make_kernel(Cin, Cout, H, W, layer, last, off)

    flops = (2 * N * OH * OW * (Cout * Cin * 16 + layer * Cout * Cout * 9
                                + (2 * Cout if last else 0))
             + 12 * N * Cout * OH * OW)
    transcendentals = N * OH * OW * (Cout * (layer + 1) + (2 if last else 0))
    bytes_accessed = 4 * (xd.size + N * C_fin * OH * OW + theta.size)

    out = pl.pallas_call(
        kernel,
        out_shape=jax.ShapeDtypeStruct((N, C_fin, OH, OW), jnp.float32),
        grid_spec=pltpu.PrefetchScalarGridSpec(
            num_scalar_prefetch=0,
            grid=(N,),
            in_specs=[
                # whole (dilated) image per batch element; last two dims = full dims
                pl.BlockSpec((None, Cin, DH, DW), lambda n: (n, 0, 0, 0)),
                # all parameters packed into one small f32 vector in SMEM
                pl.BlockSpec(memory_space=pltpu.SMEM),
            ],
            out_specs=pl.BlockSpec((None, C_fin, OH, OW), lambda n: (n, 0, 0, 0)),
        ),
        compiler_params=pltpu.CompilerParams(
            dimension_semantics=("parallel",)),   # batch steps are independent
        cost_estimate=pl.CostEstimate(flops=flops,
                                      transcendentals=transcendentals,
                                      bytes_accessed=bytes_accessed),
    )(xd, theta)

    if last:
        # matches PyTorch: permute(0,2,3,1).view(numel//2, 2)
        out = out.transpose(0, 2, 3, 1).reshape(-1, 2)
    return out


# ----------------------------------------------------------------------------
# Pure-JAX reference (XLA convs, eval-mode BN) for validation
# ----------------------------------------------------------------------------
def _reference(x, p, *, layer, last):
    hp = lax.Precision.HIGHEST
    dn = ("NCHW", "OIHW", "NCHW")

    def bn(t, b):
        s, h = _fold_bn(b)
        return t * s[None, :, None, None] + h[None, :, None, None]

    w_up = jnp.flip(p["up_w"], axis=(2, 3)).transpose(1, 0, 2, 3)
    out1 = lax.conv_general_dilated(
        x, w_up, window_strides=(1, 1), padding=((2, 2), (2, 2)),
        lhs_dilation=(2, 2), dimension_numbers=dn, precision=hp)
    out1 = out1 + p["up_b"][None, :, None, None]

    t = bn(out1, p["bn0"])
    for l in range(layer):
        c = p["convs"][l]
        t = _elu(t)
        t = lax.conv_general_dilated(
            t, c["w"], window_strides=(1, 1), padding=((1, 1), (1, 1)),
            dimension_numbers=dn, precision=hp)
        t = t + c["b"][None, :, None, None]
        t = bn(t, c["bn"])
    out = _elu(out1 + t)
    if last:
        out = lax.conv_general_dilated(
            out, p["c1_w"], window_strides=(1, 1), padding=((0, 0), (0, 0)),
            dimension_numbers=dn, precision=hp)
        out = out + p["c1_b"][None, :, None, None]
        out = out.transpose(0, 2, 3, 1).reshape(-1, 2)
        out = jax.nn.softmax(out, axis=1)
    return out


if __name__ == "__main__":
    key = jax.random.PRNGKey(0)
    kx, kp = jax.random.split(key)

    N, inchan, H, W = 2, 4, 16, 16       # outchan = 2, output spatial 32x32
    layer, last = 2, True

    x = jax.random.normal(kx, (N, inchan, H, W), dtype=jnp.float32)
    params = init_params(kp, inchan, layer, last)

    out = up_transition_forward(x, params, layer=layer, last=last)
    out = jax.block_until_ready(out)

    ref = jax.block_until_ready(_reference(x, params, layer=layer, last=last))
    assert out.shape == ref.shape, (out.shape, ref.shape)
    max_err = float(jnp.max(jnp.abs(out - ref)))
    assert jnp.allclose(out, ref, rtol=1e-4, atol=1e-5), max_err

    print("KERNEL_OK")
</pallas_src>

<mosaic_0001>
module attributes {stable_mosaic.version = 11 : i64} {
  func.func @kernel(%arg0: i32, %arg1: memref<1x4x35x35xf32, #tpu.memory_space<vmem>>, %arg2: memref<224xf32, #tpu.memory_space<smem>>, %arg3: memref<1x2x32x32xf32, #tpu.memory_space<vmem>>) attributes {dimension_semantics = [#tpu.dimension_semantics<parallel>], iteration_bounds = array<i64: 2>, scalar_prefetch = 0 : i64, scratch_operands = 0 : i64, tpu.core_type = #tpu.core_type<tc>, window_params = [{transform_indices = @transform_0, window_bounds = array<i64: 1, 4, 35, 35>}, {transform_indices = @transform_1, window_bounds = array<i64: 224>}, {transform_indices = @transform_2, window_bounds = array<i64: 1, 2, 32, 32>}]} {
    %0 = tpu.iota {dimensions = array<i32: 0>} : vector<32x32xi32>
    %1 = tpu.iota {dimensions = array<i32: 1>} : vector<32x32xi32>
    %c-1_i32 = arith.constant -1 : i32
    %2 = vector.broadcast %c-1_i32 : i32 to vector<32x32xi32>
    %3 = arith.addi %0, %2 : vector<32x32xi32>
    %c0_i32 = arith.constant 0 : i32
    %4 = vector.broadcast %c0_i32 : i32 to vector<32x32xi32>
    %5 = arith.cmpi sge, %3, %4 : vector<32x32xi32>
    %c-1_i32_0 = arith.constant -1 : i32
    %6 = vector.broadcast %c-1_i32_0 : i32 to vector<32x32xi32>
    %7 = arith.addi %0, %6 : vector<32x32xi32>
    %c32_i32 = arith.constant 32 : i32
    %8 = vector.broadcast %c32_i32 : i32 to vector<32x32xi32>
    %9 = arith.cmpi slt, %7, %8 : vector<32x32xi32>
    %10 = arith.andi %5, %9 : vector<32x32xi1>
    %c-1_i32_1 = arith.constant -1 : i32
    %11 = vector.broadcast %c-1_i32_1 : i32 to vector<32x32xi32>
    %12 = arith.addi %1, %11 : vector<32x32xi32>
    %c0_i32_2 = arith.constant 0 : i32
    %13 = vector.broadcast %c0_i32_2 : i32 to vector<32x32xi32>
    %14 = arith.cmpi sge, %12, %13 : vector<32x32xi32>
    %15 = arith.andi %10, %14 : vector<32x32xi1>
    %c-1_i32_3 = arith.constant -1 : i32
    %16 = vector.broadcast %c-1_i32_3 : i32 to vector<32x32xi32>
    %17 = arith.addi %1, %16 : vector<32x32xi32>
    %c32_i32_4 = arith.constant 32 : i32
    %18 = vector.broadcast %c32_i32_4 : i32 to vector<32x32xi32>
    %19 = arith.cmpi slt, %17, %18 : vector<32x32xi32>
    %20 = arith.andi %15, %19 : vector<32x32xi1>
    %c-1_i32_5 = arith.constant -1 : i32
    %21 = vector.broadcast %c-1_i32_5 : i32 to vector<32x32xi32>
    %22 = arith.addi %0, %21 : vector<32x32xi32>
    %c0_i32_6 = arith.constant 0 : i32
    %23 = vector.broadcast %c0_i32_6 : i32 to vector<32x32xi32>
    %24 = arith.cmpi sge, %22, %23 : vector<32x32xi32>
    %c-1_i32_7 = arith.constant -1 : i32
    %25 = vector.broadcast %c-1_i32_7 : i32 to vector<32x32xi32>
    %26 = arith.addi %0, %25 : vector<32x32xi32>
    %c32_i32_8 = arith.constant 32 : i32
    %27 = vector.broadcast %c32_i32_8 : i32 to vector<32x32xi32>
    %28 = arith.cmpi slt, %26, %27 : vector<32x32xi32>
    %29 = arith.andi %24, %28 : vector<32x32xi1>
    %c0_i32_9 = arith.constant 0 : i32
    %30 = vector.broadcast %c0_i32_9 : i32 to vector<32x32xi32>
    %31 = arith.addi %1, %30 : vector<32x32xi32>
    %c0_i32_10 = arith.constant 0 : i32
    %32 = vector.broadcast %c0_i32_10 : i32 to vector<32x32xi32>
    %33 = arith.cmpi sge, %31, %32 : vector<32x32xi32>
    %34 = arith.andi %29, %33 : vector<32x32xi1>
    %c0_i32_11 = arith.constant 0 : i32
    %35 = vector.broadcast %c0_i32_11 : i32 to vector<32x32xi32>
    %36 = arith.addi %1, %35 : vector<32x32xi32>
    %c32_i32_12 = arith.constant 32 : i32
    %37 = vector.broadcast %c32_i32_12 : i32 to vector<32x32xi32>
    %38 = arith.cmpi slt, %36, %37 : vector<32x32xi32>
    %39 = arith.andi %34, %38 : vector<32x32xi1>
    %c-1_i32_13 = arith.constant -1 : i32
    %40 = vector.broadcast %c-1_i32_13 : i32 to vector<32x32xi32>
    %41 = arith.addi %0, %40 : vector<32x32xi32>
    %c0_i32_14 = arith.constant 0 : i32
    %42 = vector.broadcast %c0_i32_14 : i32 to vector<32x32xi32>
    %43 = arith.cmpi sge, %41, %42 : vector<32x32xi32>
    %c-1_i32_15 = arith.constant -1 : i32
    %44 = vector.broadcast %c-1_i32_15 : i32 to vector<32x32xi32>
    %45 = arith.addi %0, %44 : vector<32x32xi32>
    %c32_i32_16 = arith.constant 32 : i32
    %46 = vector.broadcast %c32_i32_16 : i32 to vector<32x32xi32>
    %47 = arith.cmpi slt, %45, %46 : vector<32x32xi32>
    %48 = arith.andi %43, %47 : vector<32x32xi1>
    %c1_i32 = arith.constant 1 : i32
    %49 = vector.broadcast %c1_i32 : i32 to vector<32x32xi32>
    %50 = arith.addi %1, %49 : vector<32x32xi32>
    %c0_i32_17 = arith.constant 0 : i32
    %51 = vector.broadcast %c0_i32_17 : i32 to vector<32x32xi32>
    %52 = arith.cmpi sge, %50, %51 : vector<32x32xi32>
    %53 = arith.andi %48, %52 : vector<32x32xi1>
    %c1_i32_18 = arith.constant 1 : i32
    %54 = vector.broadcast %c1_i32_18 : i32 to vector<32x32xi32>
    %55 = arith.addi %1, %54 : vector<32x32xi32>
    %c32_i32_19 = arith.constant 32 : i32
    %56 = vector.broadcast %c32_i32_19 : i32 to vector<32x32xi32>
    %57 = arith.cmpi slt, %55, %56 : vector<32x32xi32>
    %58 = arith.andi %53, %57 : vector<32x32xi1>
    %c0_i32_20 = arith.constant 0 : i32
    %59 = vector.broadcast %c0_i32_20 : i32 to vector<32x32xi32>
    %60 = arith.addi %0, %59 : vector<32x32xi32>
    %c0_i32_21 = arith.constant 0 : i32
    %61 = vector.broadcast %c0_i32_21 : i32 to vector<32x32xi32>
    %62 = arith.cmpi sge, %60, %61 : vector<32x32xi32>
    %c0_i32_22 = arith.constant 0 : i32
    %63 = vector.broadcast %c0_i32_22 : i32 to vector<32x32xi32>
    %64 = arith.addi %0, %63 : vector<32x32xi32>
    %c32_i32_23 = arith.constant 32 : i32
    %65 = vector.broadcast %c32_i32_23 : i32 to vector<32x32xi32>
    %66 = arith.cmpi slt, %64, %65 : vector<32x32xi32>
    %67 = arith.andi %62, %66 : vector<32x32xi1>
    %c-1_i32_24 = arith.constant -1 : i32
    %68 = vector.broadcast %c-1_i32_24 : i32 to vector<32x32xi32>
    %69 = arith.addi %1, %68 : vector<32x32xi32>
    %c0_i32_25 = arith.constant 0 : i32
    %70 = vector.broadcast %c0_i32_25 : i32 to vector<32x32xi32>
    %71 = arith.cmpi sge, %69, %70 : vector<32x32xi32>
    %72 = arith.andi %67, %71 : vector<32x32xi1>
    %c-1_i32_26 = arith.constant -1 : i32
    %73 = vector.broadcast %c-1_i32_26 : i32 to vector<32x32xi32>
    %74 = arith.addi %1, %73 : vector<32x32xi32>
    %c32_i32_27 = arith.constant 32 : i32
    %75 = vector.broadcast %c32_i32_27 : i32 to vector<32x32xi32>
    %76 = arith.cmpi slt, %74, %75 : vector<32x32xi32>
    %77 = arith.andi %72, %76 : vector<32x32xi1>
    %c0_i32_28 = arith.constant 0 : i32
    %78 = vector.broadcast %c0_i32_28 : i32 to vector<32x32xi32>
    %79 = arith.addi %0, %78 : vector<32x32xi32>
    %c0_i32_29 = arith.constant 0 : i32
    %80 = vector.broadcast %c0_i32_29 : i32 to vector<32x32xi32>
    %81 = arith.cmpi sge, %79, %80 : vector<32x32xi32>
    %c0_i32_30 = arith.constant 0 : i32
    %82 = vector.broadcast %c0_i32_30 : i32 to vector<32x32xi32>
    %83 = arith.addi %0, %82 : vector<32x32xi32>
    %c32_i32_31 = arith.constant 32 : i32
    %84 = vector.broadcast %c32_i32_31 : i32 to vector<32x32xi32>
    %85 = arith.cmpi slt, %83, %84 : vector<32x32xi32>
    %86 = arith.andi %81, %85 : vector<32x32xi1>
    %c1_i32_32 = arith.constant 1 : i32
    %87 = vector.broadcast %c1_i32_32 : i32 to vector<32x32xi32>
    %88 = arith.addi %1, %87 : vector<32x32xi32>
    %c0_i32_33 = arith.constant 0 : i32
    %89 = vector.broadcast %c0_i32_33 : i32 to vector<32x32xi32>
    %90 = arith.cmpi sge, %88, %89 : vector<32x32xi32>
    %91 = arith.andi %86, %90 : vector<32x32xi1>
    %c1_i32_34 = arith.constant 1 : i32
    %92 = vector.broadcast %c1_i32_34 : i32 to vector<32x32xi32>
    %93 = arith.addi %1, %92 : vector<32x32xi32>
    %c32_i32_35 = arith.constant 32 : i32
    %94 = vector.broadcast %c32_i32_35 : i32 to vector<32x32xi32>
    %95 = arith.cmpi slt, %93, %94 : vector<32x32xi32>
    %96 = arith.andi %91, %95 : vector<32x32xi1>
    %c1_i32_36 = arith.constant 1 : i32
    %97 = vector.broadcast %c1_i32_36 : i32 to vector<32x32xi32>
    %98 = arith.addi %0, %97 : vector<32x32xi32>
    %c0_i32_37 = arith.constant 0 : i32
    %99 = vector.broadcast %c0_i32_37 : i32 to vector<32x32xi32>
    %100 = arith.cmpi sge, %98, %99 : vector<32x32xi32>
    %c1_i32_38 = arith.constant 1 : i32
    %101 = vector.broadcast %c1_i32_38 : i32 to vector<32x32xi32>
    %102 = arith.addi %0, %101 : vector<32x32xi32>
    %c32_i32_39 = arith.constant 32 : i32
    %103 = vector.broadcast %c32_i32_39 : i32 to vector<32x32xi32>
    %104 = arith.cmpi slt, %102, %103 : vector<32x32xi32>
    %105 = arith.andi %100, %104 : vector<32x32xi1>
    %c-1_i32_40 = arith.constant -1 : i32
    %106 = vector.broadcast %c-1_i32_40 : i32 to vector<32x32xi32>
    %107 = arith.addi %1, %106 : vector<32x32xi32>
    %c0_i32_41 = arith.constant 0 : i32
    %108 = vector.broadcast %c0_i32_41 : i32 to vector<32x32xi32>
    %109 = arith.cmpi sge, %107, %108 : vector<32x32xi32>
    %110 = arith.andi %105, %109 : vector<32x32xi1>
    %c-1_i32_42 = arith.constant -1 : i32
    %111 = vector.broadcast %c-1_i32_42 : i32 to vector<32x32xi32>
    %112 = arith.addi %1, %111 : vector<32x32xi32>
    %c32_i32_43 = arith.constant 32 : i32
    %113 = vector.broadcast %c32_i32_43 : i32 to vector<32x32xi32>
    %114 = arith.cmpi slt, %112, %113 : vector<32x32xi32>
    %115 = arith.andi %110, %114 : vector<32x32xi1>
    %c1_i32_44 = arith.constant 1 : i32
    %116 = vector.broadcast %c1_i32_44 : i32 to vector<32x32xi32>
    %117 = arith.addi %0, %116 : vector<32x32xi32>
    %c0_i32_45 = arith.constant 0 : i32
    %118 = vector.broadcast %c0_i32_45 : i32 to vector<32x32xi32>
    %119 = arith.cmpi sge, %117, %118 : vector<32x32xi32>
    %c1_i32_46 = arith.constant 1 : i32
    %120 = vector.broadcast %c1_i32_46 : i32 to vector<32x32xi32>
    %121 = arith.addi %0, %120 : vector<32x32xi32>
    %c32_i32_47 = arith.constant 32 : i32
    %122 = vector.broadcast %c32_i32_47 : i32 to vector<32x32xi32>
    %123 = arith.cmpi slt, %121, %122 : vector<32x32xi32>
    %124 = arith.andi %119, %123 : vector<32x32xi1>
    %c0_i32_48 = arith.constant 0 : i32
    %125 = vector.broadcast %c0_i32_48 : i32 to vector<32x32xi32>
    %126 = arith.addi %1, %125 : vector<32x32xi32>
    %c0_i32_49 = arith.constant 0 : i32
    %127 = vector.broadcast %c0_i32_49 : i32 to vector<32x32xi32>
    %128 = arith.cmpi sge, %126, %127 : vector<32x32xi32>
    %129 = arith.andi %124, %128 : vector<32x32xi1>
    %c0_i32_50 = arith.constant 0 : i32
    %130 = vector.broadcast %c0_i32_50 : i32 to vector<32x32xi32>
    %131 = arith.addi %1, %130 : vector<32x32xi32>
    %c32_i32_51 = arith.constant 32 : i32
    %132 = vector.broadcast %c32_i32_51 : i32 to vector<32x32xi32>
    %133 = arith.cmpi slt, %131, %132 : vector<32x32xi32>
    %134 = arith.andi %129, %133 : vector<32x32xi1>
    %c1_i32_52 = arith.constant 1 : i32
    %135 = vector.broadcast %c1_i32_52 : i32 to vector<32x32xi32>
    %136 = arith.addi %0, %135 : vector<32x32xi32>
    %c0_i32_53 = arith.constant 0 : i32
    %137 = vector.broadcast %c0_i32_53 : i32 to vector<32x32xi32>
    %138 = arith.cmpi sge, %136, %137 : vector<32x32xi32>
    %c1_i32_54 = arith.constant 1 : i32
    %139 = vector.broadcast %c1_i32_54 : i32 to vector<32x32xi32>
    %140 = arith.addi %0, %139 : vector<32x32xi32>
    %c32_i32_55 = arith.constant 32 : i32
    %141 = vector.broadcast %c32_i32_55 : i32 to vector<32x32xi32>
    %142 = arith.cmpi slt, %140, %141 : vector<32x32xi32>
    %143 = arith.andi %138, %142 : vector<32x32xi1>
    %c1_i32_56 = arith.constant 1 : i32
    %144 = vector.broadcast %c1_i32_56 : i32 to vector<32x32xi32>
    %145 = arith.addi %1, %144 : vector<32x32xi32>
    %c0_i32_57 = arith.constant 0 : i32
    %146 = vector.broadcast %c0_i32_57 : i32 to vector<32x32xi32>
    %147 = arith.cmpi sge, %145, %146 : vector<32x32xi32>
    %148 = arith.andi %143, %147 : vector<32x32xi1>
    %c1_i32_58 = arith.constant 1 : i32
    %149 = vector.broadcast %c1_i32_58 : i32 to vector<32x32xi32>
    %150 = arith.addi %1, %149 : vector<32x32xi32>
    %c32_i32_59 = arith.constant 32 : i32
    %151 = vector.broadcast %c32_i32_59 : i32 to vector<32x32xi32>
    %152 = arith.cmpi slt, %150, %151 : vector<32x32xi32>
    %153 = arith.andi %148, %152 : vector<32x32xi1>
    %cst = arith.constant 0.000000e+00 : f32
    %154 = vector.broadcast %cst : f32 to vector<32x32xf32>
    %c0 = arith.constant 0 : index
    %155 = memref.load %arg2[%c0] : memref<224xf32, #tpu.memory_space<smem>>
    %c0_60 = arith.constant 0 : index
    %c0_61 = arith.constant 0 : index
    %c0_62 = arith.constant 0 : index
    %c0_63 = arith.constant 0 : index
    %156 = vector.load %arg1[%c0_60, %c0_61, %c0_62, %c0_63] : memref<1x4x35x35xf32, #tpu.memory_space<vmem>>, vector<1x1x32x32xf32>
    %157 = vector.shape_cast %156 : vector<1x1x32x32xf32> to vector<32x32xf32>
    %158 = vector.broadcast %155 : f32 to vector<32x32xf32>
    %159 = arith.mulf %158, %157 : vector<32x32xf32>
    %160 = arith.addf %154, %159 : vector<32x32xf32>
    %c1 = arith.constant 1 : index
    %161 = memref.load %arg2[%c1] : memref<224xf32, #tpu.memory_space<smem>>
    %c0_64 = arith.constant 0 : index
    %c0_65 = arith.constant 0 : index
    %c0_66 = arith.constant 0 : index
    %c1_67 = arith.constant 1 : index
    %162 = vector.load %arg1[%c0_64, %c0_65, %c0_66, %c1_67] : memref<1x4x35x35xf32, #tpu.memory_space<vmem>>, vector<1x1x32x32xf32>
    %163 = vector.shape_cast %162 : vector<1x1x32x32xf32> to vector<32x32xf32>
    %164 = vector.broadcast %161 : f32 to vector<32x32xf32>
    %165 = arith.mulf %164, %163 : vector<32x32xf32>
    %166 = arith.addf %160, %165 : vector<32x32xf32>
    %c2 = arith.constant 2 : index
    %167 = memref.load %arg2[%c2] : memref<224xf32, #tpu.memory_space<smem>>
    %c0_68 = arith.constant 0 : index
    %c0_69 = arith.constant 0 : index
    %c0_70 = arith.constant 0 : index
    %c2_71 = arith.constant 2 : index
    %168 = vector.load %arg1[%c0_68, %c0_69, %c0_70, %c2_71] : memref<1x4x35x35xf32, #tpu.memory_space<vmem>>, vector<1x1x32x32xf32>
    %169 = vector.shape_cast %168 : vector<1x1x32x32xf32> to vector<32x32xf32>
    %170 = vector.broadcast %167 : f32 to vector<32x32xf32>
    %171 = arith.mulf %170, %169 : vector<32x32xf32>
    %172 = arith.addf %166, %171 : vector<32x32xf32>
    %c3 = arith.constant 3 : index
    %173 = memref.load %arg2[%c3] : memref<224xf32, #tpu.memory_space<smem>>
    %c0_72 = arith.constant 0 : index
    %c0_73 = arith.constant 0 : index
    %c0_74 = arith.constant 0 : index
    %c3_75 = arith.constant 3 : index
    %174 = vector.load %arg1[%c0_72, %c0_73, %c0_74, %c3_75] : memref<1x4x35x35xf32, #tpu.memory_space<vmem>>, vector<1x1x32x32xf32>
    %175 = vector.shape_cast %174 : vector<1x1x32x32xf32> to vector<32x32xf32>
    %176 = vector.broadcast %173 : f32 to vector<32x32xf32>
    %177 = arith.mulf %176, %175 : vector<32x32xf32>
    %178 = arith.addf %172, %177 : vector<32x32xf32>
    %c4 = arith.constant 4 : index
    %179 = memref.load %arg2[%c4] : memref<224xf32, #tpu.memory_space<smem>>
    %c0_76 = arith.constant 0 : index
    %c0_77 = arith.constant 0 : index
    %c1_78 = arith.constant 1 : index
    %c0_79 = arith.constant 0 : index
    %180 = vector.load %arg1[%c0_76, %c0_77, %c1_78, %c0_79] : memref<1x4x35x35xf32, #tpu.memory_space<vmem>>, vector<1x1x32x32xf32>
    %181 = vector.shape_cast %180 : vector<1x1x32x32xf32> to vector<32x32xf32>
    %182 = vector.broadcast %179 : f32 to vector<32x32xf32>
    %183 = arith.mulf %182, %181 : vector<32x32xf32>
    %184 = arith.addf %178, %183 : vector<32x32xf32>
    %c5 = arith.constant 5 : index
    %185 = memref.load %arg2[%c5] : memref<224xf32, #tpu.memory_space<smem>>
    %c0_80 = arith.constant 0 : index
    %c0_81 = arith.constant 0 : index
    %c1_82 = arith.constant 1 : index
    %c1_83 = arith.constant 1 : index
    %186 = vector.load %arg1[%c0_80, %c0_81, %c1_82, %c1_83] : memref<1x4x35x35xf32, #tpu.memory_space<vmem>>, vector<1x1x32x32xf32>
    %187 = vector.shape_cast %186 : vector<1x1x32x32xf32> to vector<32x32xf32>
    %188 = vector.broadcast %185 : f32 to vector<32x32xf32>
    %189 = arith.mulf %188, %187 : vector<32x32xf32>
    %190 = arith.addf %184, %189 : vector<32x32xf32>
    %c6 = arith.constant 6 : index
    %191 = memref.load %arg2[%c6] : memref<224xf32, #tpu.memory_space<smem>>
    %c0_84 = arith.constant 0 : index
    %c0_85 = arith.constant 0 : index
    %c1_86 = arith.constant 1 : index
    %c2_87 = arith.constant 2 : index
    %192 = vector.load %arg1[%c0_84, %c0_85, %c1_86, %c2_87] : memref<1x4x35x35xf32, #tpu.memory_space<vmem>>, vector<1x1x32x32xf32>
    %193 = vector.shape_cast %192 : vector<1x1x32x32xf32> to vector<32x32xf32>
    %194 = vector.broadcast %191 : f32 to vector<32x32xf32>
    %195 = arith.mulf %194, %193 : vector<32x32xf32>
    %196 = arith.addf %190, %195 : vector<32x32xf32>
    %c7 = arith.constant 7 : index
    %197 = memref.load %arg2[%c7] : memref<224xf32, #tpu.memory_space<smem>>
    %c0_88 = arith.constant 0 : index
    %c0_89 = arith.constant 0 : index
    %c1_90 = arith.constant 1 : index
    %c3_91 = arith.constant 3 : index
    %198 = vector.load %arg1[%c0_88, %c0_89, %c1_90, %c3_91] : memref<1x4x35x35xf32, #tpu.memory_space<vmem>>, vector<1x1x32x32xf32>
    %199 = vector.shape_cast %198 : vector<1x1x32x32xf32> to vector<32x32xf32>
    %200 = vector.broadcast %197 : f32 to vector<32x32xf32>
    %201 = arith.mulf %200, %199 : vector<32x32xf32>
    %202 = arith.addf %196, %201 : vector<32x32xf32>
    %c8 = arith.constant 8 : index
    %203 = memref.load %arg2[%c8] : memref<224xf32, #tpu.memory_space<smem>>
    %c0_92 = arith.constant 0 : index
    %c0_93 = arith.constant 0 : index
    %c2_94 = arith.constant 2 : index
    %c0_95 = arith.constant 0 : index
    %204 = vector.load %arg1[%c0_92, %c0_93, %c2_94, %c0_95] : memref<1x4x35x35xf32, #tpu.memory_space<vmem>>, vector<1x1x32x32xf32>
    %205 = vector.shape_cast %204 : vector<1x1x32x32xf32> to vector<32x32xf32>
    %206 = vector.broadcast %203 : f32 to vector<32x32xf32>
    %207 = arith.mulf %206, %205 : vector<32x32xf32>
    %208 = arith.addf %202, %207 : vector<32x32xf32>
    %c9 = arith.constant 9 : index
    %209 = memref.load %arg2[%c9] : memref<224xf32, #tpu.memory_space<smem>>
    %c0_96 = arith.constant 0 : index
    %c0_97 = arith.constant 0 : index
    %c2_98 = arith.constant 2 : index
    %c1_99 = arith.constant 1 : index
    %210 = vector.load %arg1[%c0_96, %c0_97, %c2_98, %c1_99] : memref<1x4x35x35xf32, #tpu.memory_space<vmem>>, vector<1x1x32x32xf32>
    %211 = vector.shape_cast %210 : vector<1x1x32x32xf32> to vector<32x32xf32>
    %212 = vector.broadcast %209 : f32 to vector<32x32xf32>
    %213 = arith.mulf %212, %211 : vector<32x32xf32>
    %214 = arith.addf %208, %213 : vector<32x32xf32>
    %c10 = arith.constant 10 : index
    %215 = memref.load %arg2[%c10] : memref<224xf32, #tpu.memory_space<smem>>
    %c0_100 = arith.constant 0 : index
    %c0_101 = arith.constant 0 : index
    %c2_102 = arith.constant 2 : index
    %c2_103 = arith.constant 2 : index
    %216 = vector.load %arg1[%c0_100, %c0_101, %c2_102, %c2_103] : memref<1x4x35x35xf32, #tpu.memory_space<vmem>>, vector<1x1x32x32xf32>
    %217 = vector.shape_cast %216 : vector<1x1x32x32xf32> to vector<32x32xf32>
    %218 = vector.broadcast %215 : f32 to vector<32x32xf32>
    %219 = arith.mulf %218, %217 : vector<32x32xf32>
    %220 = arith.addf %214, %219 : vector<32x32xf32>
    %c11 = arith.constant 11 : index
    %221 = memref.load %arg2[%c11] : memref<224xf32, #tpu.memory_space<smem>>
    %c0_104 = arith.constant 0 : index
    %c0_105 = arith.constant 0 : index
    %c2_106 = arith.constant 2 : index
    %c3_107 = arith.constant 3 : index
    %222 = vector.load %arg1[%c0_104, %c0_105, %c2_106, %c3_107] : memref<1x4x35x35xf32, #tpu.memory_space<vmem>>, vector<1x1x32x32xf32>
    %223 = vector.shape_cast %222 : vector<1x1x32x32xf32> to vector<32x32xf32>
    %224 = vector.broadcast %221 : f32 to vector<32x32xf32>
    %225 = arith.mulf %224, %223 : vector<32x32xf32>
    %226 = arith.addf %220, %225 : vector<32x32xf32>
    %c12 = arith.constant 12 : index
    %227 = memref.load %arg2[%c12] : memref<224xf32, #tpu.memory_space<smem>>
    %c0_108 = arith.constant 0 : index
    %c0_109 = arith.constant 0 : index
    %c3_110 = arith.constant 3 : index
    %c0_111 = arith.constant 0 : index
    %228 = vector.load %arg1[%c0_108, %c0_109, %c3_110, %c0_111] : memref<1x4x35x35xf32, #tpu.memory_space<vmem>>, vector<1x1x32x32xf32>
    %229 = vector.shape_cast %228 : vector<1x1x32x32xf32> to vector<32x32xf32>
    %230 = vector.broadcast %227 : f32 to vector<32x32xf32>
    %231 = arith.mulf %230, %229 : vector<32x32xf32>
    %232 = arith.addf %226, %231 : vector<32x32xf32>
    %c13 = arith.constant 13 : index
    %233 = memref.load %arg2[%c13] : memref<224xf32, #tpu.memory_space<smem>>
    %c0_112 = arith.constant 0 : index
    %c0_113 = arith.constant 0 : index
    %c3_114 = arith.constant 3 : index
    %c1_115 = arith.constant 1 : index
    %234 = vector.load %arg1[%c0_112, %c0_113, %c3_114, %c1_115] : memref<1x4x35x35xf32, #tpu.memory_space<vmem>>, vector<1x1x32x32xf32>
    %235 = vector.shape_cast %234 : vector<1x1x32x32xf32> to vector<32x32xf32>
    %236 = vector.broadcast %233 : f32 to vector<32x32xf32>
    %237 = arith.mulf %236, %235 : vector<32x32xf32>
    %238 = arith.addf %232, %237 : vector<32x32xf32>
    %c14 = arith.constant 14 : index
    %239 = memref.load %arg2[%c14] : memref<224xf32, #tpu.memory_space<smem>>
    %c0_116 = arith.constant 0 : index
    %c0_117 = arith.constant 0 : index
    %c3_118 = arith.constant 3 : index
    %c2_119 = arith.constant 2 : index
    %240 = vector.load %arg1[%c0_116, %c0_117, %c3_118, %c2_119] : memref<1x4x35x35xf32, #tpu.memory_space<vmem>>, vector<1x1x32x32xf32>
    %241 = vector.shape_cast %240 : vector<1x1x32x32xf32> to vector<32x32xf32>
    %242 = vector.broadcast %239 : f32 to vector<32x32xf32>
    %243 = arith.mulf %242, %241 : vector<32x32xf32>
    %244 = arith.addf %238, %243 : vector<32x32xf32>
    %c15 = arith.constant 15 : index
    %245 = memref.load %arg2[%c15] : memref<224xf32, #tpu.memory_space<smem>>
    %c0_120 = arith.constant 0 : index
    %c0_121 = arith.constant 0 : index
    %c3_122 = arith.constant 3 : index
    %c3_123 = arith.constant 3 : index
    %246 = vector.load %arg1[%c0_120, %c0_121, %c3_122, %c3_123] : memref<1x4x35x35xf32, #tpu.memory_space<vmem>>, vector<1x1x32x32xf32>
    %247 = vector.shape_cast %246 : vector<1x1x32x32xf32> to vector<32x32xf32>
    %248 = vector.broadcast %245 : f32 to vector<32x32xf32>
    %249 = arith.mulf %248, %247 : vector<32x32xf32>
    %250 = arith.addf %244, %249 : vector<32x32xf32>
    %c16 = arith.constant 16 : index
    %251 = memref.load %arg2[%c16] : memref<224xf32, #tpu.memory_space<smem>>
    %c0_124 = arith.constant 0 : index
    %c1_125 = arith.constant 1 : index
    %c0_126 = arith.constant 0 : index
    %c0_127 = arith.constant 0 : index
    %252 = vector.load %arg1[%c0_124, %c1_125, %c0_126, %c0_127] : memref<1x4x35x35xf32, #tpu.memory_space<vmem>>, vector<1x1x32x32xf32>
    %253 = vector.shape_cast %252 : vector<1x1x32x32xf32> to vector<32x32xf32>
    %254 = vector.broadcast %251 : f32 to vector<32x32xf32>
    %255 = arith.mulf %254, %253 : vector<32x32xf32>
    %256 = arith.addf %250, %255 : vector<32x32xf32>
    %c17 = arith.constant 17 : index
    %257 = memref.load %arg2[%c17] : memref<224xf32, #tpu.memory_space<smem>>
    %c0_128 = arith.constant 0 : index
    %c1_129 = arith.constant 1 : index
    %c0_130 = arith.constant 0 : index
    %c1_131 = arith.constant 1 : index
    %258 = vector.load %arg1[%c0_128, %c1_129, %c0_130, %c1_131] : memref<1x4x35x35xf32, #tpu.memory_space<vmem>>, vector<1x1x32x32xf32>
    %259 = vector.shape_cast %258 : vector<1x1x32x32xf32> to vector<32x32xf32>
    %260 = vector.broadcast %257 : f32 to vector<32x32xf32>
    %261 = arith.mulf %260, %259 : vector<32x32xf32>
    %262 = arith.addf %256, %261 : vector<32x32xf32>
    %c18 = arith.constant 18 : index
    %263 = memref.load %arg2[%c18] : memref<224xf32, #tpu.memory_space<smem>>
    %c0_132 = arith.constant 0 : index
    %c1_133 = arith.constant 1 : index
    %c0_134 = arith.constant 0 : index
    %c2_135 = arith.constant 2 : index
    %264 = vector.load %arg1[%c0_132, %c1_133, %c0_134, %c2_135] : memref<1x4x35x35xf32, #tpu.memory_space<vmem>>, vector<1x1x32x32xf32>
    %265 = vector.shape_cast %264 : vector<1x1x32x32xf32> to vector<32x32xf32>
    %266 = vector.broadcast %263 : f32 to vector<32x32xf32>
    %267 = arith.mulf %266, %265 : vector<32x32xf32>
    %268 = arith.addf %262, %267 : vector<32x32xf32>
    %c19 = arith.constant 19 : index
    %269 = memref.load %arg2[%c19] : memref<224xf32, #tpu.memory_space<smem>>
    %c0_136 = arith.constant 0 : index
    %c1_137 = arith.constant 1 : index
    %c0_138 = arith.constant 0 : index
    %c3_139 = arith.constant 3 : index
    %270 = vector.load %arg1[%c0_136, %c1_137, %c0_138, %c3_139] : memref<1x4x35x35xf32, #tpu.memory_space<vmem>>, vector<1x1x32x32xf32>
    %271 = vector.shape_cast %270 : vector<1x1x32x32xf32> to vector<32x32xf32>
    %272 = vector.broadcast %269 : f32 to vector<32x32xf32>
    %273 = arith.mulf %272, %271 : vector<32x32xf32>
    %274 = arith.addf %268, %273 : vector<32x32xf32>
    %c20 = arith.constant 20 : index
    %275 = memref.load %arg2[%c20] : memref<224xf32, #tpu.memory_space<smem>>
    %c0_140 = arith.constant 0 : index
    %c1_141 = arith.constant 1 : index
    %c1_142 = arith.constant 1 : index
    %c0_143 = arith.constant 0 : index
    %276 = vector.load %arg1[%c0_140, %c1_141, %c1_142, %c0_143] : memref<1x4x35x35xf32, #tpu.memory_space<vmem>>, vector<1x1x32x32xf32>
    %277 = vector.shape_cast %276 : vector<1x1x32x32xf32> to vector<32x32xf32>
    %278 = vector.broadcast %275 : f32 to vector<32x32xf32>
    %279 = arith.mulf %278, %277 : vector<32x32xf32>
    %280 = arith.addf %274, %279 : vector<32x32xf32>
    %c21 = arith.constant 21 : index
    %281 = memref.load %arg2[%c21] : memref<224xf32, #tpu.memory_space<smem>>
    %c0_144 = arith.constant 0 : index
    %c1_145 = arith.constant 1 : index
    %c1_146 = arith.constant 1 : index
    %c1_147 = arith.constant 1 : index
    %282 = vector.load %arg1[%c0_144, %c1_145, %c1_146, %c1_147] : memref<1x4x35x35xf32, #tpu.memory_space<vmem>>, vector<1x1x32x32xf32>
    %283 = vector.shape_cast %282 : vector<1x1x32x32xf32> to vector<32x32xf32>
    %284 = vector.broadcast %281 : f32 to vector<32x32xf32>
    %285 = arith.mulf %284, %283 : vector<32x32xf32>
    %286 = arith.addf %280, %285 : vector<32x32xf32>
    %c22 = arith.constant 22 : index
    %287 = memref.load %arg2[%c22] : memref<224xf32, #tpu.memory_space<smem>>
    %c0_148 = arith.constant 0 : index
    %c1_149 = arith.constant 1 : index
    %c1_150 = arith.constant 1 : index
    %c2_151 = arith.constant 2 : index
    %288 = vector.load %arg1[%c0_148, %c1_149, %c1_150, %c2_151] : memref<1x4x35x35xf32, #tpu.memory_space<vmem>>, vector<1x1x32x32xf32>
    %289 = vector.shape_cast %288 : vector<1x1x32x32xf32> to vector<32x32xf32>
    %290 = vector.broadcast %287 : f32 to vector<32x32xf32>
    %291 = arith.mulf %290, %289 : vector<32x32xf32>
    %292 = arith.addf %286, %291 : vector<32x32xf32>
    %c23 = arith.constant 23 : index
    %293 = memref.load %arg2[%c23] : memref<224xf32, #tpu.memory_space<smem>>
    %c0_152 = arith.constant 0 : index
    %c1_153 = arith.constant 1 : index
    %c1_154 = arith.constant 1 : index
    %c3_155 = arith.constant 3 : index
    %294 = vector.load %arg1[%c0_152, %c1_153, %c1_154, %c3_155] : memref<1x4x35x35xf32, #tpu.memory_space<vmem>>, vector<1x1x32x32xf32>
    %295 = vector.shape_cast %294 : vector<1x1x32x32xf32> to vector<32x32xf32>
    %296 = vector.broadcast %293 : f32 to vector<32x32xf32>
    %297 = arith.mulf %296, %295 : vector<32x32xf32>
    %298 = arith.addf %292, %297 : vector<32x32xf32>
    %c24 = arith.constant 24 : index
    %299 = memref.load %arg2[%c24] : memref<224xf32, #tpu.memory_space<smem>>
    %c0_156 = arith.constant 0 : index
    %c1_157 = arith.constant 1 : index
    %c2_158 = arith.constant 2 : index
    %c0_159 = arith.constant 0 : index
    %300 = vector.load %arg1[%c0_156, %c1_157, %c2_158, %c0_159] : memref<1x4x35x35xf32, #tpu.memory_space<vmem>>, vector<1x1x32x32xf32>
    %301 = vector.shape_cast %300 : vector<1x1x32x32xf32> to vector<32x32xf32>
    %302 = vector.broadcast %299 : f32 to vector<32x32xf32>
    %303 = arith.mulf %302, %301 : vector<32x32xf32>
    %304 = arith.addf %298, %303 : vector<32x32xf32>
    %c25 = arith.constant 25 : index
    %305 = memref.load %arg2[%c25] : memref<224xf32, #tpu.memory_space<smem>>
    %c0_160 = arith.constant 0 : index
    %c1_161 = arith.constant 1 : index
    %c2_162 = arith.constant 2 : index
    %c1_163 = arith.constant 1 : index
    %306 = vector.load %arg1[%c0_160, %c1_161, %c2_162, %c1_163] : memref<1x4x35x35xf32, #tpu.memory_space<vmem>>, vector<1x1x32x32xf32>
    %307 = vector.shape_cast %306 : vector<1x1x32x32xf32> to vector<32x32xf32>
    %308 = vector.broadcast %305 : f32 to vector<32x32xf32>
    %309 = arith.mulf %308, %307 : vector<32x32xf32>
    %310 = arith.addf %304, %309 : vector<32x32xf32>
    %c26 = arith.constant 26 : index
    %311 = memref.load %arg2[%c26] : memref<224xf32, #tpu.memory_space<smem>>
    %c0_164 = arith.constant 0 : index
    %c1_165 = arith.constant 1 : index
    %c2_166 = arith.constant 2 : index
    %c2_167 = arith.constant 2 : index
    %312 = vector.load %arg1[%c0_164, %c1_165, %c2_166, %c2_167] : memref<1x4x35x35xf32, #tpu.memory_space<vmem>>, vector<1x1x32x32xf32>
    %313 = vector.shape_cast %312 : vector<1x1x32x32xf32> to vector<32x32xf32>
    %314 = vector.broadcast %311 : f32 to vector<32x32xf32>
    %315 = arith.mulf %314, %313 : vector<32x32xf32>
    %316 = arith.addf %310, %315 : vector<32x32xf32>
    %c27 = arith.constant 27 : index
    %317 = memref.load %arg2[%c27] : memref<224xf32, #tpu.memory_space<smem>>
    %c0_168 = arith.constant 0 : index
    %c1_169 = arith.constant 1 : index
    %c2_170 = arith.constant 2 : index
    %c3_171 = arith.constant 3 : index
    %318 = vector.load %arg1[%c0_168, %c1_169, %c2_170, %c3_171] : memref<1x4x35x35xf32, #tpu.memory_space<vmem>>, vector<1x1x32x32xf32>
    %319 = vector.shape_cast %318 : vector<1x1x32x32xf32> to vector<32x32xf32>
    %320 = vector.broadcast %317 : f32 to vector<32x32xf32>
    %321 = arith.mulf %320, %319 : vector<32x32xf32>
    %322 = arith.addf %316, %321 : vector<32x32xf32>
    %c28 = arith.constant 28 : index
    %323 = memref.load %arg2[%c28] : memref<224xf32, #tpu.memory_space<smem>>
    %c0_172 = arith.constant 0 : index
    %c1_173 = arith.constant 1 : index
    %c3_174 = arith.constant 3 : index
    %c0_175 = arith.constant 0 : index
    %324 = vector.load %arg1[%c0_172, %c1_173, %c3_174, %c0_175] : memref<1x4x35x35xf32, #tpu.memory_space<vmem>>, vector<1x1x32x32xf32>
    %325 = vector.shape_cast %324 : vector<1x1x32x32xf32> to vector<32x32xf32>
    %326 = vector.broadcast %323 : f32 to vector<32x32xf32>
    %327 = arith.mulf %326, %325 : vector<32x32xf32>
    %328 = arith.addf %322, %327 : vector<32x32xf32>
    %c29 = arith.constant 29 : index
    %329 = memref.load %arg2[%c29] : memref<224xf32, #tpu.memory_space<smem>>
    %c0_176 = arith.constant 0 : index
    %c1_177 = arith.constant 1 : index
    %c3_178 = arith.constant 3 : index
    %c1_179 = arith.constant 1 : index
    %330 = vector.load %arg1[%c0_176, %c1_177, %c3_178, %c1_179] : memref<1x4x35x35xf32, #tpu.memory_space<vmem>>, vector<1x1x32x32xf32>
    %331 = vector.shape_cast %330 : vector<1x1x32x32xf32> to vector<32x32xf32>
    %332 = vector.broadcast %329 : f32 to vector<32x32xf32>
    %333 = arith.mulf %332, %331 : vector<32x32xf32>
    %334 = arith.addf %328, %333 : vector<32x32xf32>
    %c30 = arith.constant 30 : index
    %335 = memref.load %arg2[%c30] : memref<224xf32, #tpu.memory_space<smem>>
    %c0_180 = arith.constant 0 : index
    %c1_181 = arith.constant 1 : index
    %c3_182 = arith.constant 3 : index
    %c2_183 = arith.constant 2 : index
    %336 = vector.load %arg1[%c0_180, %c1_181, %c3_182, %c2_183] : memref<1x4x35x35xf32, #tpu.memory_space<vmem>>, vector<1x1x32x32xf32>
    %337 = vector.shape_cast %336 : vector<1x1x32x32xf32> to vector<32x32xf32>
    %338 = vector.broadcast %335 : f32 to vector<32x32xf32>
    %339 = arith.mulf %338, %337 : vector<32x32xf32>
    %340 = arith.addf %334, %339 : vector<32x32xf32>
    %c31 = arith.constant 31 : index
    %341 = memref.load %arg2[%c31] : memref<224xf32, #tpu.memory_space<smem>>
    %c0_184 = arith.constant 0 : index
    %c1_185 = arith.constant 1 : index
    %c3_186 = arith.constant 3 : index
    %c3_187 = arith.constant 3 : index
    %342 = vector.load %arg1[%c0_184, %c1_185, %c3_186, %c3_187] : memref<1x4x35x35xf32, #tpu.memory_space<vmem>>, vector<1x1x32x32xf32>
    %343 = vector.shape_cast %342 : vector<1x1x32x32xf32> to vector<32x32xf32>
    %344 = vector.broadcast %341 : f32 to vector<32x32xf32>
    %345 = arith.mulf %344, %343 : vector<32x32xf32>
    %346 = arith.addf %340, %345 : vector<32x32xf32>
    %c32 = arith.constant 32 : index
    %347 = memref.load %arg2[%c32] : memref<224xf32, #tpu.memory_space<smem>>
    %c0_188 = arith.constant 0 : index
    %c2_189 = arith.constant 2 : index
    %c0_190 = arith.constant 0 : index
    %c0_191 = arith.constant 0 : index
    %348 = vector.load %arg1[%c0_188, %c2_189, %c0_190, %c0_191] : memref<1x4x35x35xf32, #tpu.memory_space<vmem>>, vector<1x1x32x32xf32>
    %349 = vector.shape_cast %348 : vector<1x1x32x32xf32> to vector<32x32xf32>
    %350 = vector.broadcast %347 : f32 to vector<32x32xf32>
    %351 = arith.mulf %350, %349 : vector<32x32xf32>
    %352 = arith.addf %346, %351 : vector<32x32xf32>
    %c33 = arith.constant 33 : index
    %353 = memref.load %arg2[%c33] : memref<224xf32, #tpu.memory_space<smem>>
    %c0_192 = arith.constant 0 : index
    %c2_193 = arith.constant 2 : index
    %c0_194 = arith.constant 0 : index
    %c1_195 = arith.constant 1 : index
    %354 = vector.load %arg1[%c0_192, %c2_193, %c0_194, %c1_195] : memref<1x4x35x35xf32, #tpu.memory_space<vmem>>, vector<1x1x32x32xf32>
    %355 = vector.shape_cast %354 : vector<1x1x32x32xf32> to vector<32x32xf32>
    %356 = vector.broadcast %353 : f32 to vector<32x32xf32>
    %357 = arith.mulf %356, %355 : vector<32x32xf32>
    %358 = arith.addf %352, %357 : vector<32x32xf32>
    %c34 = arith.constant 34 : index
    %359 = memref.load %arg2[%c34] : memref<224xf32, #tpu.memory_space<smem>>
    %c0_196 = arith.constant 0 : index
    %c2_197 = arith.constant 2 : index
    %c0_198 = arith.constant 0 : index
    %c2_199 = arith.constant 2 : index
    %360 = vector.load %arg1[%c0_196, %c2_197, %c0_198, %c2_199] : memref<1x4x35x35xf32, #tpu.memory_space<vmem>>, vector<1x1x32x32xf32>
    %361 = vector.shape_cast %360 : vector<1x1x32x32xf32> to vector<32x32xf32>
    %362 = vector.broadcast %359 : f32 to vector<32x32xf32>
    %363 = arith.mulf %362, %361 : vector<32x32xf32>
    %364 = arith.addf %358, %363 : vector<32x32xf32>
    %c35 = arith.constant 35 : index
    %365 = memref.load %arg2[%c35] : memref<224xf32, #tpu.memory_space<smem>>
    %c0_200 = arith.constant 0 : index
    %c2_201 = arith.constant 2 : index
    %c0_202 = arith.constant 0 : index
    %c3_203 = arith.constant 3 : index
    %366 = vector.load %arg1[%c0_200, %c2_201, %c0_202, %c3_203] : memref<1x4x35x35xf32, #tpu.memory_space<vmem>>, vector<1x1x32x32xf32>
    %367 = vector.shape_cast %366 : vector<1x1x32x32xf32> to vector<32x32xf32>
    %368 = vector.broadcast %365 : f32 to vector<32x32xf32>
    %369 = arith.mulf %368, %367 : vector<32x32xf32>
    %370 = arith.addf %364, %369 : vector<32x32xf32>
    %c36 = arith.constant 36 : index
    %371 = memref.load %arg2[%c36] : memref<224xf32, #tpu.memory_space<smem>>
    %c0_204 = arith.constant 0 : index
    %c2_205 = arith.constant 2 : index
    %c1_206 = arith.constant 1 : index
    %c0_207 = arith.constant 0 : index
    %372 = vector.load %arg1[%c0_204, %c2_205, %c1_206, %c0_207] : memref<1x4x35x35xf32, #tpu.memory_space<vmem>>, vector<1x1x32x32xf32>
    %373 = vector.shape_cast %372 : vector<1x1x32x32xf32> to vector<32x32xf32>
    %374 = vector.broadcast %371 : f32 to vector<32x32xf32>
    %375 = arith.mulf %374, %373 : vector<32x32xf32>
    %376 = arith.addf %370, %375 : vector<32x32xf32>
    %c37 = arith.constant 37 : index
    %377 = memref.load %arg2[%c37] : memref<224xf32, #tpu.memory_space<smem>>
    %c0_208 = arith.constant 0 : index
    %c2_209 = arith.constant 2 : index
    %c1_210 = arith.constant 1 : index
    %c1_211 = arith.constant 1 : index
    %378 = vector.load %arg1[%c0_208, %c2_209, %c1_210, %c1_211] : memref<1x4x35x35xf32, #tpu.memory_space<vmem>>, vector<1x1x32x32xf32>
    %379 = vector.shape_cast %378 : vector<1x1x32x32xf32> to vector<32x32xf32>
    %380 = vector.broadcast %377 : f32 to vector<32x32xf32>
    %381 = arith.mulf %380, %379 : vector<32x32xf32>
    %382 = arith.addf %376, %381 : vector<32x32xf32>
    %c38 = arith.constant 38 : index
    %383 = memref.load %arg2[%c38] : memref<224xf32, #tpu.memory_space<smem>>
    %c0_212 = arith.constant 0 : index
    %c2_213 = arith.constant 2 : index
    %c1_214 = arith.constant 1 : index
    %c2_215 = arith.constant 2 : index
    %384 = vector.load %arg1[%c0_212, %c2_213, %c1_214, %c2_215] : memref<1x4x35x35xf32, #tpu.memory_space<vmem>>, vector<1x1x32x32xf32>
    %385 = vector.shape_cast %384 : vector<1x1x32x32xf32> to vector<32x32xf32>
    %386 = vector.broadcast %383 : f32 to vector<32x32xf32>
    %387 = arith.mulf %386, %385 : vector<32x32xf32>
    %388 = arith.addf %382, %387 : vector<32x32xf32>
    %c39 = arith.constant 39 : index
    %389 = memref.load %arg2[%c39] : memref<224xf32, #tpu.memory_space<smem>>
    %c0_216 = arith.constant 0 : index
    %c2_217 = arith.constant 2 : index
    %c1_218 = arith.constant 1 : index
    %c3_219 = arith.constant 3 : index
    %390 = vector.load %arg1[%c0_216, %c2_217, %c1_218, %c3_219] : memref<1x4x35x35xf32, #tpu.memory_space<vmem>>, vector<1x1x32x32xf32>
    %391 = vector.shape_cast %390 : vector<1x1x32x32xf32> to vector<32x32xf32>
    %392 = vector.broadcast %389 : f32 to vector<32x32xf32>
    %393 = arith.mulf %392, %391 : vector<32x32xf32>
    %394 = arith.addf %388, %393 : vector<32x32xf32>
    %c40 = arith.constant 40 : index
    %395 = memref.load %arg2[%c40] : memref<224xf32, #tpu.memory_space<smem>>
    %c0_220 = arith.constant 0 : index
    %c2_221 = arith.constant 2 : index
    %c2_222 = arith.constant 2 : index
    %c0_223 = arith.constant 0 : index
    %396 = vector.load %arg1[%c0_220, %c2_221, %c2_222, %c0_223] : memref<1x4x35x35xf32, #tpu.memory_space<vmem>>, vector<1x1x32x32xf32>
    %397 = vector.shape_cast %396 : vector<1x1x32x32xf32> to vector<32x32xf32>
    %398 = vector.broadcast %395 : f32 to vector<32x32xf32>
    %399 = arith.mulf %398, %397 : vector<32x32xf32>
    %400 = arith.addf %394, %399 : vector<32x32xf32>
    %c41 = arith.constant 41 : index
    %401 = memref.load %arg2[%c41] : memref<224xf32, #tpu.memory_space<smem>>
    %c0_224 = arith.constant 0 : index
    %c2_225 = arith.constant 2 : index
    %c2_226 = arith.constant 2 : index
    %c1_227 = arith.constant 1 : index
    %402 = vector.load %arg1[%c0_224, %c2_225, %c2_226, %c1_227] : memref<1x4x35x35xf32, #tpu.memory_space<vmem>>, vector<1x1x32x32xf32>
    %403 = vector.shape_cast %402 : vector<1x1x32x32xf32> to vector<32x32xf32>
    %404 = vector.broadcast %401 : f32 to vector<32x32xf32>
    %405 = arith.mulf %404, %403 : vector<32x32xf32>
    %406 = arith.addf %400, %405 : vector<32x32xf32>
    %c42 = arith.constant 42 : index
    %407 = memref.load %arg2[%c42] : memref<224xf32, #tpu.memory_space<smem>>
    %c0_228 = arith.constant 0 : index
    %c2_229 = arith.constant 2 : index
    %c2_230 = arith.constant 2 : index
    %c2_231 = arith.constant 2 : index
    %408 = vector.load %arg1[%c0_228, %c2_229, %c2_230, %c2_231] : memref<1x4x35x35xf32, #tpu.memory_space<vmem>>, vector<1x1x32x32xf32>
    %409 = vector.shape_cast %408 : vector<1x1x32x32xf32> to vector<32x32xf32>
    %410 = vector.broadcast %407 : f32 to vector<32x32xf32>
    %411 = arith.mulf %410, %409 : vector<32x32xf32>
    %412 = arith.addf %406, %411 : vector<32x32xf32>
    %c43 = arith.constant 43 : index
    %413 = memref.load %arg2[%c43] : memref<224xf32, #tpu.memory_space<smem>>
    %c0_232 = arith.constant 0 : index
    %c2_233 = arith.constant 2 : index
    %c2_234 = arith.constant 2 : index
    %c3_235 = arith.constant 3 : index
    %414 = vector.load %arg1[%c0_232, %c2_233, %c2_234, %c3_235] : memref<1x4x35x35xf32, #tpu.memory_space<vmem>>, vector<1x1x32x32xf32>
    %415 = vector.shape_cast %414 : vector<1x1x32x32xf32> to vector<32x32xf32>
    %416 = vector.broadcast %413 : f32 to vector<32x32xf32>
    %417 = arith.mulf %416, %415 : vector<32x32xf32>
    %418 = arith.addf %412, %417 : vector<32x32xf32>
    %c44 = arith.constant 44 : index
    %419 = memref.load %arg2[%c44] : memref<224xf32, #tpu.memory_space<smem>>
    %c0_236 = arith.constant 0 : index
    %c2_237 = arith.constant 2 : index
    %c3_238 = arith.constant 3 : index
    %c0_239 = arith.constant 0 : index
    %420 = vector.load %arg1[%c0_236, %c2_237, %c3_238, %c0_239] : memref<1x4x35x35xf32, #tpu.memory_space<vmem>>, vector<1x1x32x32xf32>
    %421 = vector.shape_cast %420 : vector<1x1x32x32xf32> to vector<32x32xf32>
    %422 = vector.broadcast %419 : f32 to vector<32x32xf32>
    %423 = arith.mulf %422, %421 : vector<32x32xf32>
    %424 = arith.addf %418, %423 : vector<32x32xf32>
    %c45 = arith.constant 45 : index
    %425 = memref.load %arg2[%c45] : memref<224xf32, #tpu.memory_space<smem>>
    %c0_240 = arith.constant 0 : index
    %c2_241 = arith.constant 2 : index
    %c3_242 = arith.constant 3 : index
    %c1_243 = arith.constant 1 : index
    %426 = vector.load %arg1[%c0_240, %c2_241, %c3_242, %c1_243] : memref<1x4x35x35xf32, #tpu.memory_space<vmem>>, vector<1x1x32x32xf32>
    %427 = vector.shape_cast %426 : vector<1x1x32x32xf32> to vector<32x32xf32>
    %428 = vector.broadcast %425 : f32 to vector<32x32xf32>
    %429 = arith.mulf %428, %427 : vector<32x32xf32>
    %430 = arith.addf %424, %429 : vector<32x32xf32>
    %c46 = arith.constant 46 : index
    %431 = memref.load %arg2[%c46] : memref<224xf32, #tpu.memory_space<smem>>
    %c0_244 = arith.constant 0 : index
    %c2_245 = arith.constant 2 : index
    %c3_246 = arith.constant 3 : index
    %c2_247 = arith.constant 2 : index
    %432 = vector.load %arg1[%c0_244, %c2_245, %c3_246, %c2_247] : memref<1x4x35x35xf32, #tpu.memory_space<vmem>>, vector<1x1x32x32xf32>
    %433 = vector.shape_cast %432 : vector<1x1x32x32xf32> to vector<32x32xf32>
    %434 = vector.broadcast %431 : f32 to vector<32x32xf32>
    %435 = arith.mulf %434, %433 : vector<32x32xf32>
    %436 = arith.addf %430, %435 : vector<32x32xf32>
    %c47 = arith.constant 47 : index
    %437 = memref.load %arg2[%c47] : memref<224xf32, #tpu.memory_space<smem>>
    %c0_248 = arith.constant 0 : index
    %c2_249 = arith.constant 2 : index
    %c3_250 = arith.constant 3 : index
    %c3_251 = arith.constant 3 : index
    %438 = vector.load %arg1[%c0_248, %c2_249, %c3_250, %c3_251] : memref<1x4x35x35xf32, #tpu.memory_space<vmem>>, vector<1x1x32x32xf32>
    %439 = vector.shape_cast %438 : vector<1x1x32x32xf32> to vector<32x32xf32>
    %440 = vector.broadcast %437 : f32 to vector<32x32xf32>
    %441 = arith.mulf %440, %439 : vector<32x32xf32>
    %442 = arith.addf %436, %441 : vector<32x32xf32>
    %c48 = arith.constant 48 : index
    %443 = memref.load %arg2[%c48] : memref<224xf32, #tpu.memory_space<smem>>
    %c0_252 = arith.constant 0 : index
    %c3_253 = arith.constant 3 : index
    %c0_254 = arith.constant 0 : index
    %c0_255 = arith.constant 0 : index
    %444 = vector.load %arg1[%c0_252, %c3_253, %c0_254, %c0_255] : memref<1x4x35x35xf32, #tpu.memory_space<vmem>>, vector<1x1x32x32xf32>
    %445 = vector.shape_cast %444 : vector<1x1x32x32xf32> to vector<32x32xf32>
    %446 = vector.broadcast %443 : f32 to vector<32x32xf32>
    %447 = arith.mulf %446, %445 : vector<32x32xf32>
    %448 = arith.addf %442, %447 : vector<32x32xf32>
    %c49 = arith.constant 49 : index
    %449 = memref.load %arg2[%c49] : memref<224xf32, #tpu.memory_space<smem>>
    %c0_256 = arith.constant 0 : index
    %c3_257 = arith.constant 3 : index
    %c0_258 = arith.constant 0 : index
    %c1_259 = arith.constant 1 : index
    %450 = vector.load %arg1[%c0_256, %c3_257, %c0_258, %c1_259] : memref<1x4x35x35xf32, #tpu.memory_space<vmem>>, vector<1x1x32x32xf32>
    %451 = vector.shape_cast %450 : vector<1x1x32x32xf32> to vector<32x32xf32>
    %452 = vector.broadcast %449 : f32 to vector<32x32xf32>
    %453 = arith.mulf %452, %451 : vector<32x32xf32>
    %454 = arith.addf %448, %453 : vector<32x32xf32>
    %c50 = arith.constant 50 : index
    %455 = memref.load %arg2[%c50] : memref<224xf32, #tpu.memory_space<smem>>
    %c0_260 = arith.constant 0 : index
    %c3_261 = arith.constant 3 : index
    %c0_262 = arith.constant 0 : index
    %c2_263 = arith.constant 2 : index
    %456 = vector.load %arg1[%c0_260, %c3_261, %c0_262, %c2_263] : memref<1x4x35x35xf32, #tpu.memory_space<vmem>>, vector<1x1x32x32xf32>
    %457 = vector.shape_cast %456 : vector<1x1x32x32xf32> to vector<32x32xf32>
    %458 = vector.broadcast %455 : f32 to vector<32x32xf32>
    %459 = arith.mulf %458, %457 : vector<32x32xf32>
    %460 = arith.addf %454, %459 : vector<32x32xf32>
    %c51 = arith.constant 51 : index
    %461 = memref.load %arg2[%c51] : memref<224xf32, #tpu.memory_space<smem>>
    %c0_264 = arith.constant 0 : index
    %c3_265 = arith.constant 3 : index
    %c0_266 = arith.constant 0 : index
    %c3_267 = arith.constant 3 : index
    %462 = vector.load %arg1[%c0_264, %c3_265, %c0_266, %c3_267] : memref<1x4x35x35xf32, #tpu.memory_space<vmem>>, vector<1x1x32x32xf32>
    %463 = vector.shape_cast %462 : vector<1x1x32x32xf32> to vector<32x32xf32>
    %464 = vector.broadcast %461 : f32 to vector<32x32xf32>
    %465 = arith.mulf %464, %463 : vector<32x32xf32>
    %466 = arith.addf %460, %465 : vector<32x32xf32>
    %c52 = arith.constant 52 : index
    %467 = memref.load %arg2[%c52] : memref<224xf32, #tpu.memory_space<smem>>
    %c0_268 = arith.constant 0 : index
    %c3_269 = arith.constant 3 : index
    %c1_270 = arith.constant 1 : index
    %c0_271 = arith.constant 0 : index
    %468 = vector.load %arg1[%c0_268, %c3_269, %c1_270, %c0_271] : memref<1x4x35x35xf32, #tpu.memory_space<vmem>>, vector<1x1x32x32xf32>
    %469 = vector.shape_cast %468 : vector<1x1x32x32xf32> to vector<32x32xf32>
    %470 = vector.broadcast %467 : f32 to vector<32x32xf32>
    %471 = arith.mulf %470, %469 : vector<32x32xf32>
    %472 = arith.addf %466, %471 : vector<32x32xf32>
    %c53 = arith.constant 53 : index
    %473 = memref.load %arg2[%c53] : memref<224xf32, #tpu.memory_space<smem>>
    %c0_272 = arith.constant 0 : index
    %c3_273 = arith.constant 3 : index
    %c1_274 = arith.constant 1 : index
    %c1_275 = arith.constant 1 : index
    %474 = vector.load %arg1[%c0_272, %c3_273, %c1_274, %c1_275] : memref<1x4x35x35xf32, #tpu.memory_space<vmem>>, vector<1x1x32x32xf32>
    %475 = vector.shape_cast %474 : vector<1x1x32x32xf32> to vector<32x32xf32>
    %476 = vector.broadcast %473 : f32 to vector<32x32xf32>
    %477 = arith.mulf %476, %475 : vector<32x32xf32>
    %478 = arith.addf %472, %477 : vector<32x32xf32>
    %c54 = arith.constant 54 : index
    %479 = memref.load %arg2[%c54] : memref<224xf32, #tpu.memory_space<smem>>
    %c0_276 = arith.constant 0 : index
    %c3_277 = arith.constant 3 : index
    %c1_278 = arith.constant 1 : index
    %c2_279 = arith.constant 2 : index
    %480 = vector.load %arg1[%c0_276, %c3_277, %c1_278, %c2_279] : memref<1x4x35x35xf32, #tpu.memory_space<vmem>>, vector<1x1x32x32xf32>
    %481 = vector.shape_cast %480 : vector<1x1x32x32xf32> to vector<32x32xf32>
    %482 = vector.broadcast %479 : f32 to vector<32x32xf32>
    %483 = arith.mulf %482, %481 : vector<32x32xf32>
    %484 = arith.addf %478, %483 : vector<32x32xf32>
    %c55 = arith.constant 55 : index
    %485 = memref.load %arg2[%c55] : memref<224xf32, #tpu.memory_space<smem>>
    %c0_280 = arith.constant 0 : index
    %c3_281 = arith.constant 3 : index
    %c1_282 = arith.constant 1 : index
    %c3_283 = arith.constant 3 : index
    %486 = vector.load %arg1[%c0_280, %c3_281, %c1_282, %c3_283] : memref<1x4x35x35xf32, #tpu.memory_space<vmem>>, vector<1x1x32x32xf32>
    %487 = vector.shape_cast %486 : vector<1x1x32x32xf32> to vector<32x32xf32>
    %488 = vector.broadcast %485 : f32 to vector<32x32xf32>
    %489 = arith.mulf %488, %487 : vector<32x32xf32>
    %490 = arith.addf %484, %489 : vector<32x32xf32>
    %c56 = arith.constant 56 : index
    %491 = memref.load %arg2[%c56] : memref<224xf32, #tpu.memory_space<smem>>
    %c0_284 = arith.constant 0 : index
    %c3_285 = arith.constant 3 : index
    %c2_286 = arith.constant 2 : index
    %c0_287 = arith.constant 0 : index
    %492 = vector.load %arg1[%c0_284, %c3_285, %c2_286, %c0_287] : memref<1x4x35x35xf32, #tpu.memory_space<vmem>>, vector<1x1x32x32xf32>
    %493 = vector.shape_cast %492 : vector<1x1x32x32xf32> to vector<32x32xf32>
    %494 = vector.broadcast %491 : f32 to vector<32x32xf32>
    %495 = arith.mulf %494, %493 : vector<32x32xf32>
    %496 = arith.addf %490, %495 : vector<32x32xf32>
    %c57 = arith.constant 57 : index
    %497 = memref.load %arg2[%c57] : memref<224xf32, #tpu.memory_space<smem>>
    %c0_288 = arith.constant 0 : index
    %c3_289 = arith.constant 3 : index
    %c2_290 = arith.constant 2 : index
    %c1_291 = arith.constant 1 : index
    %498 = vector.load %arg1[%c0_288, %c3_289, %c2_290, %c1_291] : memref<1x4x35x35xf32, #tpu.memory_space<vmem>>, vector<1x1x32x32xf32>
    %499 = vector.shape_cast %498 : vector<1x1x32x32xf32> to vector<32x32xf32>
    %500 = vector.broadcast %497 : f32 to vector<32x32xf32>
    %501 = arith.mulf %500, %499 : vector<32x32xf32>
    %502 = arith.addf %496, %501 : vector<32x32xf32>
    %c58 = arith.constant 58 : index
    %503 = memref.load %arg2[%c58] : memref<224xf32, #tpu.memory_space<smem>>
    %c0_292 = arith.constant 0 : index
    %c3_293 = arith.constant 3 : index
    %c2_294 = arith.constant 2 : index
    %c2_295 = arith.constant 2 : index
    %504 = vector.load %arg1[%c0_292, %c3_293, %c2_294, %c2_295] : memref<1x4x35x35xf32, #tpu.memory_space<vmem>>, vector<1x1x32x32xf32>
    %505 = vector.shape_cast %504 : vector<1x1x32x32xf32> to vector<32x32xf32>
    %506 = vector.broadcast %503 : f32 to vector<32x32xf32>
    %507 = arith.mulf %506, %505 : vector<32x32xf32>
    %508 = arith.addf %502, %507 : vector<32x32xf32>
    %c59 = arith.constant 59 : index
    %509 = memref.load %arg2[%c59] : memref<224xf32, #tpu.memory_space<smem>>
    %c0_296 = arith.constant 0 : index
    %c3_297 = arith.constant 3 : index
    %c2_298 = arith.constant 2 : index
    %c3_299 = arith.constant 3 : index
    %510 = vector.load %arg1[%c0_296, %c3_297, %c2_298, %c3_299] : memref<1x4x35x35xf32, #tpu.memory_space<vmem>>, vector<1x1x32x32xf32>
    %511 = vector.shape_cast %510 : vector<1x1x32x32xf32> to vector<32x32xf32>
    %512 = vector.broadcast %509 : f32 to vector<32x32xf32>
    %513 = arith.mulf %512, %511 : vector<32x32xf32>
    %514 = arith.addf %508, %513 : vector<32x32xf32>
    %c60 = arith.constant 60 : index
    %515 = memref.load %arg2[%c60] : memref<224xf32, #tpu.memory_space<smem>>
    %c0_300 = arith.constant 0 : index
    %c3_301 = arith.constant 3 : index
    %c3_302 = arith.constant 3 : index
    %c0_303 = arith.constant 0 : index
    %516 = vector.load %arg1[%c0_300, %c3_301, %c3_302, %c0_303] : memref<1x4x35x35xf32, #tpu.memory_space<vmem>>, vector<1x1x32x32xf32>
    %517 = vector.shape_cast %516 : vector<1x1x32x32xf32> to vector<32x32xf32>
    %518 = vector.broadcast %515 : f32 to vector<32x32xf32>
    %519 = arith.mulf %518, %517 : vector<32x32xf32>
    %520 = arith.addf %514, %519 : vector<32x32xf32>
    %c61 = arith.constant 61 : index
    %521 = memref.load %arg2[%c61] : memref<224xf32, #tpu.memory_space<smem>>
    %c0_304 = arith.constant 0 : index
    %c3_305 = arith.constant 3 : index
    %c3_306 = arith.constant 3 : index
    %c1_307 = arith.constant 1 : index
    %522 = vector.load %arg1[%c0_304, %c3_305, %c3_306, %c1_307] : memref<1x4x35x35xf32, #tpu.memory_space<vmem>>, vector<1x1x32x32xf32>
    %523 = vector.shape_cast %522 : vector<1x1x32x32xf32> to vector<32x32xf32>
    %524 = vector.broadcast %521 : f32 to vector<32x32xf32>
    %525 = arith.mulf %524, %523 : vector<32x32xf32>
    %526 = arith.addf %520, %525 : vector<32x32xf32>
    %c62 = arith.constant 62 : index
    %527 = memref.load %arg2[%c62] : memref<224xf32, #tpu.memory_space<smem>>
    %c0_308 = arith.constant 0 : index
    %c3_309 = arith.constant 3 : index
    %c3_310 = arith.constant 3 : index
    %c2_311 = arith.constant 2 : index
    %528 = vector.load %arg1[%c0_308, %c3_309, %c3_310, %c2_311] : memref<1x4x35x35xf32, #tpu.memory_space<vmem>>, vector<1x1x32x32xf32>
    %529 = vector.shape_cast %528 : vector<1x1x32x32xf32> to vector<32x32xf32>
    %530 = vector.broadcast %527 : f32 to vector<32x32xf32>
    %531 = arith.mulf %530, %529 : vector<32x32xf32>
    %532 = arith.addf %526, %531 : vector<32x32xf32>
    %c63 = arith.constant 63 : index
    %533 = memref.load %arg2[%c63] : memref<224xf32, #tpu.memory_space<smem>>
    %c0_312 = arith.constant 0 : index
    %c3_313 = arith.constant 3 : index
    %c3_314 = arith.constant 3 : index
    %c3_315 = arith.constant 3 : index
    %534 = vector.load %arg1[%c0_312, %c3_313, %c3_314, %c3_315] : memref<1x4x35x35xf32, #tpu.memory_space<vmem>>, vector<1x1x32x32xf32>
    %535 = vector.shape_cast %534 : vector<1x1x32x32xf32> to vector<32x32xf32>
    %536 = vector.broadcast %533 : f32 to vector<32x32xf32>
    %537 = arith.mulf %536, %535 : vector<32x32xf32>
    %538 = arith.addf %532, %537 : vector<32x32xf32>
    %c128 = arith.constant 128 : index
    %539 = memref.load %arg2[%c128] : memref<224xf32, #tpu.memory_space<smem>>
    %540 = vector.broadcast %539 : f32 to vector<32x32xf32>
    %541 = arith.addf %538, %540 : vector<32x32xf32>
    %cst_316 = arith.constant 0.000000e+00 : f32
    %542 = vector.broadcast %cst_316 : f32 to vector<32x32xf32>
    %c64 = arith.constant 64 : index
    %543 = memref.load %arg2[%c64] : memref<224xf32, #tpu.memory_space<smem>>
    %c0_317 = arith.constant 0 : index
    %c0_318 = arith.constant 0 : index
    %c0_319 = arith.constant 0 : index
    %c0_320 = arith.constant 0 : index
    %544 = vector.load %arg1[%c0_317, %c0_318, %c0_319, %c0_320] : memref<1x4x35x35xf32, #tpu.memory_space<vmem>>, vector<1x1x32x32xf32>
    %545 = vector.shape_cast %544 : vector<1x1x32x32xf32> to vector<32x32xf32>
    %546 = vector.broadcast %543 : f32 to vector<32x32xf32>
    %547 = arith.mulf %546, %545 : vector<32x32xf32>
    %548 = arith.addf %542, %547 : vector<32x32xf32>
    %c65 = arith.constant 65 : index
    %549 = memref.load %arg2[%c65] : memref<224xf32, #tpu.memory_space<smem>>
    %c0_321 = arith.constant 0 : index
    %c0_322 = arith.constant 0 : index
    %c0_323 = arith.constant 0 : index
    %c1_324 = arith.constant 1 : index
    %550 = vector.load %arg1[%c0_321, %c0_322, %c0_323, %c1_324] : memref<1x4x35x35xf32, #tpu.memory_space<vmem>>, vector<1x1x32x32xf32>
    %551 = vector.shape_cast %550 : vector<1x1x32x32xf32> to vector<32x32xf32>
    %552 = vector.broadcast %549 : f32 to vector<32x32xf32>
    %553 = arith.mulf %552, %551 : vector<32x32xf32>
    %554 = arith.addf %548, %553 : vector<32x32xf32>
    %c66 = arith.constant 66 : index
    %555 = memref.load %arg2[%c66] : memref<224xf32, #tpu.memory_space<smem>>
    %c0_325 = arith.constant 0 : index
    %c0_326 = arith.constant 0 : index
    %c0_327 = arith.constant 0 : index
    %c2_328 = arith.constant 2 : index
    %556 = vector.load %arg1[%c0_325, %c0_326, %c0_327, %c2_328] : memref<1x4x35x35xf32, #tpu.memory_space<vmem>>, vector<1x1x32x32xf32>
    %557 = vector.shape_cast %556 : vector<1x1x32x32xf32> to vector<32x32xf32>
    %558 = vector.broadcast %555 : f32 to vector<32x32xf32>
    %559 = arith.mulf %558, %557 : vector<32x32xf32>
    %560 = arith.addf %554, %559 : vector<32x32xf32>
    %c67 = arith.constant 67 : index
    %561 = memref.load %arg2[%c67] : memref<224xf32, #tpu.memory_space<smem>>
    %c0_329 = arith.constant 0 : index
    %c0_330 = arith.constant 0 : index
    %c0_331 = arith.constant 0 : index
    %c3_332 = arith.constant 3 : index
    %562 = vector.load %arg1[%c0_329, %c0_330, %c0_331, %c3_332] : memref<1x4x35x35xf32, #tpu.memory_space<vmem>>, vector<1x1x32x32xf32>
    %563 = vector.shape_cast %562 : vector<1x1x32x32xf32> to vector<32x32xf32>
    %564 = vector.broadcast %561 : f32 to vector<32x32xf32>
    %565 = arith.mulf %564, %563 : vector<32x32xf32>
    %566 = arith.addf %560, %565 : vector<32x32xf32>
    %c68 = arith.constant 68 : index
    %567 = memref.load %arg2[%c68] : memref<224xf32, #tpu.memory_space<smem>>
    %c0_333 = arith.constant 0 : index
    %c0_334 = arith.constant 0 : index
    %c1_335 = arith.constant 1 : index
    %c0_336 = arith.constant 0 : index
    %568 = vector.load %arg1[%c0_333, %c0_334, %c1_335, %c0_336] : memref<1x4x35x35xf32, #tpu.memory_space<vmem>>, vector<1x1x32x32xf32>
    %569 = vector.shape_cast %568 : vector<1x1x32x32xf32> to vector<32x32xf32>
    %570 = vector.broadcast %567 : f32 to vector<32x32xf32>
    %571 = arith.mulf %570, %569 : vector<32x32xf32>
    %572 = arith.addf %566, %571 : vector<32x32xf32>
    %c69 = arith.constant 69 : index
    %573 = memref.load %arg2[%c69] : memref<224xf32, #tpu.memory_space<smem>>
    %c0_337 = arith.constant 0 : index
    %c0_338 = arith.constant 0 : index
    %c1_339 = arith.constant 1 : index
    %c1_340 = arith.constant 1 : index
    %574 = vector.load %arg1[%c0_337, %c0_338, %c1_339, %c1_340] : memref<1x4x35x35xf32, #tpu.memory_space<vmem>>, vector<1x1x32x32xf32>
    %575 = vector.shape_cast %574 : vector<1x1x32x32xf32> to vector<32x32xf32>
    %576 = vector.broadcast %573 : f32 to vector<32x32xf32>
    %577 = arith.mulf %576, %575 : vector<32x32xf32>
    %578 = arith.addf %572, %577 : vector<32x32xf32>
    %c70 = arith.constant 70 : index
    %579 = memref.load %arg2[%c70] : memref<224xf32, #tpu.memory_space<smem>>
    %c0_341 = arith.constant 0 : index
    %c0_342 = arith.constant 0 : index
    %c1_343 = arith.constant 1 : index
    %c2_344 = arith.constant 2 : index
    %580 = vector.load %arg1[%c0_341, %c0_342, %c1_343, %c2_344] : memref<1x4x35x35xf32, #tpu.memory_space<vmem>>, vector<1x1x32x32xf32>
    %581 = vector.shape_cast %580 : vector<1x1x32x32xf32> to vector<32x32xf32>
    %582 = vector.broadcast %579 : f32 to vector<32x32xf32>
    %583 = arith.mulf %582, %581 : vector<32x32xf32>
    %584 = arith.addf %578, %583 : vector<32x32xf32>
    %c71 = arith.constant 71 : index
    %585 = memref.load %arg2[%c71] : memref<224xf32, #tpu.memory_space<smem>>
    %c0_345 = arith.constant 0 : index
    %c0_346 = arith.constant 0 : index
    %c1_347 = arith.constant 1 : index
    %c3_348 = arith.constant 3 : index
    %586 = vector.load %arg1[%c0_345, %c0_346, %c1_347, %c3_348] : memref<1x4x35x35xf32, #tpu.memory_space<vmem>>, vector<1x1x32x32xf32>
    %587 = vector.shape_cast %586 : vector<1x1x32x32xf32> to vector<32x32xf32>
    %588 = vector.broadcast %585 : f32 to vector<32x32xf32>
    %589 = arith.mulf %588, %587 : vector<32x32xf32>
    %590 = arith.addf %584, %589 : vector<32x32xf32>
    %c72 = arith.constant 72 : index
    %591 = memref.load %arg2[%c72] : memref<224xf32, #tpu.memory_space<smem>>
    %c0_349 = arith.constant 0 : index
    %c0_350 = arith.constant 0 : index
    %c2_351 = arith.constant 2 : index
    %c0_352 = arith.constant 0 : index
    %592 = vector.load %arg1[%c0_349, %c0_350, %c2_351, %c0_352] : memref<1x4x35x35xf32, #tpu.memory_space<vmem>>, vector<1x1x32x32xf32>
    %593 = vector.shape_cast %592 : vector<1x1x32x32xf32> to vector<32x32xf32>
    %594 = vector.broadcast %591 : f32 to vector<32x32xf32>
    %595 = arith.mulf %594, %593 : vector<32x32xf32>
    %596 = arith.addf %590, %595 : vector<32x32xf32>
    %c73 = arith.constant 73 : index
    %597 = memref.load %arg2[%c73] : memref<224xf32, #tpu.memory_space<smem>>
    %c0_353 = arith.constant 0 : index
    %c0_354 = arith.constant 0 : index
    %c2_355 = arith.constant 2 : index
    %c1_356 = arith.constant 1 : index
    %598 = vector.load %arg1[%c0_353, %c0_354, %c2_355, %c1_356] : memref<1x4x35x35xf32, #tpu.memory_space<vmem>>, vector<1x1x32x32xf32>
    %599 = vector.shape_cast %598 : vector<1x1x32x32xf32> to vector<32x32xf32>
    %600 = vector.broadcast %597 : f32 to vector<32x32xf32>
    %601 = arith.mulf %600, %599 : vector<32x32xf32>
    %602 = arith.addf %596, %601 : vector<32x32xf32>
    %c74 = arith.constant 74 : index
    %603 = memref.load %arg2[%c74] : memref<224xf32, #tpu.memory_space<smem>>
    %c0_357 = arith.constant 0 : index
    %c0_358 = arith.constant 0 : index
    %c2_359 = arith.constant 2 : index
    %c2_360 = arith.constant 2 : index
    %604 = vector.load %arg1[%c0_357, %c0_358, %c2_359, %c2_360] : memref<1x4x35x35xf32, #tpu.memory_space<vmem>>, vector<1x1x32x32xf32>
    %605 = vector.shape_cast %604 : vector<1x1x32x32xf32> to vector<32x32xf32>
    %606 = vector.broadcast %603 : f32 to vector<32x32xf32>
    %607 = arith.mulf %606, %605 : vector<32x32xf32>
    %608 = arith.addf %602, %607 : vector<32x32xf32>
    %c75 = arith.constant 75 : index
    %609 = memref.load %arg2[%c75] : memref<224xf32, #tpu.memory_space<smem>>
    %c0_361 = arith.constant 0 : index
    %c0_362 = arith.constant 0 : index
    %c2_363 = arith.constant 2 : index
    %c3_364 = arith.constant 3 : index
    %610 = vector.load %arg1[%c0_361, %c0_362, %c2_363, %c3_364] : memref<1x4x35x35xf32, #tpu.memory_space<vmem>>, vector<1x1x32x32xf32>
    %611 = vector.shape_cast %610 : vector<1x1x32x32xf32> to vector<32x32xf32>
    %612 = vector.broadcast %609 : f32 to vector<32x32xf32>
    %613 = arith.mulf %612, %611 : vector<32x32xf32>
    %614 = arith.addf %608, %613 : vector<32x32xf32>
    %c76 = arith.constant 76 : index
    %615 = memref.load %arg2[%c76] : memref<224xf32, #tpu.memory_space<smem>>
    %c0_365 = arith.constant 0 : index
    %c0_366 = arith.constant 0 : index
    %c3_367 = arith.constant 3 : index
    %c0_368 = arith.constant 0 : index
    %616 = vector.load %arg1[%c0_365, %c0_366, %c3_367, %c0_368] : memref<1x4x35x35xf32, #tpu.memory_space<vmem>>, vector<1x1x32x32xf32>
    %617 = vector.shape_cast %616 : vector<1x1x32x32xf32> to vector<32x32xf32>
    %618 = vector.broadcast %615 : f32 to vector<32x32xf32>
    %619 = arith.mulf %618, %617 : vector<32x32xf32>
    %620 = arith.addf %614, %619 : vector<32x32xf32>
    %c77 = arith.constant 77 : index
    %621 = memref.load %arg2[%c77] : memref<224xf32, #tpu.memory_space<smem>>
    %c0_369 = arith.constant 0 : index
    %c0_370 = arith.constant 0 : index
    %c3_371 = arith.constant 3 : index
    %c1_372 = arith.constant 1 : index
    %622 = vector.load %arg1[%c0_369, %c0_370, %c3_371, %c1_372] : memref<1x4x35x35xf32, #tpu.memory_space<vmem>>, vector<1x1x32x32xf32>
    %623 = vector.shape_cast %622 : vector<1x1x32x32xf32> to vector<32x32xf32>
    %624 = vector.broadcast %621 : f32 to vector<32x32xf32>
    %625 = arith.mulf %624, %623 : vector<32x32xf32>
    %626 = arith.addf %620, %625 : vector<32x32xf32>
    %c78 = arith.constant 78 : index
    %627 = memref.load %arg2[%c78] : memref<224xf32, #tpu.memory_space<smem>>
    %c0_373 = arith.constant 0 : index
    %c0_374 = arith.constant 0 : index
    %c3_375 = arith.constant 3 : index
    %c2_376 = arith.constant 2 : index
    %628 = vector.load %arg1[%c0_373, %c0_374, %c3_375, %c2_376] : memref<1x4x35x35xf32, #tpu.memory_space<vmem>>, vector<1x1x32x32xf32>
    %629 = vector.shape_cast %628 : vector<1x1x32x32xf32> to vector<32x32xf32>
    %630 = vector.broadcast %627 : f32 to vector<32x32xf32>
    %631 = arith.mulf %630, %629 : vector<32x32xf32>
    %632 = arith.addf %626, %631 : vector<32x32xf32>
    %c79 = arith.constant 79 : index
    %633 = memref.load %arg2[%c79] : memref<224xf32, #tpu.memory_space<smem>>
    %c0_377 = arith.constant 0 : index
    %c0_378 = arith.constant 0 : index
    %c3_379 = arith.constant 3 : index
    %c3_380 = arith.constant 3 : index
    %634 = vector.load %arg1[%c0_377, %c0_378, %c3_379, %c3_380] : memref<1x4x35x35xf32, #tpu.memory_space<vmem>>, vector<1x1x32x32xf32>
    %635 = vector.shape_cast %634 : vector<1x1x32x32xf32> to vector<32x32xf32>
    %636 = vector.broadcast %633 : f32 to vector<32x32xf32>
    %637 = arith.mulf %636, %635 : vector<32x32xf32>
    %638 = arith.addf %632, %637 : vector<32x32xf32>
    %c80 = arith.constant 80 : index
    %639 = memref.load %arg2[%c80] : memref<224xf32, #tpu.memory_space<smem>>
    %c0_381 = arith.constant 0 : index
    %c1_382 = arith.constant 1 : index
    %c0_383 = arith.constant 0 : index
    %c0_384 = arith.constant 0 : index
    %640 = vector.load %arg1[%c0_381, %c1_382, %c0_383, %c0_384] : memref<1x4x35x35xf32, #tpu.memory_space<vmem>>, vector<1x1x32x32xf32>
    %641 = vector.shape_cast %640 : vector<1x1x32x32xf32> to vector<32x32xf32>
    %642 = vector.broadcast %639 : f32 to vector<32x32xf32>
    %643 = arith.mulf %642, %641 : vector<32x32xf32>
    %644 = arith.addf %638, %643 : vector<32x32xf32>
    %c81 = arith.constant 81 : index
    %645 = memref.load %arg2[%c81] : memref<224xf32, #tpu.memory_space<smem>>
    %c0_385 = arith.constant 0 : index
    %c1_386 = arith.constant 1 : index
    %c0_387 = arith.constant 0 : index
    %c1_388 = arith.constant 1 : index
    %646 = vector.load %arg1[%c0_385, %c1_386, %c0_387, %c1_388] : memref<1x4x35x35xf32, #tpu.memory_space<vmem>>, vector<1x1x32x32xf32>
    %647 = vector.shape_cast %646 : vector<1x1x32x32xf32> to vector<32x32xf32>
    %648 = vector.broadcast %645 : f32 to vector<32x32xf32>
    %649 = arith.mulf %648, %647 : vector<32x32xf32>
    %650 = arith.addf %644, %649 : vector<32x32xf32>
    %c82 = arith.constant 82 : index
    %651 = memref.load %arg2[%c82] : memref<224xf32, #tpu.memory_space<smem>>
    %c0_389 = arith.constant 0 : index
    %c1_390 = arith.constant 1 : index
    %c0_391 = arith.constant 0 : index
    %c2_392 = arith.constant 2 : index
    %652 = vector.load %arg1[%c0_389, %c1_390, %c0_391, %c2_392] : memref<1x4x35x35xf32, #tpu.memory_space<vmem>>, vector<1x1x32x32xf32>
    %653 = vector.shape_cast %652 : vector<1x1x32x32xf32> to vector<32x32xf32>
    %654 = vector.broadcast %651 : f32 to vector<32x32xf32>
    %655 = arith.mulf %654, %653 : vector<32x32xf32>
    %656 = arith.addf %650, %655 : vector<32x32xf32>
    %c83 = arith.constant 83 : index
    %657 = memref.load %arg2[%c83] : memref<224xf32, #tpu.memory_space<smem>>
    %c0_393 = arith.constant 0 : index
    %c1_394 = arith.constant 1 : index
    %c0_395 = arith.constant 0 : index
    %c3_396 = arith.constant 3 : index
    %658 = vector.load %arg1[%c0_393, %c1_394, %c0_395, %c3_396] : memref<1x4x35x35xf32, #tpu.memory_space<vmem>>, vector<1x1x32x32xf32>
    %659 = vector.shape_cast %658 : vector<1x1x32x32xf32> to vector<32x32xf32>
    %660 = vector.broadcast %657 : f32 to vector<32x32xf32>
    %661 = arith.mulf %660, %659 : vector<32x32xf32>
    %662 = arith.addf %656, %661 : vector<32x32xf32>
    %c84 = arith.constant 84 : index
    %663 = memref.load %arg2[%c84] : memref<224xf32, #tpu.memory_space<smem>>
    %c0_397 = arith.constant 0 : index
    %c1_398 = arith.constant 1 : index
    %c1_399 = arith.constant 1 : index
    %c0_400 = arith.constant 0 : index
    %664 = vector.load %arg1[%c0_397, %c1_398, %c1_399, %c0_400] : memref<1x4x35x35xf32, #tpu.memory_space<vmem>>, vector<1x1x32x32xf32>
    %665 = vector.shape_cast %664 : vector<1x1x32x32xf32> to vector<32x32xf32>
    %666 = vector.broadcast %663 : f32 to vector<32x32xf32>
    %667 = arith.mulf %666, %665 : vector<32x32xf32>
    %668 = arith.addf %662, %667 : vector<32x32xf32>
    %c85 = arith.constant 85 : index
    %669 = memref.load %arg2[%c85] : memref<224xf32, #tpu.memory_space<smem>>
    %c0_401 = arith.constant 0 : index
    %c1_402 = arith.constant 1 : index
    %c1_403 = arith.constant 1 : index
    %c1_404 = arith.constant 1 : index
    %670 = vector.load %arg1[%c0_401, %c1_402, %c1_403, %c1_404] : memref<1x4x35x35xf32, #tpu.memory_space<vmem>>, vector<1x1x32x32xf32>
    %671 = vector.shape_cast %670 : vector<1x1x32x32xf32> to vector<32x32xf32>
    %672 = vector.broadcast %669 : f32 to vector<32x32xf32>
    %673 = arith.mulf %672, %671 : vector<32x32xf32>
    %674 = arith.addf %668, %673 : vector<32x32xf32>
    %c86 = arith.constant 86 : index
    %675 = memref.load %arg2[%c86] : memref<224xf32, #tpu.memory_space<smem>>
    %c0_405 = arith.constant 0 : index
    %c1_406 = arith.constant 1 : index
    %c1_407 = arith.constant 1 : index
    %c2_408 = arith.constant 2 : index
    %676 = vector.load %arg1[%c0_405, %c1_406, %c1_407, %c2_408] : memref<1x4x35x35xf32, #tpu.memory_space<vmem>>, vector<1x1x32x32xf32>
    %677 = vector.shape_cast %676 : vector<1x1x32x32xf32> to vector<32x32xf32>
    %678 = vector.broadcast %675 : f32 to vector<32x32xf32>
    %679 = arith.mulf %678, %677 : vector<32x32xf32>
    %680 = arith.addf %674, %679 : vector<32x32xf32>
    %c87 = arith.constant 87 : index
    %681 = memref.load %arg2[%c87] : memref<224xf32, #tpu.memory_space<smem>>
    %c0_409 = arith.constant 0 : index
    %c1_410 = arith.constant 1 : index
    %c1_411 = arith.constant 1 : index
    %c3_412 = arith.constant 3 : index
    %682 = vector.load %arg1[%c0_409, %c1_410, %c1_411, %c3_412] : memref<1x4x35x35xf32, #tpu.memory_space<vmem>>, vector<1x1x32x32xf32>
    %683 = vector.shape_cast %682 : vector<1x1x32x32xf32> to vector<32x32xf32>
    %684 = vector.broadcast %681 : f32 to vector<32x32xf32>
    %685 = arith.mulf %684, %683 : vector<32x32xf32>
    %686 = arith.addf %680, %685 : vector<32x32xf32>
    %c88 = arith.constant 88 : index
    %687 = memref.load %arg2[%c88] : memref<224xf32, #tpu.memory_space<smem>>
    %c0_413 = arith.constant 0 : index
    %c1_414 = arith.constant 1 : index
    %c2_415 = arith.constant 2 : index
    %c0_416 = arith.constant 0 : index
    %688 = vector.load %arg1[%c0_413, %c1_414, %c2_415, %c0_416] : memref<1x4x35x35xf32, #tpu.memory_space<vmem>>, vector<1x1x32x32xf32>
    %689 = vector.shape_cast %688 : vector<1x1x32x32xf32> to vector<32x32xf32>
    %690 = vector.broadcast %687 : f32 to vector<32x32xf32>
    %691 = arith.mulf %690, %689 : vector<32x32xf32>
    %692 = arith.addf %686, %691 : vector<32x32xf32>
    %c89 = arith.constant 89 : index
    %693 = memref.load %arg2[%c89] : memref<224xf32, #tpu.memory_space<smem>>
    %c0_417 = arith.constant 0 : index
    %c1_418 = arith.constant 1 : index
    %c2_419 = arith.constant 2 : index
    %c1_420 = arith.constant 1 : index
    %694 = vector.load %arg1[%c0_417, %c1_418, %c2_419, %c1_420] : memref<1x4x35x35xf32, #tpu.memory_space<vmem>>, vector<1x1x32x32xf32>
    %695 = vector.shape_cast %694 : vector<1x1x32x32xf32> to vector<32x32xf32>
    %696 = vector.broadcast %693 : f32 to vector<32x32xf32>
    %697 = arith.mulf %696, %695 : vector<32x32xf32>
    %698 = arith.addf %692, %697 : vector<32x32xf32>
    %c90 = arith.constant 90 : index
    %699 = memref.load %arg2[%c90] : memref<224xf32, #tpu.memory_space<smem>>
    %c0_421 = arith.constant 0 : index
    %c1_422 = arith.constant 1 : index
    %c2_423 = arith.constant 2 : index
    %c2_424 = arith.constant 2 : index
    %700 = vector.load %arg1[%c0_421, %c1_422, %c2_423, %c2_424] : memref<1x4x35x35xf32, #tpu.memory_space<vmem>>, vector<1x1x32x32xf32>
    %701 = vector.shape_cast %700 : vector<1x1x32x32xf32> to vector<32x32xf32>
    %702 = vector.broadcast %699 : f32 to vector<32x32xf32>
    %703 = arith.mulf %702, %701 : vector<32x32xf32>
    %704 = arith.addf %698, %703 : vector<32x32xf32>
    %c91 = arith.constant 91 : index
    %705 = memref.load %arg2[%c91] : memref<224xf32, #tpu.memory_space<smem>>
    %c0_425 = arith.constant 0 : index
    %c1_426 = arith.constant 1 : index
    %c2_427 = arith.constant 2 : index
    %c3_428 = arith.constant 3 : index
    %706 = vector.load %arg1[%c0_425, %c1_426, %c2_427, %c3_428] : memref<1x4x35x35xf32, #tpu.memory_space<vmem>>, vector<1x1x32x32xf32>
    %707 = vector.shape_cast %706 : vector<1x1x32x32xf32> to vector<32x32xf32>
    %708 = vector.broadcast %705 : f32 to vector<32x32xf32>
    %709 = arith.mulf %708, %707 : vector<32x32xf32>
    %710 = arith.addf %704, %709 : vector<32x32xf32>
    %c92 = arith.constant 92 : index
    %711 = memref.load %arg2[%c92] : memref<224xf32, #tpu.memory_space<smem>>
    %c0_429 = arith.constant 0 : index
    %c1_430 = arith.constant 1 : index
    %c3_431 = arith.constant 3 : index
    %c0_432 = arith.constant 0 : index
    %712 = vector.load %arg1[%c0_429, %c1_430, %c3_431, %c0_432] : memref<1x4x35x35xf32, #tpu.memory_space<vmem>>, vector<1x1x32x32xf32>
    %713 = vector.shape_cast %712 : vector<1x1x32x32xf32> to vector<32x32xf32>
    %714 = vector.broadcast %711 : f32 to vector<32x32xf32>
    %715 = arith.mulf %714, %713 : vector<32x32xf32>
    %716 = arith.addf %710, %715 : vector<32x32xf32>
    %c93 = arith.constant 93 : index
    %717 = memref.load %arg2[%c93] : memref<224xf32, #tpu.memory_space<smem>>
    %c0_433 = arith.constant 0 : index
    %c1_434 = arith.constant 1 : index
    %c3_435 = arith.constant 3 : index
    %c1_436 = arith.constant 1 : index
    %718 = vector.load %arg1[%c0_433, %c1_434, %c3_435, %c1_436] : memref<1x4x35x35xf32, #tpu.memory_space<vmem>>, vector<1x1x32x32xf32>
    %719 = vector.shape_cast %718 : vector<1x1x32x32xf32> to vector<32x32xf32>
    %720 = vector.broadcast %717 : f32 to vector<32x32xf32>
    %721 = arith.mulf %720, %719 : vector<32x32xf32>
    %722 = arith.addf %716, %721 : vector<32x32xf32>
    %c94 = arith.constant 94 : index
    %723 = memref.load %arg2[%c94] : memref<224xf32, #tpu.memory_space<smem>>
    %c0_437 = arith.constant 0 : index
    %c1_438 = arith.constant 1 : index
    %c3_439 = arith.constant 3 : index
    %c2_440 = arith.constant 2 : index
    %724 = vector.load %arg1[%c0_437, %c1_438, %c3_439, %c2_440] : memref<1x4x35x35xf32, #tpu.memory_space<vmem>>, vector<1x1x32x32xf32>
    %725 = vector.shape_cast %724 : vector<1x1x32x32xf32> to vector<32x32xf32>
    %726 = vector.broadcast %723 : f32 to vector<32x32xf32>
    %727 = arith.mulf %726, %725 : vector<32x32xf32>
    %728 = arith.addf %722, %727 : vector<32x32xf32>
    %c95 = arith.constant 95 : index
    %729 = memref.load %arg2[%c95] : memref<224xf32, #tpu.memory_space<smem>>
    %c0_441 = arith.constant 0 : index
    %c1_442 = arith.constant 1 : index
    %c3_443 = arith.constant 3 : index
    %c3_444 = arith.constant 3 : index
    %730 = vector.load %arg1[%c0_441, %c1_442, %c3_443, %c3_444] : memref<1x4x35x35xf32, #tpu.memory_space<vmem>>, vector<1x1x32x32xf32>
    %731 = vector.shape_cast %730 : vector<1x1x32x32xf32> to vector<32x32xf32>
    %732 = vector.broadcast %729 : f32 to vector<32x32xf32>
    %733 = arith.mulf %732, %731 : vector<32x32xf32>
    %734 = arith.addf %728, %733 : vector<32x32xf32>
    %c96 = arith.constant 96 : index
    %735 = memref.load %arg2[%c96] : memref<224xf32, #tpu.memory_space<smem>>
    %c0_445 = arith.constant 0 : index
    %c2_446 = arith.constant 2 : index
    %c0_447 = arith.constant 0 : index
    %c0_448 = arith.constant 0 : index
    %736 = vector.load %arg1[%c0_445, %c2_446, %c0_447, %c0_448] : memref<1x4x35x35xf32, #tpu.memory_space<vmem>>, vector<1x1x32x32xf32>
    %737 = vector.shape_cast %736 : vector<1x1x32x32xf32> to vector<32x32xf32>
    %738 = vector.broadcast %735 : f32 to vector<32x32xf32>
    %739 = arith.mulf %738, %737 : vector<32x32xf32>
    %740 = arith.addf %734, %739 : vector<32x32xf32>
    %c97 = arith.constant 97 : index
    %741 = memref.load %arg2[%c97] : memref<224xf32, #tpu.memory_space<smem>>
    %c0_449 = arith.constant 0 : index
    %c2_450 = arith.constant 2 : index
    %c0_451 = arith.constant 0 : index
    %c1_452 = arith.constant 1 : index
    %742 = vector.load %arg1[%c0_449, %c2_450, %c0_451, %c1_452] : memref<1x4x35x35xf32, #tpu.memory_space<vmem>>, vector<1x1x32x32xf32>
    %743 = vector.shape_cast %742 : vector<1x1x32x32xf32> to vector<32x32xf32>
    %744 = vector.broadcast %741 : f32 to vector<32x32xf32>
    %745 = arith.mulf %744, %743 : vector<32x32xf32>
    %746 = arith.addf %740, %745 : vector<32x32xf32>
    %c98 = arith.constant 98 : index
    %747 = memref.load %arg2[%c98] : memref<224xf32, #tpu.memory_space<smem>>
    %c0_453 = arith.constant 0 : index
    %c2_454 = arith.constant 2 : index
    %c0_455 = arith.constant 0 : index
    %c2_456 = arith.constant 2 : index
    %748 = vector.load %arg1[%c0_453, %c2_454, %c0_455, %c2_456] : memref<1x4x35x35xf32, #tpu.memory_space<vmem>>, vector<1x1x32x32xf32>
    %749 = vector.shape_cast %748 : vector<1x1x32x32xf32> to vector<32x32xf32>
    %750 = vector.broadcast %747 : f32 to vector<32x32xf32>
    %751 = arith.mulf %750, %749 : vector<32x32xf32>
    %752 = arith.addf %746, %751 : vector<32x32xf32>
    %c99 = arith.constant 99 : index
    %753 = memref.load %arg2[%c99] : memref<224xf32, #tpu.memory_space<smem>>
    %c0_457 = arith.constant 0 : index
    %c2_458 = arith.constant 2 : index
    %c0_459 = arith.constant 0 : index
    %c3_460 = arith.constant 3 : index
    %754 = vector.load %arg1[%c0_457, %c2_458, %c0_459, %c3_460] : memref<1x4x35x35xf32, #tpu.memory_space<vmem>>, vector<1x1x32x32xf32>
    %755 = vector.shape_cast %754 : vector<1x1x32x32xf32> to vector<32x32xf32>
    %756 = vector.broadcast %753 : f32 to vector<32x32xf32>
    %757 = arith.mulf %756, %755 : vector<32x32xf32>
    %758 = arith.addf %752, %757 : vector<32x32xf32>
    %c100 = arith.constant 100 : index
    %759 = memref.load %arg2[%c100] : memref<224xf32, #tpu.memory_space<smem>>
    %c0_461 = arith.constant 0 : index
    %c2_462 = arith.constant 2 : index
    %c1_463 = arith.constant 1 : index
    %c0_464 = arith.constant 0 : index
    %760 = vector.load %arg1[%c0_461, %c2_462, %c1_463, %c0_464] : memref<1x4x35x35xf32, #tpu.memory_space<vmem>>, vector<1x1x32x32xf32>
    %761 = vector.shape_cast %760 : vector<1x1x32x32xf32> to vector<32x32xf32>
    %762 = vector.broadcast %759 : f32 to vector<32x32xf32>
    %763 = arith.mulf %762, %761 : vector<32x32xf32>
    %764 = arith.addf %758, %763 : vector<32x32xf32>
    %c101 = arith.constant 101 : index
    %765 = memref.load %arg2[%c101] : memref<224xf32, #tpu.memory_space<smem>>
    %c0_465 = arith.constant 0 : index
    %c2_466 = arith.constant 2 : index
    %c1_467 = arith.constant 1 : index
    %c1_468 = arith.constant 1 : index
    %766 = vector.load %arg1[%c0_465, %c2_466, %c1_467, %c1_468] : memref<1x4x35x35xf32, #tpu.memory_space<vmem>>, vector<1x1x32x32xf32>
    %767 = vector.shape_cast %766 : vector<1x1x32x32xf32> to vector<32x32xf32>
    %768 = vector.broadcast %765 : f32 to vector<32x32xf32>
    %769 = arith.mulf %768, %767 : vector<32x32xf32>
    %770 = arith.addf %764, %769 : vector<32x32xf32>
    %c102 = arith.constant 102 : index
    %771 = memref.load %arg2[%c102] : memref<224xf32, #tpu.memory_space<smem>>
    %c0_469 = arith.constant 0 : index
    %c2_470 = arith.constant 2 : index
    %c1_471 = arith.constant 1 : index
    %c2_472 = arith.constant 2 : index
    %772 = vector.load %arg1[%c0_469, %c2_470, %c1_471, %c2_472] : memref<1x4x35x35xf32, #tpu.memory_space<vmem>>, vector<1x1x32x32xf32>
    %773 = vector.shape_cast %772 : vector<1x1x32x32xf32> to vector<32x32xf32>
    %774 = vector.broadcast %771 : f32 to vector<32x32xf32>
    %775 = arith.mulf %774, %773 : vector<32x32xf32>
    %776 = arith.addf %770, %775 : vector<32x32xf32>
    %c103 = arith.constant 103 : index
    %777 = memref.load %arg2[%c103] : memref<224xf32, #tpu.memory_space<smem>>
    %c0_473 = arith.constant 0 : index
    %c2_474 = arith.constant 2 : index
    %c1_475 = arith.constant 1 : index
    %c3_476 = arith.constant 3 : index
    %778 = vector.load %arg1[%c0_473, %c2_474, %c1_475, %c3_476] : memref<1x4x35x35xf32, #tpu.memory_space<vmem>>, vector<1x1x32x32xf32>
    %779 = vector.shape_cast %778 : vector<1x1x32x32xf32> to vector<32x32xf32>
    %780 = vector.broadcast %777 : f32 to vector<32x32xf32>
    %781 = arith.mulf %780, %779 : vector<32x32xf32>
    %782 = arith.addf %776, %781 : vector<32x32xf32>
    %c104 = arith.constant 104 : index
    %783 = memref.load %arg2[%c104] : memref<224xf32, #tpu.memory_space<smem>>
    %c0_477 = arith.constant 0 : index
    %c2_478 = arith.constant 2 : index
    %c2_479 = arith.constant 2 : index
    %c0_480 = arith.constant 0 : index
    %784 = vector.load %arg1[%c0_477, %c2_478, %c2_479, %c0_480] : memref<1x4x35x35xf32, #tpu.memory_space<vmem>>, vector<1x1x32x32xf32>
    %785 = vector.shape_cast %784 : vector<1x1x32x32xf32> to vector<32x32xf32>
    %786 = vector.broadcast %783 : f32 to vector<32x32xf32>
    %787 = arith.mulf %786, %785 : vector<32x32xf32>
    %788 = arith.addf %782, %787 : vector<32x32xf32>
    %c105 = arith.constant 105 : index
    %789 = memref.load %arg2[%c105] : memref<224xf32, #tpu.memory_space<smem>>
    %c0_481 = arith.constant 0 : index
    %c2_482 = arith.constant 2 : index
    %c2_483 = arith.constant 2 : index
    %c1_484 = arith.constant 1 : index
    %790 = vector.load %arg1[%c0_481, %c2_482, %c2_483, %c1_484] : memref<1x4x35x35xf32, #tpu.memory_space<vmem>>, vector<1x1x32x32xf32>
    %791 = vector.shape_cast %790 : vector<1x1x32x32xf32> to vector<32x32xf32>
    %792 = vector.broadcast %789 : f32 to vector<32x32xf32>
    %793 = arith.mulf %792, %791 : vector<32x32xf32>
    %794 = arith.addf %788, %793 : vector<32x32xf32>
    %c106 = arith.constant 106 : index
    %795 = memref.load %arg2[%c106] : memref<224xf32, #tpu.memory_space<smem>>
    %c0_485 = arith.constant 0 : index
    %c2_486 = arith.constant 2 : index
    %c2_487 = arith.constant 2 : index
    %c2_488 = arith.constant 2 : index
    %796 = vector.load %arg1[%c0_485, %c2_486, %c2_487, %c2_488] : memref<1x4x35x35xf32, #tpu.memory_space<vmem>>, vector<1x1x32x32xf32>
    %797 = vector.shape_cast %796 : vector<1x1x32x32xf32> to vector<32x32xf32>
    %798 = vector.broadcast %795 : f32 to vector<32x32xf32>
    %799 = arith.mulf %798, %797 : vector<32x32xf32>
    %800 = arith.addf %794, %799 : vector<32x32xf32>
    %c107 = arith.constant 107 : index
    %801 = memref.load %arg2[%c107] : memref<224xf32, #tpu.memory_space<smem>>
    %c0_489 = arith.constant 0 : index
    %c2_490 = arith.constant 2 : index
    %c2_491 = arith.constant 2 : index
    %c3_492 = arith.constant 3 : index
    %802 = vector.load %arg1[%c0_489, %c2_490, %c2_491, %c3_492] : memref<1x4x35x35xf32, #tpu.memory_space<vmem>>, vector<1x1x32x32xf32>
    %803 = vector.shape_cast %802 : vector<1x1x32x32xf32> to vector<32x32xf32>
    %804 = vector.broadcast %801 : f32 to vector<32x32xf32>
    %805 = arith.mulf %804, %803 : vector<32x32xf32>
    %806 = arith.addf %800, %805 : vector<32x32xf32>
    %c108 = arith.constant 108 : index
    %807 = memref.load %arg2[%c108] : memref<224xf32, #tpu.memory_space<smem>>
    %c0_493 = arith.constant 0 : index
    %c2_494 = arith.constant 2 : index
    %c3_495 = arith.constant 3 : index
    %c0_496 = arith.constant 0 : index
    %808 = vector.load %arg1[%c0_493, %c2_494, %c3_495, %c0_496] : memref<1x4x35x35xf32, #tpu.memory_space<vmem>>, vector<1x1x32x32xf32>
    %809 = vector.shape_cast %808 : vector<1x1x32x32xf32> to vector<32x32xf32>
    %810 = vector.broadcast %807 : f32 to vector<32x32xf32>
    %811 = arith.mulf %810, %809 : vector<32x32xf32>
    %812 = arith.addf %806, %811 : vector<32x32xf32>
    %c109 = arith.constant 109 : index
    %813 = memref.load %arg2[%c109] : memref<224xf32, #tpu.memory_space<smem>>
    %c0_497 = arith.constant 0 : index
    %c2_498 = arith.constant 2 : index
    %c3_499 = arith.constant 3 : index
    %c1_500 = arith.constant 1 : index
    %814 = vector.load %arg1[%c0_497, %c2_498, %c3_499, %c1_500] : memref<1x4x35x35xf32, #tpu.memory_space<vmem>>, vector<1x1x32x32xf32>
    %815 = vector.shape_cast %814 : vector<1x1x32x32xf32> to vector<32x32xf32>
    %816 = vector.broadcast %813 : f32 to vector<32x32xf32>
    %817 = arith.mulf %816, %815 : vector<32x32xf32>
    %818 = arith.addf %812, %817 : vector<32x32xf32>
    %c110 = arith.constant 110 : index
    %819 = memref.load %arg2[%c110] : memref<224xf32, #tpu.memory_space<smem>>
    %c0_501 = arith.constant 0 : index
    %c2_502 = arith.constant 2 : index
    %c3_503 = arith.constant 3 : index
    %c2_504 = arith.constant 2 : index
    %820 = vector.load %arg1[%c0_501, %c2_502, %c3_503, %c2_504] : memref<1x4x35x35xf32, #tpu.memory_space<vmem>>, vector<1x1x32x32xf32>
    %821 = vector.shape_cast %820 : vector<1x1x32x32xf32> to vector<32x32xf32>
    %822 = vector.broadcast %819 : f32 to vector<32x32xf32>
    %823 = arith.mulf %822, %821 : vector<32x32xf32>
    %824 = arith.addf %818, %823 : vector<32x32xf32>
    %c111 = arith.constant 111 : index
    %825 = memref.load %arg2[%c111] : memref<224xf32, #tpu.memory_space<smem>>
    %c0_505 = arith.constant 0 : index
    %c2_506 = arith.constant 2 : index
    %c3_507 = arith.constant 3 : index
    %c3_508 = arith.constant 3 : index
    %826 = vector.load %arg1[%c0_505, %c2_506, %c3_507, %c3_508] : memref<1x4x35x35xf32, #tpu.memory_space<vmem>>, vector<1x1x32x32xf32>
    %827 = vector.shape_cast %826 : vector<1x1x32x32xf32> to vector<32x32xf32>
    %828 = vector.broadcast %825 : f32 to vector<32x32xf32>
    %829 = arith.mulf %828, %827 : vector<32x32xf32>
    %830 = arith.addf %824, %829 : vector<32x32xf32>
    %c112 = arith.constant 112 : index
    %831 = memref.load %arg2[%c112] : memref<224xf32, #tpu.memory_space<smem>>
    %c0_509 = arith.constant 0 : index
    %c3_510 = arith.constant 3 : index
    %c0_511 = arith.constant 0 : index
    %c0_512 = arith.constant 0 : index
    %832 = vector.load %arg1[%c0_509, %c3_510, %c0_511, %c0_512] : memref<1x4x35x35xf32, #tpu.memory_space<vmem>>, vector<1x1x32x32xf32>
    %833 = vector.shape_cast %832 : vector<1x1x32x32xf32> to vector<32x32xf32>
    %834 = vector.broadcast %831 : f32 to vector<32x32xf32>
    %835 = arith.mulf %834, %833 : vector<32x32xf32>
    %836 = arith.addf %830, %835 : vector<32x32xf32>
    %c113 = arith.constant 113 : index
    %837 = memref.load %arg2[%c113] : memref<224xf32, #tpu.memory_space<smem>>
    %c0_513 = arith.constant 0 : index
    %c3_514 = arith.constant 3 : index
    %c0_515 = arith.constant 0 : index
    %c1_516 = arith.constant 1 : index
    %838 = vector.load %arg1[%c0_513, %c3_514, %c0_515, %c1_516] : memref<1x4x35x35xf32, #tpu.memory_space<vmem>>, vector<1x1x32x32xf32>
    %839 = vector.shape_cast %838 : vector<1x1x32x32xf32> to vector<32x32xf32>
    %840 = vector.broadcast %837 : f32 to vector<32x32xf32>
    %841 = arith.mulf %840, %839 : vector<32x32xf32>
    %842 = arith.addf %836, %841 : vector<32x32xf32>
    %c114 = arith.constant 114 : index
    %843 = memref.load %arg2[%c114] : memref<224xf32, #tpu.memory_space<smem>>
    %c0_517 = arith.constant 0 : index
    %c3_518 = arith.constant 3 : index
    %c0_519 = arith.constant 0 : index
    %c2_520 = arith.constant 2 : index
    %844 = vector.load %arg1[%c0_517, %c3_518, %c0_519, %c2_520] : memref<1x4x35x35xf32, #tpu.memory_space<vmem>>, vector<1x1x32x32xf32>
    %845 = vector.shape_cast %844 : vector<1x1x32x32xf32> to vector<32x32xf32>
    %846 = vector.broadcast %843 : f32 to vector<32x32xf32>
    %847 = arith.mulf %846, %845 : vector<32x32xf32>
    %848 = arith.addf %842, %847 : vector<32x32xf32>
    %c115 = arith.constant 115 : index
    %849 = memref.load %arg2[%c115] : memref<224xf32, #tpu.memory_space<smem>>
    %c0_521 = arith.constant 0 : index
    %c3_522 = arith.constant 3 : index
    %c0_523 = arith.constant 0 : index
    %c3_524 = arith.constant 3 : index
    %850 = vector.load %arg1[%c0_521, %c3_522, %c0_523, %c3_524] : memref<1x4x35x35xf32, #tpu.memory_space<vmem>>, vector<1x1x32x32xf32>
    %851 = vector.shape_cast %850 : vector<1x1x32x32xf32> to vector<32x32xf32>
    %852 = vector.broadcast %849 : f32 to vector<32x32xf32>
    %853 = arith.mulf %852, %851 : vector<32x32xf32>
    %854 = arith.addf %848, %853 : vector<32x32xf32>
    %c116 = arith.constant 116 : index
    %855 = memref.load %arg2[%c116] : memref<224xf32, #tpu.memory_space<smem>>
    %c0_525 = arith.constant 0 : index
    %c3_526 = arith.constant 3 : index
    %c1_527 = arith.constant 1 : index
    %c0_528 = arith.constant 0 : index
    %856 = vector.load %arg1[%c0_525, %c3_526, %c1_527, %c0_528] : memref<1x4x35x35xf32, #tpu.memory_space<vmem>>, vector<1x1x32x32xf32>
    %857 = vector.shape_cast %856 : vector<1x1x32x32xf32> to vector<32x32xf32>
    %858 = vector.broadcast %855 : f32 to vector<32x32xf32>
    %859 = arith.mulf %858, %857 : vector<32x32xf32>
    %860 = arith.addf %854, %859 : vector<32x32xf32>
    %c117 = arith.constant 117 : index
    %861 = memref.load %arg2[%c117] : memref<224xf32, #tpu.memory_space<smem>>
    %c0_529 = arith.constant 0 : index
    %c3_530 = arith.constant 3 : index
    %c1_531 = arith.constant 1 : index
    %c1_532 = arith.constant 1 : index
    %862 = vector.load %arg1[%c0_529, %c3_530, %c1_531, %c1_532] : memref<1x4x35x35xf32, #tpu.memory_space<vmem>>, vector<1x1x32x32xf32>
    %863 = vector.shape_cast %862 : vector<1x1x32x32xf32> to vector<32x32xf32>
    %864 = vector.broadcast %861 : f32 to vector<32x32xf32>
    %865 = arith.mulf %864, %863 : vector<32x32xf32>
    %866 = arith.addf %860, %865 : vector<32x32xf32>
    %c118 = arith.constant 118 : index
    %867 = memref.load %arg2[%c118] : memref<224xf32, #tpu.memory_space<smem>>
    %c0_533 = arith.constant 0 : index
    %c3_534 = arith.constant 3 : index
    %c1_535 = arith.constant 1 : index
    %c2_536 = arith.constant 2 : index
    %868 = vector.load %arg1[%c0_533, %c3_534, %c1_535, %c2_536] : memref<1x4x35x35xf32, #tpu.memory_space<vmem>>, vector<1x1x32x32xf32>
    %869 = vector.shape_cast %868 : vector<1x1x32x32xf32> to vector<32x32xf32>
    %870 = vector.broadcast %867 : f32 to vector<32x32xf32>
    %871 = arith.mulf %870, %869 : vector<32x32xf32>
    %872 = arith.addf %866, %871 : vector<32x32xf32>
    %c119 = arith.constant 119 : index
    %873 = memref.load %arg2[%c119] : memref<224xf32, #tpu.memory_space<smem>>
    %c0_537 = arith.constant 0 : index
    %c3_538 = arith.constant 3 : index
    %c1_539 = arith.constant 1 : index
    %c3_540 = arith.constant 3 : index
    %874 = vector.load %arg1[%c0_537, %c3_538, %c1_539, %c3_540] : memref<1x4x35x35xf32, #tpu.memory_space<vmem>>, vector<1x1x32x32xf32>
    %875 = vector.shape_cast %874 : vector<1x1x32x32xf32> to vector<32x32xf32>
    %876 = vector.broadcast %873 : f32 to vector<32x32xf32>
    %877 = arith.mulf %876, %875 : vector<32x32xf32>
    %878 = arith.addf %872, %877 : vector<32x32xf32>
    %c120 = arith.constant 120 : index
    %879 = memref.load %arg2[%c120] : memref<224xf32, #tpu.memory_space<smem>>
    %c0_541 = arith.constant 0 : index
    %c3_542 = arith.constant 3 : index
    %c2_543 = arith.constant 2 : index
    %c0_544 = arith.constant 0 : index
    %880 = vector.load %arg1[%c0_541, %c3_542, %c2_543, %c0_544] : memref<1x4x35x35xf32, #tpu.memory_space<vmem>>, vector<1x1x32x32xf32>
    %881 = vector.shape_cast %880 : vector<1x1x32x32xf32> to vector<32x32xf32>
    %882 = vector.broadcast %879 : f32 to vector<32x32xf32>
    %883 = arith.mulf %882, %881 : vector<32x32xf32>
    %884 = arith.addf %878, %883 : vector<32x32xf32>
    %c121 = arith.constant 121 : index
    %885 = memref.load %arg2[%c121] : memref<224xf32, #tpu.memory_space<smem>>
    %c0_545 = arith.constant 0 : index
    %c3_546 = arith.constant 3 : index
    %c2_547 = arith.constant 2 : index
    %c1_548 = arith.constant 1 : index
    %886 = vector.load %arg1[%c0_545, %c3_546, %c2_547, %c1_548] : memref<1x4x35x35xf32, #tpu.memory_space<vmem>>, vector<1x1x32x32xf32>
    %887 = vector.shape_cast %886 : vector<1x1x32x32xf32> to vector<32x32xf32>
    %888 = vector.broadcast %885 : f32 to vector<32x32xf32>
    %889 = arith.mulf %888, %887 : vector<32x32xf32>
    %890 = arith.addf %884, %889 : vector<32x32xf32>
    %c122 = arith.constant 122 : index
    %891 = memref.load %arg2[%c122] : memref<224xf32, #tpu.memory_space<smem>>
    %c0_549 = arith.constant 0 : index
    %c3_550 = arith.constant 3 : index
    %c2_551 = arith.constant 2 : index
    %c2_552 = arith.constant 2 : index
    %892 = vector.load %arg1[%c0_549, %c3_550, %c2_551, %c2_552] : memref<1x4x35x35xf32, #tpu.memory_space<vmem>>, vector<1x1x32x32xf32>
    %893 = vector.shape_cast %892 : vector<1x1x32x32xf32> to vector<32x32xf32>
    %894 = vector.broadcast %891 : f32 to vector<32x32xf32>
    %895 = arith.mulf %894, %893 : vector<32x32xf32>
    %896 = arith.addf %890, %895 : vector<32x32xf32>
    %c123 = arith.constant 123 : index
    %897 = memref.load %arg2[%c123] : memref<224xf32, #tpu.memory_space<smem>>
    %c0_553 = arith.constant 0 : index
    %c3_554 = arith.constant 3 : index
    %c2_555 = arith.constant 2 : index
    %c3_556 = arith.constant 3 : index
    %898 = vector.load %arg1[%c0_553, %c3_554, %c2_555, %c3_556] : memref<1x4x35x35xf32, #tpu.memory_space<vmem>>, vector<1x1x32x32xf32>
    %899 = vector.shape_cast %898 : vector<1x1x32x32xf32> to vector<32x32xf32>
    %900 = vector.broadcast %897 : f32 to vector<32x32xf32>
    %901 = arith.mulf %900, %899 : vector<32x32xf32>
    %902 = arith.addf %896, %901 : vector<32x32xf32>
    %c124 = arith.constant 124 : index
    %903 = memref.load %arg2[%c124] : memref<224xf32, #tpu.memory_space<smem>>
    %c0_557 = arith.constant 0 : index
    %c3_558 = arith.constant 3 : index
    %c3_559 = arith.constant 3 : index
    %c0_560 = arith.constant 0 : index
    %904 = vector.load %arg1[%c0_557, %c3_558, %c3_559, %c0_560] : memref<1x4x35x35xf32, #tpu.memory_space<vmem>>, vector<1x1x32x32xf32>
    %905 = vector.shape_cast %904 : vector<1x1x32x32xf32> to vector<32x32xf32>
    %906 = vector.broadcast %903 : f32 to vector<32x32xf32>
    %907 = arith.mulf %906, %905 : vector<32x32xf32>
    %908 = arith.addf %902, %907 : vector<32x32xf32>
    %c125 = arith.constant 125 : index
    %909 = memref.load %arg2[%c125] : memref<224xf32, #tpu.memory_space<smem>>
    %c0_561 = arith.constant 0 : index
    %c3_562 = arith.constant 3 : index
    %c3_563 = arith.constant 3 : index
    %c1_564 = arith.constant 1 : index
    %910 = vector.load %arg1[%c0_561, %c3_562, %c3_563, %c1_564] : memref<1x4x35x35xf32, #tpu.memory_space<vmem>>, vector<1x1x32x32xf32>
    %911 = vector.shape_cast %910 : vector<1x1x32x32xf32> to vector<32x32xf32>
    %912 = vector.broadcast %909 : f32 to vector<32x32xf32>
    %913 = arith.mulf %912, %911 : vector<32x32xf32>
    %914 = arith.addf %908, %913 : vector<32x32xf32>
    %c126 = arith.constant 126 : index
    %915 = memref.load %arg2[%c126] : memref<224xf32, #tpu.memory_space<smem>>
    %c0_565 = arith.constant 0 : index
    %c3_566 = arith.constant 3 : index
    %c3_567 = arith.constant 3 : index
    %c2_568 = arith.constant 2 : index
    %916 = vector.load %arg1[%c0_565, %c3_566, %c3_567, %c2_568] : memref<1x4x35x35xf32, #tpu.memory_space<vmem>>, vector<1x1x32x32xf32>
    %917 = vector.shape_cast %916 : vector<1x1x32x32xf32> to vector<32x32xf32>
    %918 = vector.broadcast %915 : f32 to vector<32x32xf32>
    %919 = arith.mulf %918, %917 : vector<32x32xf32>
    %920 = arith.addf %914, %919 : vector<32x32xf32>
    %c127 = arith.constant 127 : index
    %921 = memref.load %arg2[%c127] : memref<224xf32, #tpu.memory_space<smem>>
    %c0_569 = arith.constant 0 : index
    %c3_570 = arith.constant 3 : index
    %c3_571 = arith.constant 3 : index
    %c3_572 = arith.constant 3 : index
    %922 = vector.load %arg1[%c0_569, %c3_570, %c3_571, %c3_572] : memref<1x4x35x35xf32, #tpu.memory_space<vmem>>, vector<1x1x32x32xf32>
    %923 = vector.shape_cast %922 : vector<1x1x32x32xf32> to vector<32x32xf32>
    %924 = vector.broadcast %921 : f32 to vector<32x32xf32>
    %925 = arith.mulf %924, %923 : vector<32x32xf32>
    %926 = arith.addf %920, %925 : vector<32x32xf32>
    %c129 = arith.constant 129 : index
    %927 = memref.load %arg2[%c129] : memref<224xf32, #tpu.memory_space<smem>>
    %928 = vector.broadcast %927 : f32 to vector<32x32xf32>
    %929 = arith.addf %926, %928 : vector<32x32xf32>
    %c130 = arith.constant 130 : index
    %930 = memref.load %arg2[%c130] : memref<224xf32, #tpu.memory_space<smem>>
    %931 = vector.broadcast %930 : f32 to vector<32x32xf32>
    %932 = arith.mulf %541, %931 : vector<32x32xf32>
    %c132 = arith.constant 132 : index
    %933 = memref.load %arg2[%c132] : memref<224xf32, #tpu.memory_space<smem>>
    %934 = vector.broadcast %933 : f32 to vector<32x32xf32>
    %935 = arith.addf %932, %934 : vector<32x32xf32>
    %c131 = arith.constant 131 : index
    %936 = memref.load %arg2[%c131] : memref<224xf32, #tpu.memory_space<smem>>
    %937 = vector.broadcast %936 : f32 to vector<32x32xf32>
    %938 = arith.mulf %929, %937 : vector<32x32xf32>
    %c133 = arith.constant 133 : index
    %939 = memref.load %arg2[%c133] : memref<224xf32, #tpu.memory_space<smem>>
    %940 = vector.broadcast %939 : f32 to vector<32x32xf32>
    %941 = arith.addf %938, %940 : vector<32x32xf32>
    %cst_573 = arith.constant 0.000000e+00 : f32
    %942 = vector.broadcast %cst_573 : f32 to vector<32x32xf32>
    %943 = arith.cmpf ogt, %935, %942 : vector<32x32xf32>
    %944 = math.exp %935 : vector<32x32xf32>
    %cst_574 = arith.constant 1.000000e+00 : f32
    %945 = vector.broadcast %cst_574 : f32 to vector<32x32xf32>
    %946 = arith.subf %944, %945 : vector<32x32xf32>
    %947 = arith.select %943, %935, %946 : vector<32x32xi1>, vector<32x32xf32>
    %cst_575 = arith.constant 0.000000e+00 : f32
    %948 = vector.broadcast %cst_575 : f32 to vector<32x32xf32>
    %949 = arith.cmpf ogt, %941, %948 : vector<32x32xf32>
    %950 = math.exp %941 : vector<32x32xf32>
    %cst_576 = arith.constant 1.000000e+00 : f32
    %951 = vector.broadcast %cst_576 : f32 to vector<32x32xf32>
    %952 = arith.subf %950, %951 : vector<32x32xf32>
    %953 = arith.select %949, %941, %952 : vector<32x32xi1>, vector<32x32xf32>
    %cst_577 = arith.constant 0.000000e+00 : f32
    %954 = vector.broadcast %cst_577 : f32 to vector<32x32xf32>
    %c134 = arith.constant 134 : index
    %955 = memref.load %arg2[%c134] : memref<224xf32, #tpu.memory_space<smem>>
    %c1_i32_578 = arith.constant 1 : i32
    %956 = tpu.dynamic_rotate %947 by %c1_i32_578 dim 0 : vector<32x32xf32>, i32 -> vector<32x32xf32>
    %c1_i32_579 = arith.constant 1 : i32
    %957 = tpu.dynamic_rotate %956 by %c1_i32_579 dim 1 : vector<32x32xf32>, i32 -> vector<32x32xf32>
    %cst_580 = arith.constant 0.000000e+00 : f32
    %958 = vector.broadcast %cst_580 : f32 to vector<32x32xf32>
    %959 = arith.select %20, %957, %958 : vector<32x32xi1>, vector<32x32xf32>
    %960 = vector.broadcast %955 : f32 to vector<32x32xf32>
    %961 = arith.mulf %960, %959 : vector<32x32xf32>
    %962 = arith.addf %954, %961 : vector<32x32xf32>
    %c135 = arith.constant 135 : index
    %963 = memref.load %arg2[%c135] : memref<224xf32, #tpu.memory_space<smem>>
    %c1_i32_581 = arith.constant 1 : i32
    %964 = tpu.dynamic_rotate %947 by %c1_i32_581 dim 0 : vector<32x32xf32>, i32 -> vector<32x32xf32>
    %cst_582 = arith.constant 0.000000e+00 : f32
    %965 = vector.broadcast %cst_582 : f32 to vector<32x32xf32>
    %966 = arith.select %39, %964, %965 : vector<32x32xi1>, vector<32x32xf32>
    %967 = vector.broadcast %963 : f32 to vector<32x32xf32>
    %968 = arith.mulf %967, %966 : vector<32x32xf32>
    %969 = arith.addf %962, %968 : vector<32x32xf32>
    %c136 = arith.constant 136 : index
    %970 = memref.load %arg2[%c136] : memref<224xf32, #tpu.memory_space<smem>>
    %c1_i32_583 = arith.constant 1 : i32
    %971 = tpu.dynamic_rotate %947 by %c1_i32_583 dim 0 : vector<32x32xf32>, i32 -> vector<32x32xf32>
    %c31_i32 = arith.constant 31 : i32
    %972 = tpu.dynamic_rotate %971 by %c31_i32 dim 1 : vector<32x32xf32>, i32 -> vector<32x32xf32>
    %cst_584 = arith.constant 0.000000e+00 : f32
    %973 = vector.broadcast %cst_584 : f32 to vector<32x32xf32>
    %974 = arith.select %58, %972, %973 : vector<32x32xi1>, vector<32x32xf32>
    %975 = vector.broadcast %970 : f32 to vector<32x32xf32>
    %976 = arith.mulf %975, %974 : vector<32x32xf32>
    %977 = arith.addf %969, %976 : vector<32x32xf32>
    %c137 = arith.constant 137 : index
    %978 = memref.load %arg2[%c137] : memref<224xf32, #tpu.memory_space<smem>>
    %c1_i32_585 = arith.constant 1 : i32
    %979 = tpu.dynamic_rotate %947 by %c1_i32_585 dim 1 : vector<32x32xf32>, i32 -> vector<32x32xf32>
    %cst_586 = arith.constant 0.000000e+00 : f32
    %980 = vector.broadcast %cst_586 : f32 to vector<32x32xf32>
    %981 = arith.select %77, %979, %980 : vector<32x32xi1>, vector<32x32xf32>
    %982 = vector.broadcast %978 : f32 to vector<32x32xf32>
    %983 = arith.mulf %982, %981 : vector<32x32xf32>
    %984 = arith.addf %977, %983 : vector<32x32xf32>
    %c138 = arith.constant 138 : index
    %985 = memref.load %arg2[%c138] : memref<224xf32, #tpu.memory_space<smem>>
    %986 = vector.broadcast %985 : f32 to vector<32x32xf32>
    %987 = arith.mulf %986, %947 : vector<32x32xf32>
    %988 = arith.addf %984, %987 : vector<32x32xf32>
    %c139 = arith.constant 139 : index
    %989 = memref.load %arg2[%c139] : memref<224xf32, #tpu.memory_space<smem>>
    %c31_i32_587 = arith.constant 31 : i32
    %990 = tpu.dynamic_rotate %947 by %c31_i32_587 dim 1 : vector<32x32xf32>, i32 -> vector<32x32xf32>
    %cst_588 = arith.constant 0.000000e+00 : f32
    %991 = vector.broadcast %cst_588 : f32 to vector<32x32xf32>
    %992 = arith.select %96, %990, %991 : vector<32x32xi1>, vector<32x32xf32>
    %993 = vector.broadcast %989 : f32 to vector<32x32xf32>
    %994 = arith.mulf %993, %992 : vector<32x32xf32>
    %995 = arith.addf %988, %994 : vector<32x32xf32>
    %c140 = arith.constant 140 : index
    %996 = memref.load %arg2[%c140] : memref<224xf32, #tpu.memory_space<smem>>
    %c31_i32_589 = arith.constant 31 : i32
    %997 = tpu.dynamic_rotate %947 by %c31_i32_589 dim 0 : vector<32x32xf32>, i32 -> vector<32x32xf32>
    %c1_i32_590 = arith.constant 1 : i32
    %998 = tpu.dynamic_rotate %997 by %c1_i32_590 dim 1 : vector<32x32xf32>, i32 -> vector<32x32xf32>
    %cst_591 = arith.constant 0.000000e+00 : f32
    %999 = vector.broadcast %cst_591 : f32 to vector<32x32xf32>
    %1000 = arith.select %115, %998, %999 : vector<32x32xi1>, vector<32x32xf32>
    %1001 = vector.broadcast %996 : f32 to vector<32x32xf32>
    %1002 = arith.mulf %1001, %1000 : vector<32x32xf32>
    %1003 = arith.addf %995, %1002 : vector<32x32xf32>
    %c141 = arith.constant 141 : index
    %1004 = memref.load %arg2[%c141] : memref<224xf32, #tpu.memory_space<smem>>
    %c31_i32_592 = arith.constant 31 : i32
    %1005 = tpu.dynamic_rotate %947 by %c31_i32_592 dim 0 : vector<32x32xf32>, i32 -> vector<32x32xf32>
    %cst_593 = arith.constant 0.000000e+00 : f32
    %1006 = vector.broadcast %cst_593 : f32 to vector<32x32xf32>
    %1007 = arith.select %134, %1005, %1006 : vector<32x32xi1>, vector<32x32xf32>
    %1008 = vector.broadcast %1004 : f32 to vector<32x32xf32>
    %1009 = arith.mulf %1008, %1007 : vector<32x32xf32>
    %1010 = arith.addf %1003, %1009 : vector<32x32xf32>
    %c142 = arith.constant 142 : index
    %1011 = memref.load %arg2[%c142] : memref<224xf32, #tpu.memory_space<smem>>
    %c31_i32_594 = arith.constant 31 : i32
    %1012 = tpu.dynamic_rotate %947 by %c31_i32_594 dim 0 : vector<32x32xf32>, i32 -> vector<32x32xf32>
    %c31_i32_595 = arith.constant 31 : i32
    %1013 = tpu.dynamic_rotate %1012 by %c31_i32_595 dim 1 : vector<32x32xf32>, i32 -> vector<32x32xf32>
    %cst_596 = arith.constant 0.000000e+00 : f32
    %1014 = vector.broadcast %cst_596 : f32 to vector<32x32xf32>
    %1015 = arith.select %153, %1013, %1014 : vector<32x32xi1>, vector<32x32xf32>
    %1016 = vector.broadcast %1011 : f32 to vector<32x32xf32>
    %1017 = arith.mulf %1016, %1015 : vector<32x32xf32>
    %1018 = arith.addf %1010, %1017 : vector<32x32xf32>
    %c143 = arith.constant 143 : index
    %1019 = memref.load %arg2[%c143] : memref<224xf32, #tpu.memory_space<smem>>
    %c1_i32_597 = arith.constant 1 : i32
    %1020 = tpu.dynamic_rotate %953 by %c1_i32_597 dim 0 : vector<32x32xf32>, i32 -> vector<32x32xf32>
    %c1_i32_598 = arith.constant 1 : i32
    %1021 = tpu.dynamic_rotate %1020 by %c1_i32_598 dim 1 : vector<32x32xf32>, i32 -> vector<32x32xf32>
    %cst_599 = arith.constant 0.000000e+00 : f32
    %1022 = vector.broadcast %cst_599 : f32 to vector<32x32xf32>
    %1023 = arith.select %20, %1021, %1022 : vector<32x32xi1>, vector<32x32xf32>
    %1024 = vector.broadcast %1019 : f32 to vector<32x32xf32>
    %1025 = arith.mulf %1024, %1023 : vector<32x32xf32>
    %1026 = arith.addf %1018, %1025 : vector<32x32xf32>
    %c144 = arith.constant 144 : index
    %1027 = memref.load %arg2[%c144] : memref<224xf32, #tpu.memory_space<smem>>
    %c1_i32_600 = arith.constant 1 : i32
    %1028 = tpu.dynamic_rotate %953 by %c1_i32_600 dim 0 : vector<32x32xf32>, i32 -> vector<32x32xf32>
    %cst_601 = arith.constant 0.000000e+00 : f32
    %1029 = vector.broadcast %cst_601 : f32 to vector<32x32xf32>
    %1030 = arith.select %39, %1028, %1029 : vector<32x32xi1>, vector<32x32xf32>
    %1031 = vector.broadcast %1027 : f32 to vector<32x32xf32>
    %1032 = arith.mulf %1031, %1030 : vector<32x32xf32>
    %1033 = arith.addf %1026, %1032 : vector<32x32xf32>
    %c145 = arith.constant 145 : index
    %1034 = memref.load %arg2[%c145] : memref<224xf32, #tpu.memory_space<smem>>
    %c1_i32_602 = arith.constant 1 : i32
    %1035 = tpu.dynamic_rotate %953 by %c1_i32_602 dim 0 : vector<32x32xf32>, i32 -> vector<32x32xf32>
    %c31_i32_603 = arith.constant 31 : i32
    %1036 = tpu.dynamic_rotate %1035 by %c31_i32_603 dim 1 : vector<32x32xf32>, i32 -> vector<32x32xf32>
    %cst_604 = arith.constant 0.000000e+00 : f32
    %1037 = vector.broadcast %cst_604 : f32 to vector<32x32xf32>
    %1038 = arith.select %58, %1036, %1037 : vector<32x32xi1>, vector<32x32xf32>
    %1039 = vector.broadcast %1034 : f32 to vector<32x32xf32>
    %1040 = arith.mulf %1039, %1038 : vector<32x32xf32>
    %1041 = arith.addf %1033, %1040 : vector<32x32xf32>
    %c146 = arith.constant 146 : index
    %1042 = memref.load %arg2[%c146] : memref<224xf32, #tpu.memory_space<smem>>
    %c1_i32_605 = arith.constant 1 : i32
    %1043 = tpu.dynamic_rotate %953 by %c1_i32_605 dim 1 : vector<32x32xf32>, i32 -> vector<32x32xf32>
    %cst_606 = arith.constant 0.000000e+00 : f32
    %1044 = vector.broadcast %cst_606 : f32 to vector<32x32xf32>
    %1045 = arith.select %77, %1043, %1044 : vector<32x32xi1>, vector<32x32xf32>
    %1046 = vector.broadcast %1042 : f32 to vector<32x32xf32>
    %1047 = arith.mulf %1046, %1045 : vector<32x32xf32>
    %1048 = arith.addf %1041, %1047 : vector<32x32xf32>
    %c147 = arith.constant 147 : index
    %1049 = memref.load %arg2[%c147] : memref<224xf32, #tpu.memory_space<smem>>
    %1050 = vector.broadcast %1049 : f32 to vector<32x32xf32>
    %1051 = arith.mulf %1050, %953 : vector<32x32xf32>
    %1052 = arith.addf %1048, %1051 : vector<32x32xf32>
    %c148 = arith.constant 148 : index
    %1053 = memref.load %arg2[%c148] : memref<224xf32, #tpu.memory_space<smem>>
    %c31_i32_607 = arith.constant 31 : i32
    %1054 = tpu.dynamic_rotate %953 by %c31_i32_607 dim 1 : vector<32x32xf32>, i32 -> vector<32x32xf32>
    %cst_608 = arith.constant 0.000000e+00 : f32
    %1055 = vector.broadcast %cst_608 : f32 to vector<32x32xf32>
    %1056 = arith.select %96, %1054, %1055 : vector<32x32xi1>, vector<32x32xf32>
    %1057 = vector.broadcast %1053 : f32 to vector<32x32xf32>
    %1058 = arith.mulf %1057, %1056 : vector<32x32xf32>
    %1059 = arith.addf %1052, %1058 : vector<32x32xf32>
    %c149 = arith.constant 149 : index
    %1060 = memref.load %arg2[%c149] : memref<224xf32, #tpu.memory_space<smem>>
    %c31_i32_609 = arith.constant 31 : i32
    %1061 = tpu.dynamic_rotate %953 by %c31_i32_609 dim 0 : vector<32x32xf32>, i32 -> vector<32x32xf32>
    %c1_i32_610 = arith.constant 1 : i32
    %1062 = tpu.dynamic_rotate %1061 by %c1_i32_610 dim 1 : vector<32x32xf32>, i32 -> vector<32x32xf32>
    %cst_611 = arith.constant 0.000000e+00 : f32
    %1063 = vector.broadcast %cst_611 : f32 to vector<32x32xf32>
    %1064 = arith.select %115, %1062, %1063 : vector<32x32xi1>, vector<32x32xf32>
    %1065 = vector.broadcast %1060 : f32 to vector<32x32xf32>
    %1066 = arith.mulf %1065, %1064 : vector<32x32xf32>
    %1067 = arith.addf %1059, %1066 : vector<32x32xf32>
    %c150 = arith.constant 150 : index
    %1068 = memref.load %arg2[%c150] : memref<224xf32, #tpu.memory_space<smem>>
    %c31_i32_612 = arith.constant 31 : i32
    %1069 = tpu.dynamic_rotate %953 by %c31_i32_612 dim 0 : vector<32x32xf32>, i32 -> vector<32x32xf32>
    %cst_613 = arith.constant 0.000000e+00 : f32
    %1070 = vector.broadcast %cst_613 : f32 to vector<32x32xf32>
    %1071 = arith.select %134, %1069, %1070 : vector<32x32xi1>, vector<32x32xf32>
    %1072 = vector.broadcast %1068 : f32 to vector<32x32xf32>
    %1073 = arith.mulf %1072, %1071 : vector<32x32xf32>
    %1074 = arith.addf %1067, %1073 : vector<32x32xf32>
    %c151 = arith.constant 151 : index
    %1075 = memref.load %arg2[%c151] : memref<224xf32, #tpu.memory_space<smem>>
    %c31_i32_614 = arith.constant 31 : i32
    %1076 = tpu.dynamic_rotate %953 by %c31_i32_614 dim 0 : vector<32x32xf32>, i32 -> vector<32x32xf32>
    %c31_i32_615 = arith.constant 31 : i32
    %1077 = tpu.dynamic_rotate %1076 by %c31_i32_615 dim 1 : vector<32x32xf32>, i32 -> vector<32x32xf32>
    %cst_616 = arith.constant 0.000000e+00 : f32
    %1078 = vector.broadcast %cst_616 : f32 to vector<32x32xf32>
    %1079 = arith.select %153, %1077, %1078 : vector<32x32xi1>, vector<32x32xf32>
    %1080 = vector.broadcast %1075 : f32 to vector<32x32xf32>
    %1081 = arith.mulf %1080, %1079 : vector<32x32xf32>
    %1082 = arith.addf %1074, %1081 : vector<32x32xf32>
    %c170 = arith.constant 170 : index
    %1083 = memref.load %arg2[%c170] : memref<224xf32, #tpu.memory_space<smem>>
    %1084 = vector.broadcast %1083 : f32 to vector<32x32xf32>
    %1085 = arith.addf %1082, %1084 : vector<32x32xf32>
    %c172 = arith.constant 172 : index
    %1086 = memref.load %arg2[%c172] : memref<224xf32, #tpu.memory_space<smem>>
    %1087 = vector.broadcast %1086 : f32 to vector<32x32xf32>
    %1088 = arith.mulf %1085, %1087 : vector<32x32xf32>
    %c174 = arith.constant 174 : index
    %1089 = memref.load %arg2[%c174] : memref<224xf32, #tpu.memory_space<smem>>
    %1090 = vector.broadcast %1089 : f32 to vector<32x32xf32>
    %1091 = arith.addf %1088, %1090 : vector<32x32xf32>
    %cst_617 = arith.constant 0.000000e+00 : f32
    %1092 = vector.broadcast %cst_617 : f32 to vector<32x32xf32>
    %c152 = arith.constant 152 : index
    %1093 = memref.load %arg2[%c152] : memref<224xf32, #tpu.memory_space<smem>>
    %c1_i32_618 = arith.constant 1 : i32
    %1094 = tpu.dynamic_rotate %947 by %c1_i32_618 dim 0 : vector<32x32xf32>, i32 -> vector<32x32xf32>
    %c1_i32_619 = arith.constant 1 : i32
    %1095 = tpu.dynamic_rotate %1094 by %c1_i32_619 dim 1 : vector<32x32xf32>, i32 -> vector<32x32xf32>
    %cst_620 = arith.constant 0.000000e+00 : f32
    %1096 = vector.broadcast %cst_620 : f32 to vector<32x32xf32>
    %1097 = arith.select %20, %1095, %1096 : vector<32x32xi1>, vector<32x32xf32>
    %1098 = vector.broadcast %1093 : f32 to vector<32x32xf32>
    %1099 = arith.mulf %1098, %1097 : vector<32x32xf32>
    %1100 = arith.addf %1092, %1099 : vector<32x32xf32>
    %c153 = arith.constant 153 : index
    %1101 = memref.load %arg2[%c153] : memref<224xf32, #tpu.memory_space<smem>>
    %c1_i32_621 = arith.constant 1 : i32
    %1102 = tpu.dynamic_rotate %947 by %c1_i32_621 dim 0 : vector<32x32xf32>, i32 -> vector<32x32xf32>
    %cst_622 = arith.constant 0.000000e+00 : f32
    %1103 = vector.broadcast %cst_622 : f32 to vector<32x32xf32>
    %1104 = arith.select %39, %1102, %1103 : vector<32x32xi1>, vector<32x32xf32>
    %1105 = vector.broadcast %1101 : f32 to vector<32x32xf32>
    %1106 = arith.mulf %1105, %1104 : vector<32x32xf32>
    %1107 = arith.addf %1100, %1106 : vector<32x32xf32>
    %c154 = arith.constant 154 : index
    %1108 = memref.load %arg2[%c154] : memref<224xf32, #tpu.memory_space<smem>>
    %c1_i32_623 = arith.constant 1 : i32
    %1109 = tpu.dynamic_rotate %947 by %c1_i32_623 dim 0 : vector<32x32xf32>, i32 -> vector<32x32xf32>
    %c31_i32_624 = arith.constant 31 : i32
    %1110 = tpu.dynamic_rotate %1109 by %c31_i32_624 dim 1 : vector<32x32xf32>, i32 -> vector<32x32xf32>
    %cst_625 = arith.constant 0.000000e+00 : f32
    %1111 = vector.broadcast %cst_625 : f32 to vector<32x32xf32>
    %1112 = arith.select %58, %1110, %1111 : vector<32x32xi1>, vector<32x32xf32>
    %1113 = vector.broadcast %1108 : f32 to vector<32x32xf32>
    %1114 = arith.mulf %1113, %1112 : vector<32x32xf32>
    %1115 = arith.addf %1107, %1114 : vector<32x32xf32>
    %c155 = arith.constant 155 : index
    %1116 = memref.load %arg2[%c155] : memref<224xf32, #tpu.memory_space<smem>>
    %c1_i32_626 = arith.constant 1 : i32
    %1117 = tpu.dynamic_rotate %947 by %c1_i32_626 dim 1 : vector<32x32xf32>, i32 -> vector<32x32xf32>
    %cst_627 = arith.constant 0.000000e+00 : f32
    %1118 = vector.broadcast %cst_627 : f32 to vector<32x32xf32>
    %1119 = arith.select %77, %1117, %1118 : vector<32x32xi1>, vector<32x32xf32>
    %1120 = vector.broadcast %1116 : f32 to vector<32x32xf32>
    %1121 = arith.mulf %1120, %1119 : vector<32x32xf32>
    %1122 = arith.addf %1115, %1121 : vector<32x32xf32>
    %c156 = arith.constant 156 : index
    %1123 = memref.load %arg2[%c156] : memref<224xf32, #tpu.memory_space<smem>>
    %1124 = vector.broadcast %1123 : f32 to vector<32x32xf32>
    %1125 = arith.mulf %1124, %947 : vector<32x32xf32>
    %1126 = arith.addf %1122, %1125 : vector<32x32xf32>
    %c157 = arith.constant 157 : index
    %1127 = memref.load %arg2[%c157] : memref<224xf32, #tpu.memory_space<smem>>
    %c31_i32_628 = arith.constant 31 : i32
    %1128 = tpu.dynamic_rotate %947 by %c31_i32_628 dim 1 : vector<32x32xf32>, i32 -> vector<32x32xf32>
    %cst_629 = arith.constant 0.000000e+00 : f32
    %1129 = vector.broadcast %cst_629 : f32 to vector<32x32xf32>
    %1130 = arith.select %96, %1128, %1129 : vector<32x32xi1>, vector<32x32xf32>
    %1131 = vector.broadcast %1127 : f32 to vector<32x32xf32>
    %1132 = arith.mulf %1131, %1130 : vector<32x32xf32>
    %1133 = arith.addf %1126, %1132 : vector<32x32xf32>
    %c158 = arith.constant 158 : index
    %1134 = memref.load %arg2[%c158] : memref<224xf32, #tpu.memory_space<smem>>
    %c31_i32_630 = arith.constant 31 : i32
    %1135 = tpu.dynamic_rotate %947 by %c31_i32_630 dim 0 : vector<32x32xf32>, i32 -> vector<32x32xf32>
    %c1_i32_631 = arith.constant 1 : i32
    %1136 = tpu.dynamic_rotate %1135 by %c1_i32_631 dim 1 : vector<32x32xf32>, i32 -> vector<32x32xf32>
    %cst_632 = arith.constant 0.000000e+00 : f32
    %1137 = vector.broadcast %cst_632 : f32 to vector<32x32xf32>
    %1138 = arith.select %115, %1136, %1137 : vector<32x32xi1>, vector<32x32xf32>
    %1139 = vector.broadcast %1134 : f32 to vector<32x32xf32>
    %1140 = arith.mulf %1139, %1138 : vector<32x32xf32>
    %1141 = arith.addf %1133, %1140 : vector<32x32xf32>
    %c159 = arith.constant 159 : index
    %1142 = memref.load %arg2[%c159] : memref<224xf32, #tpu.memory_space<smem>>
    %c31_i32_633 = arith.constant 31 : i32
    %1143 = tpu.dynamic_rotate %947 by %c31_i32_633 dim 0 : vector<32x32xf32>, i32 -> vector<32x32xf32>
    %cst_634 = arith.constant 0.000000e+00 : f32
    %1144 = vector.broadcast %cst_634 : f32 to vector<32x32xf32>
    %1145 = arith.select %134, %1143, %1144 : vector<32x32xi1>, vector<32x32xf32>
    %1146 = vector.broadcast %1142 : f32 to vector<32x32xf32>
    %1147 = arith.mulf %1146, %1145 : vector<32x32xf32>
    %1148 = arith.addf %1141, %1147 : vector<32x32xf32>
    %c160 = arith.constant 160 : index
    %1149 = memref.load %arg2[%c160] : memref<224xf32, #tpu.memory_space<smem>>
    %c31_i32_635 = arith.constant 31 : i32
    %1150 = tpu.dynamic_rotate %947 by %c31_i32_635 dim 0 : vector<32x32xf32>, i32 -> vector<32x32xf32>
    %c31_i32_636 = arith.constant 31 : i32
    %1151 = tpu.dynamic_rotate %1150 by %c31_i32_636 dim 1 : vector<32x32xf32>, i32 -> vector<32x32xf32>
    %cst_637 = arith.constant 0.000000e+00 : f32
    %1152 = vector.broadcast %cst_637 : f32 to vector<32x32xf32>
    %1153 = arith.select %153, %1151, %1152 : vector<32x32xi1>, vector<32x32xf32>
    %1154 = vector.broadcast %1149 : f32 to vector<32x32xf32>
    %1155 = arith.mulf %1154, %1153 : vector<32x32xf32>
    %1156 = arith.addf %1148, %1155 : vector<32x32xf32>
    %c161 = arith.constant 161 : index
    %1157 = memref.load %arg2[%c161] : memref<224xf32, #tpu.memory_space<smem>>
    %c1_i32_638 = arith.constant 1 : i32
    %1158 = tpu.dynamic_rotate %953 by %c1_i32_638 dim 0 : vector<32x32xf32>, i32 -> vector<32x32xf32>
    %c1_i32_639 = arith.constant 1 : i32
    %1159 = tpu.dynamic_rotate %1158 by %c1_i32_639 dim 1 : vector<32x32xf32>, i32 -> vector<32x32xf32>
    %cst_640 = arith.constant 0.000000e+00 : f32
    %1160 = vector.broadcast %cst_640 : f32 to vector<32x32xf32>
    %1161 = arith.select %20, %1159, %1160 : vector<32x32xi1>, vector<32x32xf32>
    %1162 = vector.broadcast %1157 : f32 to vector<32x32xf32>
    %1163 = arith.mulf %1162, %1161 : vector<32x32xf32>
    %1164 = arith.addf %1156, %1163 : vector<32x32xf32>
    %c162 = arith.constant 162 : index
    %1165 = memref.load %arg2[%c162] : memref<224xf32, #tpu.memory_space<smem>>
    %c1_i32_641 = arith.constant 1 : i32
    %1166 = tpu.dynamic_rotate %953 by %c1_i32_641 dim 0 : vector<32x32xf32>, i32 -> vector<32x32xf32>
    %cst_642 = arith.constant 0.000000e+00 : f32
    %1167 = vector.broadcast %cst_642 : f32 to vector<32x32xf32>
    %1168 = arith.select %39, %1166, %1167 : vector<32x32xi1>, vector<32x32xf32>
    %1169 = vector.broadcast %1165 : f32 to vector<32x32xf32>
    %1170 = arith.mulf %1169, %1168 : vector<32x32xf32>
    %1171 = arith.addf %1164, %1170 : vector<32x32xf32>
    %c163 = arith.constant 163 : index
    %1172 = memref.load %arg2[%c163] : memref<224xf32, #tpu.memory_space<smem>>
    %c1_i32_643 = arith.constant 1 : i32
    %1173 = tpu.dynamic_rotate %953 by %c1_i32_643 dim 0 : vector<32x32xf32>, i32 -> vector<32x32xf32>
    %c31_i32_644 = arith.constant 31 : i32
    %1174 = tpu.dynamic_rotate %1173 by %c31_i32_644 dim 1 : vector<32x32xf32>, i32 -> vector<32x32xf32>
    %cst_645 = arith.constant 0.000000e+00 : f32
    %1175 = vector.broadcast %cst_645 : f32 to vector<32x32xf32>
    %1176 = arith.select %58, %1174, %1175 : vector<32x32xi1>, vector<32x32xf32>
    %1177 = vector.broadcast %1172 : f32 to vector<32x32xf32>
    %1178 = arith.mulf %1177, %1176 : vector<32x32xf32>
    %1179 = arith.addf %1171, %1178 : vector<32x32xf32>
    %c164 = arith.constant 164 : index
    %1180 = memref.load %arg2[%c164] : memref<224xf32, #tpu.memory_space<smem>>
    %c1_i32_646 = arith.constant 1 : i32
    %1181 = tpu.dynamic_rotate %953 by %c1_i32_646 dim 1 : vector<32x32xf32>, i32 -> vector<32x32xf32>
    %cst_647 = arith.constant 0.000000e+00 : f32
    %1182 = vector.broadcast %cst_647 : f32 to vector<32x32xf32>
    %1183 = arith.select %77, %1181, %1182 : vector<32x32xi1>, vector<32x32xf32>
    %1184 = vector.broadcast %1180 : f32 to vector<32x32xf32>
    %1185 = arith.mulf %1184, %1183 : vector<32x32xf32>
    %1186 = arith.addf %1179, %1185 : vector<32x32xf32>
    %c165 = arith.constant 165 : index
    %1187 = memref.load %arg2[%c165] : memref<224xf32, #tpu.memory_space<smem>>
    %1188 = vector.broadcast %1187 : f32 to vector<32x32xf32>
    %1189 = arith.mulf %1188, %953 : vector<32x32xf32>
    %1190 = arith.addf %1186, %1189 : vector<32x32xf32>
    %c166 = arith.constant 166 : index
    %1191 = memref.load %arg2[%c166] : memref<224xf32, #tpu.memory_space<smem>>
    %c31_i32_648 = arith.constant 31 : i32
    %1192 = tpu.dynamic_rotate %953 by %c31_i32_648 dim 1 : vector<32x32xf32>, i32 -> vector<32x32xf32>
    %cst_649 = arith.constant 0.000000e+00 : f32
    %1193 = vector.broadcast %cst_649 : f32 to vector<32x32xf32>
    %1194 = arith.select %96, %1192, %1193 : vector<32x32xi1>, vector<32x32xf32>
    %1195 = vector.broadcast %1191 : f32 to vector<32x32xf32>
    %1196 = arith.mulf %1195, %1194 : vector<32x32xf32>
    %1197 = arith.addf %1190, %1196 : vector<32x32xf32>
    %c167 = arith.constant 167 : index
    %1198 = memref.load %arg2[%c167] : memref<224xf32, #tpu.memory_space<smem>>
    %c31_i32_650 = arith.constant 31 : i32
    %1199 = tpu.dynamic_rotate %953 by %c31_i32_650 dim 0 : vector<32x32xf32>, i32 -> vector<32x32xf32>
    %c1_i32_651 = arith.constant 1 : i32
    %1200 = tpu.dynamic_rotate %1199 by %c1_i32_651 dim 1 : vector<32x32xf32>, i32 -> vector<32x32xf32>
    %cst_652 = arith.constant 0.000000e+00 : f32
    %1201 = vector.broadcast %cst_652 : f32 to vector<32x32xf32>
    %1202 = arith.select %115, %1200, %1201 : vector<32x32xi1>, vector<32x32xf32>
    %1203 = vector.broadcast %1198 : f32 to vector<32x32xf32>
    %1204 = arith.mulf %1203, %1202 : vector<32x32xf32>
    %1205 = arith.addf %1197, %1204 : vector<32x32xf32>
    %c168 = arith.constant 168 : index
    %1206 = memref.load %arg2[%c168] : memref<224xf32, #tpu.memory_space<smem>>
    %c31_i32_653 = arith.constant 31 : i32
    %1207 = tpu.dynamic_rotate %953 by %c31_i32_653 dim 0 : vector<32x32xf32>, i32 -> vector<32x32xf32>
    %cst_654 = arith.constant 0.000000e+00 : f32
    %1208 = vector.broadcast %cst_654 : f32 to vector<32x32xf32>
    %1209 = arith.select %134, %1207, %1208 : vector<32x32xi1>, vector<32x32xf32>
    %1210 = vector.broadcast %1206 : f32 to vector<32x32xf32>
    %1211 = arith.mulf %1210, %1209 : vector<32x32xf32>
    %1212 = arith.addf %1205, %1211 : vector<32x32xf32>
    %c169 = arith.constant 169 : index
    %1213 = memref.load %arg2[%c169] : memref<224xf32, #tpu.memory_space<smem>>
    %c31_i32_655 = arith.constant 31 : i32
    %1214 = tpu.dynamic_rotate %953 by %c31_i32_655 dim 0 : vector<32x32xf32>, i32 -> vector<32x32xf32>
    %c31_i32_656 = arith.constant 31 : i32
    %1215 = tpu.dynamic_rotate %1214 by %c31_i32_656 dim 1 : vector<32x32xf32>, i32 -> vector<32x32xf32>
    %cst_657 = arith.constant 0.000000e+00 : f32
    %1216 = vector.broadcast %cst_657 : f32 to vector<32x32xf32>
    %1217 = arith.select %153, %1215, %1216 : vector<32x32xi1>, vector<32x32xf32>
    %1218 = vector.broadcast %1213 : f32 to vector<32x32xf32>
    %1219 = arith.mulf %1218, %1217 : vector<32x32xf32>
    %1220 = arith.addf %1212, %1219 : vector<32x32xf32>
    %c171 = arith.constant 171 : index
    %1221 = memref.load %arg2[%c171] : memref<224xf32, #tpu.memory_space<smem>>
    %1222 = vector.broadcast %1221 : f32 to vector<32x32xf32>
    %1223 = arith.addf %1220, %1222 : vector<32x32xf32>
    %c173 = arith.constant 173 : index
    %1224 = memref.load %arg2[%c173] : memref<224xf32, #tpu.memory_space<smem>>
    %1225 = vector.broadcast %1224 : f32 to vector<32x32xf32>
    %1226 = arith.mulf %1223, %1225 : vector<32x32xf32>
    %c175 = arith.constant 175 : index
    %1227 = memref.load %arg2[%c175] : memref<224xf32, #tpu.memory_space<smem>>
    %1228 = vector.broadcast %1227 : f32 to vector<32x32xf32>
    %1229 = arith.addf %1226, %1228 : vector<32x32xf32>
    %cst_658 = arith.constant 0.000000e+00 : f32
    %1230 = vector.broadcast %cst_658 : f32 to vector<32x32xf32>
    %1231 = arith.cmpf ogt, %1091, %1230 : vector<32x32xf32>
    %1232 = math.exp %1091 : vector<32x32xf32>
    %cst_659 = arith.constant 1.000000e+00 : f32
    %1233 = vector.broadcast %cst_659 : f32 to vector<32x32xf32>
    %1234 = arith.subf %1232, %1233 : vector<32x32xf32>
    %1235 = arith.select %1231, %1091, %1234 : vector<32x32xi1>, vector<32x32xf32>
    %cst_660 = arith.constant 0.000000e+00 : f32
    %1236 = vector.broadcast %cst_660 : f32 to vector<32x32xf32>
    %1237 = arith.cmpf ogt, %1229, %1236 : vector<32x32xf32>
    %1238 = math.exp %1229 : vector<32x32xf32>
    %cst_661 = arith.constant 1.000000e+00 : f32
    %1239 = vector.broadcast %cst_661 : f32 to vector<32x32xf32>
    %1240 = arith.subf %1238, %1239 : vector<32x32xf32>
    %1241 = arith.select %1237, %1229, %1240 : vector<32x32xi1>, vector<32x32xf32>
    %cst_662 = arith.constant 0.000000e+00 : f32
    %1242 = vector.broadcast %cst_662 : f32 to vector<32x32xf32>
    %c176 = arith.constant 176 : index
    %1243 = memref.load %arg2[%c176] : memref<224xf32, #tpu.memory_space<smem>>
    %c1_i32_663 = arith.constant 1 : i32
    %1244 = tpu.dynamic_rotate %1235 by %c1_i32_663 dim 0 : vector<32x32xf32>, i32 -> vector<32x32xf32>
    %c1_i32_664 = arith.constant 1 : i32
    %1245 = tpu.dynamic_rotate %1244 by %c1_i32_664 dim 1 : vector<32x32xf32>, i32 -> vector<32x32xf32>
    %cst_665 = arith.constant 0.000000e+00 : f32
    %1246 = vector.broadcast %cst_665 : f32 to vector<32x32xf32>
    %1247 = arith.select %20, %1245, %1246 : vector<32x32xi1>, vector<32x32xf32>
    %1248 = vector.broadcast %1243 : f32 to vector<32x32xf32>
    %1249 = arith.mulf %1248, %1247 : vector<32x32xf32>
    %1250 = arith.addf %1242, %1249 : vector<32x32xf32>
    %c177 = arith.constant 177 : index
    %1251 = memref.load %arg2[%c177] : memref<224xf32, #tpu.memory_space<smem>>
    %c1_i32_666 = arith.constant 1 : i32
    %1252 = tpu.dynamic_rotate %1235 by %c1_i32_666 dim 0 : vector<32x32xf32>, i32 -> vector<32x32xf32>
    %cst_667 = arith.constant 0.000000e+00 : f32
    %1253 = vector.broadcast %cst_667 : f32 to vector<32x32xf32>
    %1254 = arith.select %39, %1252, %1253 : vector<32x32xi1>, vector<32x32xf32>
    %1255 = vector.broadcast %1251 : f32 to vector<32x32xf32>
    %1256 = arith.mulf %1255, %1254 : vector<32x32xf32>
    %1257 = arith.addf %1250, %1256 : vector<32x32xf32>
    %c178 = arith.constant 178 : index
    %1258 = memref.load %arg2[%c178] : memref<224xf32, #tpu.memory_space<smem>>
    %c1_i32_668 = arith.constant 1 : i32
    %1259 = tpu.dynamic_rotate %1235 by %c1_i32_668 dim 0 : vector<32x32xf32>, i32 -> vector<32x32xf32>
    %c31_i32_669 = arith.constant 31 : i32
    %1260 = tpu.dynamic_rotate %1259 by %c31_i32_669 dim 1 : vector<32x32xf32>, i32 -> vector<32x32xf32>
    %cst_670 = arith.constant 0.000000e+00 : f32
    %1261 = vector.broadcast %cst_670 : f32 to vector<32x32xf32>
    %1262 = arith.select %58, %1260, %1261 : vector<32x32xi1>, vector<32x32xf32>
    %1263 = vector.broadcast %1258 : f32 to vector<32x32xf32>
    %1264 = arith.mulf %1263, %1262 : vector<32x32xf32>
    %1265 = arith.addf %1257, %1264 : vector<32x32xf32>
    %c179 = arith.constant 179 : index
    %1266 = memref.load %arg2[%c179] : memref<224xf32, #tpu.memory_space<smem>>
    %c1_i32_671 = arith.constant 1 : i32
    %1267 = tpu.dynamic_rotate %1235 by %c1_i32_671 dim 1 : vector<32x32xf32>, i32 -> vector<32x32xf32>
    %cst_672 = arith.constant 0.000000e+00 : f32
    %1268 = vector.broadcast %cst_672 : f32 to vector<32x32xf32>
    %1269 = arith.select %77, %1267, %1268 : vector<32x32xi1>, vector<32x32xf32>
    %1270 = vector.broadcast %1266 : f32 to vector<32x32xf32>
    %1271 = arith.mulf %1270, %1269 : vector<32x32xf32>
    %1272 = arith.addf %1265, %1271 : vector<32x32xf32>
    %c180 = arith.constant 180 : index
    %1273 = memref.load %arg2[%c180] : memref<224xf32, #tpu.memory_space<smem>>
    %1274 = vector.broadcast %1273 : f32 to vector<32x32xf32>
    %1275 = arith.mulf %1274, %1235 : vector<32x32xf32>
    %1276 = arith.addf %1272, %1275 : vector<32x32xf32>
    %c181 = arith.constant 181 : index
    %1277 = memref.load %arg2[%c181] : memref<224xf32, #tpu.memory_space<smem>>
    %c31_i32_673 = arith.constant 31 : i32
    %1278 = tpu.dynamic_rotate %1235 by %c31_i32_673 dim 1 : vector<32x32xf32>, i32 -> vector<32x32xf32>
    %cst_674 = arith.constant 0.000000e+00 : f32
    %1279 = vector.broadcast %cst_674 : f32 to vector<32x32xf32>
    %1280 = arith.select %96, %1278, %1279 : vector<32x32xi1>, vector<32x32xf32>
    %1281 = vector.broadcast %1277 : f32 to vector<32x32xf32>
    %1282 = arith.mulf %1281, %1280 : vector<32x32xf32>
    %1283 = arith.addf %1276, %1282 : vector<32x32xf32>
    %c182 = arith.constant 182 : index
    %1284 = memref.load %arg2[%c182] : memref<224xf32, #tpu.memory_space<smem>>
    %c31_i32_675 = arith.constant 31 : i32
    %1285 = tpu.dynamic_rotate %1235 by %c31_i32_675 dim 0 : vector<32x32xf32>, i32 -> vector<32x32xf32>
    %c1_i32_676 = arith.constant 1 : i32
    %1286 = tpu.dynamic_rotate %1285 by %c1_i32_676 dim 1 : vector<32x32xf32>, i32 -> vector<32x32xf32>
    %cst_677 = arith.constant 0.000000e+00 : f32
    %1287 = vector.broadcast %cst_677 : f32 to vector<32x32xf32>
    %1288 = arith.select %115, %1286, %1287 : vector<32x32xi1>, vector<32x32xf32>
    %1289 = vector.broadcast %1284 : f32 to vector<32x32xf32>
    %1290 = arith.mulf %1289, %1288 : vector<32x32xf32>
    %1291 = arith.addf %1283, %1290 : vector<32x32xf32>
    %c183 = arith.constant 183 : index
    %1292 = memref.load %arg2[%c183] : memref<224xf32, #tpu.memory_space<smem>>
    %c31_i32_678 = arith.constant 31 : i32
    %1293 = tpu.dynamic_rotate %1235 by %c31_i32_678 dim 0 : vector<32x32xf32>, i32 -> vector<32x32xf32>
    %cst_679 = arith.constant 0.000000e+00 : f32
    %1294 = vector.broadcast %cst_679 : f32 to vector<32x32xf32>
    %1295 = arith.select %134, %1293, %1294 : vector<32x32xi1>, vector<32x32xf32>
    %1296 = vector.broadcast %1292 : f32 to vector<32x32xf32>
    %1297 = arith.mulf %1296, %1295 : vector<32x32xf32>
    %1298 = arith.addf %1291, %1297 : vector<32x32xf32>
    %c184 = arith.constant 184 : index
    %1299 = memref.load %arg2[%c184] : memref<224xf32, #tpu.memory_space<smem>>
    %c31_i32_680 = arith.constant 31 : i32
    %1300 = tpu.dynamic_rotate %1235 by %c31_i32_680 dim 0 : vector<32x32xf32>, i32 -> vector<32x32xf32>
    %c31_i32_681 = arith.constant 31 : i32
    %1301 = tpu.dynamic_rotate %1300 by %c31_i32_681 dim 1 : vector<32x32xf32>, i32 -> vector<32x32xf32>
    %cst_682 = arith.constant 0.000000e+00 : f32
    %1302 = vector.broadcast %cst_682 : f32 to vector<32x32xf32>
    %1303 = arith.select %153, %1301, %1302 : vector<32x32xi1>, vector<32x32xf32>
    %1304 = vector.broadcast %1299 : f32 to vector<32x32xf32>
    %1305 = arith.mulf %1304, %1303 : vector<32x32xf32>
    %1306 = arith.addf %1298, %1305 : vector<32x32xf32>
    %c185 = arith.constant 185 : index
    %1307 = memref.load %arg2[%c185] : memref<224xf32, #tpu.memory_space<smem>>
    %c1_i32_683 = arith.constant 1 : i32
    %1308 = tpu.dynamic_rotate %1241 by %c1_i32_683 dim 0 : vector<32x32xf32>, i32 -> vector<32x32xf32>
    %c1_i32_684 = arith.constant 1 : i32
    %1309 = tpu.dynamic_rotate %1308 by %c1_i32_684 dim 1 : vector<32x32xf32>, i32 -> vector<32x32xf32>
    %cst_685 = arith.constant 0.000000e+00 : f32
    %1310 = vector.broadcast %cst_685 : f32 to vector<32x32xf32>
    %1311 = arith.select %20, %1309, %1310 : vector<32x32xi1>, vector<32x32xf32>
    %1312 = vector.broadcast %1307 : f32 to vector<32x32xf32>
    %1313 = arith.mulf %1312, %1311 : vector<32x32xf32>
    %1314 = arith.addf %1306, %1313 : vector<32x32xf32>
    %c186 = arith.constant 186 : index
    %1315 = memref.load %arg2[%c186] : memref<224xf32, #tpu.memory_space<smem>>
    %c1_i32_686 = arith.constant 1 : i32
    %1316 = tpu.dynamic_rotate %1241 by %c1_i32_686 dim 0 : vector<32x32xf32>, i32 -> vector<32x32xf32>
    %cst_687 = arith.constant 0.000000e+00 : f32
    %1317 = vector.broadcast %cst_687 : f32 to vector<32x32xf32>
    %1318 = arith.select %39, %1316, %1317 : vector<32x32xi1>, vector<32x32xf32>
    %1319 = vector.broadcast %1315 : f32 to vector<32x32xf32>
    %1320 = arith.mulf %1319, %1318 : vector<32x32xf32>
    %1321 = arith.addf %1314, %1320 : vector<32x32xf32>
    %c187 = arith.constant 187 : index
    %1322 = memref.load %arg2[%c187] : memref<224xf32, #tpu.memory_space<smem>>
    %c1_i32_688 = arith.constant 1 : i32
    %1323 = tpu.dynamic_rotate %1241 by %c1_i32_688 dim 0 : vector<32x32xf32>, i32 -> vector<32x32xf32>
    %c31_i32_689 = arith.constant 31 : i32
    %1324 = tpu.dynamic_rotate %1323 by %c31_i32_689 dim 1 : vector<32x32xf32>, i32 -> vector<32x32xf32>
    %cst_690 = arith.constant 0.000000e+00 : f32
    %1325 = vector.broadcast %cst_690 : f32 to vector<32x32xf32>
    %1326 = arith.select %58, %1324, %1325 : vector<32x32xi1>, vector<32x32xf32>
    %1327 = vector.broadcast %1322 : f32 to vector<32x32xf32>
    %1328 = arith.mulf %1327, %1326 : vector<32x32xf32>
    %1329 = arith.addf %1321, %1328 : vector<32x32xf32>
    %c188 = arith.constant 188 : index
    %1330 = memref.load %arg2[%c188] : memref<224xf32, #tpu.memory_space<smem>>
    %c1_i32_691 = arith.constant 1 : i32
    %1331 = tpu.dynamic_rotate %1241 by %c1_i32_691 dim 1 : vector<32x32xf32>, i32 -> vector<32x32xf32>
    %cst_692 = arith.constant 0.000000e+00 : f32
    %1332 = vector.broadcast %cst_692 : f32 to vector<32x32xf32>
    %1333 = arith.select %77, %1331, %1332 : vector<32x32xi1>, vector<32x32xf32>
    %1334 = vector.broadcast %1330 : f32 to vector<32x32xf32>
    %1335 = arith.mulf %1334, %1333 : vector<32x32xf32>
    %1336 = arith.addf %1329, %1335 : vector<32x32xf32>
    %c189 = arith.constant 189 : index
    %1337 = memref.load %arg2[%c189] : memref<224xf32, #tpu.memory_space<smem>>
    %1338 = vector.broadcast %1337 : f32 to vector<32x32xf32>
    %1339 = arith.mulf %1338, %1241 : vector<32x32xf32>
    %1340 = arith.addf %1336, %1339 : vector<32x32xf32>
    %c190 = arith.constant 190 : index
    %1341 = memref.load %arg2[%c190] : memref<224xf32, #tpu.memory_space<smem>>
    %c31_i32_693 = arith.constant 31 : i32
    %1342 = tpu.dynamic_rotate %1241 by %c31_i32_693 dim 1 : vector<32x32xf32>, i32 -> vector<32x32xf32>
    %cst_694 = arith.constant 0.000000e+00 : f32
    %1343 = vector.broadcast %cst_694 : f32 to vector<32x32xf32>
    %1344 = arith.select %96, %1342, %1343 : vector<32x32xi1>, vector<32x32xf32>
    %1345 = vector.broadcast %1341 : f32 to vector<32x32xf32>
    %1346 = arith.mulf %1345, %1344 : vector<32x32xf32>
    %1347 = arith.addf %1340, %1346 : vector<32x32xf32>
    %c191 = arith.constant 191 : index
    %1348 = memref.load %arg2[%c191] : memref<224xf32, #tpu.memory_space<smem>>
    %c31_i32_695 = arith.constant 31 : i32
    %1349 = tpu.dynamic_rotate %1241 by %c31_i32_695 dim 0 : vector<32x32xf32>, i32 -> vector<32x32xf32>
    %c1_i32_696 = arith.constant 1 : i32
    %1350 = tpu.dynamic_rotate %1349 by %c1_i32_696 dim 1 : vector<32x32xf32>, i32 -> vector<32x32xf32>
    %cst_697 = arith.constant 0.000000e+00 : f32
    %1351 = vector.broadcast %cst_697 : f32 to vector<32x32xf32>
    %1352 = arith.select %115, %1350, %1351 : vector<32x32xi1>, vector<32x32xf32>
    %1353 = vector.broadcast %1348 : f32 to vector<32x32xf32>
    %1354 = arith.mulf %1353, %1352 : vector<32x32xf32>
    %1355 = arith.addf %1347, %1354 : vector<32x32xf32>
    %c192 = arith.constant 192 : index
    %1356 = memref.load %arg2[%c192] : memref<224xf32, #tpu.memory_space<smem>>
    %c31_i32_698 = arith.constant 31 : i32
    %1357 = tpu.dynamic_rotate %1241 by %c31_i32_698 dim 0 : vector<32x32xf32>, i32 -> vector<32x32xf32>
    %cst_699 = arith.constant 0.000000e+00 : f32
    %1358 = vector.broadcast %cst_699 : f32 to vector<32x32xf32>
    %1359 = arith.select %134, %1357, %1358 : vector<32x32xi1>, vector<32x32xf32>
    %1360 = vector.broadcast %1356 : f32 to vector<32x32xf32>
    %1361 = arith.mulf %1360, %1359 : vector<32x32xf32>
    %1362 = arith.addf %1355, %1361 : vector<32x32xf32>
    %c193 = arith.constant 193 : index
    %1363 = memref.load %arg2[%c193] : memref<224xf32, #tpu.memory_space<smem>>
    %c31_i32_700 = arith.constant 31 : i32
    %1364 = tpu.dynamic_rotate %1241 by %c31_i32_700 dim 0 : vector<32x32xf32>, i32 -> vector<32x32xf32>
    %c31_i32_701 = arith.constant 31 : i32
    %1365 = tpu.dynamic_rotate %1364 by %c31_i32_701 dim 1 : vector<32x32xf32>, i32 -> vector<32x32xf32>
    %cst_702 = arith.constant 0.000000e+00 : f32
    %1366 = vector.broadcast %cst_702 : f32 to vector<32x32xf32>
    %1367 = arith.select %153, %1365, %1366 : vector<32x32xi1>, vector<32x32xf32>
    %1368 = vector.broadcast %1363 : f32 to vector<32x32xf32>
    %1369 = arith.mulf %1368, %1367 : vector<32x32xf32>
    %1370 = arith.addf %1362, %1369 : vector<32x32xf32>
    %c212 = arith.constant 212 : index
    %1371 = memref.load %arg2[%c212] : memref<224xf32, #tpu.memory_space<smem>>
    %1372 = vector.broadcast %1371 : f32 to vector<32x32xf32>
    %1373 = arith.addf %1370, %1372 : vector<32x32xf32>
    %c214 = arith.constant 214 : index
    %1374 = memref.load %arg2[%c214] : memref<224xf32, #tpu.memory_space<smem>>
    %1375 = vector.broadcast %1374 : f32 to vector<32x32xf32>
    %1376 = arith.mulf %1373, %1375 : vector<32x32xf32>
    %c216 = arith.constant 216 : index
    %1377 = memref.load %arg2[%c216] : memref<224xf32, #tpu.memory_space<smem>>
    %1378 = vector.broadcast %1377 : f32 to vector<32x32xf32>
    %1379 = arith.addf %1376, %1378 : vector<32x32xf32>
    %cst_703 = arith.constant 0.000000e+00 : f32
    %1380 = vector.broadcast %cst_703 : f32 to vector<32x32xf32>
    %c194 = arith.constant 194 : index
    %1381 = memref.load %arg2[%c194] : memref<224xf32, #tpu.memory_space<smem>>
    %c1_i32_704 = arith.constant 1 : i32
    %1382 = tpu.dynamic_rotate %1235 by %c1_i32_704 dim 0 : vector<32x32xf32>, i32 -> vector<32x32xf32>
    %c1_i32_705 = arith.constant 1 : i32
    %1383 = tpu.dynamic_rotate %1382 by %c1_i32_705 dim 1 : vector<32x32xf32>, i32 -> vector<32x32xf32>
    %cst_706 = arith.constant 0.000000e+00 : f32
    %1384 = vector.broadcast %cst_706 : f32 to vector<32x32xf32>
    %1385 = arith.select %20, %1383, %1384 : vector<32x32xi1>, vector<32x32xf32>
    %1386 = vector.broadcast %1381 : f32 to vector<32x32xf32>
    %1387 = arith.mulf %1386, %1385 : vector<32x32xf32>
    %1388 = arith.addf %1380, %1387 : vector<32x32xf32>
    %c195 = arith.constant 195 : index
    %1389 = memref.load %arg2[%c195] : memref<224xf32, #tpu.memory_space<smem>>
    %c1_i32_707 = arith.constant 1 : i32
    %1390 = tpu.dynamic_rotate %1235 by %c1_i32_707 dim 0 : vector<32x32xf32>, i32 -> vector<32x32xf32>
    %cst_708 = arith.constant 0.000000e+00 : f32
    %1391 = vector.broadcast %cst_708 : f32 to vector<32x32xf32>
    %1392 = arith.select %39, %1390, %1391 : vector<32x32xi1>, vector<32x32xf32>
    %1393 = vector.broadcast %1389 : f32 to vector<32x32xf32>
    %1394 = arith.mulf %1393, %1392 : vector<32x32xf32>
    %1395 = arith.addf %1388, %1394 : vector<32x32xf32>
    %c196 = arith.constant 196 : index
    %1396 = memref.load %arg2[%c196] : memref<224xf32, #tpu.memory_space<smem>>
    %c1_i32_709 = arith.constant 1 : i32
    %1397 = tpu.dynamic_rotate %1235 by %c1_i32_709 dim 0 : vector<32x32xf32>, i32 -> vector<32x32xf32>
    %c31_i32_710 = arith.constant 31 : i32
    %1398 = tpu.dynamic_rotate %1397 by %c31_i32_710 dim 1 : vector<32x32xf32>, i32 -> vector<32x32xf32>
    %cst_711 = arith.constant 0.000000e+00 : f32
    %1399 = vector.broadcast %cst_711 : f32 to vector<32x32xf32>
    %1400 = arith.select %58, %1398, %1399 : vector<32x32xi1>, vector<32x32xf32>
    %1401 = vector.broadcast %1396 : f32 to vector<32x32xf32>
    %1402 = arith.mulf %1401, %1400 : vector<32x32xf32>
    %1403 = arith.addf %1395, %1402 : vector<32x32xf32>
    %c197 = arith.constant 197 : index
    %1404 = memref.load %arg2[%c197] : memref<224xf32, #tpu.memory_space<smem>>
    %c1_i32_712 = arith.constant 1 : i32
    %1405 = tpu.dynamic_rotate %1235 by %c1_i32_712 dim 1 : vector<32x32xf32>, i32 -> vector<32x32xf32>
    %cst_713 = arith.constant 0.000000e+00 : f32
    %1406 = vector.broadcast %cst_713 : f32 to vector<32x32xf32>
    %1407 = arith.select %77, %1405, %1406 : vector<32x32xi1>, vector<32x32xf32>
    %1408 = vector.broadcast %1404 : f32 to vector<32x32xf32>
    %1409 = arith.mulf %1408, %1407 : vector<32x32xf32>
    %1410 = arith.addf %1403, %1409 : vector<32x32xf32>
    %c198 = arith.constant 198 : index
    %1411 = memref.load %arg2[%c198] : memref<224xf32, #tpu.memory_space<smem>>
    %1412 = vector.broadcast %1411 : f32 to vector<32x32xf32>
    %1413 = arith.mulf %1412, %1235 : vector<32x32xf32>
    %1414 = arith.addf %1410, %1413 : vector<32x32xf32>
    %c199 = arith.constant 199 : index
    %1415 = memref.load %arg2[%c199] : memref<224xf32, #tpu.memory_space<smem>>
    %c31_i32_714 = arith.constant 31 : i32
    %1416 = tpu.dynamic_rotate %1235 by %c31_i32_714 dim 1 : vector<32x32xf32>, i32 -> vector<32x32xf32>
    %cst_715 = arith.constant 0.000000e+00 : f32
    %1417 = vector.broadcast %cst_715 : f32 to vector<32x32xf32>
    %1418 = arith.select %96, %1416, %1417 : vector<32x32xi1>, vector<32x32xf32>
    %1419 = vector.broadcast %1415 : f32 to vector<32x32xf32>
    %1420 = arith.mulf %1419, %1418 : vector<32x32xf32>
    %1421 = arith.addf %1414, %1420 : vector<32x32xf32>
    %c200 = arith.constant 200 : index
    %1422 = memref.load %arg2[%c200] : memref<224xf32, #tpu.memory_space<smem>>
    %c31_i32_716 = arith.constant 31 : i32
    %1423 = tpu.dynamic_rotate %1235 by %c31_i32_716 dim 0 : vector<32x32xf32>, i32 -> vector<32x32xf32>
    %c1_i32_717 = arith.constant 1 : i32
    %1424 = tpu.dynamic_rotate %1423 by %c1_i32_717 dim 1 : vector<32x32xf32>, i32 -> vector<32x32xf32>
    %cst_718 = arith.constant 0.000000e+00 : f32
    %1425 = vector.broadcast %cst_718 : f32 to vector<32x32xf32>
    %1426 = arith.select %115, %1424, %1425 : vector<32x32xi1>, vector<32x32xf32>
    %1427 = vector.broadcast %1422 : f32 to vector<32x32xf32>
    %1428 = arith.mulf %1427, %1426 : vector<32x32xf32>
    %1429 = arith.addf %1421, %1428 : vector<32x32xf32>
    %c201 = arith.constant 201 : index
    %1430 = memref.load %arg2[%c201] : memref<224xf32, #tpu.memory_space<smem>>
    %c31_i32_719 = arith.constant 31 : i32
    %1431 = tpu.dynamic_rotate %1235 by %c31_i32_719 dim 0 : vector<32x32xf32>, i32 -> vector<32x32xf32>
    %cst_720 = arith.constant 0.000000e+00 : f32
    %1432 = vector.broadcast %cst_720 : f32 to vector<32x32xf32>
    %1433 = arith.select %134, %1431, %1432 : vector<32x32xi1>, vector<32x32xf32>
    %1434 = vector.broadcast %1430 : f32 to vector<32x32xf32>
    %1435 = arith.mulf %1434, %1433 : vector<32x32xf32>
    %1436 = arith.addf %1429, %1435 : vector<32x32xf32>
    %c202 = arith.constant 202 : index
    %1437 = memref.load %arg2[%c202] : memref<224xf32, #tpu.memory_space<smem>>
    %c31_i32_721 = arith.constant 31 : i32
    %1438 = tpu.dynamic_rotate %1235 by %c31_i32_721 dim 0 : vector<32x32xf32>, i32 -> vector<32x32xf32>
    %c31_i32_722 = arith.constant 31 : i32
    %1439 = tpu.dynamic_rotate %1438 by %c31_i32_722 dim 1 : vector<32x32xf32>, i32 -> vector<32x32xf32>
    %cst_723 = arith.constant 0.000000e+00 : f32
    %1440 = vector.broadcast %cst_723 : f32 to vector<32x32xf32>
    %1441 = arith.select %153, %1439, %1440 : vector<32x32xi1>, vector<32x32xf32>
    %1442 = vector.broadcast %1437 : f32 to vector<32x32xf32>
    %1443 = arith.mulf %1442, %1441 : vector<32x32xf32>
    %1444 = arith.addf %1436, %1443 : vector<32x32xf32>
    %c203 = arith.constant 203 : index
    %1445 = memref.load %arg2[%c203] : memref<224xf32, #tpu.memory_space<smem>>
    %c1_i32_724 = arith.constant 1 : i32
    %1446 = tpu.dynamic_rotate %1241 by %c1_i32_724 dim 0 : vector<32x32xf32>, i32 -> vector<32x32xf32>
    %c1_i32_725 = arith.constant 1 : i32
    %1447 = tpu.dynamic_rotate %1446 by %c1_i32_725 dim 1 : vector<32x32xf32>, i32 -> vector<32x32xf32>
    %cst_726 = arith.constant 0.000000e+00 : f32
    %1448 = vector.broadcast %cst_726 : f32 to vector<32x32xf32>
    %1449 = arith.select %20, %1447, %1448 : vector<32x32xi1>, vector<32x32xf32>
    %1450 = vector.broadcast %1445 : f32 to vector<32x32xf32>
    %1451 = arith.mulf %1450, %1449 : vector<32x32xf32>
    %1452 = arith.addf %1444, %1451 : vector<32x32xf32>
    %c204 = arith.constant 204 : index
    %1453 = memref.load %arg2[%c204] : memref<224xf32, #tpu.memory_space<smem>>
    %c1_i32_727 = arith.constant 1 : i32
    %1454 = tpu.dynamic_rotate %1241 by %c1_i32_727 dim 0 : vector<32x32xf32>, i32 -> vector<32x32xf32>
    %cst_728 = arith.constant 0.000000e+00 : f32
    %1455 = vector.broadcast %cst_728 : f32 to vector<32x32xf32>
    %1456 = arith.select %39, %1454, %1455 : vector<32x32xi1>, vector<32x32xf32>
    %1457 = vector.broadcast %1453 : f32 to vector<32x32xf32>
    %1458 = arith.mulf %1457, %1456 : vector<32x32xf32>
    %1459 = arith.addf %1452, %1458 : vector<32x32xf32>
    %c205 = arith.constant 205 : index
    %1460 = memref.load %arg2[%c205] : memref<224xf32, #tpu.memory_space<smem>>
    %c1_i32_729 = arith.constant 1 : i32
    %1461 = tpu.dynamic_rotate %1241 by %c1_i32_729 dim 0 : vector<32x32xf32>, i32 -> vector<32x32xf32>
    %c31_i32_730 = arith.constant 31 : i32
    %1462 = tpu.dynamic_rotate %1461 by %c31_i32_730 dim 1 : vector<32x32xf32>, i32 -> vector<32x32xf32>
    %cst_731 = arith.constant 0.000000e+00 : f32
    %1463 = vector.broadcast %cst_731 : f32 to vector<32x32xf32>
    %1464 = arith.select %58, %1462, %1463 : vector<32x32xi1>, vector<32x32xf32>
    %1465 = vector.broadcast %1460 : f32 to vector<32x32xf32>
    %1466 = arith.mulf %1465, %1464 : vector<32x32xf32>
    %1467 = arith.addf %1459, %1466 : vector<32x32xf32>
    %c206 = arith.constant 206 : index
    %1468 = memref.load %arg2[%c206] : memref<224xf32, #tpu.memory_space<smem>>
    %c1_i32_732 = arith.constant 1 : i32
    %1469 = tpu.dynamic_rotate %1241 by %c1_i32_732 dim 1 : vector<32x32xf32>, i32 -> vector<32x32xf32>
    %cst_733 = arith.constant 0.000000e+00 : f32
    %1470 = vector.broadcast %cst_733 : f32 to vector<32x32xf32>
    %1471 = arith.select %77, %1469, %1470 : vector<32x32xi1>, vector<32x32xf32>
    %1472 = vector.broadcast %1468 : f32 to vector<32x32xf32>
    %1473 = arith.mulf %1472, %1471 : vector<32x32xf32>
    %1474 = arith.addf %1467, %1473 : vector<32x32xf32>
    %c207 = arith.constant 207 : index
    %1475 = memref.load %arg2[%c207] : memref<224xf32, #tpu.memory_space<smem>>
    %1476 = vector.broadcast %1475 : f32 to vector<32x32xf32>
    %1477 = arith.mulf %1476, %1241 : vector<32x32xf32>
    %1478 = arith.addf %1474, %1477 : vector<32x32xf32>
    %c208 = arith.constant 208 : index
    %1479 = memref.load %arg2[%c208] : memref<224xf32, #tpu.memory_space<smem>>
    %c31_i32_734 = arith.constant 31 : i32
    %1480 = tpu.dynamic_rotate %1241 by %c31_i32_734 dim 1 : vector<32x32xf32>, i32 -> vector<32x32xf32>
    %cst_735 = arith.constant 0.000000e+00 : f32
    %1481 = vector.broadcast %cst_735 : f32 to vector<32x32xf32>
    %1482 = arith.select %96, %1480, %1481 : vector<32x32xi1>, vector<32x32xf32>
    %1483 = vector.broadcast %1479 : f32 to vector<32x32xf32>
    %1484 = arith.mulf %1483, %1482 : vector<32x32xf32>
    %1485 = arith.addf %1478, %1484 : vector<32x32xf32>
    %c209 = arith.constant 209 : index
    %1486 = memref.load %arg2[%c209] : memref<224xf32, #tpu.memory_space<smem>>
    %c31_i32_736 = arith.constant 31 : i32
    %1487 = tpu.dynamic_rotate %1241 by %c31_i32_736 dim 0 : vector<32x32xf32>, i32 -> vector<32x32xf32>
    %c1_i32_737 = arith.constant 1 : i32
    %1488 = tpu.dynamic_rotate %1487 by %c1_i32_737 dim 1 : vector<32x32xf32>, i32 -> vector<32x32xf32>
    %cst_738 = arith.constant 0.000000e+00 : f32
    %1489 = vector.broadcast %cst_738 : f32 to vector<32x32xf32>
    %1490 = arith.select %115, %1488, %1489 : vector<32x32xi1>, vector<32x32xf32>
    %1491 = vector.broadcast %1486 : f32 to vector<32x32xf32>
    %1492 = arith.mulf %1491, %1490 : vector<32x32xf32>
    %1493 = arith.addf %1485, %1492 : vector<32x32xf32>
    %c210 = arith.constant 210 : index
    %1494 = memref.load %arg2[%c210] : memref<224xf32, #tpu.memory_space<smem>>
    %c31_i32_739 = arith.constant 31 : i32
    %1495 = tpu.dynamic_rotate %1241 by %c31_i32_739 dim 0 : vector<32x32xf32>, i32 -> vector<32x32xf32>
    %cst_740 = arith.constant 0.000000e+00 : f32
    %1496 = vector.broadcast %cst_740 : f32 to vector<32x32xf32>
    %1497 = arith.select %134, %1495, %1496 : vector<32x32xi1>, vector<32x32xf32>
    %1498 = vector.broadcast %1494 : f32 to vector<32x32xf32>
    %1499 = arith.mulf %1498, %1497 : vector<32x32xf32>
    %1500 = arith.addf %1493, %1499 : vector<32x32xf32>
    %c211 = arith.constant 211 : index
    %1501 = memref.load %arg2[%c211] : memref<224xf32, #tpu.memory_space<smem>>
    %c31_i32_741 = arith.constant 31 : i32
    %1502 = tpu.dynamic_rotate %1241 by %c31_i32_741 dim 0 : vector<32x32xf32>, i32 -> vector<32x32xf32>
    %c31_i32_742 = arith.constant 31 : i32
    %1503 = tpu.dynamic_rotate %1502 by %c31_i32_742 dim 1 : vector<32x32xf32>, i32 -> vector<32x32xf32>
    %cst_743 = arith.constant 0.000000e+00 : f32
    %1504 = vector.broadcast %cst_743 : f32 to vector<32x32xf32>
    %1505 = arith.select %153, %1503, %1504 : vector<32x32xi1>, vector<32x32xf32>
    %1506 = vector.broadcast %1501 : f32 to vector<32x32xf32>
    %1507 = arith.mulf %1506, %1505 : vector<32x32xf32>
    %1508 = arith.addf %1500, %1507 : vector<32x32xf32>
    %c213 = arith.constant 213 : index
    %1509 = memref.load %arg2[%c213] : memref<224xf32, #tpu.memory_space<smem>>
    %1510 = vector.broadcast %1509 : f32 to vector<32x32xf32>
    %1511 = arith.addf %1508, %1510 : vector<32x32xf32>
    %c215 = arith.constant 215 : index
    %1512 = memref.load %arg2[%c215] : memref<224xf32, #tpu.memory_space<smem>>
    %1513 = vector.broadcast %1512 : f32 to vector<32x32xf32>
    %1514 = arith.mulf %1511, %1513 : vector<32x32xf32>
    %c217 = arith.constant 217 : index
    %1515 = memref.load %arg2[%c217] : memref<224xf32, #tpu.memory_space<smem>>
    %1516 = vector.broadcast %1515 : f32 to vector<32x32xf32>
    %1517 = arith.addf %1514, %1516 : vector<32x32xf32>
    %1518 = arith.addf %541, %1379 : vector<32x32xf32>
    %cst_744 = arith.constant 0.000000e+00 : f32
    %1519 = vector.broadcast %cst_744 : f32 to vector<32x32xf32>
    %1520 = arith.cmpf ogt, %1518, %1519 : vector<32x32xf32>
    %1521 = math.exp %1518 : vector<32x32xf32>
    %cst_745 = arith.constant 1.000000e+00 : f32
    %1522 = vector.broadcast %cst_745 : f32 to vector<32x32xf32>
    %1523 = arith.subf %1521, %1522 : vector<32x32xf32>
    %1524 = arith.select %1520, %1518, %1523 : vector<32x32xi1>, vector<32x32xf32>
    %1525 = arith.addf %929, %1517 : vector<32x32xf32>
    %cst_746 = arith.constant 0.000000e+00 : f32
    %1526 = vector.broadcast %cst_746 : f32 to vector<32x32xf32>
    %1527 = arith.cmpf ogt, %1525, %1526 : vector<32x32xf32>
    %1528 = math.exp %1525 : vector<32x32xf32>
    %cst_747 = arith.constant 1.000000e+00 : f32
    %1529 = vector.broadcast %cst_747 : f32 to vector<32x32xf32>
    %1530 = arith.subf %1528, %1529 : vector<32x32xf32>
    %1531 = arith.select %1527, %1525, %1530 : vector<32x32xi1>, vector<32x32xf32>
    %cst_748 = arith.constant 0.000000e+00 : f32
    %1532 = vector.broadcast %cst_748 : f32 to vector<32x32xf32>
    %c218 = arith.constant 218 : index
    %1533 = memref.load %arg2[%c218] : memref<224xf32, #tpu.memory_space<smem>>
    %1534 = vector.broadcast %1533 : f32 to vector<32x32xf32>
    %1535 = arith.mulf %1534, %1524 : vector<32x32xf32>
    %1536 = arith.addf %1532, %1535 : vector<32x32xf32>
    %c219 = arith.constant 219 : index
    %1537 = memref.load %arg2[%c219] : memref<224xf32, #tpu.memory_space<smem>>
    %1538 = vector.broadcast %1537 : f32 to vector<32x32xf32>
    %1539 = arith.mulf %1538, %1531 : vector<32x32xf32>
    %1540 = arith.addf %1536, %1539 : vector<32x32xf32>
    %c222 = arith.constant 222 : index
    %1541 = memref.load %arg2[%c222] : memref<224xf32, #tpu.memory_space<smem>>
    %1542 = vector.broadcast %1541 : f32 to vector<32x32xf32>
    %1543 = arith.addf %1540, %1542 : vector<32x32xf32>
    %cst_749 = arith.constant 0.000000e+00 : f32
    %1544 = vector.broadcast %cst_749 : f32 to vector<32x32xf32>
    %c220 = arith.constant 220 : index
    %1545 = memref.load %arg2[%c220] : memref<224xf32, #tpu.memory_space<smem>>
    %1546 = vector.broadcast %1545 : f32 to vector<32x32xf32>
    %1547 = arith.mulf %1546, %1524 : vector<32x32xf32>
    %1548 = arith.addf %1544, %1547 : vector<32x32xf32>
    %c221 = arith.constant 221 : index
    %1549 = memref.load %arg2[%c221] : memref<224xf32, #tpu.memory_space<smem>>
    %1550 = vector.broadcast %1549 : f32 to vector<32x32xf32>
    %1551 = arith.mulf %1550, %1531 : vector<32x32xf32>
    %1552 = arith.addf %1548, %1551 : vector<32x32xf32>
    %c223 = arith.constant 223 : index
    %1553 = memref.load %arg2[%c223] : memref<224xf32, #tpu.memory_space<smem>>
    %1554 = vector.broadcast %1553 : f32 to vector<32x32xf32>
    %1555 = arith.addf %1552, %1554 : vector<32x32xf32>
    %1556 = arith.maximumf %1543, %1555 : vector<32x32xf32>
    %1557 = arith.subf %1543, %1556 : vector<32x32xf32>
    %1558 = math.exp %1557 : vector<32x32xf32>
    %1559 = arith.subf %1555, %1556 : vector<32x32xf32>
    %1560 = math.exp %1559 : vector<32x32xf32>
    %1561 = arith.addf %1558, %1560 : vector<32x32xf32>
    %cst_750 = arith.constant 1.000000e+00 : f32
    %1562 = vector.broadcast %cst_750 : f32 to vector<32x32xf32>
    %1563 = arith.divf %1562, %1561 : vector<32x32xf32>
    %1564 = arith.mulf %1558, %1563 : vector<32x32xf32>
    %c0_751 = arith.constant 0 : index
    %c0_752 = arith.constant 0 : index
    %c0_753 = arith.constant 0 : index
    %c0_754 = arith.constant 0 : index
    %1565 = vector.load %arg3[%c0_751, %c0_752, %c0_753, %c0_754] : memref<1x2x32x32xf32, #tpu.memory_space<vmem>>, vector<1x1x32x32xf32>
    %1566 = vector.shape_cast %1565 : vector<1x1x32x32xf32> to vector<32x32xf32>
    %1567 = vector.shape_cast %1564 : vector<32x32xf32> to vector<1x1x32x32xf32>
    tpu.vector_store %arg3[%c0_751, %c0_752, %c0_753, %c0_754], %1567 {strides = array<i32>} : memref<1x2x32x32xf32, #tpu.memory_space<vmem>>, vector<1x1x32x32xf32>,
    %1568 = arith.mulf %1560, %1563 : vector<32x32xf32>
    %c0_755 = arith.constant 0 : index
    %c1_756 = arith.constant 1 : index
    %c0_757 = arith.constant 0 : index
    %c0_758 = arith.constant 0 : index
    %1569 = vector.load %arg3[%c0_755, %c1_756, %c0_757, %c0_758] : memref<1x2x32x32xf32, #tpu.memory_space<vmem>>, vector<1x1x32x32xf32>
    %1570 = vector.shape_cast %1569 : vector<1x1x32x32xf32> to vector<32x32xf32>
    %1571 = vector.shape_cast %1568 : vector<32x32xf32> to vector<1x1x32x32xf32>
    tpu.vector_store %arg3[%c0_755, %c1_756, %c0_757, %c0_758], %1571 {strides = array<i32>} : memref<1x2x32x32xf32, #tpu.memory_space<vmem>>, vector<1x1x32x32xf32>,
    return
  }
  func.func @transform_0(%arg0: i32) -> (i32, i32, i32, i32) {
    %c0_i32 = arith.constant 0 : i32
    %c0_i32_0 = arith.constant 0 : i32
    %c0_i32_1 = arith.constant 0 : i32
    %c0_i32_2 = arith.constant 0 : i32
    return %arg0, %c0_i32, %c0_i32_0, %c0_i32_1 : i32, i32, i32, i32
  }
  func.func @transform_1(%arg0: i32) -> i32 {
    %c0_i32 = arith.constant 0 : i32
    %c0_i32_0 = arith.constant 0 : i32
    return %c0_i32 : i32
  }
  func.func @transform_2(%arg0: i32) -> (i32, i32, i32, i32) {
    %c0_i32 = arith.constant 0 : i32
    %c0_i32_0 = arith.constant 0 : i32
    %c0_i32_1 = arith.constant 0 : i32
    %c0_i32_2 = arith.constant 0 : i32
    return %arg0, %c0_i32, %c0_i32_0, %c0_i32_1 : i32, i32, i32, i32
  }
}

</mosaic_0001>

<bundles_post_ra>
// kernel: tpu_custom_call.1
= control target key start
LH: loop header
LB: loop body
LE: loop exit
PB: predicated region body
PF: predicated region fallthrough
CT: control target
= control target key end

     0   :  { %s10261_s0 = inlined_call_operand.vmem [shape: f32[2,4,35,35], index: 0, kind: input, shape index: {}]   ;;  %s10262_s1 = inlined_call_operand.vmem [shape: f32[224], index: 1, kind: input, shape index: {}]   ;;  %s10263_s2 = inlined_call_operand.hbm [shape: f32[2,2,32,32], index: 2, kind: output, shape index: {}]  }
   0x1   :  { %10355 = sst [smem:[#allocation215_spill]] %s10261_s0 }
   0x2   :  { %10356 = sst [smem:[#allocation216_spill]] %s10262_s1 }
   0x3   :  { %7 = vsyncpa [#allocation4], 0 }
   0x4   :  { %8 = vsyncpa [#allocation3], 0 }
   0x5   :  { %10 = vsyncpa [#allocation3 + $0x1], 0  ;;  %s5813_s9 = smov 0   ;;  %s5815_s10 = smov 0  }
   0x6   :  { %s5817_s11 = smov 0   ;;  %s5819_s12 = smov 0  }
   0x7 LB: > { %s5834_s13 = sadd.s32 4294967295, %s5787_s12   ;;  %s5135_s14 = sadd.s32 4294967294, %s5787_s12   ;;  %s5787_s12 = sphi %s5819_s12, %s11132_s12   ;;  %s5783_s11 = sphi %s5817_s11, %s11131_s11   ;;  %s5779_s10 = sphi %s5815_s10, %s11130_s10   ;;  %s5775_s9 = sphi %s5813_s9, %s11129_s9  }
   0x8   : > { %s5838_s15 = sadd.s32 1, %s5787_s12   ;;  %s70_s16 = sadd.s32 1, %s5783_s11 }
   0x9   : > { %s67_s17 = ssub.s32 %s5787_s12, %s5838_s15  ;;  %p80_p0 = scmp.ne.s32.totalorder %s5783_s11, %s5779_s10 }
   0xa   : > { %p68_p1 = scmp.eq.s32.totalorder %s67_s17, 0  ;;  %p81_p2 = scmp.eq.s32.totalorder %s5834_s13, 1 }
   0xb   : > { %p86_p3 = scmp.ne.s32.totalorder %s5779_s10, %s5775_s9  ;;  %p87_p4 = scmp.eq.s32.totalorder %s5135_s14, 1 }
   0xc   : > { %s5849_s18 = scalar_select %p68_p1, %s5783_s11, %s70_s16  }
   0xd   : > { %p5851_p5 = por %p81_p2, %p80_p0  ;;  %p5855_p6 = por %p87_p4, %p86_p3 }
   0xe   : > { %p5136_p7 = scmp.ge.s32.totalorder %s5787_s12, 1  ;;  %p94_p8 = scmp.lt.s32.totalorder %s5787_s12, 3 }
   0xf   : > { %p5463_p9 = scmp.eq.s32.totalorder %s5834_s13, 0  ;;  %s10360_s1 = sld [smem:[#allocation216_spill]] }
  0x10   : > { %p5862_p10 = pnand %p5136_p7, %p94_p8 }
  0x12   : > { %p5455_p11 = pneg %p5862_p10 }
  0x14   : > { %p5456_p12 = pnand %p5463_p9, %p5455_p11 }
  0x15   : > { %s107_s24 = sshll.u32 %s10360_s1, 4  ;;  %s108_s24 = int_to_ptr.vmem [resolvable:$true] %s107_s24 }
  0x16   : > { %s5706_s25 = scalar_lea.vmem %s108_s24, 32  ;;  %p5708_p0 = pneg %p5456_p12 }
  0x17   : > { %p5707_p13 = scmp.ne.s32.totalorder %s108_s24, %s5706_s25  ;;  %p5714_p3 = scmp.lt.s32.totalorder %s108_s24, %s108_s24 }
  0x18   : > { %p5715_p4 = scmp.lt.s32.totalorder %s5706_s25, %s5706_s25 }
  0x19   : > { %p5709_p1 = pnand %p5708_p0, %p5707_p13 }
  0x1a   : > { %p5716_p7 = por %p5715_p4, %p5714_p3 }
  0x1b   : > { %p5710_p2 = pneg %p5709_p1 }
  0x1d   : > { %p5717_p8 = pnand %p5716_p7, %p5710_p2 }
  0x1f   : > { %5720 = shalt.err (!%p5717_p8)
}
  0x20   : > { %s5789_s26 = smov [#allocation2]   ;;  %128 = sbr.rel (%p5862_p10) target bundleno = 1905 (0x771), region = 28 }
  0x21   : > { %5458 = dma.vmem_to_smem (!%p5456_p12), %s108_s24, 32, %s5789_s26, [#allocation4]  }
  0x27   : > { %5766 = dma.done.wait (%p5463_p9), [#allocation4], 32  }
  0x28   : > { %5768 = vsyncadd (%p5463_p9), [#allocation4], 4294967264 }
  0x29   : > { %134 = sfence }
  0x2a   : > { %p151_p11 = scmp.lt.s32.totalorder %s5834_s13, 1  ;;  %s5143_s27 = sld [smem:[#allocation2 + $0x1]]  ;;  %vm3248_vm10 = vcmask 1047808  }
  0x2b   : > { %s5144_s29 = sld [smem:[#allocation2 + $0x2]]  ;;  %s10361_s0 = sld [smem:[#allocation215_spill]] }
  0x2c   : > { %s152_s28 = scalar_select %p151_p11, %s5834_s13, 1 }
  0x2d   : > { %s10318_s6 = smov 127   ;;  %s5145_s7 = sld [smem:[#allocation2 + $0x3]] }
  0x2e   : > { %s5448_s30 = smul.u32 160, %s152_s28  ;;  %s5791_s8 = smov 126  }
  0x2f   : > { %s5147_s14 = sld [smem:[#allocation2 + $0x5]]  ;;  %s5792_s16 = smov 125  }
  0x30   : > { %v294_v0 = vstv %s5143_s27  ;;  %s5148_s17 = sld [smem:[#allocation2 + $0x6]]  ;;  %s5149_s21 = sld [smem:[#allocation2 + $0x7]] }
  0x31   : > { %s5884_s5 = scalar_lea.vmem %s10361_s0, %s5448_s30  ;;  %v320_v9 = vstv %s5144_s29  ;;  %s5151_s22 = sld [smem:[#allocation2 + $0x9]] }
  0x32   : > { %v282_v1 = vld [vmem:[%s5884_s5 + $0x10] sm:$0xff]  ;;  %v280_v2 = vld [vmem:[%s5884_s5] sm:$0xff]  ;;  %v283_v3 = vld [vmem:[%s5884_s5 + $0x18] sm:$0xff]  ;;  %s5152_s23 = sld [smem:[#allocation2 + $0xa]]  ;;  %s5153_s24 = sld [smem:[#allocation2 + $0xb]] }
  0x33   : > { %v297_v4 = vmul.f32 %v294_v0, %v282_v1  ;;  %v295_v5 = vmul.f32 %v294_v0, %v280_v2  ;;  %v281_v6 = vld [vmem:[%s5884_s5 + $0x8] sm:$0xff]  ;;  %v298_v7 = vmul.f32 %v294_v0, %v283_v3  ;;  %v321_v11 = vmul.f32 %v320_v9, %v280_v2  ;;  %v375_v24 = vld [vmem:[%s5884_s5 + $0x19] sm:$0xff]  ;;  %v374_v25 = vld [vmem:[%s5884_s5 + $0x11] sm:$0xff]  ;;  %s5155_s25 = sld [smem:[#allocation2 + $0xd]]  ;;  %s5156_s26 = sld [smem:[#allocation2 + $0xe]] }
  0x34   : > { %v296_v8 = vmul.f32 %v294_v0, %v281_v6  ;;  %v322_v10 = vmul.f32 %v320_v9, %v281_v6  ;;  %v324_v12 = vmul.f32 %v320_v9, %v283_v3  ;;  %v323_v13 = vmul.f32 %v320_v9, %v282_v1  ;;  %v373_v19 = vld [vmem:[%s5884_s5 + $0x9] sm:$0xff]  ;;  %v372_v21 = vld [vmem:[%s5884_s5 + $0x1] sm:$0xff]  ;;  %v466_v44 = vld [vmem:[%s5884_s5 + $0x12] sm:$0xff]  ;;  %s5157_s27 = sld [smem:[#allocation2 + $0xf]]  ;;  %s5163_s28 = sld [smem:[#allocation2 + $0x11]] }
  0x35   : > { %307 = vrot.lane.b32.xlu1 %v297_v4, %s10318_s6  ;;  %303 = vrot.lane.b32.xlu0 %v295_v5, %s10318_s6  ;;  %v346_v14 = vstv %s5145_s7  ;;  %v386_v20 = vstv %s5147_s14  ;;  %s5164_s29 = sld [smem:[#allocation2 + $0x12]]  ;;  %s5165_s30 = sld [smem:[#allocation2 + $0x13]] }
  0x36   : > { %v348_v15 = vmul.f32 %v346_v14, %v281_v6  ;;  %v347_v16 = vmul.f32 %v346_v14, %v280_v2  ;;  %v350_v17 = vmul.f32 %v346_v14, %v283_v3  ;;  %v349_v18 = vmul.f32 %v346_v14, %v282_v1  ;;  %v465_v38 = vld [vmem:[%s5884_s5 + $0xa] sm:$0xff]  ;;  %v464_v40 = vld [vmem:[%s5884_s5 + $0x2] sm:$0xff]  ;;  %v467_v43 = vld [vmem:[%s5884_s5 + $0x1a] sm:$0xff]  ;;  %s5171_s3 = sld [smem:[#allocation2 + $0x15]]  ;;  %s5172_s4 = sld [smem:[#allocation2 + $0x16]] }
  0x37   : > { %v388_v22 = vmul.f32 %v386_v20, %v373_v19  ;;  %v387_v23 = vmul.f32 %v386_v20, %v372_v21  ;;  %v390_v26 = vmul.f32 %v386_v20, %v375_v24  ;;  %v389_v27 = vmul.f32 %v386_v20, %v374_v25  ;;  %v557_v57 = vld [vmem:[%s5884_s5 + $0xb] sm:$0xff]  ;;  %v556_v59 = vld [vmem:[%s5884_s5 + $0x3] sm:$0xff]  ;;  %v559_v62 = vld [vmem:[%s5884_s5 + $0x1b] sm:$0xff]  ;;  %s5173_s7 = sld [smem:[#allocation2 + $0x17]]  ;;  %s5179_s14 = sld [smem:[#allocation2 + $0x19]] }
  0x38   : > { %v412_v28 = vstv %s5148_s17  ;;  %v438_v33 = vstv %s5149_s21  ;;  %v478_v39 = vstv %s5151_s22  ;;  %v504_v47 = vstv %s5152_s23  ;;  %s5180_s17 = sld [smem:[#allocation2 + $0x1a]]  ;;  %s5181_s21 = sld [smem:[#allocation2 + $0x1b]] }
  0x39   : > { %309 = vrot.lane.b32.xlu1 %v298_v7, %s10318_s6  ;;  %305 = vrot.lane.b32.xlu0 %v296_v8, %s10318_s6  ;;  %v414_v29 = vmul.f32 %v412_v28, %v373_v19  ;;  %v413_v30 = vmul.f32 %v412_v28, %v372_v21  ;;  %v416_v31 = vmul.f32 %v412_v28, %v375_v24  ;;  %v530_v52 = vstv %s5153_s24  ;;  %v558_v63 = vld [vmem:[%s5884_s5 + $0x13] sm:$0xff]  ;;  %s5187_s22 = sld [smem:[#allocation2 + $0x1d]]  ;;  %s5188_s23 = sld [smem:[#allocation2 + $0x1e]] }
  0x3a   : > { %v415_v32 = vmul.f32 %v412_v28, %v374_v25  ;;  %v440_v34 = vmul.f32 %v438_v33, %v373_v19  ;;  %v439_v35 = vmul.f32 %v438_v33, %v372_v21  ;;  %v442_v36 = vmul.f32 %v438_v33, %v375_v24  ;;  %v5159_v14 = vld [vmem:[%s5884_s5 + $0x28] sm:$0xff]  ;;  %s5189_s24 = sld [smem:[#allocation2 + $0x1f]]  ;;  %s8756_s0 = sld [smem:[#allocation2 + $0xa6]] }
  0x3b   : > { %v441_v37 = vmul.f32 %v438_v33, %v374_v25  ;;  %v480_v41 = vmul.f32 %v478_v39, %v465_v38  ;;  %v479_v42 = vmul.f32 %v478_v39, %v464_v40  ;;  %v482_v45 = vmul.f32 %v478_v39, %v467_v43  ;;  %v5167_v33 = vld [vmem:[%s5884_s5 + $0x29] sm:$0xff]  ;;  %s9745_s1 = sld [smem:[#allocation2 + $0xbf]] }
  0x3c   : > { %v481_v46 = vmul.f32 %v478_v39, %v466_v44  ;;  %v506_v48 = vmul.f32 %v504_v47, %v465_v38  ;;  %v505_v49 = vmul.f32 %v504_v47, %v464_v40  ;;  %v508_v50 = vmul.f32 %v504_v47, %v467_v43  ;;  %v5169_v39 = vld [vmem:[%s5884_s5 + $0x39] sm:$0xff] }
  0x3d   : > { %331 = vrot.lane.b32.xlu1 %v322_v10, %s5791_s8  ;;  %329 = vrot.lane.b32.xlu0 %v321_v11, %s5791_s8  ;;  %v507_v51 = vmul.f32 %v504_v47, %v466_v44  ;;  %v532_v53 = vmul.f32 %v530_v52, %v465_v38  ;;  %v531_v54 = vmul.f32 %v530_v52, %v464_v40  ;;  %v570_v58 = vstv %s5155_s25  ;;  %v5170_v38 = vld [vmem:[%s5884_s5 + $0x41] sm:$0xff]  ;;  %s5195_s25 = sld [smem:[#allocation2 + $0x21]] }
  0x3e   : > { %v534_v55 = vmul.f32 %v530_v52, %v467_v43  ;;  %v533_v56 = vmul.f32 %v530_v52, %v466_v44  ;;  %v572_v60 = vmul.f32 %v570_v58, %v557_v57  ;;  %v571_v61 = vmul.f32 %v570_v58, %v556_v59 }
  0x3f   : > { %v574_v0 = vmul.f32 %v570_v58, %v559_v62  ;;  %v573_v1 = vmul.f32 %v570_v58, %v558_v63  ;;  %v596_v2 = vstv %s5156_s26  ;;  %v622_v7 = vstv %s5157_s27  ;;  %s5196_s26 = sld [smem:[#allocation2 + $0x22]]  ;;  %s5197_s27 = sld [smem:[#allocation2 + $0x23]] }
  0x40   : > { %v598_v3 = vmul.f32 %v596_v2, %v557_v57  ;;  %v597_v4 = vmul.f32 %v596_v2, %v556_v59  ;;  %v600_v5 = vmul.f32 %v596_v2, %v559_v62  ;;  %v599_v6 = vmul.f32 %v596_v2, %v558_v63 }
  0x41   : > { %335 = vrot.lane.b32.xlu1 %v324_v12, %s5791_s8  ;;  %333 = vrot.lane.b32.xlu0 %v323_v13, %s5791_s8  ;;  %v624_v8 = vmul.f32 %v622_v7, %v557_v57  ;;  %v623_v9 = vmul.f32 %v622_v7, %v556_v59  ;;  %v626_v10 = vmul.f32 %v622_v7, %v559_v62  ;;  %v5160_v12 = vld [vmem:[%s5884_s5 + $0x30] sm:$0xff]  ;;  %v663_v13 = vstv %s5163_s28  ;;  %s5203_s28 = sld [smem:[#allocation2 + $0x25]] }
  0x42   : > { %v625_v11 = vmul.f32 %v622_v7, %v558_v63  ;;  %v689_v21 = vstv %s5164_s29  ;;  %v781_v44 = vstv %s5172_s4  ;;  %v5176_v62 = vld [vmem:[%s5884_s5 + $0x32] sm:$0xff]  ;;  %v847_v63 = vstv %s5179_s14  ;;  %s5204_s29 = sld [smem:[#allocation2 + $0x26]]  ;;  %s5212_s4 = sld [smem:[#allocation2 + $0x2a]] }
  0x43   : > { %v784_v52 = vmul.f32 %v5169_v39, %v781_v44  ;;  %s5219_s14 = sld [smem:[#allocation2 + $0x2d]] }
  0x45   : > { %357 = vrot.lane.b32.xlu1 %v348_v15, %s5792_s16  ;;  %355 = vrot.lane.b32.xlu0 %v347_v16, %s5792_s16  ;;  %v665_v15 = vmul.f32 %v5160_v12, %v663_v13  ;;  %v664_v16 = vmul.f32 %v5159_v14, %v663_v13 }
  0x49   : > { %361 = vrot.lane.b32.xlu1 %v350_v17, %s5792_s16  ;;  %359 = vrot.lane.b32.xlu0 %v349_v18, %s5792_s16  ;;  %v5162_v17 = vld [vmem:[%s5884_s5 + $0x40] sm:$0xff]  ;;  %v5161_v18 = vld [vmem:[%s5884_s5 + $0x38] sm:$0xff] }
  0x4a   : > { %v667_v19 = vmul.f32 %v5162_v17, %v663_v13  ;;  %v666_v20 = vmul.f32 %v5161_v18, %v663_v13  ;;  %v693_v24 = vmul.f32 %v5162_v17, %v689_v21  ;;  %v692_v25 = vmul.f32 %v5161_v18, %v689_v21 }
  0x4d   : > { %397 = vrot.lane.b32.xlu1 %v388_v22, %s10318_s6  ;;  %395 = vrot.lane.b32.xlu0 %v387_v23, %s10318_s6  ;;  %v691_v22 = vmul.f32 %v5160_v12, %v689_v21  ;;  %v690_v23 = vmul.f32 %v5159_v14, %v689_v21 }
  0x51   : > { %401 = vrot.lane.b32.xlu1 %v390_v26, %s10318_s6  ;;  %399 = vrot.lane.b32.xlu0 %v389_v27, %s10318_s6  ;;  %v715_v26 = vstv %s5165_s30  ;;  %s5205_s30 = sld [smem:[#allocation2 + $0x27]] }
  0x52   : > { %v717_v27 = vmul.f32 %v5160_v12, %v715_v26  ;;  %v716_v28 = vmul.f32 %v5159_v14, %v715_v26 }
  0x55   : > { %423 = vrot.lane.b32.xlu1 %v414_v29, %s5791_s8  ;;  %421 = vrot.lane.b32.xlu0 %v413_v30, %s5791_s8  ;;  %v719_v29 = vmul.f32 %v5162_v17, %v715_v26  ;;  %v718_v30 = vmul.f32 %v5161_v18, %v715_v26 }
  0x59   : > { %427 = vrot.lane.b32.xlu1 %v416_v31, %s5791_s8  ;;  %425 = vrot.lane.b32.xlu0 %v415_v32, %s5791_s8  ;;  %v5168_v31 = vld [vmem:[%s5884_s5 + $0x31] sm:$0xff]  ;;  %v755_v32 = vstv %s5171_s3  ;;  %s5211_s3 = sld [smem:[#allocation2 + $0x29]] }
  0x5a   : > { %v758_v43 = vmul.f32 %v5169_v39, %v755_v32  ;;  %v783_v47 = vmul.f32 %v5168_v31, %v781_v44 }
  0x5d   : > { %449 = vrot.lane.b32.xlu1 %v440_v34, %s5792_s16  ;;  %447 = vrot.lane.b32.xlu0 %v439_v35, %s5792_s16 }
  0x61   : > { %453 = vrot.lane.b32.xlu1 %v442_v36, %s5792_s16  ;;  %451 = vrot.lane.b32.xlu0 %v441_v37, %s5792_s16  ;;  %v757_v36 = vmul.f32 %v5168_v31, %v755_v32  ;;  %v756_v37 = vmul.f32 %v5167_v33, %v755_v32 }
  0x65   : > { %489 = vrot.lane.b32.xlu1 %v480_v41, %s10318_s6  ;;  %487 = vrot.lane.b32.xlu0 %v479_v42, %s10318_s6  ;;  %v759_v42 = vmul.f32 %v5170_v38, %v755_v32 }
  0x69   : > { %493 = vrot.lane.b32.xlu1 %v482_v45, %s10318_s6  ;;  %491 = vrot.lane.b32.xlu0 %v481_v46, %s10318_s6 }
  0x6d   : > { %515 = vrot.lane.b32.xlu1 %v506_v48, %s5791_s8  ;;  %513 = vrot.lane.b32.xlu0 %v505_v49, %s5791_s8  ;;  %v782_v48 = vmul.f32 %v5167_v33, %v781_v44 }
  0x71   : > { %519 = vrot.lane.b32.xlu1 %v508_v50, %s5791_s8  ;;  %517 = vrot.lane.b32.xlu0 %v507_v51, %s5791_s8  ;;  %v785_v51 = vmul.f32 %v5170_v38, %v781_v44 }
  0x75   : > { %541 = vrot.lane.b32.xlu1 %v532_v53, %s5792_s16  ;;  %539 = vrot.lane.b32.xlu0 %v531_v54, %s5792_s16  ;;  %v807_v53 = vstv %s5173_s7  ;;  %s5213_s7 = sld [smem:[#allocation2 + $0x2b]] }
  0x76   : > { %v808_v57 = vmul.f32 %v5167_v33, %v807_v53 }
  0x79   : > { %545 = vrot.lane.b32.xlu1 %v534_v55, %s5792_s16  ;;  %543 = vrot.lane.b32.xlu0 %v533_v56, %s5792_s16  ;;  %v809_v56 = vmul.f32 %v5168_v31, %v807_v53  ;;  %v5183_v31 = vld [vmem:[%s5884_s5 + $0x2b] sm:$0xff] }
  0x7d   : > { %581 = vrot.lane.b32.xlu1 %v572_v60, %s10318_s6  ;;  %579 = vrot.lane.b32.xlu0 %v571_v61, %s10318_s6  ;;  %v811_v60 = vmul.f32 %v5170_v38, %v807_v53  ;;  %v810_v61 = vmul.f32 %v5169_v39, %v807_v53  ;;  %v5186_v38 = vld [vmem:[%s5884_s5 + $0x43] sm:$0xff]  ;;  %v5185_v39 = vld [vmem:[%s5884_s5 + $0x3b] sm:$0xff] }
  0x81   : > { %585 = vrot.lane.b32.xlu1 %v574_v0, %s10318_s6  ;;  %583 = vrot.lane.b32.xlu0 %v573_v1, %s10318_s6  ;;  %v5175_v0 = vld [vmem:[%s5884_s5 + $0x2a] sm:$0xff] }
  0x85   : > { %607 = vrot.lane.b32.xlu1 %v598_v3, %s5791_s8  ;;  %605 = vrot.lane.b32.xlu0 %v597_v4, %s5791_s8  ;;  %v849_v3 = vmul.f32 %v5176_v62, %v847_v63  ;;  %v848_v4 = vmul.f32 %v5175_v0, %v847_v63 }
  0x89   : > { %611 = vrot.lane.b32.xlu1 %v600_v5, %s5791_s8  ;;  %609 = vrot.lane.b32.xlu0 %v599_v6, %s5791_s8  ;;  %v5178_v5 = vld [vmem:[%s5884_s5 + $0x42] sm:$0xff]  ;;  %v5177_v6 = vld [vmem:[%s5884_s5 + $0x3a] sm:$0xff] }
  0x8d   : > { %633 = vrot.lane.b32.xlu1 %v624_v8, %s5792_s16  ;;  %631 = vrot.lane.b32.xlu0 %v623_v9, %s5792_s16  ;;  %v851_v9 = vmul.f32 %v5178_v5, %v847_v63 }
  0x91   : > { %637 = vrot.lane.b32.xlu1 %v626_v10, %s5792_s16  ;;  %635 = vrot.lane.b32.xlu0 %v625_v11, %s5792_s16  ;;  %v850_v10 = vmul.f32 %v5177_v6, %v847_v63  ;;  %v873_v11 = vstv %s5180_s17  ;;  %v991_v63 = vstv %s5189_s24  ;;  %s5220_s17 = sld [smem:[#allocation2 + $0x2e]]  ;;  %s5229_s24 = sld [smem:[#allocation2 + $0x33]] }
  0x92   : > { %v875_v14 = vmul.f32 %v5176_v62, %v873_v11  ;;  %v877_v18 = vmul.f32 %v5178_v5, %v873_v11 }
  0x95   : > { %674 = vrot.lane.b32.xlu1 %v665_v15, %s10318_s6  ;;  %672 = vrot.lane.b32.xlu0 %v664_v16, %s10318_s6  ;;  %v874_v15 = vmul.f32 %v5175_v0, %v873_v11 }
  0x99   : > { %678 = vrot.lane.b32.xlu1 %v667_v19, %s10318_s6  ;;  %676 = vrot.lane.b32.xlu0 %v666_v20, %s10318_s6  ;;  %v876_v19 = vmul.f32 %v5177_v6, %v873_v11  ;;  %v899_v20 = vstv %s5181_s21  ;;  %v994_v11 = vmul.f32 %v5185_v39, %v991_v63  ;;  %s5221_s21 = sld [smem:[#allocation2 + $0x2f]] }
  0x9d   : > { %700 = vrot.lane.b32.xlu1 %v691_v22, %s5791_s8  ;;  %698 = vrot.lane.b32.xlu0 %v690_v23, %s5791_s8  ;;  %v901_v23 = vmul.f32 %v5176_v62, %v899_v20 }
  0xa1   : > { %704 = vrot.lane.b32.xlu1 %v693_v24, %s5791_s8  ;;  %702 = vrot.lane.b32.xlu0 %v692_v25, %s5791_s8  ;;  %v900_v24 = vmul.f32 %v5175_v0, %v899_v20 }
  0xa5   : > { %726 = vrot.lane.b32.xlu1 %v717_v27, %s5792_s16  ;;  %724 = vrot.lane.b32.xlu0 %v716_v28, %s5792_s16  ;;  %v903_v27 = vmul.f32 %v5178_v5, %v899_v20  ;;  %v902_v28 = vmul.f32 %v5177_v6, %v899_v20  ;;  %v992_v5 = vmul.f32 %v5183_v31, %v991_v63 }
  0xa7   : > { %v5966_v34 = vpop.permute.xlu1 %307  ;;  %v5968_v35 = vpop.permute.xlu0 %303 }
  0xa9   : > { %730 = vrot.lane.b32.xlu1 %v719_v29, %s5792_s16  ;;  %728 = vrot.lane.b32.xlu0 %v718_v30, %s5792_s16  ;;  %v5184_v29 = vld [vmem:[%s5884_s5 + $0x33] sm:$0xff]  ;;  %v939_v30 = vstv %s5187_s22  ;;  %s5227_s22 = sld [smem:[#allocation2 + $0x31]] }
  0xaa   : > { %v943_v44 = vmul.f32 %v5186_v38, %v939_v30 }
  0xab   : > { %v5974_v40 = vpop.permute.xlu1 %309  ;;  %v5976_v41 = vpop.permute.xlu0 %305 }
  0xad   : > { %766 = vrot.lane.b32.xlu1 %v757_v36, %s10318_s6  ;;  %764 = vrot.lane.b32.xlu0 %v756_v37, %s10318_s6  ;;  %v941_v36 = vmul.f32 %v5184_v29, %v939_v30  ;;  %v940_v37 = vmul.f32 %v5183_v31, %v939_v30 }
  0xaf   : > { %v5980_v45 = vpop.permute.xlu1 %331  ;;  %v5982_v46 = vpop.permute.xlu0 %329 }
  0xb1   : > { %770 = vrot.lane.b32.xlu1 %v759_v42, %s10318_s6  ;;  %768 = vrot.lane.b32.xlu0 %v758_v43, %s10318_s6 }
  0xb3   : > { %v5986_v49 = vpop.permute.xlu1 %335  ;;  %v5988_v50 = vpop.permute.xlu0 %333 }
  0xb5   : > { %792 = vrot.lane.b32.xlu1 %v783_v47, %s5791_s8  ;;  %790 = vrot.lane.b32.xlu0 %v782_v48, %s5791_s8  ;;  %v942_v47 = vmul.f32 %v5185_v39, %v939_v30  ;;  %v965_v48 = vstv %s5188_s23  ;;  %s5228_s23 = sld [smem:[#allocation2 + $0x32]] }
  0xb6   : > { %v967_v53 = vmul.f32 %v5184_v29, %v965_v48  ;;  %v968_v62 = vmul.f32 %v5185_v39, %v965_v48 }
  0xb7   : > { %v5992_v54 = vpop.permute.xlu1 %357  ;;  %v5994_v55 = vpop.permute.xlu0 %355 }
  0xb9   : > { %796 = vrot.lane.b32.xlu1 %v785_v51, %s5791_s8  ;;  %794 = vrot.lane.b32.xlu0 %v784_v52, %s5791_s8 }
  0xbb   : > { %v5998_v58 = vpop.permute.xlu1 %361  ;;  %v6000_v59 = vpop.permute.xlu0 %359 }
  0xbd   : > { %818 = vrot.lane.b32.xlu1 %v809_v56, %s5792_s16  ;;  %816 = vrot.lane.b32.xlu0 %v808_v57, %s5792_s16  ;;  %v966_v56 = vmul.f32 %v5183_v31, %v965_v48 }
  0xbf   : > { %v6006_v1 = vpop.permute.xlu1 %397  ;;  %v6008_v2 = vpop.permute.xlu0 %395 }
  0xc1   : > { %822 = vrot.lane.b32.xlu1 %v811_v60, %s5792_s16  ;;  %820 = vrot.lane.b32.xlu0 %v810_v61, %s5792_s16  ;;  %v969_v61 = vmul.f32 %v5186_v38, %v965_v48 }
  0xc3   : > { %v6014_v7 = vpop.permute.xlu1 %401  ;;  %v6016_v8 = vpop.permute.xlu0 %399 }
  0xc5   : > { %858 = vrot.lane.b32.xlu1 %v849_v3, %s10318_s6  ;;  %856 = vrot.lane.b32.xlu0 %v848_v4, %s10318_s6  ;;  %v993_v4 = vmul.f32 %v5184_v29, %v991_v63 }
  0xc7   : > { %v6020_v12 = vpop.permute.xlu1 %423  ;;  %v6022_v13 = vpop.permute.xlu0 %421 }
  0xc9   : > { %862 = vrot.lane.b32.xlu1 %v851_v9, %s10318_s6  ;;  %860 = vrot.lane.b32.xlu0 %v850_v10, %s10318_s6  ;;  %v995_v10 = vmul.f32 %v5186_v38, %v991_v63 }
  0xcb   : > { %v6026_v16 = vpop.permute.xlu1 %427  ;;  %v6028_v17 = vpop.permute.xlu0 %425 }
  0xcd   : > { %884 = vrot.lane.b32.xlu1 %v875_v14, %s5791_s8  ;;  %882 = vrot.lane.b32.xlu0 %v874_v15, %s5791_s8  ;;  %v5192_v14 = vld [vmem:[%s5884_s5 + $0x58] sm:$0xff]  ;;  %v1032_v15 = vstv %s5195_s25  ;;  %s5235_s25 = sld [smem:[#allocation2 + $0x35]] }
  0xcf   : > { %v6032_v21 = vpop.permute.xlu1 %449  ;;  %v6034_v22 = vpop.permute.xlu0 %447 }
  0xd1   : > { %888 = vrot.lane.b32.xlu1 %v877_v18, %s5791_s8  ;;  %886 = vrot.lane.b32.xlu0 %v876_v19, %s5791_s8  ;;  %v5191_v18 = vld [vmem:[%s5884_s5 + $0x50] sm:$0xff] }
  0xd3   : > { %v6038_v25 = vpop.permute.xlu1 %453  ;;  %v6040_v26 = vpop.permute.xlu0 %451 }
  0xd5   : > { %910 = vrot.lane.b32.xlu1 %v901_v23, %s5792_s16  ;;  %908 = vrot.lane.b32.xlu0 %v900_v24, %s5792_s16  ;;  %v1034_v23 = vmul.f32 %v5192_v14, %v1032_v15  ;;  %v1033_v24 = vmul.f32 %v5191_v18, %v1032_v15 }
  0xd7   : > { %v6046_v32 = vpop.permute.xlu1 %489  ;;  %v6048_v33 = vpop.permute.xlu0 %487 }
  0xd9   : > { %914 = vrot.lane.b32.xlu1 %v903_v27, %s5792_s16  ;;  %912 = vrot.lane.b32.xlu0 %v902_v28, %s5792_s16  ;;  %v5194_v27 = vld [vmem:[%s5884_s5 + $0x68] sm:$0xff]  ;;  %v5193_v28 = vld [vmem:[%s5884_s5 + $0x60] sm:$0xff] }
  0xda   : > { %v1036_v31 = vmul.f32 %v5194_v27, %v1032_v15 }
  0xdb   : > { %v6054_v42 = vpop.permute.xlu1 %493  ;;  %v6056_v43 = vpop.permute.xlu0 %491 }
  0xdd   : > { %950 = vrot.lane.b32.xlu1 %v941_v36, %s10318_s6  ;;  %948 = vrot.lane.b32.xlu0 %v940_v37, %s10318_s6  ;;  %v1035_v36 = vmul.f32 %v5193_v28, %v1032_v15  ;;  %v1058_v37 = vstv %s5196_s26  ;;  %s5236_s26 = sld [smem:[#allocation2 + $0x36]] }
  0xdf   : > { %v6060_v51 = vpop.permute.xlu1 %515  ;;  %v6062_v52 = vpop.permute.xlu0 %513 }
  0xe1   : > { %954 = vrot.lane.b32.xlu1 %v943_v44, %s10318_s6  ;;  %952 = vrot.lane.b32.xlu0 %v942_v47, %s10318_s6  ;;  %v1060_v44 = vmul.f32 %v5192_v14, %v1058_v37  ;;  %v1059_v47 = vmul.f32 %v5191_v18, %v1058_v37 }
  0xe3   : > { %v6066_v57 = vpop.permute.xlu1 %519  ;;  %v6068_v60 = vpop.permute.xlu0 %517 }
  0xe4   : > { %10362 = vst [vmem:[#allocation8_spill] sm:$0xff] %v6068_v60 }
  0xe5   : > { %976 = vrot.lane.b32.xlu1 %v967_v53, %s5791_s8  ;;  %974 = vrot.lane.b32.xlu0 %v966_v56, %s5791_s8  ;;  %v1062_v56 = vmul.f32 %v5194_v27, %v1058_v37 }
  0xe7   : > { %v6072_v0 = vpop.permute.xlu1 %541  ;;  %v6074_v3 = vpop.permute.xlu0 %539 }
  0xe9   : > { %980 = vrot.lane.b32.xlu1 %v969_v61, %s5791_s8  ;;  %978 = vrot.lane.b32.xlu0 %v968_v62, %s5791_s8  ;;  %v1061_v61 = vmul.f32 %v5193_v28, %v1058_v37  ;;  %v1084_v62 = vstv %s5197_s27  ;;  %v5199_v37 = vld [vmem:[%s5884_s5 + $0x51] sm:$0xff]  ;;  %s5237_s27 = sld [smem:[#allocation2 + $0x37]] }
  0xeb   : > { %v6078_v6 = vpop.permute.xlu1 %545  ;;  %v6080_v9 = vpop.permute.xlu0 %543 }
  0xec   : > { %10363 = vst [vmem:[#allocation9_spill] sm:$0xff] %v6078_v6  ;;  %10364 = vst [vmem:[#allocation10_spill] sm:$0xff] %v6080_v9 }
  0xed   : > { %1002 = vrot.lane.b32.xlu1 %v993_v4, %s5792_s16  ;;  %1000 = vrot.lane.b32.xlu0 %v992_v5, %s5792_s16  ;;  %v1086_v5 = vmul.f32 %v5192_v14, %v1084_v62 }
  0xef   : > { %v6086_v19 = vpop.permute.xlu1 %581  ;;  %v6088_v20 = vpop.permute.xlu0 %579 }
  0xf0   : > { %10365 = vst [vmem:[#allocation11_spill] sm:$0xff] %v6086_v19  ;;  %10366 = vst [vmem:[#allocation12_spill] sm:$0xff] %v6088_v20 }
  0xf1   : > { %1006 = vrot.lane.b32.xlu1 %v995_v10, %s5792_s16  ;;  %1004 = vrot.lane.b32.xlu0 %v994_v11, %s5792_s16  ;;  %v1085_v10 = vmul.f32 %v5191_v18, %v1084_v62 }
  0xf3   : > { %v6094_v29 = vpop.permute.xlu1 %585  ;;  %v6096_v30 = vpop.permute.xlu0 %583 }
  0xf4   : > { %10367 = vst [vmem:[#allocation13_spill] sm:$0xff] %v6094_v29  ;;  %10368 = vst [vmem:[#allocation14_spill] sm:$0xff] %v6096_v30 }
  0xf5   : > { %1043 = vrot.lane.b32.xlu1 %v1034_v23, %s10318_s6  ;;  %1041 = vrot.lane.b32.xlu0 %v1033_v24, %s10318_s6  ;;  %v1088_v23 = vmul.f32 %v5194_v27, %v1084_v62  ;;  %v1087_v24 = vmul.f32 %v5193_v28, %v1084_v62 }
  0xf7   : > { %v6100_v38 = vpop.permute.xlu1 %607  ;;  %v6102_v39 = vpop.permute.xlu0 %605 }
  0xf8   : > { %10369 = vst [vmem:[#allocation15_spill] sm:$0xff] %v6100_v38  ;;  %10370 = vst [vmem:[#allocation16_spill] sm:$0xff] %v6102_v39 }
  0xf9   : > { %1047 = vrot.lane.b32.xlu1 %v1036_v31, %s10318_s6  ;;  %1045 = vrot.lane.b32.xlu0 %v1035_v36, %s10318_s6  ;;  %v5200_v31 = vld [vmem:[%s5884_s5 + $0x59] sm:$0xff]  ;;  %v1124_v36 = vstv %s5203_s28  ;;  %s5243_s28 = sld [smem:[#allocation2 + $0x39]] }
  0xfa   : > { %v1126_v18 = vmul.f32 %v5200_v31, %v1124_v36 }
  0xfb   : > { %v6106_v48 = vpop.permute.xlu1 %611  ;;  %v6108_v53 = vpop.permute.xlu0 %609 }
  0xfc   : > { %10371 = vst [vmem:[#allocation17_spill] sm:$0xff] %v6106_v48  ;;  %10372 = vst [vmem:[#allocation18_spill] sm:$0xff] %v6108_v53 }
  0xfd   : > { %1069 = vrot.lane.b32.xlu1 %v1060_v44, %s5791_s8  ;;  %1067 = vrot.lane.b32.xlu0 %v1059_v47, %s5791_s8  ;;  %v1125_v47 = vmul.f32 %v5199_v37, %v1124_v36 }
  0xff   : > { %v6112_v63 = vpop.permute.xlu1 %633  ;;  %v6114_v4 = vpop.permute.xlu0 %631 }
 0x100   : > { %10373 = vst [vmem:[#allocation19_spill] sm:$0xff] %v6112_v63  ;;  %10374 = vst [vmem:[#allocation20_spill] sm:$0xff] %v6114_v4 }
 0x101   : > { %1073 = vrot.lane.b32.xlu1 %v1062_v56, %s5791_s8  ;;  %1071 = vrot.lane.b32.xlu0 %v1061_v61, %s5791_s8  ;;  %v5202_v56 = vld [vmem:[%s5884_s5 + $0x69] sm:$0xff]  ;;  %v5201_v61 = vld [vmem:[%s5884_s5 + $0x61] sm:$0xff] }
 0x102   : > { %v1128_v28 = vmul.f32 %v5202_v56, %v1124_v36  ;;  %v1127_v62 = vmul.f32 %v5201_v61, %v1124_v36 }
 0x103   : > { %v6118_v11 = vpop.permute.xlu1 %637  ;;  %v6120_v15 = vpop.permute.xlu0 %635 }
 0x104   : > { %10375 = vst [vmem:[#allocation21_spill] sm:$0xff] %v6118_v11  ;;  %10376 = vst [vmem:[#allocation22_spill] sm:$0xff] %v6120_v15 }
 0x105   : > { %1095 = vrot.lane.b32.xlu1 %v1086_v5, %s5792_s16  ;;  %1093 = vrot.lane.b32.xlu0 %v1085_v10, %s5792_s16  ;;  %v1150_v10 = vstv %s5204_s29  ;;  %s5244_s29 = sld [smem:[#allocation2 + $0x3a]] }
 0x106   : > { %v1154_v36 = vmul.f32 %v5202_v56, %v1150_v10 }
 0x107   : > { %v6126_v44 = vpop.permute.xlu1 %674  ;;  %v6128_v14 = vpop.permute.xlu0 %672 }
 0x108   : > { %10377 = vst [vmem:[#allocation23_spill] sm:$0xff] %v6126_v44  ;;  %10378 = vst [vmem:[#allocation24_spill] sm:$0xff] %v6128_v14 }
 0x109   : > { %1099 = vrot.lane.b32.xlu1 %v1088_v23, %s5792_s16  ;;  %1097 = vrot.lane.b32.xlu0 %v1087_v24, %s5792_s16  ;;  %v1152_v24 = vmul.f32 %v5200_v31, %v1150_v10 }
 0x10b   : > { %v6134_v5 = vpop.permute.xlu1 %678  ;;  %v6136_v27 = vpop.permute.xlu0 %676 }
 0x10c   : > { %10379 = vst [vmem:[#allocation25_spill] sm:$0xff] %v6134_v5  ;;  %10380 = vst [vmem:[#allocation26_spill] sm:$0xff] %v6136_v27  ;;  %v1151_v5 = vmul.f32 %v5199_v37, %v1150_v10 }
 0x10d   : > { %1135 = vrot.lane.b32.xlu1 %v1126_v18, %s10318_s6  ;;  %1133 = vrot.lane.b32.xlu0 %v1125_v47, %s10318_s6  ;;  %v1153_v18 = vmul.f32 %v5201_v61, %v1150_v10  ;;  %v1176_v47 = vstv %s5205_s30  ;;  %s5245_s30 = sld [smem:[#allocation2 + $0x3b]] }
 0x10e   : > { %v1180_v10 = vmul.f32 %v5202_v56, %v1176_v47 }
 0x10f   : > { %v6140_v14 = vpop.permute.xlu1 %700  ;;  %v6142_v23 = vpop.permute.xlu0 %698 }
 0x110   : > { %10381 = vst [vmem:[#allocation27_spill] sm:$0xff] %v6140_v14  ;;  %10382 = vst [vmem:[#allocation28_spill] sm:$0xff] %v6142_v23  ;;  %v5207_v14 = vld [vmem:[%s5884_s5 + $0x52] sm:$0xff] }
 0x111   : > { %1139 = vrot.lane.b32.xlu1 %v1128_v28, %s10318_s6  ;;  %1137 = vrot.lane.b32.xlu0 %v1127_v62, %s10318_s6  ;;  %v1178_v62 = vmul.f32 %v5200_v31, %v1176_v47 }
 0x113   : > { %v6146_v15 = vpop.permute.xlu1 %704  ;;  %v6148_v27 = vpop.permute.xlu0 %702 }
 0x114   : > { %10383 = vst [vmem:[#allocation29_spill] sm:$0xff] %v6146_v15  ;;  %10384 = vst [vmem:[#allocation30_spill] sm:$0xff] %v6148_v27  ;;  %v1177_v27 = vmul.f32 %v5199_v37, %v1176_v47 }
 0x115   : > { %1161 = vrot.lane.b32.xlu1 %v1152_v24, %s5791_s8  ;;  %1159 = vrot.lane.b32.xlu0 %v1151_v5, %s5791_s8  ;;  %v1179_v24 = vmul.f32 %v5201_v61, %v1176_v47  ;;  %v1242_v47 = vstv %s5212_s4  ;;  %s5252_s4 = sld [smem:[#allocation2 + $0x3e]] }
 0x117   : > { %v6152_v23 = vpop.permute.xlu1 %726  ;;  %v6154_v28 = vpop.permute.xlu0 %724 }
 0x118   : > { %10385 = vst [vmem:[#allocation31_spill] sm:$0xff] %v6152_v23  ;;  %10386 = vst [vmem:[#allocation32_spill] sm:$0xff] %v6154_v28  ;;  %v5208_v23 = vld [vmem:[%s5884_s5 + $0x5a] sm:$0xff]  ;;  %v1216_v28 = vstv %s5211_s3  ;;  %s5251_s3 = sld [smem:[#allocation2 + $0x3d]] }
 0x119   : > { %1165 = vrot.lane.b32.xlu1 %v1154_v36, %s5791_s8  ;;  %1163 = vrot.lane.b32.xlu0 %v1153_v18, %s5791_s8  ;;  %v1218_v37 = vmul.f32 %v5208_v23, %v1216_v28  ;;  %v1217_v18 = vmul.f32 %v5207_v14, %v1216_v28 }
 0x11b   : > { %v6158_v15 = vpop.permute.xlu1 %730  ;;  %v6160_v5 = vpop.permute.xlu0 %728 }
 0x11c   : > { %10387 = vst [vmem:[#allocation33_spill] sm:$0xff] %v6158_v15  ;;  %10388 = vst [vmem:[#allocation34_spill] sm:$0xff] %v6160_v5  ;;  %v5210_v5 = vld [vmem:[%s5884_s5 + $0x6a] sm:$0xff] }
 0x11d   : > { %1187 = vrot.lane.b32.xlu1 %v1178_v62, %s5792_s16  ;;  %1185 = vrot.lane.b32.xlu0 %v1177_v27, %s5792_s16  ;;  %v5209_v62 = vld [vmem:[%s5884_s5 + $0x62] sm:$0xff]  ;;  %v1220_v61 = vmul.f32 %v5210_v5, %v1216_v28 }
 0x11e   : > { %v1219_v27 = vmul.f32 %v5209_v62, %v1216_v28  ;;  %v1246_v28 = vmul.f32 %v5210_v5, %v1242_v47 }
 0x11f   : > { %v6166_v36 = vpop.permute.xlu1 %766  ;;  %v6168_v31 = vpop.permute.xlu0 %764 }
 0x120   : > { %10389 = vst [vmem:[#allocation35_spill] sm:$0xff] %v6166_v36  ;;  %10390 = vst [vmem:[#allocation36_spill] sm:$0xff] %v6168_v31 }
 0x121   : > { %1191 = vrot.lane.b32.xlu1 %v1180_v10, %s5792_s16  ;;  %1189 = vrot.lane.b32.xlu0 %v1179_v24, %s5792_s16  ;;  %v1244_v24 = vmul.f32 %v5208_v23, %v1242_v47 }
 0x123   : > { %v6174_v15 = vpop.permute.xlu1 %770  ;;  %v6176_v56 = vpop.permute.xlu0 %768 }
 0x124   : > { %10391 = vst [vmem:[#allocation37_spill] sm:$0xff] %v6174_v15  ;;  %10392 = vst [vmem:[#allocation38_spill] sm:$0xff] %v6176_v56  ;;  %v1243_v15 = vmul.f32 %v5207_v14, %v1242_v47 }
 0x125   : > { %1227 = vrot.lane.b32.xlu1 %v1218_v37, %s10318_s6  ;;  %1225 = vrot.lane.b32.xlu0 %v1217_v18, %s10318_s6  ;;  %v1245_v37 = vmul.f32 %v5209_v62, %v1242_v47  ;;  %v1268_v18 = vstv %s5213_s7  ;;  %s5253_s7 = sld [smem:[#allocation2 + $0x3f]] }
 0x126   : > { %v1272_v47 = vmul.f32 %v5210_v5, %v1268_v18 }
 0x127   : > { %v6180_v31 = vpop.permute.xlu1 %792  ;;  %v6182_v10 = vpop.permute.xlu0 %790 }
 0x128   : > { %10393 = vst [vmem:[#allocation39_spill] sm:$0xff] %v6180_v31  ;;  %10394 = vst [vmem:[#allocation40_spill] sm:$0xff] %v6182_v10  ;;  %v5215_v31 = vld [vmem:[%s5884_s5 + $0x53] sm:$0xff] }
 0x129   : > { %1231 = vrot.lane.b32.xlu1 %v1220_v61, %s10318_s6  ;;  %1229 = vrot.lane.b32.xlu0 %v1219_v27, %s10318_s6  ;;  %v1270_v27 = vmul.f32 %v5208_v23, %v1268_v18 }
 0x12b   : > { %v6186_v36 = vpop.permute.xlu1 %796  ;;  %v6188_v56 = vpop.permute.xlu0 %794 }
 0x12c   : > { %10395 = vst [vmem:[#allocation41_spill] sm:$0xff] %v6186_v36  ;;  %10396 = vst [vmem:[#allocation42_spill] sm:$0xff] %v6188_v56  ;;  %v1269_v56 = vmul.f32 %v5207_v14, %v1268_v18 }
 0x12d   : > { %1253 = vrot.lane.b32.xlu1 %v1244_v24, %s5791_s8  ;;  %1251 = vrot.lane.b32.xlu0 %v1243_v15, %s5791_s8  ;;  %v1271_v24 = vmul.f32 %v5209_v62, %v1268_v18  ;;  %v1334_v18 = vstv %s5220_s17  ;;  %s5257_s17 = sld [smem:[#allocation2 + $0x42]] }
 0x12f   : > { %v6192_v10 = vpop.permute.xlu1 %818  ;;  %v6194_v61 = vpop.permute.xlu0 %816 }
 0x130   : > { %10397 = vst [vmem:[#allocation43_spill] sm:$0xff] %v6192_v10  ;;  %10398 = vst [vmem:[#allocation44_spill] sm:$0xff] %v6194_v61  ;;  %v5216_v10 = vld [vmem:[%s5884_s5 + $0x5b] sm:$0xff]  ;;  %v1308_v61 = vstv %s5219_s14  ;;  %s5256_s14 = sld [smem:[#allocation2 + $0x41]] }
 0x131   : > { %1257 = vrot.lane.b32.xlu1 %v1246_v28, %s5791_s8  ;;  %1255 = vrot.lane.b32.xlu0 %v1245_v37, %s5791_s8  ;;  %v1310_v14 = vmul.f32 %v5216_v10, %v1308_v61  ;;  %v1309_v37 = vmul.f32 %v5215_v31, %v1308_v61 }
 0x133   : > { %v6198_v36 = vpop.permute.xlu1 %822  ;;  %v6200_v15 = vpop.permute.xlu0 %820 }
 0x134   : > { %10399 = vst [vmem:[#allocation45_spill] sm:$0xff] %v6198_v36  ;;  %10400 = vst [vmem:[#allocation46_spill] sm:$0xff] %v6200_v15  ;;  %v5218_v15 = vld [vmem:[%s5884_s5 + $0x6b] sm:$0xff] }
 0x135   : > { %1279 = vrot.lane.b32.xlu1 %v1270_v27, %s5792_s16  ;;  %1277 = vrot.lane.b32.xlu0 %v1269_v56, %s5792_s16  ;;  %v5217_v27 = vld [vmem:[%s5884_s5 + $0x63] sm:$0xff]  ;;  %v1312_v62 = vmul.f32 %v5218_v15, %v1308_v61 }
 0x136   : > { %v1311_v56 = vmul.f32 %v5217_v27, %v1308_v61  ;;  %v1338_v61 = vmul.f32 %v5218_v15, %v1334_v18 }
 0x137   : > { %v6206_v28 = vpop.permute.xlu1 %858  ;;  %v6208_v23 = vpop.permute.xlu0 %856 }
 0x138   : > { %10401 = vst [vmem:[#allocation47_spill] sm:$0xff] %v6206_v28  ;;  %10402 = vst [vmem:[#allocation48_spill] sm:$0xff] %v6208_v23 }
 0x139   : > { %1283 = vrot.lane.b32.xlu1 %v1272_v47, %s5792_s16  ;;  %1281 = vrot.lane.b32.xlu0 %v1271_v24, %s5792_s16  ;;  %v1336_v24 = vmul.f32 %v5216_v10, %v1334_v18 }
 0x13b   : > { %v6214_v36 = vpop.permute.xlu1 %862  ;;  %v6216_v5 = vpop.permute.xlu0 %860 }
 0x13c   : > { %10403 = vst [vmem:[#allocation49_spill] sm:$0xff] %v6214_v36  ;;  %10404 = vst [vmem:[#allocation50_spill] sm:$0xff] %v6216_v5  ;;  %v1335_v36 = vmul.f32 %v5215_v31, %v1334_v18 }
 0x13d   : > { %1319 = vrot.lane.b32.xlu1 %v1310_v14, %s10318_s6  ;;  %1317 = vrot.lane.b32.xlu0 %v1309_v37, %s10318_s6  ;;  %v1337_v14 = vmul.f32 %v5217_v27, %v1334_v18  ;;  %v1360_v37 = vstv %s5221_s21  ;;  %s5258_s21 = sld [smem:[#allocation2 + $0x43]] }
 0x13e   : > { %v1364_v18 = vmul.f32 %v5218_v15, %v1360_v37 }
 0x13f   : > { %v6220_v23 = vpop.permute.xlu1 %884  ;;  %v6222_v47 = vpop.permute.xlu0 %882 }
 0x140   : > { %10405 = vst [vmem:[#allocation51_spill] sm:$0xff] %v6220_v23  ;;  %10406 = vst [vmem:[#allocation52_spill] sm:$0xff] %v6222_v47  ;;  %v5223_v23 = vld [vmem:[%s5884_s5 + $0x78] sm:$0xff] }
 0x141   : > { %1323 = vrot.lane.b32.xlu1 %v1312_v62, %s10318_s6  ;;  %1321 = vrot.lane.b32.xlu0 %v1311_v56, %s10318_s6  ;;  %v1362_v56 = vmul.f32 %v5216_v10, %v1360_v37 }
 0x143   : > { %v6226_v28 = vpop.permute.xlu1 %888  ;;  %v6228_v5 = vpop.permute.xlu0 %886 }
 0x144   : > { %10407 = vst [vmem:[#allocation53_spill] sm:$0xff] %v6226_v28  ;;  %10408 = vst [vmem:[#allocation54_spill] sm:$0xff] %v6228_v5  ;;  %v1361_v5 = vmul.f32 %v5215_v31, %v1360_v37 }
 0x145   : > { %1345 = vrot.lane.b32.xlu1 %v1336_v24, %s5791_s8  ;;  %1343 = vrot.lane.b32.xlu0 %v1335_v36, %s5791_s8  ;;  %v1363_v24 = vmul.f32 %v5217_v27, %v1360_v37  ;;  %v1427_v37 = vstv %s5228_s23  ;;  %s5261_s23 = sld [smem:[#allocation2 + $0x46]] }
 0x147   : > { %v6232_v47 = vpop.permute.xlu1 %910  ;;  %v6234_v62 = vpop.permute.xlu0 %908 }
 0x148   : > { %10409 = vst [vmem:[#allocation55_spill] sm:$0xff] %v6232_v47  ;;  %10410 = vst [vmem:[#allocation56_spill] sm:$0xff] %v6234_v62  ;;  %v5224_v47 = vld [vmem:[%s5884_s5 + $0x80] sm:$0xff]  ;;  %v1401_v62 = vstv %s5227_s22  ;;  %s5260_s22 = sld [smem:[#allocation2 + $0x45]] }
 0x149   : > { %1349 = vrot.lane.b32.xlu1 %v1338_v61, %s5791_s8  ;;  %1347 = vrot.lane.b32.xlu0 %v1337_v14, %s5791_s8  ;;  %v1403_v31 = vmul.f32 %v5224_v47, %v1401_v62  ;;  %v1402_v14 = vmul.f32 %v5223_v23, %v1401_v62 }
 0x14b   : > { %v6238_v28 = vpop.permute.xlu1 %914  ;;  %v6240_v36 = vpop.permute.xlu0 %912 }
 0x14c   : > { %10411 = vst [vmem:[#allocation57_spill] sm:$0xff] %v6238_v28  ;;  %10412 = vst [vmem:[#allocation58_spill] sm:$0xff] %v6240_v36  ;;  %v5226_v36 = vld [vmem:[%s5884_s5 + $0x90] sm:$0xff] }
 0x14d   : > { %1371 = vrot.lane.b32.xlu1 %v1362_v56, %s5792_s16  ;;  %1369 = vrot.lane.b32.xlu0 %v1361_v5, %s5792_s16  ;;  %v5225_v56 = vld [vmem:[%s5884_s5 + $0x88] sm:$0xff]  ;;  %v1405_v27 = vmul.f32 %v5226_v36, %v1401_v62 }
 0x14e   : > { %v1404_v5 = vmul.f32 %v5225_v56, %v1401_v62  ;;  %v1431_v62 = vmul.f32 %v5226_v36, %v1427_v37 }
 0x14f   : > { %v6246_v61 = vpop.permute.xlu1 %950  ;;  %v6248_v10 = vpop.permute.xlu0 %948 }
 0x150   : > { %10413 = vst [vmem:[#allocation59_spill] sm:$0xff] %v6246_v61  ;;  %10414 = vst [vmem:[#allocation60_spill] sm:$0xff] %v6248_v10 }
 0x151   : > { %1375 = vrot.lane.b32.xlu1 %v1364_v18, %s5792_s16  ;;  %1373 = vrot.lane.b32.xlu0 %v1363_v24, %s5792_s16  ;;  %v1429_v24 = vmul.f32 %v5224_v47, %v1427_v37 }
 0x153   : > { %v6254_v28 = vpop.permute.xlu1 %954  ;;  %v6256_v15 = vpop.permute.xlu0 %952 }
 0x154   : > { %10415 = vst [vmem:[#allocation61_spill] sm:$0xff] %v6254_v28  ;;  %10416 = vst [vmem:[#allocation62_spill] sm:$0xff] %v6256_v15  ;;  %v1428_v28 = vmul.f32 %v5223_v23, %v1427_v37 }
 0x155   : > { %1412 = vrot.lane.b32.xlu1 %v1403_v31, %s10318_s6  ;;  %1410 = vrot.lane.b32.xlu0 %v1402_v14, %s10318_s6  ;;  %v1430_v31 = vmul.f32 %v5225_v56, %v1427_v37  ;;  %v1453_v14 = vstv %s5229_s24  ;;  %s5262_s24 = sld [smem:[#allocation2 + $0x47]] }
 0x156   : > { %v1457_v37 = vmul.f32 %v5226_v36, %v1453_v14 }
 0x157   : > { %v6260_v10 = vpop.permute.xlu1 %976  ;;  %v6262_v18 = vpop.permute.xlu0 %974 }
 0x158   : > { %10417 = vst [vmem:[#allocation63_spill] sm:$0xff] %v6260_v10  ;;  %10418 = vst [vmem:[#allocation64_spill] sm:$0xff] %v6262_v18  ;;  %v5231_v10 = vld [vmem:[%s5884_s5 + $0x79] sm:$0xff] }
 0x159   : > { %1416 = vrot.lane.b32.xlu1 %v1405_v27, %s10318_s6  ;;  %1414 = vrot.lane.b32.xlu0 %v1404_v5, %s10318_s6  ;;  %v1455_v5 = vmul.f32 %v5224_v47, %v1453_v14 }
 0x15b   : > { %v6266_v61 = vpop.permute.xlu1 %980  ;;  %v6268_v15 = vpop.permute.xlu0 %978 }
 0x15c   : > { %10419 = vst [vmem:[#allocation65_spill] sm:$0xff] %v6266_v61  ;;  %10420 = vst [vmem:[#allocation66_spill] sm:$0xff] %v6268_v15  ;;  %v1454_v15 = vmul.f32 %v5223_v23, %v1453_v14 }
 0x15d   : > { %1438 = vrot.lane.b32.xlu1 %v1429_v24, %s5791_s8  ;;  %1436 = vrot.lane.b32.xlu0 %v1428_v28, %s5791_s8  ;;  %v1456_v24 = vmul.f32 %v5225_v56, %v1453_v14  ;;  %v1519_v14 = vstv %s5236_s26  ;;  %s5265_s26 = sld [smem:[#allocation2 + $0x4a]] }
 0x15f   : > { %v6272_v18 = vpop.permute.xlu1 %1002  ;;  %v6274_v27 = vpop.permute.xlu0 %1000 }
 0x160   : > { %10421 = vst [vmem:[#allocation67_spill] sm:$0xff] %v6272_v18  ;;  %10422 = vst [vmem:[#allocation68_spill] sm:$0xff] %v6274_v27  ;;  %v5232_v18 = vld [vmem:[%s5884_s5 + $0x81] sm:$0xff]  ;;  %v1493_v27 = vstv %s5235_s25  ;;  %s5264_s25 = sld [smem:[#allocation2 + $0x49]] }
 0x161   : > { %1442 = vrot.lane.b32.xlu1 %v1431_v62, %s5791_s8  ;;  %1440 = vrot.lane.b32.xlu0 %v1430_v31, %s5791_s8  ;;  %v1495_v23 = vmul.f32 %v5232_v18, %v1493_v27  ;;  %v1494_v31 = vmul.f32 %v5231_v10, %v1493_v27 }
 0x163   : > { %v6278_v61 = vpop.permute.xlu1 %1006  ;;  %v6280_v28 = vpop.permute.xlu0 %1004  ;;  %v1973_v30 = vstv %s5265_s26  ;;  %s5285_s26 = sld [smem:[#allocation2 + $0x5e]] }
 0x164   : > { %10423 = vst [vmem:[#allocation69_spill] sm:$0xff] %v6278_v61  ;;  %10424 = vst [vmem:[#allocation70_spill] sm:$0xff] %v6280_v28  ;;  %v5234_v28 = vld [vmem:[%s5884_s5 + $0x91] sm:$0xff] }
 0x165   : > { %1464 = vrot.lane.b32.xlu1 %v1455_v5, %s5792_s16  ;;  %1462 = vrot.lane.b32.xlu0 %v1454_v15, %s5792_s16  ;;  %v5233_v5 = vld [vmem:[%s5884_s5 + $0x89] sm:$0xff]  ;;  %v1497_v56 = vmul.f32 %v5234_v28, %v1493_v27 }
 0x166   : > { %v1496_v15 = vmul.f32 %v5233_v5, %v1493_v27  ;;  %v1523_v27 = vmul.f32 %v5234_v28, %v1519_v14 }
 0x167   : > { %v6286_v62 = vpop.permute.xlu1 %1043  ;;  %v6288_v47 = vpop.permute.xlu0 %1041 }
 0x168   : > { %10425 = vst [vmem:[#allocation71_spill] sm:$0xff] %v6286_v62  ;;  %10426 = vst [vmem:[#allocation72_spill] sm:$0xff] %v6288_v47 }
 0x169   : > { %1468 = vrot.lane.b32.xlu1 %v1457_v37, %s5792_s16  ;;  %1466 = vrot.lane.b32.xlu0 %v1456_v24, %s5792_s16  ;;  %v1521_v24 = vmul.f32 %v5232_v18, %v1519_v14 }
 0x16b   : > { %v6294_v61 = vpop.permute.xlu1 %1047  ;;  %v6296_v36 = vpop.permute.xlu0 %1045 }
 0x16c   : > { %10427 = vst [vmem:[#allocation73_spill] sm:$0xff] %v6294_v61  ;;  %10428 = vst [vmem:[#allocation74_spill] sm:$0xff] %v6296_v36  ;;  %v1520_v61 = vmul.f32 %v5231_v10, %v1519_v14 }
 0x16d   : > { %1504 = vrot.lane.b32.xlu1 %v1495_v23, %s10318_s6  ;;  %1502 = vrot.lane.b32.xlu0 %v1494_v31, %s10318_s6  ;;  %v1522_v23 = vmul.f32 %v5233_v5, %v1519_v14  ;;  %v1545_v31 = vstv %s5237_s27  ;;  %s5266_s27 = sld [smem:[#allocation2 + $0x4b]] }
 0x16e   : > { %v1549_v14 = vmul.f32 %v5234_v28, %v1545_v31 }
 0x16f   : > { %v6300_v47 = vpop.permute.xlu1 %1069  ;;  %v6302_v37 = vpop.permute.xlu0 %1067 }
 0x170   : > { %10429 = vst [vmem:[#allocation75_spill] sm:$0xff] %v6300_v47  ;;  %10430 = vst [vmem:[#allocation76_spill] sm:$0xff] %v6302_v37  ;;  %v5239_v47 = vld [vmem:[%s5884_s5 + $0x7a] sm:$0xff] }
 0x171   : > { %1508 = vrot.lane.b32.xlu1 %v1497_v56, %s10318_s6  ;;  %1506 = vrot.lane.b32.xlu0 %v1496_v15, %s10318_s6  ;;  %v1547_v15 = vmul.f32 %v5232_v18, %v1545_v31 }
 0x173   : > { %v6306_v62 = vpop.permute.xlu1 %1073  ;;  %v6308_v36 = vpop.permute.xlu0 %1071 }
 0x174   : > { %10431 = vst [vmem:[#allocation77_spill] sm:$0xff] %v6306_v62  ;;  %10432 = vst [vmem:[#allocation78_spill] sm:$0xff] %v6308_v36  ;;  %v1546_v36 = vmul.f32 %v5231_v10, %v1545_v31 }
 0x175   : > { %1530 = vrot.lane.b32.xlu1 %v1521_v24, %s5791_s8  ;;  %1528 = vrot.lane.b32.xlu0 %v1520_v61, %s5791_s8  ;;  %v1548_v24 = vmul.f32 %v5233_v5, %v1545_v31  ;;  %v1611_v31 = vstv %s5244_s29  ;;  %s5269_s29 = sld [smem:[#allocation2 + $0x4e]] }
 0x177   : > { %v6312_v37 = vpop.permute.xlu1 %1095  ;;  %v6314_v56 = vpop.permute.xlu0 %1093 }
 0x178   : > { %10433 = vst [vmem:[#allocation79_spill] sm:$0xff] %v6312_v37  ;;  %10434 = vst [vmem:[#allocation80_spill] sm:$0xff] %v6314_v56  ;;  %v5240_v37 = vld [vmem:[%s5884_s5 + $0x82] sm:$0xff]  ;;  %v1585_v56 = vstv %s5243_s28  ;;  %s5268_s28 = sld [smem:[#allocation2 + $0x4d]] }
 0x179   : > { %1534 = vrot.lane.b32.xlu1 %v1523_v27, %s5791_s8  ;;  %1532 = vrot.lane.b32.xlu0 %v1522_v23, %s5791_s8  ;;  %v1587_v10 = vmul.f32 %v5240_v37, %v1585_v56  ;;  %v1586_v23 = vmul.f32 %v5239_v47, %v1585_v56 }
 0x17b   : > { %v6318_v62 = vpop.permute.xlu1 %1099  ;;  %v6320_v61 = vpop.permute.xlu0 %1097  ;;  %v2061_v39 = vstv %s5269_s29  ;;  %s5146_s29 = sld [smem:[#allocation2 + $0x4]] }
 0x17c   : > { %10435 = vst [vmem:[#allocation81_spill] sm:$0xff] %v6318_v62  ;;  %10436 = vst [vmem:[#allocation82_spill] sm:$0xff] %v6320_v61  ;;  %v5242_v61 = vld [vmem:[%s5884_s5 + $0x92] sm:$0xff] }
 0x17d   : > { %1556 = vrot.lane.b32.xlu1 %v1547_v15, %s5792_s16  ;;  %1554 = vrot.lane.b32.xlu0 %v1546_v36, %s5792_s16  ;;  %v5241_v15 = vld [vmem:[%s5884_s5 + $0x8a] sm:$0xff]  ;;  %v1589_v5 = vmul.f32 %v5242_v61, %v1585_v56 }
 0x17e   : > { %v1588_v36 = vmul.f32 %v5241_v15, %v1585_v56  ;;  %v1615_v56 = vmul.f32 %v5242_v61, %v1611_v31 }
 0x17f   : > { %v6326_v27 = vpop.permute.xlu1 %1135  ;;  %v6328_v18 = vpop.permute.xlu0 %1133 }
 0x180   : > { %10437 = vst [vmem:[#allocation83_spill] sm:$0xff] %v6326_v27  ;;  %10438 = vst [vmem:[#allocation84_spill] sm:$0xff] %v6328_v18 }
 0x181   : > { %1560 = vrot.lane.b32.xlu1 %v1549_v14, %s5792_s16  ;;  %1558 = vrot.lane.b32.xlu0 %v1548_v24, %s5792_s16  ;;  %v1613_v24 = vmul.f32 %v5240_v37, %v1611_v31 }
 0x183   : > { %v6334_v62 = vpop.permute.xlu1 %1139  ;;  %v6336_v28 = vpop.permute.xlu0 %1137 }
 0x184   : > { %10439 = vst [vmem:[#allocation85_spill] sm:$0xff] %v6334_v62  ;;  %10440 = vst [vmem:[#allocation86_spill] sm:$0xff] %v6336_v28  ;;  %v1612_v62 = vmul.f32 %v5239_v47, %v1611_v31 }
 0x185   : > { %1596 = vrot.lane.b32.xlu1 %v1587_v10, %s10318_s6  ;;  %1594 = vrot.lane.b32.xlu0 %v1586_v23, %s10318_s6  ;;  %v1614_v10 = vmul.f32 %v5241_v15, %v1611_v31  ;;  %v1637_v23 = vstv %s5245_s30  ;;  %s5270_s30 = sld [smem:[#allocation2 + $0x4f]] }
 0x186   : > { %v1641_v31 = vmul.f32 %v5242_v61, %v1637_v23 }
 0x187   : > { %v6340_v18 = vpop.permute.xlu1 %1161  ;;  %v6342_v14 = vpop.permute.xlu0 %1159 }
 0x188   : > { %10441 = vst [vmem:[#allocation87_spill] sm:$0xff] %v6340_v18  ;;  %10442 = vst [vmem:[#allocation88_spill] sm:$0xff] %v6342_v14  ;;  %v5247_v18 = vld [vmem:[%s5884_s5 + $0x7b] sm:$0xff] }
 0x189   : > { %1600 = vrot.lane.b32.xlu1 %v1589_v5, %s10318_s6  ;;  %1598 = vrot.lane.b32.xlu0 %v1588_v36, %s10318_s6  ;;  %v1639_v36 = vmul.f32 %v5240_v37, %v1637_v23 }
 0x18b   : > { %v6346_v27 = vpop.permute.xlu1 %1165  ;;  %v6348_v28 = vpop.permute.xlu0 %1163 }
 0x18c   : > { %10443 = vst [vmem:[#allocation89_spill] sm:$0xff] %v6346_v27  ;;  %10444 = vst [vmem:[#allocation90_spill] sm:$0xff] %v6348_v28  ;;  %v1638_v28 = vmul.f32 %v5239_v47, %v1637_v23 }
 0x18d   : > { %1622 = vrot.lane.b32.xlu1 %v1613_v24, %s5791_s8  ;;  %1620 = vrot.lane.b32.xlu0 %v1612_v62, %s5791_s8  ;;  %v1640_v24 = vmul.f32 %v5241_v15, %v1637_v23  ;;  %v1703_v23 = vstv %s5252_s4  ;;  %s5273_s4 = sld [smem:[#allocation2 + $0x52]] }
 0x18f   : > { %v6352_v14 = vpop.permute.xlu1 %1187  ;;  %v6354_v5 = vpop.permute.xlu0 %1185 }
 0x190   : > { %10445 = vst [vmem:[#allocation91_spill] sm:$0xff] %v6352_v14  ;;  %10446 = vst [vmem:[#allocation92_spill] sm:$0xff] %v6354_v5  ;;  %v5248_v14 = vld [vmem:[%s5884_s5 + $0x83] sm:$0xff]  ;;  %v1677_v5 = vstv %s5251_s3  ;;  %s5272_s3 = sld [smem:[#allocation2 + $0x51]] }
 0x191   : > { %1626 = vrot.lane.b32.xlu1 %v1615_v56, %s5791_s8  ;;  %1624 = vrot.lane.b32.xlu0 %v1614_v10, %s5791_s8  ;;  %v1679_v47 = vmul.f32 %v5248_v14, %v1677_v5  ;;  %v1678_v10 = vmul.f32 %v5247_v18, %v1677_v5 }
 0x193   : > { %v6358_v27 = vpop.permute.xlu1 %1191  ;;  %v6360_v62 = vpop.permute.xlu0 %1189  ;;  %v2149_v9 = vstv %s5273_s4  ;;  %s6893_s4 = sld [smem:[#allocation2 + $0x62]] }
 0x194   : > { %10447 = vst [vmem:[#allocation93_spill] sm:$0xff] %v6358_v27  ;;  %10448 = vst [vmem:[#allocation94_spill] sm:$0xff] %v6360_v62  ;;  %v5250_v62 = vld [vmem:[%s5884_s5 + $0x93] sm:$0xff] }
 0x195   : > { %1648 = vrot.lane.b32.xlu1 %v1639_v36, %s5792_s16  ;;  %1646 = vrot.lane.b32.xlu0 %v1638_v28, %s5792_s16  ;;  %v5249_v36 = vld [vmem:[%s5884_s5 + $0x8b] sm:$0xff]  ;;  %v1681_v15 = vmul.f32 %v5250_v62, %v1677_v5 }
 0x196   : > { %v1680_v28 = vmul.f32 %v5249_v36, %v1677_v5  ;;  %v1707_v5 = vmul.f32 %v5250_v62, %v1703_v23 }
 0x197   : > { %v6366_v56 = vpop.permute.xlu1 %1227  ;;  %v6368_v37 = vpop.permute.xlu0 %1225 }
 0x198   : > { %10449 = vst [vmem:[#allocation95_spill] sm:$0xff] %v6366_v56  ;;  %10450 = vst [vmem:[#allocation96_spill] sm:$0xff] %v6368_v37 }
 0x199   : > { %1652 = vrot.lane.b32.xlu1 %v1641_v31, %s5792_s16  ;;  %1650 = vrot.lane.b32.xlu0 %v1640_v24, %s5792_s16  ;;  %v1705_v24 = vmul.f32 %v5248_v14, %v1703_v23 }
 0x19b   : > { %v6374_v27 = vpop.permute.xlu1 %1231  ;;  %v6376_v61 = vpop.permute.xlu0 %1229 }
 0x19c   : > { %10451 = vst [vmem:[#allocation97_spill] sm:$0xff] %v6374_v27  ;;  %10452 = vst [vmem:[#allocation98_spill] sm:$0xff] %v6376_v61  ;;  %v1704_v27 = vmul.f32 %v5247_v18, %v1703_v23 }
 0x19d   : > { %1688 = vrot.lane.b32.xlu1 %v1679_v47, %s10318_s6  ;;  %1686 = vrot.lane.b32.xlu0 %v1678_v10, %s10318_s6  ;;  %v1706_v47 = vmul.f32 %v5249_v36, %v1703_v23  ;;  %v1729_v10 = vstv %s5253_s7  ;;  %s5274_s7 = sld [smem:[#allocation2 + $0x53]] }
 0x19e   : > { %v1732_v23 = vmul.f32 %v5249_v36, %v1729_v10 }
 0x19f   : > { %v6380_v37 = vpop.permute.xlu1 %1253  ;;  %v6382_v31 = vpop.permute.xlu0 %1251 }
 0x1a0   : > { %10453 = vst [vmem:[#allocation99_spill] sm:$0xff] %v6380_v37  ;;  %10454 = vst [vmem:[#allocation100_spill] sm:$0xff] %v6382_v31 }
 0x1a1   : > { %1692 = vrot.lane.b32.xlu1 %v1681_v15, %s10318_s6  ;;  %1690 = vrot.lane.b32.xlu0 %v1680_v28, %s10318_s6  ;;  %v1731_v15 = vmul.f32 %v5248_v14, %v1729_v10  ;;  %v1730_v28 = vmul.f32 %v5247_v18, %v1729_v10  ;;  %v6411_v18 = vld [vmem:[%s5884_s5 + $0x8] sm:$0xff] }
 0x1a3   : > { %v6386_v56 = vpop.permute.xlu1 %1257  ;;  %v6388_v61 = vpop.permute.xlu0 %1255 }
 0x1a4   : > { %10455 = vst [vmem:[#allocation101_spill] sm:$0xff] %v6386_v56  ;;  %10456 = vst [vmem:[#allocation102_spill] sm:$0xff] %v6388_v61 }
 0x1a5   : > { %1714 = vrot.lane.b32.xlu1 %v1705_v24, %s5791_s8  ;;  %1712 = vrot.lane.b32.xlu0 %v1704_v27, %s5791_s8  ;;  %v1733_v27 = vmul.f32 %v5250_v62, %v1729_v10 }
 0x1a7   : > { %v6392_v37 = vpop.permute.xlu1 %1279  ;;  %v6394_v31 = vpop.permute.xlu0 %1277 }
 0x1a8   : > { %10457 = vst [vmem:[#allocation103_spill] sm:$0xff] %v6392_v37  ;;  %10458 = vst [vmem:[#allocation104_spill] sm:$0xff] %v6394_v31  ;;  %v1771_v31 = vstv %s5256_s14  ;;  %v1885_v37 = vstv %s5261_s23  ;;  %s5276_s14 = sld [smem:[#allocation2 + $0x55]]  ;;  %s5281_s23 = sld [smem:[#allocation2 + $0x5a]] }
 0x1a9   : > { %1718 = vrot.lane.b32.xlu1 %v1707_v5, %s5791_s8  ;;  %1716 = vrot.lane.b32.xlu0 %v1706_v47, %s5791_s8  ;;  %v1773_v14 = vmul.f32 %v6411_v18, %v1771_v31 }
 0x1ab   : > { %v6398_v61 = vpop.permute.xlu1 %1283  ;;  %v6400_v24 = vpop.permute.xlu0 %1281 }
 0x1ac   : > { %10459 = vst [vmem:[#allocation105_spill] sm:$0xff] %v6398_v61  ;;  %10460 = vst [vmem:[#allocation106_spill] sm:$0xff] %v6400_v24  ;;  %v1797_v24 = vstv %s5257_s17  ;;  %s5277_s17 = sld [smem:[#allocation2 + $0x56]] }
 0x1ad   : > { %1740 = vrot.lane.b32.xlu1 %v1731_v15, %s5792_s16  ;;  %1738 = vrot.lane.b32.xlu0 %v1730_v28, %s5792_s16  ;;  %v6415_v15 = vld [vmem:[%s5884_s5] sm:$0xff]  ;;  %v6425_v28 = vld [vmem:[%s5884_s5 + $0x18] sm:$0xff] }
 0x1ae   : > { %v1772_v62 = vmul.f32 %v6415_v15, %v1771_v31 }
 0x1af   : > { %v6404_v5 = vpop.permute.xlu1 %1319  ;;  %v6406_v47 = vpop.permute.xlu0 %1317 }
 0x1b0   : > { %10461 = vst [vmem:[#allocation107_spill] sm:$0xff] %v6404_v5  ;;  %10462 = vst [vmem:[#allocation108_spill] sm:$0xff] %v6406_v47 }
 0x1b1   : > { %1744 = vrot.lane.b32.xlu1 %v1733_v27, %s5792_s16  ;;  %1742 = vrot.lane.b32.xlu0 %v1732_v23, %s5792_s16  ;;  %v1775_v27 = vmul.f32 %v6425_v28, %v1771_v31  ;;  %v6429_v23 = vld [vmem:[%s5884_s5 + $0x10] sm:$0xff] }
 0x1b2   : > { %v1774_v47 = vmul.f32 %v6429_v23, %v1771_v31  ;;  %v1801_v31 = vmul.f32 %v6425_v28, %v1797_v24 }
 0x1b3   : > { %v6418_v36 = vpop.permute.xlu1 %1323  ;;  %v6420_v10 = vpop.permute.xlu0 %1321 }
 0x1b4   : > { %10463 = vst [vmem:[#allocation109_spill] sm:$0xff] %v6418_v36  ;;  %10464 = vst [vmem:[#allocation110_spill] sm:$0xff] %v6420_v10 }
 0x1b5   : > { %1782 = vrot.lane.b32.xlu1 %v1773_v14, %s10318_s6  ;;  %1780 = vrot.lane.b32.xlu0 %v1772_v62, %s10318_s6  ;;  %v1799_v14 = vmul.f32 %v6411_v18, %v1797_v24  ;;  %v1798_v62 = vmul.f32 %v6415_v15, %v1797_v24 }
 0x1b7   : > { %v6432_v5 = vpop.permute.xlu1 %1345  ;;  %v6434_v61 = vpop.permute.xlu0 %1343 }
 0x1b8   : > { %10465 = vst [vmem:[#allocation111_spill] sm:$0xff] %v6432_v5  ;;  %10466 = vst [vmem:[#allocation112_spill] sm:$0xff] %v6434_v61  ;;  %v1800_v61 = vmul.f32 %v6429_v23, %v1797_v24  ;;  %v1823_v5 = vstv %s5258_s21  ;;  %s5278_s21 = sld [smem:[#allocation2 + $0x57]] }
 0x1b9   : > { %1786 = vrot.lane.b32.xlu1 %v1775_v27, %s10318_s6  ;;  %1784 = vrot.lane.b32.xlu0 %v1774_v47, %s10318_s6  ;;  %v1827_v24 = vmul.f32 %v6425_v28, %v1823_v5 }
 0x1bb   : > { %v6440_v10 = vpop.permute.xlu1 %1349  ;;  %v6442_v36 = vpop.permute.xlu0 %1347 }
 0x1bc   : > { %10467 = vst [vmem:[#allocation113_spill] sm:$0xff] %v6440_v10  ;;  %10468 = vst [vmem:[#allocation114_spill] sm:$0xff] %v6442_v36  ;;  %v1825_v36 = vmul.f32 %v6411_v18, %v1823_v5 }
 0x1bd   : > { %1808 = vrot.lane.b32.xlu1 %v1799_v14, %s5791_s8  ;;  %1806 = vrot.lane.b32.xlu0 %v1798_v62, %s5791_s8  ;;  %v1824_v14 = vmul.f32 %v6415_v15, %v1823_v5 }
 0x1bf   : > { %v6448_v27 = vpop.permute.xlu1 %1371  ;;  %v6450_v47 = vpop.permute.xlu0 %1369 }
 0x1c0   : > { %10469 = vst [vmem:[#allocation115_spill] sm:$0xff] %v6448_v27  ;;  %10470 = vst [vmem:[#allocation116_spill] sm:$0xff] %v6450_v47  ;;  %v1859_v47 = vstv %s5260_s22  ;;  %s5280_s22 = sld [smem:[#allocation2 + $0x59]] }
 0x1c1   : > { %1812 = vrot.lane.b32.xlu1 %v1801_v31, %s5791_s8  ;;  %1810 = vrot.lane.b32.xlu0 %v1800_v61, %s5791_s8  ;;  %v1826_v31 = vmul.f32 %v6429_v23, %v1823_v5 }
 0x1c3   : > { %v6456_v62 = vpop.permute.xlu1 %1375  ;;  %v6458_v10 = vpop.permute.xlu0 %1373 }
 0x1c4   : > { %10471 = vst [vmem:[#allocation117_spill] sm:$0xff] %v6456_v62  ;;  %10472 = vst [vmem:[#allocation118_spill] sm:$0xff] %v6458_v10  ;;  %v6471_v10 = vld [vmem:[%s5884_s5 + $0x9] sm:$0xff] }
 0x1c5   : > { %1834 = vrot.lane.b32.xlu1 %v1825_v36, %s5792_s16  ;;  %1832 = vrot.lane.b32.xlu0 %v1824_v14, %s5792_s16  ;;  %v1861_v36 = vmul.f32 %v6471_v10, %v1859_v47  ;;  %v6475_v14 = vld [vmem:[%s5884_s5 + $0x1] sm:$0xff] }
 0x1c6   : > { %v1860_v62 = vmul.f32 %v6475_v14, %v1859_v47 }
 0x1c7   : > { %v6464_v61 = vpop.permute.xlu1 %1412  ;;  %v6466_v27 = vpop.permute.xlu0 %1410 }
 0x1c8   : > { %10473 = vst [vmem:[#allocation119_spill] sm:$0xff] %v6464_v61  ;;  %10474 = vst [vmem:[#allocation120_spill] sm:$0xff] %v6466_v27  ;;  %v6485_v27 = vld [vmem:[%s5884_s5 + $0x19] sm:$0xff] }
 0x1c9   : > { %1838 = vrot.lane.b32.xlu1 %v1827_v24, %s5792_s16  ;;  %1836 = vrot.lane.b32.xlu0 %v1826_v31, %s5792_s16  ;;  %v1863_v24 = vmul.f32 %v6485_v27, %v1859_v47  ;;  %v6489_v31 = vld [vmem:[%s5884_s5 + $0x11] sm:$0xff] }
 0x1ca   : > { %v1862_v61 = vmul.f32 %v6489_v31, %v1859_v47  ;;  %v1889_v47 = vmul.f32 %v6485_v27, %v1885_v37 }
 0x1cb   : > { %v6478_v5 = vpop.permute.xlu1 %1416  ;;  %v6480_v56 = vpop.permute.xlu0 %1414 }
 0x1cc   : > { %10475 = vst [vmem:[#allocation121_spill] sm:$0xff] %v6478_v5  ;;  %10476 = vst [vmem:[#allocation122_spill] sm:$0xff] %v6480_v56 }
 0x1cd   : > { %1870 = vrot.lane.b32.xlu1 %v1861_v36, %s10318_s6  ;;  %1868 = vrot.lane.b32.xlu0 %v1860_v62, %s10318_s6  ;;  %v1887_v62 = vmul.f32 %v6471_v10, %v1885_v37  ;;  %v1886_v36 = vmul.f32 %v6475_v14, %v1885_v37 }
 0x1cf   : > { %v6492_v44 = vpop.permute.xlu1 %1438  ;;  %v6494_v53 = vpop.permute.xlu0 %1436 }
 0x1d0   : > { %10477 = vst [vmem:[#allocation123_spill] sm:$0xff] %v6492_v44  ;;  %10478 = vst [vmem:[#allocation124_spill] sm:$0xff] %v6494_v53  ;;  %v1888_v53 = vmul.f32 %v6489_v31, %v1885_v37  ;;  %v1911_v44 = vstv %s5262_s24  ;;  %s5282_s24 = sld [smem:[#allocation2 + $0x5b]] }
 0x1d1   : > { %1874 = vrot.lane.b32.xlu1 %v1863_v24, %s10318_s6  ;;  %1872 = vrot.lane.b32.xlu0 %v1862_v61, %s10318_s6  ;;  %v1915_v37 = vmul.f32 %v6485_v27, %v1911_v44 }
 0x1d3   : > { %v6500_v56 = vpop.permute.xlu1 %1442  ;;  %v6502_v5 = vpop.permute.xlu0 %1440 }
 0x1d4   : > { %10479 = vst [vmem:[#allocation125_spill] sm:$0xff] %v6500_v56  ;;  %10480 = vst [vmem:[#allocation126_spill] sm:$0xff] %v6502_v5  ;;  %v1913_v5 = vmul.f32 %v6471_v10, %v1911_v44 }
 0x1d5   : > { %1896 = vrot.lane.b32.xlu1 %v1887_v62, %s5791_s8  ;;  %1894 = vrot.lane.b32.xlu0 %v1886_v36, %s5791_s8  ;;  %v1912_v62 = vmul.f32 %v6475_v14, %v1911_v44 }
 0x1d7   : > { %v6508_v24 = vpop.permute.xlu1 %1464  ;;  %v6510_v61 = vpop.permute.xlu0 %1462 }
 0x1d8   : > { %10481 = vst [vmem:[#allocation127_spill] sm:$0xff] %v6508_v24  ;;  %10482 = vst [vmem:[#allocation128_spill] sm:$0xff] %v6510_v61  ;;  %v1947_v61 = vstv %s5264_s25  ;;  %s5284_s25 = sld [smem:[#allocation2 + $0x5d]] }
 0x1d9   : > { %1900 = vrot.lane.b32.xlu1 %v1889_v47, %s5791_s8  ;;  %1898 = vrot.lane.b32.xlu0 %v1888_v53, %s5791_s8  ;;  %v1914_v47 = vmul.f32 %v6489_v31, %v1911_v44 }
 0x1db   : > { %v6516_v36 = vpop.permute.xlu1 %1468  ;;  %v6518_v56 = vpop.permute.xlu0 %1466 }
 0x1dc   : > { %10483 = vst [vmem:[#allocation129_spill] sm:$0xff] %v6516_v36  ;;  %10484 = vst [vmem:[#allocation130_spill] sm:$0xff] %v6518_v56  ;;  %v6531_v56 = vld [vmem:[%s5884_s5 + $0xa] sm:$0xff] }
 0x1dd   : > { %1922 = vrot.lane.b32.xlu1 %v1913_v5, %s5792_s16  ;;  %1920 = vrot.lane.b32.xlu0 %v1912_v62, %s5792_s16  ;;  %v1949_v5 = vmul.f32 %v6531_v56, %v1947_v61  ;;  %v6535_v62 = vld [vmem:[%s5884_s5 + $0x2] sm:$0xff] }
 0x1de   : > { %v1948_v36 = vmul.f32 %v6535_v62, %v1947_v61 }
 0x1df   : > { %v6524_v53 = vpop.permute.xlu1 %1504  ;;  %v6526_v24 = vpop.permute.xlu0 %1502 }
 0x1e0   : > { %10485 = vst [vmem:[#allocation131_spill] sm:$0xff] %v6524_v53  ;;  %10486 = vst [vmem:[#allocation132_spill] sm:$0xff] %v6526_v24  ;;  %v6545_v24 = vld [vmem:[%s5884_s5 + $0x1a] sm:$0xff] }
 0x1e1   : > { %1926 = vrot.lane.b32.xlu1 %v1915_v37, %s5792_s16  ;;  %1924 = vrot.lane.b32.xlu0 %v1914_v47, %s5792_s16  ;;  %v1951_v37 = vmul.f32 %v6545_v24, %v1947_v61  ;;  %v6549_v47 = vld [vmem:[%s5884_s5 + $0x12] sm:$0xff] }
 0x1e2   : > { %v1950_v53 = vmul.f32 %v6549_v47, %v1947_v61  ;;  %v1977_v61 = vmul.f32 %v6545_v24, %v1973_v30 }
 0x1e3   : > { %v6538_v44 = vpop.permute.xlu1 %1508  ;;  %v6540_v11 = vpop.permute.xlu0 %1506 }
 0x1e4   : > { %10487 = vst [vmem:[#allocation133_spill] sm:$0xff] %v6538_v44  ;;  %10488 = vst [vmem:[#allocation134_spill] sm:$0xff] %v6540_v11 }
 0x1e5   : > { %1958 = vrot.lane.b32.xlu1 %v1949_v5, %s10318_s6  ;;  %1956 = vrot.lane.b32.xlu0 %v1948_v36, %s10318_s6  ;;  %v1975_v36 = vmul.f32 %v6531_v56, %v1973_v30  ;;  %v1974_v5 = vmul.f32 %v6535_v62, %v1973_v30 }
 0x1e7   : > { %v6552_v4 = vpop.permute.xlu1 %1530  ;;  %v6554_v48 = vpop.permute.xlu0 %1528 }
 0x1e8   : > { %10489 = vst [vmem:[#allocation135_spill] sm:$0xff] %v6552_v4  ;;  %10490 = vst [vmem:[#allocation136_spill] sm:$0xff] %v6554_v48  ;;  %v1976_v48 = vmul.f32 %v6549_v47, %v1973_v30  ;;  %v1999_v4 = vstv %s5266_s27  ;;  %s279_s27 = sld [smem:[#allocation2]] }
 0x1e9   : > { %1962 = vrot.lane.b32.xlu1 %v1951_v37, %s10318_s6  ;;  %1960 = vrot.lane.b32.xlu0 %v1950_v53, %s10318_s6  ;;  %v2003_v30 = vmul.f32 %v6545_v24, %v1999_v4 }
 0x1eb   : > { %v6560_v11 = vpop.permute.xlu1 %1534  ;;  %v6562_v44 = vpop.permute.xlu0 %1532 }
 0x1ec   : > { %10491 = vst [vmem:[#allocation137_spill] sm:$0xff] %v6560_v11  ;;  %10492 = vst [vmem:[#allocation138_spill] sm:$0xff] %v6562_v44  ;;  %v2001_v44 = vmul.f32 %v6531_v56, %v1999_v4 }
 0x1ed   : > { %1984 = vrot.lane.b32.xlu1 %v1975_v36, %s5791_s8  ;;  %1982 = vrot.lane.b32.xlu0 %v1974_v5, %s5791_s8  ;;  %v2000_v36 = vmul.f32 %v6535_v62, %v1999_v4 }
 0x1ef   : > { %v6568_v37 = vpop.permute.xlu1 %1556  ;;  %v6570_v53 = vpop.permute.xlu0 %1554 }
 0x1f0   : > { %10493 = vst [vmem:[#allocation139_spill] sm:$0xff] %v6568_v37  ;;  %10494 = vst [vmem:[#allocation140_spill] sm:$0xff] %v6570_v53  ;;  %v2035_v53 = vstv %s5268_s28  ;;  %s5286_s28 = sld [smem:[#allocation2 + $0x5f]] }
 0x1f1   : > { %1988 = vrot.lane.b32.xlu1 %v1977_v61, %s5791_s8  ;;  %1986 = vrot.lane.b32.xlu0 %v1976_v48, %s5791_s8  ;;  %v2002_v61 = vmul.f32 %v6549_v47, %v1999_v4 }
 0x1f3   : > { %v6576_v5 = vpop.permute.xlu1 %1560  ;;  %v6578_v11 = vpop.permute.xlu0 %1558 }
 0x1f4   : > { %10495 = vst [vmem:[#allocation141_spill] sm:$0xff] %v6576_v5  ;;  %10496 = vst [vmem:[#allocation142_spill] sm:$0xff] %v6578_v11  ;;  %v6591_v11 = vld [vmem:[%s5884_s5 + $0xb] sm:$0xff] }
 0x1f5   : > { %2010 = vrot.lane.b32.xlu1 %v2001_v44, %s5792_s16  ;;  %2008 = vrot.lane.b32.xlu0 %v2000_v36, %s5792_s16  ;;  %v2037_v44 = vmul.f32 %v6591_v11, %v2035_v53  ;;  %v6595_v36 = vld [vmem:[%s5884_s5 + $0x3] sm:$0xff] }
 0x1f6   : > { %v2036_v5 = vmul.f32 %v6595_v36, %v2035_v53 }
 0x1f7   : > { %v6584_v48 = vpop.permute.xlu1 %1596  ;;  %v6586_v37 = vpop.permute.xlu0 %1594 }
 0x1f8   : > { %10497 = vst [vmem:[#allocation143_spill] sm:$0xff] %v6584_v48  ;;  %10498 = vst [vmem:[#allocation144_spill] sm:$0xff] %v6586_v37  ;;  %v6605_v37 = vld [vmem:[%s5884_s5 + $0x1b] sm:$0xff] }
 0x1f9   : > { %2014 = vrot.lane.b32.xlu1 %v2003_v30, %s5792_s16  ;;  %2012 = vrot.lane.b32.xlu0 %v2002_v61, %s5792_s16  ;;  %10501 = vst [vmem:[#allocation147_spill] sm:$0xff] %v6605_v37  ;;  %v2039_v30 = vmul.f32 %v6605_v37, %v2035_v53  ;;  %v6609_v61 = vld [vmem:[%s5884_s5 + $0x13] sm:$0xff] }
 0x1fa   : > { %10502 = vst [vmem:[#allocation148_spill] sm:$0xff] %v6609_v61  ;;  %v2038_v48 = vmul.f32 %v6609_v61, %v2035_v53  ;;  %v2065_v53 = vmul.f32 %v6605_v37, %v2061_v39 }
 0x1fb   : > { %v6598_v4 = vpop.permute.xlu1 %1600  ;;  %v6600_v63 = vpop.permute.xlu0 %1598 }
 0x1fc   : > { %10499 = vst [vmem:[#allocation145_spill] sm:$0xff] %v6598_v4  ;;  %10500 = vst [vmem:[#allocation146_spill] sm:$0xff] %v6600_v63 }
 0x1fd   : > { %2046 = vrot.lane.b32.xlu1 %v2037_v44, %s10318_s6  ;;  %2044 = vrot.lane.b32.xlu0 %v2036_v5, %s10318_s6  ;;  %v2063_v5 = vmul.f32 %v6591_v11, %v2061_v39  ;;  %v2062_v44 = vmul.f32 %v6595_v36, %v2061_v39 }
 0x1ff   : > { %v6612_v29 = vpop.permute.xlu1 %1622  ;;  %v6614_v38 = vpop.permute.xlu0 %1620 }
 0x200   : > { %10503 = vst [vmem:[#allocation149_spill] sm:$0xff] %v6612_v29  ;;  %10504 = vst [vmem:[#allocation150_spill] sm:$0xff] %v6614_v38  ;;  %v2064_v38 = vmul.f32 %v6609_v61, %v2061_v39  ;;  %v2087_v29 = vstv %s5270_s30  ;;  %s5288_s30 = sld [smem:[#allocation2 + $0x61]] }
 0x201   : > { %2050 = vrot.lane.b32.xlu1 %v2039_v30, %s10318_s6  ;;  %2048 = vrot.lane.b32.xlu0 %v2038_v48, %s10318_s6  ;;  %v2091_v39 = vmul.f32 %v6605_v37, %v2087_v29 }
 0x203   : > { %v6620_v63 = vpop.permute.xlu1 %1626  ;;  %v6622_v4 = vpop.permute.xlu0 %1624 }
 0x204   : > { %10505 = vst [vmem:[#allocation151_spill] sm:$0xff] %v6620_v63  ;;  %10506 = vst [vmem:[#allocation152_spill] sm:$0xff] %v6622_v4  ;;  %v2089_v4 = vmul.f32 %v6591_v11, %v2087_v29 }
 0x205   : > { %2072 = vrot.lane.b32.xlu1 %v2063_v5, %s5791_s8  ;;  %2070 = vrot.lane.b32.xlu0 %v2062_v44, %s5791_s8  ;;  %v2088_v5 = vmul.f32 %v6595_v36, %v2087_v29 }
 0x207   : > { %v6628_v30 = vpop.permute.xlu1 %1648  ;;  %v6630_v48 = vpop.permute.xlu0 %1646 }
 0x208   : > { %10507 = vst [vmem:[#allocation153_spill] sm:$0xff] %v6628_v30  ;;  %10508 = vst [vmem:[#allocation154_spill] sm:$0xff] %v6630_v48  ;;  %v2123_v48 = vstv %s5272_s3  ;;  %s6886_s3 = sld [smem:[#allocation2 + $0x8]] }
 0x209   : > { %2076 = vrot.lane.b32.xlu1 %v2065_v53, %s5791_s8  ;;  %2074 = vrot.lane.b32.xlu0 %v2064_v38, %s5791_s8  ;;  %v2090_v53 = vmul.f32 %v6609_v61, %v2087_v29 }
 0x20b   : > { %v6636_v44 = vpop.permute.xlu1 %1652  ;;  %v6638_v63 = vpop.permute.xlu0 %1650 }
 0x20c   : > { %10509 = vst [vmem:[#allocation155_spill] sm:$0xff] %v6636_v44  ;;  %10510 = vst [vmem:[#allocation156_spill] sm:$0xff] %v6638_v63  ;;  %v6651_v63 = vld [vmem:[%s5884_s5 + $0x30] sm:$0xff] }
 0x20d   : > { %2098 = vrot.lane.b32.xlu1 %v2089_v4, %s5792_s16  ;;  %2096 = vrot.lane.b32.xlu0 %v2088_v5, %s5792_s16  ;;  %10513 = vst [vmem:[#allocation159_spill] sm:$0xff] %v6651_v63  ;;  %v2125_v4 = vmul.f32 %v6651_v63, %v2123_v48  ;;  %v6655_v5 = vld [vmem:[%s5884_s5 + $0x28] sm:$0xff] }
 0x20e   : > { %10514 = vst [vmem:[#allocation160_spill] sm:$0xff] %v6655_v5  ;;  %v2124_v44 = vmul.f32 %v6655_v5, %v2123_v48 }
 0x20f   : > { %v6644_v38 = vpop.permute.xlu1 %1688  ;;  %v6646_v30 = vpop.permute.xlu0 %1686 }
 0x210   : > { %10511 = vst [vmem:[#allocation157_spill] sm:$0xff] %v6644_v38  ;;  %10512 = vst [vmem:[#allocation158_spill] sm:$0xff] %v6646_v30  ;;  %v6665_v30 = vld [vmem:[%s5884_s5 + $0x40] sm:$0xff] }
 0x211   : > { %2102 = vrot.lane.b32.xlu1 %v2091_v39, %s5792_s16  ;;  %2100 = vrot.lane.b32.xlu0 %v2090_v53, %s5792_s16  ;;  %10517 = vst [vmem:[#allocation163_spill] sm:$0xff] %v6665_v30  ;;  %v2127_v39 = vmul.f32 %v6665_v30, %v2123_v48  ;;  %v6669_v53 = vld [vmem:[%s5884_s5 + $0x38] sm:$0xff] }
 0x212   : > { %10518 = vst [vmem:[#allocation164_spill] sm:$0xff] %v6669_v53  ;;  %v2126_v38 = vmul.f32 %v6669_v53, %v2123_v48  ;;  %v2153_v48 = vmul.f32 %v6665_v30, %v2149_v9 }
 0x213   : > { %v6658_v29 = vpop.permute.xlu1 %1692  ;;  %v6660_v20 = vpop.permute.xlu0 %1690 }
 0x214   : > { %10515 = vst [vmem:[#allocation161_spill] sm:$0xff] %v6658_v29  ;;  %10516 = vst [vmem:[#allocation162_spill] sm:$0xff] %v6660_v20 }
 0x215   : > { %2134 = vrot.lane.b32.xlu1 %v2125_v4, %s10318_s6  ;;  %2132 = vrot.lane.b32.xlu0 %v2124_v44, %s10318_s6  ;;  %v2151_v44 = vmul.f32 %v6651_v63, %v2149_v9  ;;  %v2150_v4 = vmul.f32 %v6655_v5, %v2149_v9 }
 0x217   : > { %v6672_v61 = vpop.permute.xlu1 %1714  ;;  %v6674_v19 = vpop.permute.xlu0 %1712 }
 0x218   : > { %10519 = vst [vmem:[#allocation165_spill] sm:$0xff] %v6672_v61  ;;  %10520 = vst [vmem:[#allocation166_spill] sm:$0xff] %v6674_v19  ;;  %v2152_v19 = vmul.f32 %v6669_v53, %v2149_v9  ;;  %v2175_v61 = vstv %s5274_s7  ;;  %s5290_s7 = sld [smem:[#allocation2 + $0x63]] }
 0x219   : > { %2138 = vrot.lane.b32.xlu1 %v2127_v39, %s10318_s6  ;;  %2136 = vrot.lane.b32.xlu0 %v2126_v38, %s10318_s6  ;;  %v2179_v9 = vmul.f32 %v6665_v30, %v2175_v61  ;;  %v2237_v30 = vstv %s5277_s17  ;;  %s6970_s17 = sld [smem:[#allocation2 + $0x65]] }
 0x21b   : > { %v6680_v20 = vpop.permute.xlu1 %1718  ;;  %v6682_v29 = vpop.permute.xlu0 %1716 }
 0x21c   : > { %10521 = vst [vmem:[#allocation167_spill] sm:$0xff] %v6680_v20  ;;  %10522 = vst [vmem:[#allocation168_spill] sm:$0xff] %v6682_v29  ;;  %v2177_v29 = vmul.f32 %v6651_v63, %v2175_v61 }
 0x21d   : > { %2160 = vrot.lane.b32.xlu1 %v2151_v44, %s5791_s8  ;;  %2158 = vrot.lane.b32.xlu0 %v2150_v4, %s5791_s8  ;;  %v2176_v44 = vmul.f32 %v6655_v5, %v2175_v61 }
 0x21f   : > { %v6688_v39 = vpop.permute.xlu1 %1740  ;;  %v6690_v38 = vpop.permute.xlu0 %1738 }
 0x220   : > { %10523 = vst [vmem:[#allocation169_spill] sm:$0xff] %v6688_v39  ;;  %10524 = vst [vmem:[#allocation170_spill] sm:$0xff] %v6690_v38  ;;  %v2211_v38 = vstv %s5276_s14  ;;  %s6946_s14 = sld [smem:[#allocation2 + $0xc]] }
 0x221   : > { %2164 = vrot.lane.b32.xlu1 %v2153_v48, %s5791_s8  ;;  %2162 = vrot.lane.b32.xlu0 %v2152_v19, %s5791_s8  ;;  %v2178_v48 = vmul.f32 %v6669_v53, %v2175_v61 }
 0x223   : > { %v6696_v4 = vpop.permute.xlu1 %1744  ;;  %v6698_v20 = vpop.permute.xlu0 %1742 }
 0x224   : > { %10525 = vst [vmem:[#allocation171_spill] sm:$0xff] %v6696_v4  ;;  %10526 = vst [vmem:[#allocation172_spill] sm:$0xff] %v6698_v20  ;;  %v6710_v4 = vld [vmem:[%s5884_s5 + $0x31] sm:$0xff] }
 0x225   : > { %2186 = vrot.lane.b32.xlu1 %v2177_v29, %s5792_s16  ;;  %2184 = vrot.lane.b32.xlu0 %v2176_v44, %s5792_s16  ;;  %10529 = vst [vmem:[#allocation175_spill] sm:$0xff] %v6710_v4  ;;  %v2213_v29 = vmul.f32 %v6710_v4, %v2211_v38  ;;  %v6715_v44 = vld [vmem:[%s5884_s5 + $0x29] sm:$0xff] }
 0x226   : > { %10530 = vst [vmem:[#allocation176_spill] sm:$0xff] %v6715_v44  ;;  %v2212_v20 = vmul.f32 %v6715_v44, %v2211_v38 }
 0x227   : > { %v6704_v19 = vpop.permute.xlu1 %1782  ;;  %v6706_v39 = vpop.permute.xlu0 %1780 }
 0x228   : > { %10527 = vst [vmem:[#allocation173_spill] sm:$0xff] %v6704_v19  ;;  %10528 = vst [vmem:[#allocation174_spill] sm:$0xff] %v6706_v39  ;;  %v6724_v19 = vld [vmem:[%s5884_s5 + $0x41] sm:$0xff]  ;;  %v6729_v39 = vld [vmem:[%s5884_s5 + $0x39] sm:$0xff] }
 0x229   : > { %2190 = vrot.lane.b32.xlu1 %v2179_v9, %s5792_s16  ;;  %2188 = vrot.lane.b32.xlu0 %v2178_v48, %s5792_s16  ;;  %10533 = vst [vmem:[#allocation179_spill] sm:$0xff] %v6724_v19  ;;  %v2215_v9 = vmul.f32 %v6724_v19, %v2211_v38  ;;  %10534 = vst [vmem:[#allocation180_spill] sm:$0xff] %v6729_v39  ;;  %v2214_v48 = vmul.f32 %v6729_v39, %v2211_v38 }
 0x22a   : > { %v2241_v38 = vmul.f32 %v6724_v19, %v2237_v30 }
 0x22b   : > { %v6718_v61 = vpop.permute.xlu1 %1786  ;;  %v6720_v53 = vpop.permute.xlu0 %1784 }
 0x22c   : > { %10531 = vst [vmem:[#allocation177_spill] sm:$0xff] %v6718_v61  ;;  %10532 = vst [vmem:[#allocation178_spill] sm:$0xff] %v6720_v53  ;;  %v2238_v53 = vmul.f32 %v6715_v44, %v2237_v30 }
 0x22d   : > { %2222 = vrot.lane.b32.xlu1 %v2213_v29, %s10318_s6  ;;  %2220 = vrot.lane.b32.xlu0 %v2212_v20, %s10318_s6  ;;  %v2239_v29 = vmul.f32 %v6710_v4, %v2237_v30 }
 0x22f   : > { %v6732_v5 = vpop.permute.xlu1 %1808  ;;  %v6734_v63 = vpop.permute.xlu0 %1806 }
 0x230   : > { %10535 = vst [vmem:[#allocation181_spill] sm:$0xff] %v6732_v5  ;;  %10536 = vst [vmem:[#allocation182_spill] sm:$0xff] %v6734_v63  ;;  %v2240_v63 = vmul.f32 %v6729_v39, %v2237_v30  ;;  %v2263_v5 = vstv %s5278_s21  ;;  %s5158_s21 = sld [smem:[#allocation2 + $0x10]] }
 0x231   : > { %2226 = vrot.lane.b32.xlu1 %v2215_v9, %s10318_s6  ;;  %2224 = vrot.lane.b32.xlu0 %v2214_v48, %s10318_s6  ;;  %v2265_v48 = vmul.f32 %v6710_v4, %v2263_v5  ;;  %v2267_v30 = vmul.f32 %v6724_v19, %v2263_v5 }
 0x233   : > { %v6740_v61 = vpop.permute.xlu1 %1812  ;;  %v6742_v20 = vpop.permute.xlu0 %1810 }
 0x234   : > { %10537 = vst [vmem:[#allocation183_spill] sm:$0xff] %v6740_v61  ;;  %10538 = vst [vmem:[#allocation184_spill] sm:$0xff] %v6742_v20  ;;  %v2299_v61 = vstv %s5280_s22  ;;  %s7003_s22 = sld [smem:[#allocation2 + $0x66]] }
 0x235   : > { %2248 = vrot.lane.b32.xlu1 %v2239_v29, %s5791_s8  ;;  %2246 = vrot.lane.b32.xlu0 %v2238_v53, %s5791_s8  ;;  %v2264_v29 = vmul.f32 %v6715_v44, %v2263_v5 }
 0x237   : > { %v6748_v9 = vpop.permute.xlu1 %1834  ;;  %v6750_v60 = vpop.permute.xlu0 %1832 }
 0x238   : > { %10539 = vst [vmem:[#allocation185_spill] sm:$0xff] %v6748_v9  ;;  %10540 = vst [vmem:[#allocation186_spill] sm:$0xff] %v6750_v60 }
 0x239   : > { %2252 = vrot.lane.b32.xlu1 %v2241_v38, %s5791_s8  ;;  %2250 = vrot.lane.b32.xlu0 %v2240_v63, %s5791_s8  ;;  %v2266_v38 = vmul.f32 %v6729_v39, %v2263_v5  ;;  %v2325_v39 = vstv %s5281_s23  ;;  %s7032_s23 = sld [smem:[#allocation2 + $0x14]] }
 0x23b   : > { %v6756_v20 = vpop.permute.xlu1 %1838  ;;  %v6758_v53 = vpop.permute.xlu0 %1836 }
 0x23c   : > { %10541 = vst [vmem:[#allocation187_spill] sm:$0xff] %v6756_v20  ;;  %10542 = vst [vmem:[#allocation188_spill] sm:$0xff] %v6758_v53  ;;  %v6770_v20 = vld [vmem:[%s5884_s5 + $0x32] sm:$0xff]  ;;  %v6775_v53 = vld [vmem:[%s5884_s5 + $0x2a] sm:$0xff] }
 0x23d   : > { %2274 = vrot.lane.b32.xlu1 %v2265_v48, %s5792_s16  ;;  %2272 = vrot.lane.b32.xlu0 %v2264_v29, %s5792_s16  ;;  %10545 = vst [vmem:[#allocation191_spill] sm:$0xff] %v6770_v20  ;;  %v2301_v48 = vmul.f32 %v6770_v20, %v2299_v61  ;;  %10546 = vst [vmem:[#allocation192_spill] sm:$0xff] %v6775_v53  ;;  %v2300_v29 = vmul.f32 %v6775_v53, %v2299_v61 }
 0x23f   : > { %v6764_v63 = vpop.permute.xlu1 %1870  ;;  %v6766_v60 = vpop.permute.xlu0 %1868 }
 0x240   : > { %10543 = vst [vmem:[#allocation189_spill] sm:$0xff] %v6764_v63  ;;  %10544 = vst [vmem:[#allocation190_spill] sm:$0xff] %v6766_v60  ;;  %v6784_v63 = vld [vmem:[%s5884_s5 + $0x42] sm:$0xff]  ;;  %v6789_v60 = vld [vmem:[%s5884_s5 + $0x3a] sm:$0xff] }
 0x241   : > { %2278 = vrot.lane.b32.xlu1 %v2267_v30, %s5792_s16  ;;  %2276 = vrot.lane.b32.xlu0 %v2266_v38, %s5792_s16  ;;  %10549 = vst [vmem:[#allocation195_spill] sm:$0xff] %v6784_v63  ;;  %v2303_v30 = vmul.f32 %v6784_v63, %v2299_v61  ;;  %10550 = vst [vmem:[#allocation196_spill] sm:$0xff] %v6789_v60  ;;  %v2302_v38 = vmul.f32 %v6789_v60, %v2299_v61 }
 0x242   : > { %v2329_v61 = vmul.f32 %v6784_v63, %v2325_v39 }
 0x243   : > { %v6778_v5 = vpop.permute.xlu1 %1874  ;;  %v6780_v9 = vpop.permute.xlu0 %1872 }
 0x244   : > { %10547 = vst [vmem:[#allocation193_spill] sm:$0xff] %v6778_v5  ;;  %10548 = vst [vmem:[#allocation194_spill] sm:$0xff] %v6780_v9  ;;  %v2326_v9 = vmul.f32 %v6775_v53, %v2325_v39 }
 0x245   : > { %2310 = vrot.lane.b32.xlu1 %v2301_v48, %s10318_s6  ;;  %2308 = vrot.lane.b32.xlu0 %v2300_v29, %s10318_s6  ;;  %v2327_v48 = vmul.f32 %v6770_v20, %v2325_v39 }
 0x247   : > { %v6792_v19 = vpop.permute.xlu1 %1896  ;;  %v6794_v44 = vpop.permute.xlu0 %1894 }
 0x248   : > { %10551 = vst [vmem:[#allocation197_spill] sm:$0xff] %v6792_v19  ;;  %10552 = vst [vmem:[#allocation198_spill] sm:$0xff] %v6794_v44  ;;  %v2328_v44 = vmul.f32 %v6789_v60, %v2325_v39  ;;  %v2351_v19 = vstv %s5282_s24  ;;  %s5294_s24 = sld [smem:[#allocation2 + $0x67]] }
 0x249   : > { %2314 = vrot.lane.b32.xlu1 %v2303_v30, %s10318_s6  ;;  %2312 = vrot.lane.b32.xlu0 %v2302_v38, %s10318_s6  ;;  %v2353_v38 = vmul.f32 %v6770_v20, %v2351_v19  ;;  %v2355_v39 = vmul.f32 %v6784_v63, %v2351_v19 }
 0x24b   : > { %v6800_v5 = vpop.permute.xlu1 %1900  ;;  %v6802_v29 = vpop.permute.xlu0 %1898 }
 0x24c   : > { %10553 = vst [vmem:[#allocation199_spill] sm:$0xff] %v6800_v5  ;;  %10554 = vst [vmem:[#allocation200_spill] sm:$0xff] %v6802_v29  ;;  %v2387_v5 = vstv %s5284_s25  ;;  %s5174_s25 = sld [smem:[#allocation2 + $0x18]] }
 0x24d   : > { %2336 = vrot.lane.b32.xlu1 %v2327_v48, %s5791_s8  ;;  %2334 = vrot.lane.b32.xlu0 %v2326_v9, %s5791_s8  ;;  %v2352_v48 = vmul.f32 %v6775_v53, %v2351_v19 }
 0x24f   : > { %v6808_v30 = vpop.permute.xlu1 %1922  ;;  %v6810_v4 = vpop.permute.xlu0 %1920 }
 0x250   : > { %10555 = vst [vmem:[#allocation201_spill] sm:$0xff] %v6808_v30  ;;  %10556 = vst [vmem:[#allocation202_spill] sm:$0xff] %v6810_v4 }
 0x251   : > { %2340 = vrot.lane.b32.xlu1 %v2329_v61, %s5791_s8  ;;  %2338 = vrot.lane.b32.xlu0 %v2328_v44, %s5791_s8  ;;  %v2354_v61 = vmul.f32 %v6789_v60, %v2351_v19  ;;  %v2413_v60 = vstv %s5285_s26  ;;  %s7077_s26 = sld [smem:[#allocation2 + $0x69]] }
 0x253   : > { %v6816_v29 = vpop.permute.xlu1 %1926  ;;  %v6818_v9 = vpop.permute.xlu0 %1924 }
 0x254   : > { %10557 = vst [vmem:[#allocation203_spill] sm:$0xff] %v6816_v29  ;;  %10558 = vst [vmem:[#allocation204_spill] sm:$0xff] %v6818_v9  ;;  %v6830_v29 = vld [vmem:[%s5884_s5 + $0x33] sm:$0xff]  ;;  %v6835_v9 = vld [vmem:[%s5884_s5 + $0x2b] sm:$0xff] }
 0x255   : > { %2362 = vrot.lane.b32.xlu1 %v2353_v38, %s5792_s16  ;;  %2360 = vrot.lane.b32.xlu0 %v2352_v48, %s5792_s16  ;;  %v2389_v38 = vmul.f32 %v6830_v29, %v2387_v5  ;;  %v2388_v48 = vmul.f32 %v6835_v9, %v2387_v5 }
 0x257   : > { %v6824_v44 = vpop.permute.xlu1 %1958  ;;  %v6826_v4 = vpop.permute.xlu0 %1956 }
 0x258   : > { %10559 = vst [vmem:[#allocation205_spill] sm:$0xff] %v6824_v44  ;;  %10560 = vst [vmem:[#allocation206_spill] sm:$0xff] %v6826_v4  ;;  %v6844_v44 = vld [vmem:[%s5884_s5 + $0x43] sm:$0xff]  ;;  %v6849_v4 = vld [vmem:[%s5884_s5 + $0x3b] sm:$0xff] }
 0x259   : > { %2366 = vrot.lane.b32.xlu1 %v2355_v39, %s5792_s16  ;;  %2364 = vrot.lane.b32.xlu0 %v2354_v61, %s5792_s16  ;;  %v2391_v39 = vmul.f32 %v6844_v44, %v2387_v5  ;;  %v2390_v61 = vmul.f32 %v6849_v4, %v2387_v5  ;;  %v2417_v5 = vmul.f32 %v6844_v44, %v2413_v60 }
 0x25b   : > { %v6838_v19 = vpop.permute.xlu1 %1962  ;;  %v6840_v30 = vpop.permute.xlu0 %1960 }
 0x25c   : > { %10561 = vst [vmem:[#allocation207_spill] sm:$0xff] %v6838_v19  ;;  %10562 = vst [vmem:[#allocation208_spill] sm:$0xff] %v6840_v30  ;;  %v2414_v30 = vmul.f32 %v6835_v9, %v2413_v60 }
 0x25d   : > { %2398 = vrot.lane.b32.xlu1 %v2389_v38, %s10318_s6  ;;  %2396 = vrot.lane.b32.xlu0 %v2388_v48, %s10318_s6  ;;  %v2415_v38 = vmul.f32 %v6830_v29, %v2413_v60 }
 0x25f   : > { %v6852_v63 = vpop.permute.xlu1 %1984  ;;  %v6854_v19 = vpop.permute.xlu0 %1982 }
 0x260   : > { %10563 = vst [vmem:[#allocation209_spill] sm:$0xff] %v6852_v63  ;;  %10564 = vst [vmem:[#allocation210_spill] sm:$0xff] %v6854_v19  ;;  %v284_v63 = vstv %s279_s27  ;;  %v2439_v19 = vstv %s5286_s28  ;;  %s7110_s27 = sld [smem:[#allocation2 + $0x6a]]  ;;  %s7117_s28 = sld [smem:[#allocation2 + $0x1c]] }
 0x261   : > { %2402 = vrot.lane.b32.xlu1 %v2391_v39, %s10318_s6  ;;  %2400 = vrot.lane.b32.xlu0 %v2390_v61, %s10318_s6  ;;  %v2416_v39 = vmul.f32 %v6849_v4, %v2413_v60  ;;  %v286_v61 = vmul.f32 %v6411_v18, %v284_v63  ;;  %v288_v60 = vmul.f32 %v6425_v28, %v284_v63 }
 0x262   : > { %v287_v28 = vmul.f32 %v6429_v23, %v284_v63 }
 0x263   : > { %v6860_v53 = vpop.permute.xlu1 %1988  ;;  %v6862_v48 = vpop.permute.xlu0 %1986 }
 0x264   : > { %10565 = vst [vmem:[#allocation211_spill] sm:$0xff] %v6860_v53  ;;  %10566 = vst [vmem:[#allocation212_spill] sm:$0xff] %v6862_v48  ;;  %v285_v48 = vmul.f32 %v6415_v15, %v284_v63  ;;  %v316_v53 = vadd.f32 %v5976_v41, %v286_v61  ;;  %v2442_v41 = vmul.f32 %v6849_v4, %v2439_v19 }
 0x265   : > { %2424 = vrot.lane.b32.xlu1 %v2415_v38, %s5791_s8  ;;  %2422 = vrot.lane.b32.xlu0 %v2414_v30, %s5791_s8  ;;  %v2441_v38 = vmul.f32 %v6830_v29, %v2439_v19  ;;  %v2440_v30 = vmul.f32 %v6835_v9, %v2439_v19 }
 0x266   : > { %v342_v15 = vadd.f32 %v5980_v45, %v316_v53 }
 0x267   : > { %v6869_v20 = vpop.permute.xlu1 %2010  ;;  %v6871_v6 = vpop.permute.xlu0 %2008 }
 0x268   : > { %10567 = vst [vmem:[#allocation213_spill] sm:$0xff] %v6869_v20  ;;  %10568 = vst [vmem:[#allocation214_spill] sm:$0xff] %v6871_v6  ;;  %v376_v20 = vstv %s5146_s29  ;;  %v315_v6 = vadd.f32 %v5968_v35, %v285_v48  ;;  %v318_v35 = vadd.f32 %v5974_v40, %v288_v60  ;;  %v368_v48 = vadd.f32 %v5992_v54, %v342_v15  ;;  %v6908_v40 = vld [vmem:[%s5884_s5 + $0x58] sm:$0xff]  ;;  %s7156_s29 = sld [smem:[#allocation2 + $0x6b]] }
 0x269   : > { %2428 = vrot.lane.b32.xlu1 %v2417_v5, %s5791_s8  ;;  %2426 = vrot.lane.b32.xlu0 %v2416_v39, %s5791_s8  ;;  %v2443_v5 = vmul.f32 %v6844_v44, %v2439_v19  ;;  %v2475_v39 = vstv %s5288_s30  ;;  %v378_v53 = vmul.f32 %v6471_v10, %v376_v20  ;;  %v377_v63 = vmul.f32 %v6475_v14, %v376_v20  ;;  %s5190_s30 = sld [smem:[#allocation2 + $0x20]] }
 0x26a   : > { %v341_v45 = vadd.f32 %v5982_v46, %v315_v6  ;;  %v344_v23 = vadd.f32 %v5986_v49, %v318_v35  ;;  %v2477_v46 = vmul.f32 %v6908_v40, %v2475_v39  ;;  %v317_v54 = vadd.f32 %v5966_v34, %v287_v28  ;;  %v6914_v6 = vld [vmem:[%s5884_s5 + $0x50] sm:$0xff] }
 0x26b   : > { %v6880_v37 = vpop.permute.xlu1 %2014  ;;  %v6882_v18 = vpop.permute.xlu0 %2012  ;;  %v2476_v49 = vmul.f32 %v6914_v6, %v2475_v39  ;;  %v382_v10 = vadd.f32 %v378_v53, %v368_v48  ;;  %v468_v28 = vstv %s6886_s3  ;;  %v2501_v53 = vstv %s6893_s4  ;;  %s7189_s3 = sld [smem:[#allocation2 + $0x6d]]  ;;  %s7210_s4 = sld [smem:[#allocation2 + $0x24]] }
 0x26c   : > { %v367_v19 = vadd.f32 %v5994_v55, %v341_v45  ;;  %v380_v55 = vmul.f32 %v6485_v27, %v376_v20  ;;  %v370_v14 = vadd.f32 %v5998_v58, %v344_v23  ;;  %v343_v15 = vadd.f32 %v5988_v50, %v317_v54  ;;  %v6935_v45 = vld [vmem:[%s5884_s5 + $0x60] sm:$0xff] }
 0x26d   : > { %2450 = vrot.lane.b32.xlu1 %v2441_v38, %s5792_s16  ;;  %2448 = vrot.lane.b32.xlu0 %v2440_v30, %s5792_s16  ;;  %v379_v27 = vmul.f32 %v6489_v31, %v376_v20  ;;  %v2478_v50 = vmul.f32 %v6935_v45, %v2475_v39  ;;  %v470_v31 = vmul.f32 %v6531_v56, %v468_v28 }
 0x26e   : > { %v381_v34 = vadd.f32 %v377_v63, %v367_v19  ;;  %v369_v58 = vadd.f32 %v6000_v59, %v343_v15  ;;  %v469_v56 = vmul.f32 %v6535_v62, %v468_v28  ;;  %v2527_v15 = vstv %s5290_s7  ;;  %s7222_s7 = sld [smem:[#allocation2 + $0x6e]] }
 0x26f   : > { %v6899_v61 = vpop.permute.xlu1 %2046  ;;  %v6901_v38 = vpop.permute.xlu0 %2044 }
 0x270   : > { %v407_v48 = vadd.f32 %v6008_v2, %v381_v34  ;;  %v2503_v2 = vmul.f32 %v6908_v40, %v2501_v53 }
 0x271   : > { %2454 = vrot.lane.b32.xlu1 %v2443_v5, %s5792_s16  ;;  %2452 = vrot.lane.b32.xlu0 %v2442_v41, %s5792_s16  ;;  %v408_v5 = vadd.f32 %v6006_v1, %v382_v10  ;;  %v6928_v41 = vld [vmem:[%s5884_s5 + $0x68] sm:$0xff]  ;;  %v384_v1 = vadd.f32 %v380_v55, %v370_v14  ;;  %v472_v55 = vmul.f32 %v6545_v24, %v468_v28 }
 0x272   : > { %v2479_v35 = vmul.f32 %v6928_v41, %v2475_v39  ;;  %v433_v20 = vadd.f32 %v6022_v13, %v407_v48 }
 0x273   : > { %v6919_v30 = vpop.permute.xlu1 %2050  ;;  %v6921_v60 = vpop.permute.xlu0 %2048  ;;  %v434_v23 = vadd.f32 %v6020_v12, %v408_v5  ;;  %v410_v59 = vadd.f32 %v6014_v7, %v384_v1  ;;  %v2502_v12 = vmul.f32 %v6914_v6, %v2501_v53 }
 0x275   : > { %2486 = vrot.lane.b32.xlu1 %v2477_v46, %s10318_s6  ;;  %2484 = vrot.lane.b32.xlu0 %v2476_v49, %s10318_s6  ;;  %v460_v39 = vadd.f32 %v6032_v21, %v434_v23  ;;  %v383_v46 = vadd.f32 %v379_v27, %v369_v58  ;;  %v436_v54 = vadd.f32 %v6026_v16, %v410_v59  ;;  %v560_v27 = vstv %s6946_s14  ;;  %s7255_s14 = sld [smem:[#allocation2 + $0x28]] }
 0x276   : > { %v459_v49 = vadd.f32 %v6034_v22, %v433_v20  ;;  %v2505_v16 = vmul.f32 %v6928_v41, %v2501_v53  ;;  %v2504_v22 = vmul.f32 %v6935_v45, %v2501_v53  ;;  %v2529_v53 = vmul.f32 %v6908_v40, %v2527_v15  ;;  %v10569_v20 = vld [vmem:[#allocation147_spill] sm:$0xff] }
 0x277   : > { %v6941_v63 = vpop.permute.xlu1 %2072  ;;  %v6943_v19 = vpop.permute.xlu0 %2070  ;;  %v409_v21 = vadd.f32 %v6016_v8, %v383_v46  ;;  %v474_v10 = vadd.f32 %v470_v31, %v460_v39  ;;  %v462_v14 = vadd.f32 %v6038_v25, %v436_v54  ;;  %v471_v25 = vmul.f32 %v6549_v47, %v468_v28  ;;  %v10570_v39 = vld [vmem:[#allocation9_spill] sm:$0xff] }
 0x278   : > { %v473_v8 = vadd.f32 %v469_v56, %v459_v49  ;;  %v562_v28 = vmul.f32 %v6591_v11, %v560_v27  ;;  %v561_v31 = vmul.f32 %v6595_v36, %v560_v27  ;;  %v2563_v11 = vstv %s6970_s17  ;;  %v10572_v56 = vld [vmem:[#allocation11_spill] sm:$0xff]  ;;  %s7268_s17 = sld [smem:[#allocation2 + $0x6f]] }
 0x279   : > { %2490 = vrot.lane.b32.xlu1 %v2479_v35, %s10318_s6  ;;  %2488 = vrot.lane.b32.xlu0 %v2478_v50, %s10318_s6  ;;  %v435_v62 = vadd.f32 %v6028_v17, %v409_v21  ;;  %v500_v34 = vadd.f32 %v6046_v32, %v474_v10  ;;  %v476_v17 = vadd.f32 %v472_v55, %v462_v14  ;;  %v653_v21 = vstv %s5158_s21  ;;  %v7015_v10 = vld [vmem:[%s5884_s5 + $0x59] sm:$0xff]  ;;  %s5304_s21 = sld [smem:[#allocation2 + $0x71]] }
 0x27a   : > { %v499_v58 = vadd.f32 %v6048_v33, %v473_v8  ;;  %v2528_v32 = vmul.f32 %v6914_v6, %v2527_v15  ;;  %v564_v36 = vmul.f32 %v10569_v20, %v560_v27  ;;  %v2565_v55 = vmul.f32 %v7015_v10, %v2563_v11  ;;  %v10573_v14 = vld [vmem:[#allocation148_spill] sm:$0xff]  ;;  %v10581_v20 = vld [vmem:[#allocation17_spill] sm:$0xff] }
 0x27b   : > { %v6958_v7 = vpop.permute.xlu1 %2076  ;;  %v6960_v13 = vpop.permute.xlu0 %2074  ;;  %v461_v35 = vadd.f32 %v6040_v26, %v435_v62  ;;  %v526_v50 = vadd.f32 %v6060_v51, %v500_v34  ;;  %v502_v47 = vadd.f32 %v6054_v42, %v476_v17  ;;  %v2531_v42 = vmul.f32 %v6928_v41, %v2527_v15  ;;  %v10574_v62 = vld [vmem:[#allocation10_spill] sm:$0xff]  ;;  %v10576_v17 = vld [vmem:[#allocation15_spill] sm:$0xff] }
 0x27c   : > { %v525_v26 = vadd.f32 %v6062_v52, %v499_v58 }
 0x27d   : > { %2512 = vrot.lane.b32.xlu1 %v2503_v2, %s5791_s8  ;;  %2510 = vrot.lane.b32.xlu0 %v2502_v12, %s5791_s8  ;;  %v552_v33 = vadd.f32 %v6072_v0, %v526_v50  ;;  %v475_v48 = vadd.f32 %v471_v25, %v461_v35  ;;  %v528_v23 = vadd.f32 %v6066_v57, %v502_v47  ;;  %v10571_v12 = vld [vmem:[#allocation8_spill] sm:$0xff]  ;;  %v10578_v47 = vld [vmem:[#allocation13_spill] sm:$0xff] }
 0x27e   : > { %v551_v59 = vadd.f32 %v6074_v3, %v525_v26  ;;  %v2530_v0 = vmul.f32 %v6935_v45, %v2527_v15  ;;  %v7022_v15 = vld [vmem:[%s5884_s5 + $0x51] sm:$0xff]  ;;  %v10575_v25 = vld [vmem:[#allocation12_spill] sm:$0xff] }
 0x27f   : > { %v6973_v5 = vpop.permute.xlu1 %2098  ;;  %v6975_v24 = vpop.permute.xlu0 %2096  ;;  %v501_v52 = vadd.f32 %v6056_v43, %v475_v48  ;;  %v566_v57 = vadd.f32 %v562_v28, %v552_v33  ;;  %v554_v3 = vadd.f32 %v10570_v39, %v528_v23  ;;  %v2564_v8 = vmul.f32 %v7022_v15, %v2563_v11  ;;  %v10579_v28 = vld [vmem:[#allocation16_spill] sm:$0xff]  ;;  %v10580_v48 = vld [vmem:[#allocation19_spill] sm:$0xff] }
 0x280   : > { %v565_v43 = vadd.f32 %v561_v31, %v551_v59  ;;  %v7039_v31 = vld [vmem:[%s5884_s5 + $0x69] sm:$0xff]  ;;  %v10582_v39 = vld [vmem:[#allocation160_spill] sm:$0xff] }
 0x281   : > { %2516 = vrot.lane.b32.xlu1 %v2505_v16, %s5791_s8  ;;  %2514 = vrot.lane.b32.xlu0 %v2504_v22, %s5791_s8  ;;  %v527_v54 = vadd.f32 %v10571_v12, %v501_v52  ;;  %v592_v49 = vadd.f32 %v10572_v56, %v566_v57  ;;  %v563_v16 = vmul.f32 %v10573_v14, %v560_v27  ;;  %v10577_v27 = vld [vmem:[#allocation159_spill] sm:$0xff]  ;;  %v7044_v52 = vld [vmem:[%s5884_s5 + $0x61] sm:$0xff]  ;;  %v2589_v57 = vstv %s7003_s22  ;;  %s7307_s22 = sld [smem:[#allocation2 + $0x2c]] }
 0x282   : > { %v568_v34 = vadd.f32 %v564_v36, %v554_v3  ;;  %v591_v35 = vadd.f32 %v10575_v25, %v565_v43  ;;  %v2567_v59 = vmul.f32 %v7039_v31, %v2563_v11  ;;  %v654_v3 = vmul.f32 %v10582_v39, %v653_v21  ;;  %v10583_v12 = vld [vmem:[#allocation20_spill] sm:$0xff] }
 0x283   : > { %v6990_v1 = vpop.permute.xlu1 %2102  ;;  %v6992_v51 = vpop.permute.xlu0 %2100  ;;  %v553_v22 = vadd.f32 %v10574_v62, %v527_v54  ;;  %v618_v58 = vadd.f32 %v10576_v17, %v592_v49  ;;  %v10584_v49 = vld [vmem:[#allocation14_spill] sm:$0xff] }
 0x284   : > { %v594_v26 = vadd.f32 %v10578_v47, %v568_v34  ;;  %v617_v33 = vadd.f32 %v10579_v28, %v591_v35  ;;  %v10587_v34 = vld [vmem:[#allocation18_spill] sm:$0xff]  ;;  %v2590_v35 = vmul.f32 %v7022_v15, %v2589_v57 }
 0x285   : > { %2538 = vrot.lane.b32.xlu1 %v2529_v53, %s5792_s16  ;;  %2536 = vrot.lane.b32.xlu0 %v2528_v32, %s5792_s16  ;;  %v655_v32 = vmul.f32 %v10577_v27, %v653_v21  ;;  %v644_v23 = vadd.f32 %v10580_v48, %v618_v58  ;;  %v10588_v58 = vld [vmem:[#allocation23_spill] sm:$0xff] }
 0x286   : > { %v620_v36 = vadd.f32 %v10581_v20, %v594_v26  ;;  %v643_v54 = vadd.f32 %v10583_v12, %v617_v33  ;;  %v10590_v26 = vld [vmem:[#allocation164_spill] sm:$0xff]  ;;  %v10591_v33 = vld [vmem:[#allocation22_spill] sm:$0xff]  ;;  %v2615_v12 = vstv %s5294_s24  ;;  %s7345_s24 = sld [smem:[#allocation2 + $0x30]] }
 0x287   : > { %v7007_v2 = vpop.permute.xlu1 %2134  ;;  %v7009_v46 = vpop.permute.xlu0 %2132  ;;  %v659_v14 = vadd.f32 %v655_v32, %v644_v23  ;;  %v656_v28 = vmul.f32 %v10590_v26, %v653_v21  ;;  %v745_v23 = vstv %s7032_s23  ;;  %v2617_v26 = vmul.f32 %v7015_v10, %v2615_v12  ;;  %s7333_s23 = sld [smem:[#allocation2 + $0x72]] }
 0x288   : > { %v658_v17 = vadd.f32 %v654_v3, %v643_v54  ;;  %v2592_v3 = vmul.f32 %v7044_v52, %v2589_v57 }
 0x289   : > { %2542 = vrot.lane.b32.xlu1 %v2531_v42, %s5792_s16  ;;  %2540 = vrot.lane.b32.xlu0 %v2530_v0, %s5792_s16  ;;  %v567_v42 = vadd.f32 %v563_v16, %v553_v22  ;;  %v2566_v0 = vmul.f32 %v7044_v52, %v2563_v11  ;;  %v10585_v16 = vld [vmem:[#allocation163_spill] sm:$0xff]  ;;  %v10586_v22 = vld [vmem:[#allocation21_spill] sm:$0xff]  ;;  %v685_v27 = vadd.f32 %v10588_v58, %v659_v14  ;;  %v10600_v58 = vld [vmem:[#allocation32_spill] sm:$0xff] }
 0x28a   : > { %v657_v62 = vmul.f32 %v10585_v16, %v653_v21  ;;  %v646_v11 = vadd.f32 %v10586_v22, %v620_v36  ;;  %v10593_v36 = vld [vmem:[#allocation27_spill] sm:$0xff]  ;;  %v10594_v21 = vld [vmem:[#allocation25_spill] sm:$0xff] }
 0x28b   : > { %v7027_v50 = vpop.permute.xlu1 %2138  ;;  %v7029_v53 = vpop.permute.xlu0 %2136  ;;  %v711_v39 = vadd.f32 %v10593_v36, %v685_v27  ;;  %v10596_v14 = vld [vmem:[#allocation175_spill] sm:$0xff] }
 0x28c   : > { %v747_v16 = vmul.f32 %v10596_v14, %v745_v23  ;;  %v10602_v36 = vld [vmem:[#allocation179_spill] sm:$0xff] }
 0x28d   : > { %2574 = vrot.lane.b32.xlu1 %v2565_v55, %s10318_s6  ;;  %2572 = vrot.lane.b32.xlu0 %v2564_v8, %s10318_s6  ;;  %v593_v55 = vadd.f32 %v10584_v49, %v567_v42  ;;  %v2591_v8 = vmul.f32 %v7015_v10, %v2589_v57  ;;  %v10592_v42 = vld [vmem:[#allocation24_spill] sm:$0xff]  ;;  %v10607_v14 = vld [vmem:[#allocation35_spill] sm:$0xff] }
 0x28e   : > { %v684_v20 = vadd.f32 %v10592_v42, %v658_v17  ;;  %v10595_v49 = vld [vmem:[#allocation28_spill] sm:$0xff]  ;;  %v2616_v42 = vmul.f32 %v7022_v15, %v2615_v12 }
 0x28f   : > { %v7051_v43 = vpop.permute.xlu1 %2160  ;;  %v7053_v56 = vpop.permute.xlu0 %2158  ;;  %v619_v25 = vadd.f32 %v10587_v34, %v593_v55  ;;  %v10599_v17 = vld [vmem:[#allocation176_spill] sm:$0xff] }
 0x290   : > { %v710_v55 = vadd.f32 %v10595_v49, %v684_v20 }
 0x291   : > { %2578 = vrot.lane.b32.xlu1 %v2567_v59, %s10318_s6  ;;  %2576 = vrot.lane.b32.xlu0 %v2566_v0, %s10318_s6  ;;  %v645_v48 = vadd.f32 %v10591_v33, %v619_v25  ;;  %v661_v59 = vadd.f32 %v657_v62, %v646_v11  ;;  %v2593_v0 = vmul.f32 %v7039_v31, %v2589_v57  ;;  %v10597_v62 = vld [vmem:[#allocation31_spill] sm:$0xff]  ;;  %v10598_v25 = vld [vmem:[#allocation29_spill] sm:$0xff]  ;;  %v10601_v33 = vld [vmem:[#allocation26_spill] sm:$0xff] }
 0x292   : > { %v737_v22 = vadd.f32 %v10597_v62, %v711_v39  ;;  %v746_v57 = vmul.f32 %v10599_v17, %v745_v23  ;;  %v736_v27 = vadd.f32 %v10600_v58, %v710_v55  ;;  %v2651_v58 = vstv %s7077_s26  ;;  %s7402_s26 = sld [smem:[#allocation2 + $0x34]] }
 0x293   : > { %v7064_v47 = vpop.permute.xlu1 %2164  ;;  %v7066_v32 = vpop.permute.xlu0 %2162  ;;  %v687_v54 = vadd.f32 %v10594_v21, %v661_v59  ;;  %v660_v34 = vadd.f32 %v656_v28, %v645_v48  ;;  %v749_v28 = vmul.f32 %v10602_v36, %v745_v23  ;;  %v10603_v48 = vld [vmem:[#allocation33_spill] sm:$0xff]  ;;  %v10613_v36 = vld [vmem:[#allocation191_spill] sm:$0xff] }
 0x294   : > { %10589 = vst [vmem:[#allocation147_spill] sm:$0xff] %v7066_v32  ;;  %v751_v20 = vadd.f32 %v747_v16, %v737_v22  ;;  %v10609_v22 = vld [vmem:[#allocation34_spill] sm:$0xff]  ;;  %v10632_v32 = vld [vmem:[#allocation51_spill] sm:$0xff] }
 0x295   : > { %2600 = vrot.lane.b32.xlu1 %v2591_v8, %s5791_s8  ;;  %2598 = vrot.lane.b32.xlu0 %v2590_v35, %s5791_s8  ;;  %v713_v35 = vadd.f32 %v10598_v25, %v687_v54  ;;  %v686_v59 = vadd.f32 %v10601_v33, %v660_v34  ;;  %v10605_v54 = vld [vmem:[#allocation30_spill] sm:$0xff]  ;;  %v837_v34 = vstv %s5174_s25  ;;  %v10608_v25 = vld [vmem:[#allocation180_spill] sm:$0xff]  ;;  %s7380_s25 = sld [smem:[#allocation2 + $0x73]] }
 0x296   : > { %v777_v62 = vadd.f32 %v10607_v14, %v751_v20  ;;  %v748_v16 = vmul.f32 %v10608_v25, %v745_v23  ;;  %v839_v23 = vmul.f32 %v10613_v36, %v837_v34  ;;  %v10617_v14 = vld [vmem:[#allocation43_spill] sm:$0xff] }
 0x297   : > { %v7083_v11 = vpop.permute.xlu1 %2186  ;;  %v7085_v8 = vpop.permute.xlu0 %2184  ;;  %v739_v39 = vadd.f32 %v10603_v48, %v713_v35  ;;  %v712_v49 = vadd.f32 %v10605_v54, %v686_v59  ;;  %v2618_v35 = vmul.f32 %v7044_v52, %v2615_v12  ;;  %v10611_v59 = vld [vmem:[#allocation39_spill] sm:$0xff] }
 0x299   : > { %2604 = vrot.lane.b32.xlu1 %v2593_v0, %s5791_s8  ;;  %2602 = vrot.lane.b32.xlu0 %v2592_v3, %s5791_s8  ;;  %v750_v0 = vadd.f32 %v746_v57, %v736_v27  ;;  %v2619_v3 = vmul.f32 %v7039_v31, %v2615_v12  ;;  %v738_v17 = vadd.f32 %v10609_v22, %v712_v49  ;;  %v10610_v27 = vld [vmem:[#allocation36_spill] sm:$0xff] }
 0x29a   : > { %v753_v57 = vadd.f32 %v749_v28, %v739_v39  ;;  %v10616_v12 = vld [vmem:[#allocation40_spill] sm:$0xff] }
 0x29b   : > { %v7097_v21 = vpop.permute.xlu1 %2190  ;;  %v7100_v55 = vpop.permute.xlu0 %2188  ;;  %v776_v33 = vadd.f32 %v10610_v27, %v750_v0  ;;  %v7126_v28 = vld [vmem:[%s5884_s5 + $0x5a] sm:$0xff]  ;;  %v752_v0 = vadd.f32 %v748_v16, %v738_v17 }
 0x29c   : > { %10604 = vst [vmem:[#allocation9_spill] sm:$0xff] %v7097_v21  ;;  %10606 = vst [vmem:[#allocation8_spill] sm:$0xff] %v7100_v55  ;;  %v2653_v39 = vmul.f32 %v7126_v28, %v2651_v58  ;;  %v10624_v17 = vld [vmem:[#allocation195_spill] sm:$0xff]  ;;  %v929_v55 = vstv %s7117_s28  ;;  %s7439_s28 = sld [smem:[#allocation2 + $0x38]] }
 0x29d   : > { %2626 = vrot.lane.b32.xlu1 %v2617_v26, %s5792_s16  ;;  %2624 = vrot.lane.b32.xlu0 %v2616_v42, %s5792_s16  ;;  %v803_v26 = vadd.f32 %v10611_v59, %v777_v62  ;;  %v10615_v42 = vld [vmem:[#allocation37_spill] sm:$0xff]  ;;  %v802_v49 = vadd.f32 %v10616_v12, %v776_v33  ;;  %v7131_v62 = vld [vmem:[%s5884_s5 + $0x52] sm:$0xff]  ;;  %v10619_v33 = vld [vmem:[#allocation192_spill] sm:$0xff] }
 0x29e   : > { %v779_v54 = vadd.f32 %v10615_v42, %v753_v57  ;;  %v2652_v22 = vmul.f32 %v7131_v62, %v2651_v58  ;;  %v10618_v57 = vld [vmem:[#allocation41_spill] sm:$0xff]  ;;  %v838_v59 = vmul.f32 %v10619_v33, %v837_v34  ;;  %v10622_v42 = vld [vmem:[#allocation38_spill] sm:$0xff] }
 0x29f   : > { %v7114_v20 = vpop.permute.xlu1 %2222  ;;  %v7119_v48 = vpop.permute.xlu0 %2220  ;;  %v829_v25 = vadd.f32 %v10617_v14, %v803_v26  ;;  %v10620_v26 = vld [vmem:[#allocation44_spill] sm:$0xff]  ;;  %v778_v12 = vadd.f32 %v10622_v42, %v752_v0  ;;  %v10626_v33 = vld [vmem:[#allocation42_spill] sm:$0xff]  ;;  %v10627_v42 = vld [vmem:[#allocation47_spill] sm:$0xff] }
 0x2a0   : > { %10612 = vst [vmem:[#allocation11_spill] sm:$0xff] %v7114_v20  ;;  %10614 = vst [vmem:[#allocation148_spill] sm:$0xff] %v7119_v48  ;;  %v805_v27 = vadd.f32 %v10618_v57, %v779_v54  ;;  %v10625_v48 = vld [vmem:[#allocation45_spill] sm:$0xff] }
 0x2a1   : > { %2630 = vrot.lane.b32.xlu1 %v2619_v3, %s5792_s16  ;;  %2628 = vrot.lane.b32.xlu0 %v2618_v35, %s5792_s16  ;;  %v828_v3 = vadd.f32 %v10620_v26, %v802_v49  ;;  %v843_v16 = vadd.f32 %v839_v23, %v829_v25  ;;  %v841_v35 = vmul.f32 %v10624_v17, %v837_v34  ;;  %v7146_v54 = vld [vmem:[%s5884_s5 + $0x6a] sm:$0xff]  ;;  %v7152_v26 = vld [vmem:[%s5884_s5 + $0x62] sm:$0xff] }
 0x2a2   : > { %v831_v20 = vadd.f32 %v10625_v48, %v805_v27  ;;  %v2655_v57 = vmul.f32 %v7146_v54, %v2651_v58  ;;  %v804_v49 = vadd.f32 %v10626_v33, %v778_v12  ;;  %v2654_v0 = vmul.f32 %v7152_v26, %v2651_v58  ;;  %v10631_v33 = vld [vmem:[#allocation48_spill] sm:$0xff] }
 0x2a3   : > { %v7137_v36 = vpop.permute.xlu1 %2226  ;;  %v7140_v14 = vpop.permute.xlu0 %2224  ;;  %v2677_v23 = vstv %s7110_s27  ;;  %v842_v25 = vadd.f32 %v838_v59, %v828_v3  ;;  %v869_v48 = vadd.f32 %v10627_v42, %v843_v16  ;;  %v10634_v16 = vld [vmem:[#allocation52_spill] sm:$0xff]  ;;  %v10635_v42 = vld [vmem:[#allocation55_spill] sm:$0xff]  ;;  %s5308_s27 = sld [smem:[#allocation2 + $0x75]] }
 0x2a4   : > { %10621 = vst [vmem:[#allocation10_spill] sm:$0xff] %v7137_v36  ;;  %10623 = vst [vmem:[#allocation12_spill] sm:$0xff] %v7140_v14  ;;  %v10629_v14 = vld [vmem:[#allocation46_spill] sm:$0xff]  ;;  %v2679_v59 = vmul.f32 %v7126_v28, %v2677_v23  ;;  %v2678_v3 = vmul.f32 %v7131_v62, %v2677_v23 }
 0x2a5   : > { %2662 = vrot.lane.b32.xlu1 %v2653_v39, %s10318_s6  ;;  %2660 = vrot.lane.b32.xlu0 %v2652_v22, %s10318_s6  ;;  %v10628_v39 = vld [vmem:[#allocation196_spill] sm:$0xff]  ;;  %v830_v36 = vadd.f32 %v10629_v14, %v804_v49  ;;  %v845_v22 = vadd.f32 %v841_v35, %v831_v20  ;;  %v868_v21 = vadd.f32 %v10631_v33, %v842_v25 }
 0x2a6   : > { %v840_v17 = vmul.f32 %v10628_v39, %v837_v34  ;;  %v895_v58 = vadd.f32 %v10632_v32, %v869_v48  ;;  %v10633_v34 = vld [vmem:[#allocation49_spill] sm:$0xff]  ;;  %v931_v35 = vmul.f32 %v6830_v29, %v929_v55  ;;  %v10639_v33 = vld [vmem:[#allocation56_spill] sm:$0xff]  ;;  %v2680_v29 = vmul.f32 %v7152_v26, %v2677_v23 }
 0x2a7   : > { %v7159_v27 = vpop.permute.xlu1 %2248  ;;  %v7164_v12 = vpop.permute.xlu0 %2246  ;;  %v871_v14 = vadd.f32 %v10633_v34, %v845_v22  ;;  %v894_v49 = vadd.f32 %v10634_v16, %v868_v21  ;;  %v2681_v22 = vmul.f32 %v7146_v54, %v2677_v23  ;;  %v10640_v21 = vld [vmem:[#allocation50_spill] sm:$0xff]  ;;  %v933_v16 = vmul.f32 %v6844_v44, %v929_v55 }
 0x2a8   : > { %10630 = vst [vmem:[#allocation15_spill] sm:$0xff] %v7164_v12  ;;  %v921_v20 = vadd.f32 %v10635_v42, %v895_v58  ;;  %v844_v32 = vadd.f32 %v840_v17, %v830_v36  ;;  %v930_v12 = vmul.f32 %v6835_v9, %v929_v55  ;;  %v2703_v58 = vstv %s7156_s29  ;;  %v10641_v36 = vld [vmem:[#allocation57_spill] sm:$0xff]  ;;  %v10642_v9 = vld [vmem:[#allocation54_spill] sm:$0xff]  ;;  %s7445_s29 = sld [smem:[#allocation2 + $0x76]] }
 0x2a9   : > { %2666 = vrot.lane.b32.xlu1 %v2655_v57, %s10318_s6  ;;  %2664 = vrot.lane.b32.xlu0 %v2654_v0, %s10318_s6  ;;  %v10638_v57 = vld [vmem:[#allocation53_spill] sm:$0xff]  ;;  %v920_v0 = vadd.f32 %v10639_v33, %v894_v49  ;;  %v2705_v23 = vmul.f32 %v7126_v28, %v2703_v58  ;;  %v2704_v44 = vmul.f32 %v7131_v62, %v2703_v58 }
 0x2aa   : > { %v897_v39 = vadd.f32 %v10638_v57, %v871_v14  ;;  %v870_v34 = vadd.f32 %v10640_v21, %v844_v32  ;;  %v935_v14 = vadd.f32 %v931_v35, %v921_v20  ;;  %v10643_v57 = vld [vmem:[#allocation59_spill] sm:$0xff]  ;;  %v10644_v21 = vld [vmem:[#allocation58_spill] sm:$0xff]  ;;  %v932_v20 = vmul.f32 %v6849_v4, %v929_v55  ;;  %v10645_v35 = vld [vmem:[#allocation60_spill] sm:$0xff] }
 0x2ab   : > { %v7176_v25 = vpop.permute.xlu1 %2252  ;;  %v7178_v48 = vpop.permute.xlu0 %2250  ;;  %v934_v33 = vadd.f32 %v930_v12, %v920_v0  ;;  %v10650_v55 = vld [vmem:[#allocation64_spill] sm:$0xff] }
 0x2ac   : > { %10636 = vst [vmem:[#allocation159_spill] sm:$0xff] %v7176_v25  ;;  %10637 = vst [vmem:[#allocation13_spill] sm:$0xff] %v7178_v48  ;;  %v923_v17 = vadd.f32 %v10641_v36, %v897_v39  ;;  %v961_v32 = vadd.f32 %v10643_v57, %v935_v14  ;;  %v10646_v36 = vld [vmem:[#allocation63_spill] sm:$0xff] }
 0x2ad   : > { %2688 = vrot.lane.b32.xlu1 %v2679_v59, %s5791_s8  ;;  %2686 = vrot.lane.b32.xlu0 %v2678_v3, %s5791_s8  ;;  %v896_v59 = vadd.f32 %v10642_v9, %v870_v34  ;;  %v1022_v3 = vstv %s5190_s30  ;;  %v960_v39 = vadd.f32 %v10645_v35, %v934_v33  ;;  %v10649_v9 = vld [vmem:[#allocation61_spill] sm:$0xff]  ;;  %v10653_v35 = vld [vmem:[#allocation68_spill] sm:$0xff]  ;;  %s7491_s30 = sld [smem:[#allocation2 + $0x77]] }
 0x2ae   : > { %v937_v34 = vadd.f32 %v933_v16, %v923_v17  ;;  %v987_v14 = vadd.f32 %v10646_v36, %v961_v32  ;;  %v1024_v0 = vmul.f32 %v6908_v40, %v1022_v3  ;;  %v2707_v17 = vmul.f32 %v7146_v54, %v2703_v58  ;;  %v10652_v33 = vld [vmem:[#allocation65_spill] sm:$0xff] }
 0x2af   : > { %v7193_v49 = vpop.permute.xlu1 %2274  ;;  %v7196_v42 = vpop.permute.xlu0 %2272  ;;  %v922_v48 = vadd.f32 %v10644_v21, %v896_v59  ;;  %v10651_v59 = vld [vmem:[#allocation67_spill] sm:$0xff]  ;;  %v2706_v40 = vmul.f32 %v7152_v26, %v2703_v58  ;;  %v2739_v32 = vstv %s7189_s3  ;;  %s7501_s3 = sld [smem:[#allocation2 + $0x3c]] }
 0x2b0   : > { %v963_v4 = vadd.f32 %v10649_v9, %v937_v34  ;;  %v1013_v57 = vadd.f32 %v10651_v59, %v987_v14  ;;  %v1023_v34 = vmul.f32 %v6914_v6, %v1022_v3  ;;  %v7242_v59 = vld [vmem:[%s5884_s5 + $0x53] sm:$0xff] }
 0x2b1   : > { %2692 = vrot.lane.b32.xlu1 %v2681_v22, %s5791_s8  ;;  %2690 = vrot.lane.b32.xlu0 %v2680_v29, %s5791_s8  ;;  %v986_v29 = vadd.f32 %v10650_v55, %v960_v39  ;;  %v936_v16 = vadd.f32 %v932_v20, %v922_v48  ;;  %v10657_v48 = vld [vmem:[#allocation69_spill] sm:$0xff]  ;;  %v7236_v55 = vld [vmem:[%s5884_s5 + $0x5b] sm:$0xff] }
 0x2b2   : > { %v989_v21 = vadd.f32 %v10652_v33, %v963_v4  ;;  %v1028_v58 = vadd.f32 %v1024_v0, %v1013_v57  ;;  %v2741_v4 = vmul.f32 %v7236_v55, %v2739_v32  ;;  %v10659_v33 = vld [vmem:[#allocation71_spill] sm:$0xff] }
 0x2b3   : > { %v7207_v12 = vpop.permute.xlu1 %2278  ;;  %v7212_v22 = vpop.permute.xlu0 %2276  ;;  %v1012_v39 = vadd.f32 %v10653_v35, %v986_v29  ;;  %v10658_v29 = vld [vmem:[#allocation66_spill] sm:$0xff]  ;;  %v1025_v35 = vmul.f32 %v6935_v45, %v1022_v3 }
 0x2b4   : > { %10647 = vst [vmem:[#allocation16_spill] sm:$0xff] %v7207_v12  ;;  %10648 = vst [vmem:[#allocation19_spill] sm:$0xff] %v7212_v22  ;;  %v1015_v20 = vadd.f32 %v10657_v48, %v989_v21  ;;  %v1054_v0 = vadd.f32 %v10659_v33, %v1028_v58  ;;  %v10663_v48 = vld [vmem:[#allocation72_spill] sm:$0xff]  ;;  %v10667_v33 = vld [vmem:[#allocation79_spill] sm:$0xff] }
 0x2b5   : > { %2714 = vrot.lane.b32.xlu1 %v2705_v23, %s5792_s16  ;;  %2712 = vrot.lane.b32.xlu0 %v2704_v44, %s5792_s16  ;;  %v10655_v23 = vld [vmem:[#allocation62_spill] sm:$0xff]  ;;  %v1026_v44 = vmul.f32 %v6928_v41, %v1022_v3  ;;  %v1027_v57 = vadd.f32 %v1023_v34, %v1012_v39  ;;  %v7264_v58 = vld [vmem:[%s5884_s5 + $0x63] sm:$0xff]  ;;  %v2765_v3 = vstv %s7222_s7  ;;  %s7537_s7 = sld [smem:[#allocation2 + $0x40]] }
 0x2b6   : > { %v962_v14 = vadd.f32 %v10655_v23, %v936_v16  ;;  %v2740_v16 = vmul.f32 %v7242_v59, %v2739_v32  ;;  %v1114_v23 = vstv %s7210_s4  ;;  %v7259_v39 = vld [vmem:[%s5884_s5 + $0x6b] sm:$0xff]  ;;  %v2742_v45 = vmul.f32 %v7264_v58, %v2739_v32  ;;  %s7534_s4 = sld [smem:[#allocation2 + $0x79]] }
 0x2b7   : > { %v7227_v36 = vpop.permute.xlu1 %2310  ;;  %v7230_v9 = vpop.permute.xlu0 %2308  ;;  %v2743_v34 = vmul.f32 %v7259_v39, %v2739_v32  ;;  %v1115_v22 = vmul.f32 %v7022_v15, %v1114_v23 }
 0x2b8   : > { %10654 = vst [vmem:[#allocation17_spill] sm:$0xff] %v7227_v36  ;;  %10656 = vst [vmem:[#allocation160_spill] sm:$0xff] %v7230_v9  ;;  %v988_v6 = vadd.f32 %v10658_v29, %v962_v14  ;;  %v1030_v29 = vadd.f32 %v1026_v44, %v1015_v20  ;;  %v10664_v9 = vld [vmem:[#allocation75_spill] sm:$0xff]  ;;  %v10665_v20 = vld [vmem:[#allocation73_spill] sm:$0xff] }
 0x2b9   : > { %2718 = vrot.lane.b32.xlu1 %v2707_v17, %s5792_s16  ;;  %2716 = vrot.lane.b32.xlu0 %v2706_v40, %s5792_s16  ;;  %v10661_v17 = vld [vmem:[#allocation70_spill] sm:$0xff]  ;;  %v1053_v40 = vadd.f32 %v10663_v48, %v1027_v57  ;;  %v1080_v36 = vadd.f32 %v10664_v9, %v1054_v0  ;;  %v10666_v9 = vld [vmem:[#allocation76_spill] sm:$0xff] }
 0x2ba   : > { %v1014_v21 = vadd.f32 %v10661_v17, %v988_v6  ;;  %v1056_v44 = vadd.f32 %v10665_v20, %v1030_v29  ;;  %v10672_v29 = vld [vmem:[#allocation74_spill] sm:$0xff] }
 0x2bb   : > { %v7246_v41 = vpop.permute.xlu1 %2314  ;;  %v7251_v14 = vpop.permute.xlu0 %2312  ;;  %v1079_v6 = vadd.f32 %v10666_v9, %v1053_v40  ;;  %v1106_v0 = vadd.f32 %v10667_v33, %v1080_v36  ;;  %v2767_v40 = vmul.f32 %v7236_v55, %v2765_v3 }
 0x2bc   : > { %10660 = vst [vmem:[#allocation20_spill] sm:$0xff] %v7246_v41  ;;  %10662 = vst [vmem:[#allocation14_spill] sm:$0xff] %v7251_v14  ;;  %v1029_v17 = vadd.f32 %v1025_v35, %v1014_v21  ;;  %v10671_v41 = vld [vmem:[#allocation80_spill] sm:$0xff]  ;;  %v10673_v21 = vld [vmem:[#allocation81_spill] sm:$0xff] }
 0x2bd   : > { %2750 = vrot.lane.b32.xlu1 %v2741_v4, %s10318_s6  ;;  %2748 = vrot.lane.b32.xlu0 %v2740_v16, %s10318_s6  ;;  %v1116_v4 = vmul.f32 %v7015_v10, %v1114_v23  ;;  %v10670_v16 = vld [vmem:[#allocation77_spill] sm:$0xff]  ;;  %v1105_v32 = vadd.f32 %v10671_v41, %v1079_v6  ;;  %v2766_v10 = vmul.f32 %v7242_v59, %v2765_v3  ;;  %v10675_v41 = vld [vmem:[#allocation78_spill] sm:$0xff] }
 0x2be   : > { %v1082_v14 = vadd.f32 %v10670_v16, %v1056_v44  ;;  %v1055_v36 = vadd.f32 %v10672_v29, %v1029_v17  ;;  %v1118_v44 = vmul.f32 %v7039_v31, %v1114_v23  ;;  %v1206_v17 = vstv %s7255_s14  ;;  %v10678_v29 = vld [vmem:[#allocation82_spill] sm:$0xff]  ;;  %s7564_s14 = sld [smem:[#allocation2 + $0x80]] }
 0x2bf   : > { %v7274_v57 = vpop.permute.xlu1 %2336  ;;  %v7276_v48 = vpop.permute.xlu0 %2334  ;;  %v1120_v20 = vadd.f32 %v1116_v4, %v1106_v0  ;;  %v1119_v16 = vadd.f32 %v1115_v22, %v1105_v32  ;;  %v2768_v31 = vmul.f32 %v7264_v58, %v2765_v3  ;;  %v2791_v0 = vstv %s7268_s17  ;;  %v10679_v4 = vld [vmem:[#allocation84_spill] sm:$0xff]  ;;  %s7566_s17 = sld [smem:[#allocation2 + $0x44]] }
 0x2c0   : > { %10668 = vst [vmem:[#allocation163_spill] sm:$0xff] %v7274_v57  ;;  %10669 = vst [vmem:[#allocation21_spill] sm:$0xff] %v7276_v48  ;;  %v1108_v35 = vadd.f32 %v10673_v21, %v1082_v14  ;;  %v1081_v15 = vadd.f32 %v10675_v41, %v1055_v36  ;;  %v1117_v14 = vmul.f32 %v7044_v52, %v1114_v23  ;;  %v10683_v52 = vld [vmem:[#allocation85_spill] sm:$0xff] }
 0x2c1   : > { %2754 = vrot.lane.b32.xlu1 %v2743_v34, %s10318_s6  ;;  %2752 = vrot.lane.b32.xlu0 %v2742_v45, %s10318_s6  ;;  %v10677_v34 = vld [vmem:[#allocation83_spill] sm:$0xff]  ;;  %v2769_v45 = vmul.f32 %v7259_v39, %v2765_v3  ;;  %v1145_v36 = vadd.f32 %v10679_v4, %v1119_v16 }
 0x2c2   : > { %v1146_v33 = vadd.f32 %v10677_v34, %v1120_v20  ;;  %v1107_v48 = vadd.f32 %v10678_v29, %v1081_v15  ;;  %v1122_v21 = vadd.f32 %v1118_v44, %v1108_v35  ;;  %v10680_v20 = vld [vmem:[#allocation87_spill] sm:$0xff]  ;;  %v2793_v35 = vmul.f32 %v7236_v55, %v2791_v0  ;;  %v10687_v29 = vld [vmem:[#allocation92_spill] sm:$0xff] }
 0x2c3   : > { %v7288_v9 = vpop.permute.xlu1 %2340  ;;  %v7291_v6 = vpop.permute.xlu0 %2338  ;;  %v10685_v3 = vld [vmem:[#allocation91_spill] sm:$0xff] }
 0x2c4   : > { %10674 = vst [vmem:[#allocation18_spill] sm:$0xff] %v7288_v9  ;;  %10676 = vst [vmem:[#allocation23_spill] sm:$0xff] %v7291_v6  ;;  %v1172_v22 = vadd.f32 %v10680_v20, %v1146_v33  ;;  %v1148_v23 = vadd.f32 %v10683_v52, %v1122_v21  ;;  %v1121_v44 = vadd.f32 %v1117_v14, %v1107_v48  ;;  %v7559_v6 = vld [vmem:[%s5884_s5 + $0x83] sm:$0xff] }
 0x2c5   : > { %2776 = vrot.lane.b32.xlu1 %v2767_v40, %s5791_s8  ;;  %2774 = vrot.lane.b32.xlu0 %v2766_v10, %s5791_s8  ;;  %v1208_v40 = vmul.f32 %v7126_v28, %v1206_v17  ;;  %v10684_v10 = vld [vmem:[#allocation88_spill] sm:$0xff]  ;;  %v2792_v33 = vmul.f32 %v7242_v59, %v2791_v0  ;;  %v10686_v28 = vld [vmem:[#allocation89_spill] sm:$0xff]  ;;  %v1207_v20 = vmul.f32 %v7131_v62, %v1206_v17 }
 0x2c6   : > { %v1171_v15 = vadd.f32 %v10684_v10, %v1145_v36  ;;  %v1198_v34 = vadd.f32 %v10685_v3, %v1172_v22  ;;  %v1174_v16 = vadd.f32 %v10686_v28, %v1148_v23  ;;  %v10689_v36 = vld [vmem:[#allocation86_spill] sm:$0xff]  ;;  %v1210_v14 = vmul.f32 %v7146_v54, %v1206_v17  ;;  %v10785_v9 = vld [vmem:[#allocation161_spill] sm:$0xff] }
 0x2c7   : > { %v7304_v32 = vpop.permute.xlu1 %2362  ;;  %v7309_v41 = vpop.permute.xlu0 %2360  ;;  %v1147_v52 = vadd.f32 %v10689_v36, %v1121_v44  ;;  %v10692_v23 = vld [vmem:[#allocation90_spill] sm:$0xff]  ;;  %v2794_v62 = vmul.f32 %v7264_v58, %v2791_v0  ;;  %v2827_v3 = vstv %s5304_s21  ;;  %v10693_v44 = vld [vmem:[#allocation95_spill] sm:$0xff]  ;;  %s7582_s21 = sld [smem:[#allocation2 + $0x7a]] }
 0x2c8   : > { %10681 = vst [vmem:[#allocation164_spill] sm:$0xff] %v7304_v32  ;;  %10682 = vst [vmem:[#allocation22_spill] sm:$0xff] %v7309_v41  ;;  %v1197_v4 = vadd.f32 %v10687_v29, %v1171_v15  ;;  %v1212_v48 = vadd.f32 %v1208_v40, %v1198_v34  ;;  %v10695_v54 = vld [vmem:[#allocation94_spill] sm:$0xff]  ;;  %v1298_v29 = vstv %s7307_s22  ;;  %s7593_s22 = sld [smem:[#allocation2 + $0x82]] }
 0x2c9   : > { %2780 = vrot.lane.b32.xlu1 %v2769_v45, %s5791_s8  ;;  %2778 = vrot.lane.b32.xlu0 %v2768_v31, %s5791_s8  ;;  %v10691_v45 = vld [vmem:[#allocation93_spill] sm:$0xff]  ;;  %v2795_v31 = vmul.f32 %v7259_v39, %v2791_v0  ;;  %v1173_v15 = vadd.f32 %v10692_v23, %v1147_v52  ;;  %v10698_v0 = vld [vmem:[#allocation99_spill] sm:$0xff] }
 0x2ca   : > { %v1200_v10 = vadd.f32 %v10691_v45, %v1174_v16  ;;  %v1238_v28 = vadd.f32 %v10693_v44, %v1212_v48  ;;  %v1211_v40 = vadd.f32 %v1207_v20, %v1197_v4  ;;  %v1209_v16 = vmul.f32 %v7152_v26, %v1206_v17  ;;  %v7349_v48 = vld [vmem:[%s5884_s5 + $0x80] sm:$0xff]  ;;  %v7354_v26 = vld [vmem:[%s5884_s5 + $0x78] sm:$0xff]  ;;  %v10699_v20 = vld [vmem:[#allocation97_spill] sm:$0xff] }
 0x2cb   : > { %v7321_v21 = vpop.permute.xlu1 %2366  ;;  %v7324_v22 = vpop.permute.xlu0 %2364  ;;  %v2829_v4 = vmul.f32 %v7349_v48, %v2827_v3  ;;  %v2828_v17 = vmul.f32 %v7354_v26, %v2827_v3  ;;  %v10701_v44 = vld [vmem:[#allocation103_spill] sm:$0xff] }
 0x2cc   : > { %10688 = vst [vmem:[#allocation24_spill] sm:$0xff] %v7321_v21  ;;  %10690 = vst [vmem:[#allocation27_spill] sm:$0xff] %v7324_v22  ;;  %v1214_v45 = vadd.f32 %v1210_v14, %v1200_v10  ;;  %v1264_v23 = vadd.f32 %v10698_v0, %v1238_v28  ;;  %v10700_v14 = vld [vmem:[#allocation100_spill] sm:$0xff]  ;;  %v1299_v22 = vmul.f32 %v7242_v59, %v1298_v29 }
 0x2cd   : > { %2802 = vrot.lane.b32.xlu1 %v2793_v35, %s5792_s16  ;;  %2800 = vrot.lane.b32.xlu0 %v2792_v33, %s5792_s16  ;;  %v1199_v35 = vadd.f32 %v10695_v54, %v1173_v15  ;;  %v10697_v33 = vld [vmem:[#allocation96_spill] sm:$0xff] }
 0x2ce   : > { %v1237_v52 = vadd.f32 %v10697_v33, %v1211_v40  ;;  %v1240_v10 = vadd.f32 %v10699_v20, %v1214_v45  ;;  %v1290_v28 = vadd.f32 %v10701_v44, %v1264_v23  ;;  %v7370_v45 = vld [vmem:[%s5884_s5 + $0x90] sm:$0xff]  ;;  %v2853_v20 = vstv %s7333_s23  ;;  %s7616_s23 = sld [smem:[#allocation2 + $0x84]] }
 0x2cf   : > { %v7336_v34 = vpop.permute.xlu1 %2398  ;;  %v7341_v36 = vpop.permute.xlu0 %2396  ;;  %v1213_v54 = vadd.f32 %v1209_v16, %v1199_v35  ;;  %v10706_v23 = vld [vmem:[#allocation98_spill] sm:$0xff]  ;;  %v7376_v35 = vld [vmem:[%s5884_s5 + $0x88] sm:$0xff] }
 0x2d0   : > { %10694 = vst [vmem:[#allocation25_spill] sm:$0xff] %v7336_v34  ;;  %10696 = vst [vmem:[#allocation28_spill] sm:$0xff] %v7341_v36  ;;  %v1263_v15 = vadd.f32 %v10700_v14, %v1237_v52  ;;  %v10705_v36 = vld [vmem:[#allocation104_spill] sm:$0xff]  ;;  %v2831_v52 = vmul.f32 %v7370_v45, %v2827_v3  ;;  %v2830_v16 = vmul.f32 %v7376_v35, %v2827_v3 }
 0x2d1   : > { %2806 = vrot.lane.b32.xlu1 %v2795_v31, %s5792_s16  ;;  %2804 = vrot.lane.b32.xlu0 %v2794_v62, %s5792_s16  ;;  %v1300_v31 = vmul.f32 %v7236_v55, %v1298_v29  ;;  %v10704_v62 = vld [vmem:[#allocation101_spill] sm:$0xff]  ;;  %v1239_v55 = vadd.f32 %v10706_v23, %v1213_v54  ;;  %v10711_v54 = vld [vmem:[#allocation107_spill] sm:$0xff]  ;;  %v2855_v3 = vmul.f32 %v7349_v48, %v2853_v20 }
 0x2d2   : > { %v1266_v0 = vadd.f32 %v10704_v62, %v1240_v10  ;;  %v1289_v34 = vadd.f32 %v10705_v36, %v1263_v15  ;;  %v10707_v36 = vld [vmem:[#allocation105_spill] sm:$0xff]  ;;  %v10709_v15 = vld [vmem:[#allocation102_spill] sm:$0xff] }
 0x2d3   : > { %v7361_v40 = vpop.permute.xlu1 %2402  ;;  %v7363_v33 = vpop.permute.xlu0 %2400  ;;  %v1304_v10 = vadd.f32 %v1300_v31, %v1290_v28  ;;  %v1265_v44 = vadd.f32 %v10709_v15, %v1239_v55  ;;  %v1301_v28 = vmul.f32 %v7264_v58, %v1298_v29  ;;  %v10713_v31 = vld [vmem:[#allocation108_spill] sm:$0xff]  ;;  %v10719_v15 = vld [vmem:[#allocation115_spill] sm:$0xff] }
 0x2d4   : > { %10702 = vst [vmem:[#allocation175_spill] sm:$0xff] %v7361_v40  ;;  %10703 = vst [vmem:[#allocation31_spill] sm:$0xff] %v7363_v33  ;;  %v1292_v59 = vadd.f32 %v10707_v36, %v1266_v0  ;;  %v1303_v23 = vadd.f32 %v1299_v22, %v1289_v34  ;;  %v1391_v33 = vstv %s7345_s24  ;;  %v10712_v40 = vld [vmem:[#allocation106_spill] sm:$0xff]  ;;  %v10714_v36 = vld [vmem:[#allocation111_spill] sm:$0xff]  ;;  %s7631_s24 = sld [smem:[#allocation2 + $0x7b]] }
 0x2d5   : > { %2838 = vrot.lane.b32.xlu1 %v2829_v4, %s10318_s6  ;;  %2836 = vrot.lane.b32.xlu0 %v2828_v17, %s10318_s6  ;;  %v1302_v4 = vmul.f32 %v7259_v39, %v1298_v29  ;;  %v1330_v17 = vadd.f32 %v10711_v54, %v1304_v10  ;;  %v1291_v21 = vadd.f32 %v10712_v40, %v1265_v44  ;;  %v10717_v40 = vld [vmem:[#allocation109_spill] sm:$0xff]  ;;  %v10718_v29 = vld [vmem:[#allocation112_spill] sm:$0xff] }
 0x2d6   : > { %v2854_v39 = vmul.f32 %v7354_v26, %v2853_v20  ;;  %v1329_v0 = vadd.f32 %v10713_v31, %v1303_v23  ;;  %v1393_v34 = vmul.f32 %v7349_v48, %v1391_v33  ;;  %v2856_v54 = vmul.f32 %v7376_v35, %v2853_v20  ;;  %v10720_v23 = vld [vmem:[#allocation113_spill] sm:$0xff] }
 0x2d7   : > { %v7384_v14 = vpop.permute.xlu1 %2424  ;;  %v7387_v62 = vpop.permute.xlu0 %2422  ;;  %v1306_v55 = vadd.f32 %v1302_v4, %v1292_v59  ;;  %v1356_v10 = vadd.f32 %v10714_v36, %v1330_v17  ;;  %v2857_v59 = vmul.f32 %v7370_v45, %v2853_v20  ;;  %v1305_v4 = vadd.f32 %v1301_v28, %v1291_v21  ;;  %v10721_v36 = vld [vmem:[#allocation116_spill] sm:$0xff]  ;;  %v10725_v21 = vld [vmem:[#allocation117_spill] sm:$0xff] }
 0x2d8   : > { %10708 = vst [vmem:[#allocation29_spill] sm:$0xff] %v7384_v14  ;;  %10710 = vst [vmem:[#allocation176_spill] sm:$0xff] %v7387_v62  ;;  %v2879_v17 = vstv %s7380_s25  ;;  %v1395_v20 = vmul.f32 %v7370_v45, %v1391_v33  ;;  %v10766_v14 = vld [vmem:[#allocation149_spill] sm:$0xff]  ;;  %s7645_s25 = sld [smem:[#allocation2 + $0x48]] }
 0x2d9   : > { %2842 = vrot.lane.b32.xlu1 %v2831_v52, %s10318_s6  ;;  %2840 = vrot.lane.b32.xlu0 %v2830_v16, %s10318_s6  ;;  %v1332_v58 = vadd.f32 %v10717_v40, %v1306_v55  ;;  %v1355_v16 = vadd.f32 %v10718_v29, %v1329_v0  ;;  %v1382_v44 = vadd.f32 %v10719_v15, %v1356_v10  ;;  %v10723_v10 = vld [vmem:[#allocation110_spill] sm:$0xff] }
 0x2da   : > { %v1392_v55 = vmul.f32 %v7354_v26, %v1391_v33  ;;  %v10726_v29 = vld [vmem:[#allocation114_spill] sm:$0xff]  ;;  %v2880_v15 = vmul.f32 %v7354_v26, %v2879_v17  ;;  %v2883_v26 = vmul.f32 %v7370_v45, %v2879_v17 }
 0x2db   : > { %v7399_v22 = vpop.permute.xlu1 %2428  ;;  %v7404_v52 = vpop.permute.xlu0 %2426  ;;  %v1358_v31 = vadd.f32 %v10720_v23, %v1332_v58  ;;  %v2881_v58 = vmul.f32 %v7349_v48, %v2879_v17  ;;  %v10727_v23 = vld [vmem:[#allocation119_spill] sm:$0xff]  ;;  %v10731_v48 = vld [vmem:[#allocation120_spill] sm:$0xff] }
 0x2dc   : > { %10715 = vst [vmem:[#allocation32_spill] sm:$0xff] %v7399_v22  ;;  %10716 = vst [vmem:[#allocation26_spill] sm:$0xff] %v7404_v52  ;;  %v1381_v52 = vadd.f32 %v10721_v36, %v1355_v16  ;;  %v10729_v22 = vld [vmem:[#allocation118_spill] sm:$0xff] }
 0x2dd   : > { %2864 = vrot.lane.b32.xlu1 %v2855_v3, %s5791_s8  ;;  %2862 = vrot.lane.b32.xlu0 %v2854_v39, %s5791_s8  ;;  %v1331_v3 = vadd.f32 %v10723_v10, %v1305_v4  ;;  %v1384_v28 = vadd.f32 %v10725_v21, %v1358_v31  ;;  %v1397_v39 = vadd.f32 %v1393_v34, %v1382_v44  ;;  %v1483_v44 = vstv %s7402_s26  ;;  %s7689_s26 = sld [smem:[#allocation2 + $0x7d]] }
 0x2de   : > { %v1396_v4 = vadd.f32 %v1392_v55, %v1381_v52  ;;  %v1394_v34 = vmul.f32 %v7376_v35, %v1391_v33  ;;  %v2882_v33 = vmul.f32 %v7376_v35, %v2879_v17  ;;  %v10733_v52 = vld [vmem:[#allocation121_spill] sm:$0xff] }
 0x2df   : > { %v7417_v0 = vpop.permute.xlu1 %2450  ;;  %v7420_v40 = vpop.permute.xlu0 %2448  ;;  %v1357_v16 = vadd.f32 %v10726_v29, %v1331_v3  ;;  %v1423_v36 = vadd.f32 %v10727_v23, %v1397_v39  ;;  %v1399_v3 = vadd.f32 %v1395_v20, %v1384_v28  ;;  %v10732_v29 = vld [vmem:[#allocation123_spill] sm:$0xff]  ;;  %v10734_v39 = vld [vmem:[#allocation124_spill] sm:$0xff]  ;;  %v10738_v35 = vld [vmem:[#allocation125_spill] sm:$0xff] }
 0x2e0   : > { %10722 = vst [vmem:[#allocation179_spill] sm:$0xff] %v7417_v0  ;;  %10724 = vst [vmem:[#allocation33_spill] sm:$0xff] %v7420_v40  ;;  %v1422_v21 = vadd.f32 %v10731_v48, %v1396_v4  ;;  %v10735_v20 = vld [vmem:[#allocation127_spill] sm:$0xff]  ;;  %v7451_v23 = vld [vmem:[%s5884_s5 + $0x81] sm:$0xff] }
 0x2e1   : > { %2868 = vrot.lane.b32.xlu1 %v2857_v59, %s5791_s8  ;;  %2866 = vrot.lane.b32.xlu0 %v2856_v54, %s5791_s8  ;;  %v1383_v31 = vadd.f32 %v10729_v22, %v1357_v16  ;;  %v1449_v54 = vadd.f32 %v10732_v29, %v1423_v36  ;;  %v2915_v22 = vstv %s5308_s27  ;;  %v1425_v55 = vadd.f32 %v10733_v52, %v1399_v3  ;;  %v10739_v4 = vld [vmem:[#allocation128_spill] sm:$0xff]  ;;  %v10753_v40 = vld [vmem:[#allocation139_spill] sm:$0xff]  ;;  %s7702_s27 = sld [smem:[#allocation2 + $0x4c]] }
 0x2e2   : > { %v1448_v28 = vadd.f32 %v10734_v39, %v1422_v21  ;;  %v7461_v29 = vld [vmem:[%s5884_s5 + $0x79] sm:$0xff]  ;;  %v2917_v3 = vmul.f32 %v7451_v23, %v2915_v22 }
 0x2e3   : > { %v7430_v10 = vpop.permute.xlu1 %2454  ;;  %v7435_v59 = vpop.permute.xlu0 %2452  ;;  %v1475_v16 = vadd.f32 %v10735_v20, %v1449_v54  ;;  %v1398_v45 = vadd.f32 %v1394_v34, %v1383_v31  ;;  %v1451_v17 = vadd.f32 %v10738_v35, %v1425_v55  ;;  %v1484_v21 = vmul.f32 %v7461_v29, %v1483_v44  ;;  %v10740_v54 = vld [vmem:[#allocation122_spill] sm:$0xff]  ;;  %v10741_v34 = vld [vmem:[#allocation129_spill] sm:$0xff] }
 0x2e4   : > { %10728 = vst [vmem:[#allocation30_spill] sm:$0xff] %v7430_v10  ;;  %10730 = vst [vmem:[#allocation35_spill] sm:$0xff] %v7435_v59  ;;  %v1474_v48 = vadd.f32 %v10739_v4, %v1448_v28  ;;  %v2916_v31 = vmul.f32 %v7461_v29, %v2915_v22  ;;  %v7471_v28 = vld [vmem:[%s5884_s5 + $0x91] sm:$0xff] }
 0x2e5   : > { %2890 = vrot.lane.b32.xlu1 %v2881_v58, %s5792_s16  ;;  %2888 = vrot.lane.b32.xlu0 %v2880_v15, %s5792_s16  ;;  %v1485_v58 = vmul.f32 %v7451_v23, %v1483_v44  ;;  %v1424_v52 = vadd.f32 %v10740_v54, %v1398_v45  ;;  %v1477_v55 = vadd.f32 %v10741_v34, %v1451_v17  ;;  %v10745_v45 = vld [vmem:[#allocation131_spill] sm:$0xff]  ;;  %v7485_v34 = vld [vmem:[%s5884_s5 + $0x89] sm:$0xff] }
 0x2e6   : > { %v1487_v20 = vmul.f32 %v7471_v28, %v1483_v44  ;;  %v1486_v59 = vmul.f32 %v7485_v34, %v1483_v44 }
 0x2e7   : > { %v7454_v36 = vpop.permute.xlu1 %2486  ;;  %v7456_v15 = vpop.permute.xlu0 %2484  ;;  %v1489_v39 = vadd.f32 %v1485_v58, %v1475_v16  ;;  %v2919_v16 = vmul.f32 %v7471_v28, %v2915_v22  ;;  %v10746_v58 = vld [vmem:[#allocation130_spill] sm:$0xff] }
 0x2e8   : > { %10736 = vst [vmem:[#allocation180_spill] sm:$0xff] %v7454_v36  ;;  %10737 = vst [vmem:[#allocation34_spill] sm:$0xff] %v7456_v15  ;;  %v1575_v36 = vstv %s7439_s28  ;;  %s7743_s28 = sld [smem:[#allocation2 + $0x7e]] }
 0x2e9   : > { %2894 = vrot.lane.b32.xlu1 %v2883_v26, %s5792_s16  ;;  %2892 = vrot.lane.b32.xlu0 %v2882_v33, %s5792_s16  ;;  %v10743_v26 = vld [vmem:[#allocation126_spill] sm:$0xff]  ;;  %v1515_v54 = vadd.f32 %v10745_v45, %v1489_v39  ;;  %v1488_v33 = vadd.f32 %v1484_v21, %v1474_v48  ;;  %v10747_v39 = vld [vmem:[#allocation132_spill] sm:$0xff]  ;;  %v1491_v21 = vadd.f32 %v1487_v20, %v1477_v55  ;;  %v10748_v45 = vld [vmem:[#allocation135_spill] sm:$0xff] }
 0x2ea   : > { %v1450_v4 = vadd.f32 %v10743_v26, %v1424_v52  ;;  %v2918_v52 = vmul.f32 %v7485_v34, %v2915_v22  ;;  %v2941_v26 = vstv %s7445_s29  ;;  %v10751_v22 = vld [vmem:[#allocation133_spill] sm:$0xff]  ;;  %s7771_s29 = sld [smem:[#allocation2 + $0x50]] }
 0x2eb   : > { %v7474_v35 = vpop.permute.xlu1 %2490  ;;  %v7477_v15 = vpop.permute.xlu0 %2488  ;;  %v1514_v48 = vadd.f32 %v10747_v39, %v1488_v33  ;;  %v2943_v20 = vmul.f32 %v7451_v23, %v2941_v26  ;;  %v2942_v33 = vmul.f32 %v7461_v29, %v2941_v26  ;;  %v10754_v39 = vld [vmem:[#allocation137_spill] sm:$0xff] }
 0x2ec   : > { %10742 = vst [vmem:[#allocation36_spill] sm:$0xff] %v7474_v35  ;;  %10744 = vst [vmem:[#allocation39_spill] sm:$0xff] %v7477_v15  ;;  %v1476_v17 = vadd.f32 %v10746_v58, %v1450_v4  ;;  %v7498_v4 = vld [vmem:[%s5884_s5 + $0x82] sm:$0xff] }
 0x2ed   : > { %2926 = vrot.lane.b32.xlu1 %v2917_v3, %s10318_s6  ;;  %2924 = vrot.lane.b32.xlu0 %v2916_v31, %s10318_s6  ;;  %v1541_v3 = vadd.f32 %v10748_v45, %v1515_v54  ;;  %v1577_v58 = vmul.f32 %v7498_v4, %v1575_v36  ;;  %v1517_v31 = vadd.f32 %v10751_v22, %v1491_v21  ;;  %v10752_v35 = vld [vmem:[#allocation136_spill] sm:$0xff]  ;;  %v7525_v22 = vld [vmem:[%s5884_s5 + $0x92] sm:$0xff] }
 0x2ee   : > { %v1540_v10 = vadd.f32 %v10752_v35, %v1514_v48  ;;  %v1490_v54 = vadd.f32 %v1486_v59, %v1476_v17  ;;  %v7515_v21 = vld [vmem:[%s5884_s5 + $0x7a] sm:$0xff]  ;;  %v10759_v59 = vld [vmem:[#allocation141_spill] sm:$0xff] }
 0x2ef   : > { %v7495_v15 = vpop.permute.xlu1 %2512  ;;  %v7503_v44 = vpop.permute.xlu0 %2510  ;;  %v1567_v55 = vadd.f32 %v10753_v40, %v1541_v3  ;;  %v1543_v45 = vadd.f32 %v10754_v39, %v1517_v31  ;;  %v1576_v35 = vmul.f32 %v7515_v21, %v1575_v36  ;;  %v10757_v40 = vld [vmem:[#allocation134_spill] sm:$0xff]  ;;  %v1579_v31 = vmul.f32 %v7525_v22, %v1575_v36 }
 0x2f0   : > { %10749 = vst [vmem:[#allocation191_spill] sm:$0xff] %v7495_v15  ;;  %10750 = vst [vmem:[#allocation37_spill] sm:$0xff] %v7503_v44  ;;  %v10755_v15 = vld [vmem:[#allocation140_spill] sm:$0xff] }
 0x2f1   : > { %2930 = vrot.lane.b32.xlu1 %v2919_v16, %s10318_s6  ;;  %2928 = vrot.lane.b32.xlu0 %v2918_v52, %s10318_s6  ;;  %v1566_v44 = vadd.f32 %v10755_v15, %v1540_v10  ;;  %v1516_v16 = vadd.f32 %v10757_v40, %v1490_v54  ;;  %v1569_v17 = vadd.f32 %v10759_v59, %v1543_v45  ;;  %v10760_v15 = vld [vmem:[#allocation138_spill] sm:$0xff]  ;;  %v2967_v40 = vstv %s7491_s30  ;;  %v10761_v45 = vld [vmem:[#allocation143_spill] sm:$0xff]  ;;  %s7783_s30 = sld [smem:[#allocation2 + $0x7f]] }
 0x2f2   : > { %v1581_v52 = vadd.f32 %v1577_v58, %v1567_v55  ;;  %v2945_v10 = vmul.f32 %v7471_v28, %v2941_v26  ;;  %v2944_v54 = vmul.f32 %v7485_v34, %v2941_v26  ;;  %v10765_v26 = vld [vmem:[#allocation144_spill] sm:$0xff] }
 0x2f3   : > { %v7518_v48 = vpop.permute.xlu1 %2516  ;;  %v7521_v3 = vpop.permute.xlu0 %2514  ;;  %v1542_v39 = vadd.f32 %v10760_v15, %v1516_v16  ;;  %v1580_v55 = vadd.f32 %v1576_v35, %v1566_v44  ;;  %v1583_v62 = vadd.f32 %v1579_v31, %v1569_v17  ;;  %v2969_v44 = vmul.f32 %v7451_v23, %v2967_v40 }
 0x2f4   : > { %10756 = vst [vmem:[#allocation40_spill] sm:$0xff] %v7518_v48  ;;  %10758 = vst [vmem:[#allocation43_spill] sm:$0xff] %v7521_v3  ;;  %v1607_v58 = vadd.f32 %v10761_v45, %v1581_v52  ;;  %v10763_v3 = vld [vmem:[#allocation142_spill] sm:$0xff]  ;;  %v2968_v35 = vmul.f32 %v7461_v29, %v2967_v40 }
 0x2f5   : > { %2952 = vrot.lane.b32.xlu1 %v2943_v20, %s5791_s8  ;;  %2950 = vrot.lane.b32.xlu0 %v2942_v33, %s5791_s8  ;;  %v1568_v20 = vadd.f32 %v10763_v3, %v1542_v39  ;;  %v7543_v48 = vld [vmem:[%s5884_s5 + $0x8a] sm:$0xff]  ;;  %v1667_v33 = vstv %s7501_s3  ;;  %v1606_v0 = vadd.f32 %v10765_v26, %v1580_v55  ;;  %v2971_v55 = vmul.f32 %v7471_v28, %v2967_v40  ;;  %s7821_s3 = sld [smem:[#allocation2 + $0x54]] }
 0x2f6   : > { %v1578_v16 = vmul.f32 %v7543_v48, %v1575_v36  ;;  %v1633_v52 = vadd.f32 %v10766_v14, %v1607_v58  ;;  %v10767_v3 = vld [vmem:[#allocation145_spill] sm:$0xff]  ;;  %v10768_v36 = vld [vmem:[#allocation150_spill] sm:$0xff]  ;;  %v1669_v14 = vmul.f32 %v7559_v6, %v1667_v33  ;;  %v3003_v26 = vstv %s7534_s4  ;;  %s7932_s4 = sld [smem:[#allocation2 + $0x5c]] }
 0x2f7   : > { %v7539_v59 = vpop.permute.xlu1 %2538  ;;  %v7547_v15 = vpop.permute.xlu0 %2536  ;;  %v1609_v39 = vadd.f32 %v10767_v3, %v1583_v62  ;;  %v1632_v45 = vadd.f32 %v10768_v36, %v1606_v0  ;;  %v10772_v62 = vld [vmem:[#allocation151_spill] sm:$0xff]  ;;  %v10773_v29 = vld [vmem:[#allocation154_spill] sm:$0xff] }
 0x2f8   : > { %10762 = vst [vmem:[#allocation41_spill] sm:$0xff] %v7539_v59  ;;  %10764 = vst [vmem:[#allocation192_spill] sm:$0xff] %v7547_v15  ;;  %v10769_v59 = vld [vmem:[#allocation153_spill] sm:$0xff]  ;;  %v1582_v31 = vadd.f32 %v1578_v16, %v1568_v20  ;;  %v2970_v16 = vmul.f32 %v7485_v34, %v2967_v40  ;;  %v7586_v36 = vld [vmem:[%s5884_s5 + $0x93] sm:$0xff] }
 0x2f9   : > { %2956 = vrot.lane.b32.xlu1 %v2945_v10, %s5791_s8  ;;  %2954 = vrot.lane.b32.xlu0 %v2944_v54, %s5791_s8  ;;  %v1659_v15 = vadd.f32 %v10769_v59, %v1633_v52  ;;  %v1635_v0 = vadd.f32 %v10772_v62, %v1609_v39  ;;  %v1658_v10 = vadd.f32 %v10773_v29, %v1632_v45  ;;  %v7573_v54 = vld [vmem:[%s5884_s5 + $0x7b] sm:$0xff]  ;;  %v10774_v59 = vld [vmem:[#allocation146_spill] sm:$0xff]  ;;  %v1761_v45 = vstv %s7537_s7  ;;  %v10779_v40 = vld [vmem:[#allocation157_spill] sm:$0xff]  ;;  %s7980_s7 = sld [smem:[#allocation2 + $0x60]] }
 0x2fa   : > { %v1668_v58 = vmul.f32 %v7573_v54, %v1667_v33  ;;  %v1608_v20 = vadd.f32 %v10774_v59, %v1582_v31  ;;  %v10775_v52 = vld [vmem:[#allocation155_spill] sm:$0xff]  ;;  %v10777_v31 = vld [vmem:[#allocation152_spill] sm:$0xff]  ;;  %v7602_v59 = vld [vmem:[%s5884_s5 + $0x8b] sm:$0xff] }
 0x2fb   : > { %v7562_v17 = vpop.permute.xlu1 %2542  ;;  %v7568_v23 = vpop.permute.xlu0 %2540  ;;  %v1661_v3 = vadd.f32 %v10775_v52, %v1635_v0  ;;  %v1673_v39 = vadd.f32 %v1669_v14, %v1659_v15  ;;  %v3005_v15 = vmul.f32 %v7498_v4, %v3003_v26  ;;  %v10780_v14 = vld [vmem:[#allocation156_spill] sm:$0xff]  ;;  %v5642_v52 = vld [vmem:[%s5884_s5 + $0x8] sm:$0xff] }
 0x2fc   : > { %10770 = vst [vmem:[#allocation44_spill] sm:$0xff] %v7562_v17  ;;  %10771 = vst [vmem:[#allocation38_spill] sm:$0xff] %v7568_v23  ;;  %v1634_v62 = vadd.f32 %v10777_v31, %v1608_v20  ;;  %v1672_v29 = vadd.f32 %v1668_v58, %v1658_v10  ;;  %v1670_v20 = vmul.f32 %v7602_v59, %v1667_v33  ;;  %v10781_v10 = vld [vmem:[#allocation158_spill] sm:$0xff] }
 0x2fd   : > { %2978 = vrot.lane.b32.xlu1 %v2969_v44, %s5792_s16  ;;  %2976 = vrot.lane.b32.xlu0 %v2968_v35, %s5792_s16  ;;  %v1671_v44 = vmul.f32 %v7586_v36, %v1667_v33  ;;  %v1699_v35 = vadd.f32 %v10779_v40, %v1673_v39  ;;  %v1763_v31 = vmul.f32 %v5642_v52, %v1761_v45  ;;  %v5644_v33 = vld [vmem:[%s5884_s5 + $0x18] sm:$0xff]  ;;  %v1849_v52 = vstv %s7566_s17  ;;  %s5295_s17 = sld [smem:[#allocation2 + $0x68]] }
 0x2fe   : > { %v1660_v0 = vadd.f32 %v10780_v14, %v1634_v62  ;;  %v3004_v39 = vmul.f32 %v7515_v21, %v3003_v26  ;;  %v1698_v58 = vadd.f32 %v10781_v10, %v1672_v29  ;;  %v7614_v62 = vstv %s7564_s14  ;;  %s5291_s14 = sld [smem:[#allocation2 + $0x64]] }
 0x2ff   : > { %v7590_v28 = vpop.permute.xlu1 %2574  ;;  %v7595_v34 = vpop.permute.xlu0 %2572  ;;  %v1675_v40 = vadd.f32 %v1671_v44, %v1661_v3  ;;  %v1765_v14 = vmul.f32 %v5644_v33, %v1761_v45  ;;  %v10786_v3 = vld [vmem:[#allocation166_spill] sm:$0xff]  ;;  %v3006_v33 = vmul.f32 %v7543_v48, %v3003_v26 }
 0x300   : > { %10776 = vst [vmem:[#allocation195_spill] sm:$0xff] %v7590_v28  ;;  %10778 = vst [vmem:[#allocation45_spill] sm:$0xff] %v7595_v34  ;;  %v5643_v28 = vld [vmem:[%s5884_s5] sm:$0xff]  ;;  %v1724_v44 = vadd.f32 %v10786_v3, %v1698_v58  ;;  %v10791_v3 = vld [vmem:[#allocation174_spill] sm:$0xff] }
 0x301   : > { %2982 = vrot.lane.b32.xlu1 %v2971_v55, %s5792_s16  ;;  %2980 = vrot.lane.b32.xlu0 %v2970_v16, %s5792_s16  ;;  %v10782_v55 = vld [vmem:[#allocation165_spill] sm:$0xff]  ;;  %v1762_v23 = vmul.f32 %v5643_v28, %v1761_v45  ;;  %v1701_v29 = vadd.f32 %v10785_v9, %v1675_v40  ;;  %v3007_v28 = vmul.f32 %v7525_v22, %v3003_v26  ;;  %v10789_v9 = vld [vmem:[#allocation167_spill] sm:$0xff]  ;;  %v10790_v40 = vld [vmem:[#allocation170_spill] sm:$0xff] }
 0x302   : > { %v1725_v34 = vadd.f32 %v10782_v55, %v1699_v35  ;;  %v10787_v35 = vld [vmem:[#allocation169_spill] sm:$0xff]  ;;  %v1674_v55 = vadd.f32 %v1670_v20, %v1660_v0  ;;  %v10793_v0 = vld [vmem:[#allocation162_spill] sm:$0xff] }
 0x303   : > { %v7611_v17 = vpop.permute.xlu1 %2578  ;;  %v7620_v16 = vpop.permute.xlu0 %2576  ;;  %v1727_v58 = vadd.f32 %v10789_v9, %v1701_v29  ;;  %v5646_v26 = vld [vmem:[%s5884_s5 + $0x9] sm:$0xff] }
 0x304   : > { %10783 = vst [vmem:[#allocation42_spill] sm:$0xff] %v7611_v17  ;;  %10784 = vst [vmem:[#allocation47_spill] sm:$0xff] %v7620_v16  ;;  %v1751_v10 = vadd.f32 %v10787_v35, %v1725_v34  ;;  %v10788_v17 = vld [vmem:[#allocation173_spill] sm:$0xff]  ;;  %v3029_v16 = vstv %s7582_s21  ;;  %v1750_v34 = vadd.f32 %v10790_v40, %v1724_v44  ;;  %v1792_v35 = vadd.f32 %v10791_v3, %v1762_v23  ;;  %v10797_v23 = vld [vmem:[#allocation171_spill] sm:$0xff]  ;;  %s5299_s21 = sld [smem:[#allocation2 + $0x6c]] }
 0x305   : > { %3014 = vrot.lane.b32.xlu1 %v3005_v15, %s10318_s6  ;;  %v1793_v41 = vadd.f32 %v10788_v17, %v1763_v31  ;;  %3012 = vrot.lane.b32.xlu0 %v3004_v39, %s10318_s6  ;;  %v5645_v15 = vld [vmem:[%s5884_s5 + $0x10] sm:$0xff]  ;;  %v1700_v20 = vadd.f32 %v10793_v0, %v1674_v55  ;;  %v7641_v17 = vstv %s7593_s22  ;;  %v10794_v31 = vld [vmem:[#allocation181_spill] sm:$0xff]  ;;  %v1851_v12 = vmul.f32 %v5646_v26, %v1849_v52  ;;  %v10799_v55 = vld [vmem:[#allocation168_spill] sm:$0xff]  ;;  %s5303_s22 = sld [smem:[#allocation2 + $0x70]] }
 0x306   : > { %v1764_v32 = vmul.f32 %v5645_v15, %v1761_v45  ;;  %v7650_v44 = vadd.f32 %v7614_v62, %v1751_v10  ;;  %v1753_v45 = vadd.f32 %v10797_v23, %v1727_v58  ;;  %v10798_v9 = vld [vmem:[#allocation182_spill] sm:$0xff]  ;;  %v10800_v15 = vld [vmem:[#allocation177_spill] sm:$0xff]  ;;  %v3030_v10 = vmul.f32 %v7515_v21, %v3029_v16 }
 0x307   : > { %v7637_v57 = vpop.permute.xlu1 %2600  ;;  %v1819_v39 = vadd.f32 %v10794_v31, %v1793_v41  ;;  %v7647_v29 = vpop.permute.xlu0 %2598  ;;  %v1818_v40 = vadd.f32 %v10798_v9, %v1792_v35  ;;  %v3031_v41 = vmul.f32 %v7498_v4, %v3029_v16  ;;  %v1726_v3 = vadd.f32 %v10799_v55, %v1700_v20  ;;  %v10801_v31 = vld [vmem:[#allocation185_spill] sm:$0xff]  ;;  %v10803_v58 = vld [vmem:[#allocation178_spill] sm:$0xff]  ;;  %v10807_v55 = vld [vmem:[#allocation183_spill] sm:$0xff] }
 0x308   : > { %10792 = vst [vmem:[#allocation196_spill] sm:$0xff] %v7637_v57  ;;  %10795 = vst [vmem:[#allocation46_spill] sm:$0xff] %v7647_v29  ;;  %v1795_v0 = vadd.f32 %v10800_v15, %v1765_v14  ;;  %v7662_v29 = vadd.f32 %v7614_v62, %v1750_v34  ;;  %v1794_v35 = vadd.f32 %v10803_v58, %v1764_v32  ;;  %v5647_v23 = vld [vmem:[%s5884_s5 + $0x1] sm:$0xff]  ;;  %v10804_v9 = vld [vmem:[#allocation186_spill] sm:$0xff]  ;;  %v7670_v20 = vstv %s7616_s23  ;;  %s5307_s23 = sld [smem:[#allocation2 + $0x74]] }
 0x309   : > { %10796 = vst [vmem:[#allocation48_spill] sm:$0xff] %v7650_v44  ;;  %3018 = vrot.lane.b32.xlu1 %v3007_v28, %s10318_s6  ;;  %v1845_v26 = vadd.f32 %v10801_v31, %v1819_v39  ;;  %3016 = vrot.lane.b32.xlu0 %v3006_v33, %s10318_s6  ;;  %v1850_v28 = vmul.f32 %v5647_v23, %v1849_v52  ;;  %v10806_v14 = vld [vmem:[#allocation172_spill] sm:$0xff] }
 0x30a   : > { %10802 = vst [vmem:[#allocation51_spill] sm:$0xff] %v7662_v29  ;;  %v1844_v57 = vadd.f32 %v10804_v9, %v1818_v40  ;;  %v1752_v39 = vadd.f32 %v10806_v14, %v1726_v3  ;;  %v1821_v33 = vadd.f32 %v10807_v55, %v1795_v0  ;;  %v5648_v15 = vld [vmem:[%s5884_s5 + $0x19] sm:$0xff]  ;;  %v3177_v32 = vmul.f32 %v7641_v17, %v7650_v44 }
 0x30b   : > { %v7667_v25 = vpop.permute.xlu1 %2604  ;;  %v1853_v31 = vmul.f32 %v5648_v15, %v1849_v52  ;;  %v7675_v34 = vpop.permute.xlu0 %2602  ;;  %v7680_v58 = vadd.f32 %v7614_v62, %v1753_v45  ;;  %v10810_v40 = vld [vmem:[#allocation184_spill] sm:$0xff]  ;;  %v3033_v3 = vmul.f32 %v7525_v22, %v3029_v16  ;;  %v1855_v9 = vadd.f32 %v1851_v12, %v1845_v26  ;;  %v10811_v0 = vld [vmem:[#allocation187_spill] sm:$0xff]  ;;  %v10814_v26 = vld [vmem:[#allocation189_spill] sm:$0xff] }
 0x30c   : > { %10805 = vst [vmem:[#allocation49_spill] sm:$0xff] %v7667_v25  ;;  %10808 = vst [vmem:[#allocation52_spill] sm:$0xff] %v7675_v34  ;;  %v1820_v23 = vadd.f32 %v10810_v40, %v1794_v35  ;;  %v1847_v14 = vadd.f32 %v10811_v0, %v1821_v33  ;;  %v3032_v55 = vmul.f32 %v7543_v48, %v3029_v16  ;;  %v3055_v15 = vstv %s7631_s24  ;;  %v5649_v35 = vld [vmem:[%s5884_s5 + $0x11] sm:$0xff]  ;;  %s5311_s24 = sld [smem:[#allocation2 + $0x78]] }
 0x30d   : > { %10809 = vst [vmem:[#allocation55_spill] sm:$0xff] %v7680_v58  ;;  %3040 = vrot.lane.b32.xlu1 %v3031_v41, %s5791_s8  ;;  %3038 = vrot.lane.b32.xlu0 %v3030_v10, %s5791_s8  ;;  %v3176_v45 = vmul.f32 %v7641_v17, %v7662_v29  ;;  %v1854_v44 = vadd.f32 %v1850_v28, %v1844_v57  ;;  %v10812_v41 = vld [vmem:[#allocation188_spill] sm:$0xff]  ;;  %v1937_v16 = vstv %s7645_s25  ;;  %v10815_v28 = vld [vmem:[#allocation190_spill] sm:$0xff]  ;;  %s5315_s25 = sld [smem:[#allocation2 + $0x7c]] }
 0x30e   : > { %v1852_v40 = vmul.f32 %v5649_v35, %v1849_v52  ;;  %v1846_v34 = vadd.f32 %v10812_v41, %v1820_v23  ;;  %v7698_v12 = vadd.f32 %v7614_v62, %v1752_v39  ;;  %v1881_v10 = vadd.f32 %v10814_v26, %v1855_v9  ;;  %v10816_v9 = vld [vmem:[#allocation197_spill] sm:$0xff] }
 0x30f   : > { %v7695_v25 = vpop.permute.xlu1 %2626  ;;  %v7704_v33 = vpop.permute.xlu0 %2624  ;;  %v3179_v57 = vmul.f32 %v7641_v17, %v7680_v58  ;;  %v1880_v52 = vadd.f32 %v10815_v28, %v1854_v44  ;;  %v3057_v23 = vmul.f32 %v7498_v4, %v3055_v15  ;;  %v7712_v62 = vadd.f32 %v7670_v20, %v3177_v32  ;;  %v10817_v44 = vld [vmem:[#allocation198_spill] sm:$0xff] }
 0x310   : > { %10813 = vst [vmem:[#allocation53_spill] sm:$0xff] %v7698_v12  ;;  %v1857_v39 = vadd.f32 %v1853_v31, %v1847_v14  ;;  %v1907_v0 = vadd.f32 %v10816_v9, %v1881_v10  ;;  %v3056_v35 = vmul.f32 %v7515_v21, %v3055_v15  ;;  %v7718_v41 = vadd.f32 %v7670_v20, %v3176_v45  ;;  %v10819_v31 = vld [vmem:[#allocation193_spill] sm:$0xff]  ;;  %v10823_v9 = vld [vmem:[#allocation202_spill] sm:$0xff] }
 0x311   : > { %3044 = vrot.lane.b32.xlu1 %v3033_v3, %s5791_s8  ;;  %3042 = vrot.lane.b32.xlu0 %v3032_v55, %s5791_s8  ;;  %v1856_v26 = vadd.f32 %v1852_v40, %v1846_v34  ;;  %v1906_v28 = vadd.f32 %v10817_v44, %v1880_v52  ;;  %v5650_v3 = vld [vmem:[%s5884_s5 + $0xa] sm:$0xff]  ;;  %v3178_v4 = vmul.f32 %v7641_v17, %v7698_v12  ;;  %v5651_v10 = vld [vmem:[%s5884_s5 + $0x2] sm:$0xff]  ;;  %vm3199_vm0 = vcmp.gt.f32.partialorder %v7712_v62, 0.0 }
 0x312   : > { %v1939_v58 = vmul.f32 %v5650_v3, %v1937_v16  ;;  %v1883_v32 = vadd.f32 %v10819_v31, %v1857_v39  ;;  %v10820_v14 = vld [vmem:[#allocation201_spill] sm:$0xff]  ;;  %v1938_v21 = vmul.f32 %v5651_v10, %v1937_v16  ;;  %v7732_v34 = vadd.f32 %v7670_v20, %v3179_v57  ;;  %v10822_v40 = vld [vmem:[#allocation194_spill] sm:$0xff]  ;;  %v5652_v10 = vld [vmem:[%s5884_s5 + $0x1a] sm:$0xff] }
 0x313   : > { %v7722_v29 = vpop.permute.xlu1 %2630  ;;  %v1933_v55 = vadd.f32 %v10820_v14, %v1907_v0  ;;  %v7729_v45 = vpop.permute.xlu0 %2628  ;;  %v1882_v52 = vadd.f32 %v10822_v40, %v1856_v26  ;;  %v1932_v44 = vadd.f32 %v10823_v9, %v1906_v28  ;;  %v3059_v17 = vmul.f32 %v7525_v22, %v3055_v15  ;;  %v10824_v0 = vld [vmem:[#allocation199_spill] sm:$0xff]  ;;  %v10825_v26 = vld [vmem:[#allocation200_spill] sm:$0xff] }
 0x314   : > { %10818 = vst [vmem:[#allocation56_spill] sm:$0xff] %v7722_v29  ;;  %10821 = vst [vmem:[#allocation50_spill] sm:$0xff] %v7729_v45  ;;  %v3204_v39 = vmul.f32 1.442695, %v7712_v62  ;;  %v1909_v3 = vadd.f32 %v10824_v0, %v1883_v32  ;;  %v3058_v31 = vmul.f32 %v7543_v48, %v3055_v15  ;;  %v3091_v14 = vstv %s7689_s26  ;;  %v5653_v40 = vld [vmem:[%s5884_s5 + $0x12] sm:$0xff]  ;;  %s5319_s26 = sld [smem:[#allocation2 + $0x81]] }
 0x315   : > { %3066 = vrot.lane.b32.xlu1 %v3057_v23, %s5792_s16  ;;  %3064 = vrot.lane.b32.xlu0 %v3056_v35, %s5792_s16  ;;  %v3202_v57 = vmul.f32 1.442695, %v7718_v41  ;;  %v1908_v28 = vadd.f32 %v10825_v26, %v1882_v52  ;;  %v1941_v23 = vmul.f32 %v5652_v10, %v1937_v16  ;;  %v1940_v22 = vmul.f32 %v5653_v40, %v1937_v16  ;;  %v10826_v35 = vld [vmem:[#allocation203_spill] sm:$0xff]  ;;  %v10827_v52 = vld [vmem:[#allocation204_spill] sm:$0xff]  ;;  %v10828_v10 = vld [vmem:[#allocation205_spill] sm:$0xff] }
 0x316   : > { %v7752_v12 = vadd.f32 %v7670_v20, %v3178_v4  ;;  %v1943_v32 = vadd.f32 %v1939_v58, %v1933_v55  ;;  %v1935_v0 = vadd.f32 %v10826_v35, %v1909_v3  ;;  %v2025_v48 = vstv %s7702_s27  ;;  %v10829_v4 = vld [vmem:[#allocation206_spill] sm:$0xff]  ;;  %s5322_s27 = sld [smem:[#allocation2 + $0x83]] }
 0x317   : > { %v7749_v9 = vpop.permute.xlu1 %2662  ;;  %v7756_v15 = vpop.permute.xlu0 %2660  ;;  %v3208_v45 = vmul.f32 1.442695, %v7732_v34  ;;  %v1942_v29 = vadd.f32 %v1938_v21, %v1932_v44  ;;  %v1934_v26 = vadd.f32 %v10827_v52, %v1908_v28  ;;  %v3093_v16 = vmul.f32 %v7559_v6, %v3091_v14  ;;  %v10830_v28 = vld [vmem:[#allocation209_spill] sm:$0xff]  ;;  %v10832_v52 = vld [vmem:[#allocation207_spill] sm:$0xff] }
 0x318   : > { %5506 = vpow2.f32 %v3204_v39  ;;  %v1969_v20 = vadd.f32 %v10828_v10, %v1943_v32  ;;  %v3092_v58 = vmul.f32 %v7573_v54, %v3091_v14  ;;  %v3206_v21 = vmul.f32 1.442695, %v7752_v12  ;;  %v5654_v40 = vld [vmem:[%s5884_s5 + $0xb] sm:$0xff] }
 0x319   : > { %3070 = vrot.lane.b32.xlu1 %v3059_v17, %s5792_s16  ;;  %3068 = vrot.lane.b32.xlu0 %v3058_v31, %s5792_s16  ;;  %5508 = vpow2.f32 %v3202_v57  ;;  %v1968_v55 = vadd.f32 %v10829_v4, %v1942_v29  ;;  %v1945_v44 = vadd.f32 %v1941_v23, %v1935_v0  ;;  %v2027_v39 = vmul.f32 %v5654_v40, %v2025_v48  ;;  %v10831_v57 = vld [vmem:[#allocation210_spill] sm:$0xff]  ;;  %v10833_v23 = vld [vmem:[#allocation213_spill] sm:$0xff] }
 0x31a   : > { %v1995_v17 = vadd.f32 %v10830_v28, %v1969_v20  ;;  %5510 = vpow2.f32 %v3208_v45  ;;  %v1944_v31 = vadd.f32 %v1940_v22, %v1934_v26  ;;  %v3095_v29 = vmul.f32 %v7586_v36, %v3091_v14  ;;  %v10834_v45 = vld [vmem:[#allocation208_spill] sm:$0xff]  ;;  %v10835_v28 = vld [vmem:[#allocation214_spill] sm:$0xff] }
 0x31b   : > { %v7766_v3 = vpop.permute.xlu1 %2666  ;;  %v7773_v32 = vpop.permute.xlu0 %2664  ;;  %v1994_v35 = vadd.f32 %v10831_v57, %v1968_v55  ;;  %v1971_v10 = vadd.f32 %v10832_v52, %v1945_v44  ;;  %v3094_v20 = vmul.f32 %v7602_v59, %v3091_v14  ;;  %v3117_v4 = vstv %s7743_s28  ;;  %v5655_v26 = vld [vmem:[%s5884_s5 + $0x3] sm:$0xff]  ;;  %v10836_v44 = vld [vmem:[#allocation211_spill] sm:$0xff]  ;;  %s5323_s28 = sld [smem:[#allocation2 + $0x85]] }
 0x31c   : > { %v2021_v0 = vadd.f32 %v10833_v23, %v1995_v17  ;;  %v1970_v22 = vadd.f32 %v10834_v45, %v1944_v31  ;;  %v2026_v55 = vmul.f32 %v5655_v26, %v2025_v48  ;;  %5512 = vpow2.f32 %v3206_v21  ;;  %v5656_v45 = vld [vmem:[%s5884_s5 + $0x1b] sm:$0xff] }
 0x31d   : > { %3102 = vrot.lane.b32.xlu1 %v3093_v16, %s10318_s6  ;;  %3100 = vrot.lane.b32.xlu0 %v3092_v58, %s10318_s6  ;;  %v2020_v16 = vadd.f32 %v10835_v28, %v1994_v35  ;;  %v1997_v17 = vadd.f32 %v10836_v44, %v1971_v10  ;;  %v10837_v58 = vld [vmem:[#allocation212_spill] sm:$0xff]  ;;  %v3119_v52 = vmul.f32 %v7559_v6, %v3117_v4  ;;  %v5657_v28 = vld [vmem:[%s5884_s5 + $0x13] sm:$0xff]  ;;  %vm3198_vm1 = vcmp.gt.f32.partialorder %v7718_v41, 0.0 }
 0x31e   : > { %v1996_v14 = vadd.f32 %v10837_v58, %v1970_v22  ;;  %v2031_v23 = vadd.f32 %v2027_v39, %v2021_v0  ;;  %v2029_v26 = vmul.f32 %v5656_v45, %v2025_v48  ;;  %v3118_v21 = vmul.f32 %v7573_v54, %v3117_v4 }
 0x31f   : > { %v7788_v40 = vpop.permute.xlu1 %2688  ;;  %v7791_v57 = vpop.permute.xlu0 %2686  ;;  %v2023_v35 = vadd.f32 %v6880_v37, %v1997_v17  ;;  %v2030_v10 = vadd.f32 %v2026_v55, %v2020_v16  ;;  %v2028_v44 = vmul.f32 %v5657_v28, %v2025_v48  ;;  %v2113_v39 = vstv %s7771_s29  ;;  %v5659_v28 = vld [vmem:[%s5884_s5 + $0x28] sm:$0xff]  ;;  %s5336_s29 = sld [smem:[#allocation2 + $0x8a]] }
 0x320   : > { %v2022_v22 = vadd.f32 %v6882_v18, %v1996_v14  ;;  %v2057_v31 = vadd.f32 %v6899_v61, %v2031_v23  ;;  %v3121_v48 = vmul.f32 %v7586_v36, %v3117_v4  ;;  %v10839_v55 = vlaneseq }
 0x321   : > { %3106 = vrot.lane.b32.xlu1 %v3095_v29, %s10318_s6  ;;  %3104 = vrot.lane.b32.xlu0 %v3094_v20, %s10318_s6  ;;  %v2056_v20 = vadd.f32 %v6901_v38, %v2030_v10  ;;  %v2033_v18 = vadd.f32 %v2029_v26, %v2023_v35  ;;  %v3120_v61 = vmul.f32 %v7602_v59, %v3117_v4  ;;  %v3143_v14 = vstv %s7783_s30  ;;  %v5658_v10 = vld [vmem:[%s5884_s5 + $0x30] sm:$0xff]  ;;  %s5339_s30 = sld [smem:[#allocation2 + $0x8d]] }
 0x322   : > { %v5507_v58 = vpop.eup %5506  ;;  %v7812_v16 = vshrl.u32 %v10839_v55, 7  ;;  %v2083_v17 = vadd.f32 %v6941_v63, %v2057_v31  ;;  %v2032_v45 = vadd.f32 %v2028_v44, %v2022_v22  ;;  %v5660_v22 = vld [vmem:[%s5884_s5 + $0x40] sm:$0xff]  ;;  %vm3201_vm2 = vcmp.gt.f32.partialorder %v7732_v34, 0.0 }
 0x323   : > { %v7802_v29 = vpop.permute.xlu1 %2692  ;;  %v7806_v0 = vpop.permute.xlu0 %2690  ;;  %v2082_v38 = vadd.f32 %v6943_v19, %v2056_v20  ;;  %v5325_v63 = vadd.f32 -1.0, %v5507_v58  ;;  %v2059_v35 = vadd.f32 %v6919_v30, %v2033_v18  ;;  %v2117_v20 = vmul.f32 %v5660_v22, %v2113_v39 }
 0x324   : > { %10838 = vst [vmem:[#allocation57_spill] sm:$0xff] %v7806_v0  ;;  %v5509_v37 = vpop.eup %5508  ;;  %10840 = vst [vmem:[#allocation54_spill] sm:$0xff] %v7812_v16  ;;  %v2114_v0 = vmul.f32 %v5659_v28, %v2113_v39  ;;  %v2109_v4 = vadd.f32 %v6973_v5, %v2083_v17  ;;  %v2058_v44 = vadd.f32 %v6921_v60, %v2032_v45  ;;  %vm3200_vm3 = vcmp.gt.f32.partialorder %v7752_v12, 0.0 }
 0x325   : > { %3128 = vrot.lane.b32.xlu1 %v3119_v52, %s5791_s8  ;;  %3126 = vrot.lane.b32.xlu0 %v3118_v21, %s5791_s8  ;;  %v5511_v23 = vpop.eup %5510  ;;  %v2115_v52 = vmul.f32 %v5658_v10, %v2113_v39  ;;  %v5324_v31 = vadd.f32 -1.0, %v5509_v37  ;;  %v2108_v19 = vadd.f32 %v6975_v24, %v2082_v38  ;;  %v3145_v10 = vmul.f32 %v7559_v6, %v3143_v14  ;;  %v5661_v37 = vld [vmem:[%s5884_s5 + $0x38] sm:$0xff] }
 0x326   : > { %v5513_v28 = vpop.eup %5512  ;;  %v5327_v55 = vadd.f32 -1.0, %v5511_v23  ;;  %v2085_v58 = vadd.f32 %v6958_v7, %v2059_v35  ;;  %v2116_v30 = vmul.f32 %v5661_v37, %v2113_v39  ;;  %v3144_v5 = vmul.f32 %v7573_v54, %v3143_v14  ;;  %v5663_v35 = vld [vmem:[%s5884_s5 + $0x29] sm:$0xff] }
 0x327   : > { %v7823_v26 = vpop.permute.xlu1 %2714  ;;  %v7827_v21 = vpop.permute.xlu0 %2712  ;;  %v2084_v60 = vadd.f32 %v6960_v13, %v2058_v44  ;;  %v7845_v6 = vsel %vm3199_vm0, %v7712_v62, %v5325_v63  ;;  %v7848_v7 = vsel %vm3198_vm1, %v7718_v41, %v5324_v31  ;;  %v2119_v39 = vadd.f32 %v2115_v52, %v2109_v4  ;;  %v5662_v52 = vld [vmem:[%s5884_s5 + $0x31] sm:$0xff] }
 0x328   : > { %10841 = vst [vmem:[#allocation59_spill] sm:$0xff] %v7845_v6  ;;  %10842 = vst [vmem:[#allocation58_spill] sm:$0xff] %v7848_v7  ;;  %v2111_v54 = vadd.f32 %v6990_v1, %v2085_v58  ;;  %v5326_v18 = vadd.f32 -1.0, %v5513_v28  ;;  %v2118_v17 = vadd.f32 %v2114_v0, %v2108_v19  ;;  %v3147_v13 = vmul.f32 %v7586_v36, %v3143_v14  ;;  %v10848_v58 = vld [vmem:[#allocation9_spill] sm:$0xff] }
 0x329   : > { %3132 = vrot.lane.b32.xlu1 %v3121_v48, %s5791_s8  ;;  %3130 = vrot.lane.b32.xlu0 %v3120_v61, %s5791_s8  ;;  %v2110_v61 = vadd.f32 %v6992_v51, %v2084_v60  ;;  %v7857_v62 = vsel %vm3201_vm2, %v7732_v34, %v5327_v55  ;;  %v2145_v23 = vadd.f32 %v7007_v2, %v2119_v39  ;;  %v2201_v0 = vstv %s7821_s3  ;;  %s7877_s8 = sld [smem:[#allocation2 + $0x58]]  ;;  %v10849_v39 = vld [vmem:[#allocation8_spill] sm:$0xff]  ;;  %s5357_s3 = sld [smem:[#allocation2 + $0x9c]] }
 0x32a   : > { %10843 = vst [vmem:[#allocation60_spill] sm:$0xff] %v7857_v62  ;;  %v3146_v41 = vmul.f32 %v7602_v59, %v3143_v14  ;;  %v2144_v1 = vadd.f32 %v7009_v46, %v2118_v17  ;;  %vm3243_vm4 = vcmp.lt.s32.totalorder %v7812_v16, 1  ;;  %v2121_v36 = vadd.f32 %v2117_v20, %v2111_v54  ;;  %v10846_v20 = vld [vmem:[#allocation147_spill] sm:$0xff] }
 0x32b   : > { %v7842_v24 = vpop.permute.xlu1 %2718  ;;  %v7851_v48 = vpop.permute.xlu0 %2716  ;;  %v2171_v34 = vadd.f32 %v7051_v43, %v2145_v23  ;;  %v3239_v2 = vrot.slane %v7848_v7, 7  ;;  %v3240_v59 = vrot.slane %v7845_v6, 7  ;;  %v7874_v14 = vsel %vm3200_vm3, %v7752_v12, %v5326_v18  ;;  %v10850_v17 = vld [vmem:[#allocation11_spill] sm:$0xff] }
 0x32c   : > { %10844 = vst [vmem:[#allocation63_spill] sm:$0xff] %v7874_v14  ;;  %v2120_v46 = vadd.f32 %v2116_v30, %v2110_v61  ;;  %v2170_v45 = vadd.f32 %v7053_v56, %v2144_v1  ;;  %v3242_v38 = vrot.slane %v7857_v62, 7  ;;  %v2147_v43 = vadd.f32 %v7027_v50, %v2121_v36 }
 0x32d   : > { %3154 = vrot.lane.b32.xlu1 %v3145_v10, %s5792_s16  ;;  %3152 = vrot.lane.b32.xlu0 %v3144_v5, %s5792_s16  ;;  %v2203_v63 = vmul.f32 %v5662_v52, %v2201_v0  ;;  %v2197_v31 = vadd.f32 %v7083_v11, %v2171_v34  ;;  %v2202_v4 = vmul.f32 %v5663_v35, %v2201_v0  ;;  %v3241_v11 = vrot.slane %v7874_v14, 7  ;;  %v5665_v5 = vld [vmem:[%s5884_s5 + $0x39] sm:$0xff]  ;;  %v10855_v52 = vld [vmem:[#allocation10_spill] sm:$0xff] }
 0x32e   : > { %v2146_v12 = vadd.f32 %v7029_v53, %v2120_v46  ;;  %v2196_v56 = vadd.f32 %v7085_v8, %v2170_v45  ;;  %v2173_v19 = vadd.f32 %v7064_v47, %v2147_v43  ;;  %v7895_v50 = vsel %vm3243_vm4, %v3239_v2, %v3240_v59  ;;  %v5664_v8 = vld [vmem:[%s5884_s5 + $0x41] sm:$0xff]  ;;  %v10854_v45 = vld [vmem:[#allocation15_spill] sm:$0xff] }
 0x32f   : > { %v7865_v51 = vpop.permute.xlu1 %2750  ;;  %v7869_v55 = vpop.permute.xlu0 %2748  ;;  %10845 = vst [vmem:[#allocation61_spill] sm:$0xff] %v7895_v50  ;;  %v7901_v53 = vsel %vm3243_vm4, %v3242_v38, %v3239_v2  ;;  %v2207_v47 = vadd.f32 %v2203_v63, %v2197_v31  ;;  %v2205_v28 = vmul.f32 %v5664_v8, %v2201_v0  ;;  %v2204_v60 = vmul.f32 %v5665_v5, %v2201_v0  ;;  %v5666_v63 = vld [vmem:[%s5884_s5 + $0x32] sm:$0xff] }
 0x330   : > { %v2172_v10 = vadd.f32 %v10846_v20, %v2146_v12  ;;  %10847 = vst [vmem:[#allocation64_spill] sm:$0xff] %v7901_v53  ;;  %v2199_v37 = vadd.f32 %v10848_v58, %v2173_v19  ;;  %v2206_v30 = vadd.f32 %v2202_v4, %v2196_v56  ;;  %v7918_v23 = vsel %vm3243_vm4, %v3241_v11, %v3242_v38  ;;  %v5667_v56 = vld [vmem:[%s5884_s5 + $0x2a] sm:$0xff]  ;;  %v10857_v20 = vld [vmem:[#allocation159_spill] sm:$0xff] }
 0x331   : > { %3158 = vrot.lane.b32.xlu1 %v3147_v13, %s5792_s16  ;;  %3156 = vrot.lane.b32.xlu0 %v3146_v41, %s5792_s16  ;;  %s10322_s16 = smov 32   ;;  %v2233_v61 = vadd.f32 %v10850_v17, %v2207_v47  ;;  %10851 = vst [vmem:[#allocation67_spill] sm:$0xff] %v7918_v23  ;;  %v10852_v41 = vld [vmem:[#allocation148_spill] sm:$0xff]  ;;  %v2289_v36 = vstv %s7877_s8  ;;  %v7924_v0 = vsel %vm3243_vm4, %v3240_v59, %v3241_v11  ;;  %v10858_v47 = vld [vmem:[#allocation13_spill] sm:$0xff]  ;;  %vm3437_vm5 = vcmp.lt.s32.totalorder %v7812_v16, 7  ;;  %s5360_s8 = sld [smem:[#allocation2 + $0x9f]] }
 0x332   : > { %v2198_v54 = vadd.f32 %v10849_v39, %v2172_v10  ;;  %v2232_v1 = vadd.f32 %v10852_v41, %v2206_v30  ;;  %10853 = vst [vmem:[#allocation65_spill] sm:$0xff] %v7924_v0  ;;  %v2209_v34 = vadd.f32 %v2205_v28, %v2199_v37  ;;  %v2291_v31 = vmul.f32 %v5666_v63, %v2289_v36  ;;  %v5668_v28 = vld [vmem:[%s5884_s5 + $0x42] sm:$0xff]  ;;  %v10863_v63 = vld [vmem:[#allocation163_spill] sm:$0xff] }
 0x333   : > { %v7888_v44 = vpop.permute.xlu1 %2754  ;;  %v7891_v22 = vpop.permute.xlu0 %2752  ;;  %v2259_v2 = vadd.f32 %v7159_v27, %v2233_v61  ;;  %v10856_v27 = vld [vmem:[#allocation12_spill] sm:$0xff]  ;;  %v2290_v19 = vmul.f32 %v5667_v56, %v2289_v36  ;;  %v10860_v61 = vld [vmem:[#allocation19_spill] sm:$0xff] }
 0x334   : > { %v2208_v46 = vadd.f32 %v2204_v60, %v2198_v54  ;;  %v2258_v38 = vadd.f32 %v10854_v45, %v2232_v1  ;;  %v2235_v59 = vadd.f32 %v10855_v52, %v2209_v34  ;;  %v10859_v30 = vld [vmem:[#allocation16_spill] sm:$0xff]  ;;  %v3435_v54 = vrot.slane %v7874_v14, 1 }
 0x335   : > { %3252 = vrot.lane.b32.xlu1 %v7895_v50, %s10322_s16  ;;  %3249 = vrot.lane.b32.xlu0 %v7901_v53, %s10322_s16  ;;  %v2285_v12 = vadd.f32 %v7193_v49, %v2259_v2  ;;  %v2293_v49 = vmul.f32 %v5668_v28, %v2289_v36  ;;  %v5669_v60 = vld [vmem:[%s5884_s5 + $0x3a] sm:$0xff]  ;;  %v3433_v1 = vrot.slane %v7848_v7, 1  ;;  %v3434_v34 = vrot.slane %v7845_v6, 1  ;;  %v10861_v2 = vld [vmem:[#allocation17_spill] sm:$0xff]  ;;  %v10910_v50 = vld [vmem:[#allocation50_spill] sm:$0xff] }
 0x336   : > { %v2234_v4 = vadd.f32 %v10856_v27, %v2208_v46  ;;  %v2284_v11 = vadd.f32 %v7196_v42, %v2258_v38  ;;  %v2261_v10 = vadd.f32 %v10857_v20, %v2235_v59  ;;  %v2292_v42 = vmul.f32 %v5669_v60, %v2289_v36  ;;  %v10862_v36 = vld [vmem:[#allocation160_spill] sm:$0xff]  ;;  %v10870_v60 = vld [vmem:[#allocation22_spill] sm:$0xff] }
 0x337   : > { %v7911_v18 = vpop.permute.xlu1 %2776  ;;  %v7914_v13 = vpop.permute.xlu0 %2774  ;;  %v2295_v37 = vadd.f32 %v2291_v31, %v2285_v12  ;;  %v2377_v38 = vstv %s7932_s4  ;;  %v7976_v27 = vsel %vm3437_vm5, %v3434_v34, %v3435_v54  ;;  %v7984_v20 = vsel %vm3437_vm5, %v3433_v1, %v3434_v34  ;;  %v10871_v34 = vld [vmem:[#allocation18_spill] sm:$0xff]  ;;  %s5333_s4 = sld [smem:[#allocation2 + $0x87]] }
 0x338   : > { %v2260_v8 = vadd.f32 %v10858_v47, %v2234_v4  ;;  %v2287_v5 = vadd.f32 %v10859_v30, %v2261_v10  ;;  %v2294_v17 = vadd.f32 %v2290_v19, %v2284_v11  ;;  %10864 = vst [vmem:[#allocation68_spill] sm:$0xff] %v7976_v27  ;;  %v3436_v4 = vrot.slane %v7857_v62, 1  ;;  %v10865_v19 = vld [vmem:[#allocation21_spill] sm:$0xff]  ;;  %10866 = vst [vmem:[#allocation62_spill] sm:$0xff] %v7984_v20  ;;  %v10867_v10 = vld [vmem:[#allocation20_spill] sm:$0xff] }
 0x339   : > { %3258 = vrot.lane.b32.xlu1 %v7918_v23, %s10322_s16  ;;  %3255 = vrot.lane.b32.xlu0 %v7924_v0, %s10322_s16  ;;  %v2321_v46 = vadd.f32 %v10861_v2, %v2295_v37  ;;  %v10869_v30 = vld [vmem:[#allocation14_spill] sm:$0xff] }
 0x33a   : > { %v2286_v41 = vadd.f32 %v10860_v61, %v2260_v8  ;;  %v2320_v45 = vadd.f32 %v10862_v36, %v2294_v17  ;;  %v2297_v59 = vadd.f32 %v2293_v49, %v2287_v5  ;;  %v10868_v8 = vld [vmem:[#allocation164_spill] sm:$0xff]  ;;  %v5670_v49 = vld [vmem:[%s5884_s5 + $0x33] sm:$0xff]  ;;  %v5671_v17 = vld [vmem:[%s5884_s5 + $0x2b] sm:$0xff]  ;;  %v8003_v36 = vsel %vm3437_vm5, %v3436_v4, %v3433_v1 }
 0x33b   : > { %v7934_v43 = vpop.permute.xlu1 %2780  ;;  %v7939_v35 = vpop.permute.xlu0 %2778  ;;  %v2347_v31 = vadd.f32 %v10863_v63, %v2321_v46  ;;  %v2379_v37 = vmul.f32 %v5670_v49, %v2377_v38  ;;  %v2378_v61 = vmul.f32 %v5671_v17, %v2377_v38  ;;  %10872 = vst [vmem:[#allocation69_spill] sm:$0xff] %v8003_v36  ;;  %v8008_v63 = vsel %vm3437_vm5, %v3435_v54, %v3436_v4  ;;  %v10876_v1 = vld [vmem:[#allocation27_spill] sm:$0xff]  ;;  %v10877_v54 = vld [vmem:[#allocation25_spill] sm:$0xff]  ;;  %v10878_v17 = vld [vmem:[#allocation28_spill] sm:$0xff] }
 0x33c   : > { %v2296_v56 = vadd.f32 %v2292_v42, %v2286_v41  ;;  %v2346_v11 = vadd.f32 %v10865_v19, %v2320_v45  ;;  %v2323_v47 = vadd.f32 %v10867_v10, %v2297_v59  ;;  %v10873_v45 = vld [vmem:[#allocation23_spill] sm:$0xff]  ;;  %10874 = vst [vmem:[#allocation66_spill] sm:$0xff] %v8008_v63 }
 0x33d   : > { %3346 = vrot.lane.b32.xlu1 %v7845_v6, %s10322_s16  ;;  %3343 = vrot.lane.b32.xlu0 %v7848_v7, %s10322_s16  ;;  %v2373_v28 = vadd.f32 %v10868_v8, %v2347_v31  ;;  %v10875_v31 = vld [vmem:[#allocation24_spill] sm:$0xff] }
 0x33e   : > { %v2322_v5 = vadd.f32 %v10869_v30, %v2296_v56  ;;  %v2372_v42 = vadd.f32 %v10870_v60, %v2346_v11  ;;  %v2349_v2 = vadd.f32 %v10871_v34, %v2323_v47  ;;  %v5672_v11 = vld [vmem:[%s5884_s5 + $0x43] sm:$0xff]  ;;  %v5673_v49 = vld [vmem:[%s5884_s5 + $0x3b] sm:$0xff] }
 0x33f   : > { %v7951_v58 = vpop.permute.xlu1 %2802  ;;  %v7955_v39 = vpop.permute.xlu0 %2800  ;;  %v2383_v19 = vadd.f32 %v2379_v37, %v2373_v28  ;;  %v2381_v10 = vmul.f32 %v5672_v11, %v2377_v38  ;;  %v2380_v30 = vmul.f32 %v5673_v49, %v2377_v38  ;;  %v2465_v37 = vstv %s7980_s7  ;;  %v10880_v11 = vld [vmem:[#allocation176_spill] sm:$0xff]  ;;  %v10881_v38 = vld [vmem:[#allocation175_spill] sm:$0xff]  ;;  %s5354_s7 = sld [smem:[#allocation2 + $0x99]] }
 0x340   : > { %v2348_v59 = vadd.f32 %v10873_v45, %v2322_v5  ;;  %v2375_v56 = vadd.f32 %v10875_v31, %v2349_v2  ;;  %v2382_v8 = vadd.f32 %v2378_v61, %v2372_v42  ;;  %v10879_v2 = vld [vmem:[#allocation29_spill] sm:$0xff]  ;;  %v5674_v49 = vld [vmem:[%s5884_s5 + $0x58] sm:$0xff] }
 0x341   : > { %3352 = vrot.lane.b32.xlu1 %v7857_v62, %s10322_s16  ;;  %3349 = vrot.lane.b32.xlu0 %v7874_v14, %s10322_s16  ;;  %v2409_v4 = vadd.f32 %v10877_v54, %v2383_v19  ;;  %v2467_v54 = vmul.f32 %v5674_v49, %v2465_v37  ;;  %v10892_v62 = vld [vmem:[#allocation37_spill] sm:$0xff] }
 0x342   : > { %v2374_v47 = vadd.f32 %v10876_v1, %v2348_v59  ;;  %v2408_v28 = vadd.f32 %v10878_v17, %v2382_v8  ;;  %v2385_v34 = vadd.f32 %v2381_v10, %v2375_v56  ;;  %v10882_v1 = vld [vmem:[#allocation179_spill] sm:$0xff]  ;;  %v10884_v10 = vld [vmem:[#allocation33_spill] sm:$0xff]  ;;  %v10885_v17 = vld [vmem:[#allocation32_spill] sm:$0xff] }
 0x343   : > { %v7969_v52 = vpop.permute.xlu1 %2806  ;;  %v7972_v12 = vpop.permute.xlu0 %2804  ;;  %v2435_v45 = vadd.f32 %v10879_v2, %v2409_v4  ;;  %v10883_v8 = vld [vmem:[#allocation31_spill] sm:$0xff]  ;;  %v10886_v2 = vld [vmem:[#allocation26_spill] sm:$0xff] }
 0x344   : > { %v2384_v31 = vadd.f32 %v2380_v30, %v2374_v47  ;;  %v2434_v59 = vadd.f32 %v10880_v11, %v2408_v28  ;;  %v2411_v61 = vadd.f32 %v10881_v38, %v2385_v34  ;;  %v5675_v47 = vld [vmem:[%s5884_s5 + $0x50] sm:$0xff] }
 0x345   : > { %3445 = vrot.lane.b32.xlu1 %v7976_v27, %s10322_s16  ;;  %3442 = vrot.lane.b32.xlu0 %v7984_v20, %s10322_s16  ;;  %v2461_v19 = vadd.f32 %v10882_v1, %v2435_v45  ;;  %v2466_v30 = vmul.f32 %v5675_v47, %v2465_v37  ;;  %v10887_v34 = vld [vmem:[#allocation30_spill] sm:$0xff]  ;;  %v5676_v1 = vld [vmem:[%s5884_s5 + $0x68] sm:$0xff]  ;;  %v10888_v27 = vld [vmem:[#allocation35_spill] sm:$0xff] }
 0x346   : > { %v2410_v56 = vadd.f32 %v10883_v8, %v2384_v31  ;;  %v2460_v4 = vadd.f32 %v10884_v10, %v2434_v59  ;;  %v2437_v28 = vadd.f32 %v10885_v17, %v2411_v61  ;;  %v2469_v49 = vmul.f32 %v5676_v1, %v2465_v37  ;;  %v5677_v59 = vld [vmem:[%s5884_s5 + $0x60] sm:$0xff]  ;;  %v10890_v61 = vld [vmem:[#allocation34_spill] sm:$0xff] }
 0x347   : > { %v7996_v41 = vpop.permute.xlu1 %2838  ;;  %v7999_v46 = vpop.permute.xlu0 %2836  ;;  %v2471_v45 = vadd.f32 %v2467_v54, %v2461_v19  ;;  %v2468_v8 = vmul.f32 %v5677_v59, %v2465_v37  ;;  %v10889_v10 = vld [vmem:[#allocation180_spill] sm:$0xff]  ;;  %v2553_v17 = vstv %s5291_s14  ;;  %v10891_v19 = vld [vmem:[#allocation191_spill] sm:$0xff]  ;;  %s8523_s14 = sld [smem:[#allocation2 + $0x93]] }
 0x348   : > { %v2436_v11 = vadd.f32 %v10886_v2, %v2410_v56  ;;  %v2463_v38 = vadd.f32 %v10887_v34, %v2437_v28  ;;  %v2470_v31 = vadd.f32 %v2466_v30, %v2460_v4  ;;  %v10893_v4 = vld [vmem:[#allocation36_spill] sm:$0xff]  ;;  %v10894_v30 = vld [vmem:[#allocation41_spill] sm:$0xff]  ;;  %v10895_v59 = vld [vmem:[#allocation39_spill] sm:$0xff] }
 0x349   : > { %3451 = vrot.lane.b32.xlu1 %v8003_v36, %s10322_s16  ;;  %3448 = vrot.lane.b32.xlu0 %v8008_v63, %s10322_s16  ;;  %v2497_v47 = vadd.f32 %v10889_v10, %v2471_v45  ;;  %v5678_v45 = vld [vmem:[%s5884_s5 + $0x59] sm:$0xff] }
 0x34a   : > { %v2462_v14 = vadd.f32 %v10888_v27, %v2436_v11  ;;  %v2496_v56 = vadd.f32 %v10890_v61, %v2470_v31  ;;  %v2473_v28 = vadd.f32 %v2469_v49, %v2463_v38  ;;  %v2555_v31 = vmul.f32 %v5678_v45, %v2553_v17  ;;  %v10896_v61 = vld [vmem:[#allocation192_spill] sm:$0xff]  ;;  %v5679_v49 = vld [vmem:[%s5884_s5 + $0x51] sm:$0xff] }
 0x34b   : > { %v8018_v5 = vpop.permute.xlu1 %2842  ;;  %v8021_v60 = vpop.permute.xlu0 %2840  ;;  %v2523_v54 = vadd.f32 %v10891_v19, %v2497_v47  ;;  %v2554_v47 = vmul.f32 %v5679_v49, %v2553_v17  ;;  %v10900_v45 = vld [vmem:[#allocation38_spill] sm:$0xff]  ;;  %v10901_v49 = vld [vmem:[#allocation195_spill] sm:$0xff] }
 0x34c   : > { %v2472_v1 = vadd.f32 %v2468_v8, %v2462_v14  ;;  %v2522_v27 = vadd.f32 %v10892_v62, %v2496_v56  ;;  %v2499_v37 = vadd.f32 %v10893_v4, %v2473_v28  ;;  %v10897_v14 = vld [vmem:[#allocation40_spill] sm:$0xff]  ;;  %v10898_v56 = vld [vmem:[#allocation43_spill] sm:$0xff] }
 0x34d   : > { %v2549_v11 = vadd.f32 %v10894_v30, %v2523_v54  ;;  %v10899_v28 = vld [vmem:[#allocation44_spill] sm:$0xff]  ;;  %v5680_v30 = vld [vmem:[%s5884_s5 + $0x69] sm:$0xff] }
 0x34e   : > { %v2498_v10 = vadd.f32 %v10895_v59, %v2472_v1  ;;  %v2548_v38 = vadd.f32 %v10896_v61, %v2522_v27  ;;  %v2525_v8 = vadd.f32 %v10897_v14, %v2499_v37  ;;  %v2557_v6 = vmul.f32 %v5680_v30, %v2553_v17  ;;  %v5681_v27 = vld [vmem:[%s5884_s5 + $0x61] sm:$0xff]  ;;  %v10904_v30 = vld [vmem:[#allocation46_spill] sm:$0xff] }
 0x34f   : > { %v8027_v42 = vpop.permute.xlu1 %2864  ;;  %v8032_v63 = vpop.permute.xlu0 %2862  ;;  %v2559_v54 = vadd.f32 %v2555_v31, %v2549_v11  ;;  %v2556_v59 = vmul.f32 %v5681_v27, %v2553_v17  ;;  %v10902_v14 = vld [vmem:[#allocation45_spill] sm:$0xff]  ;;  %v10903_v11 = vld [vmem:[#allocation196_spill] sm:$0xff]  ;;  %v10905_v17 = vld [vmem:[#allocation42_spill] sm:$0xff] }
 0x350   : > { %v2524_v7 = vadd.f32 %v10898_v56, %v2498_v10  ;;  %v2551_v4 = vadd.f32 %v10899_v28, %v2525_v8  ;;  %v2558_v1 = vadd.f32 %v2554_v47, %v2548_v38  ;;  %v2641_v56 = vstv %s5295_s17  ;;  %s8531_s17 = sld [smem:[#allocation2 + $0x90]] }
 0x351   : > { %v2585_v23 = vadd.f32 %v10901_v49, %v2559_v54 }
 0x352   : > { %v2550_v0 = vadd.f32 %v10900_v45, %v2524_v7  ;;  %v2584_v10 = vadd.f32 %v10902_v14, %v2558_v1  ;;  %v2561_v8 = vadd.f32 %v2557_v6, %v2551_v4  ;;  %v5682_v45 = vld [vmem:[%s5884_s5 + $0x5a] sm:$0xff] }
 0x353   : > { %v8039_v36 = vpop.permute.xlu1 %2868  ;;  %v8043_v20 = vpop.permute.xlu0 %2866  ;;  %v2611_v31 = vadd.f32 %v10903_v11, %v2585_v23  ;;  %v2643_v27 = vmul.f32 %v5682_v45, %v2641_v56  ;;  %v10906_v1 = vld [vmem:[#allocation47_spill] sm:$0xff] }
 0x354   : > { %v2560_v28 = vadd.f32 %v2556_v59, %v2550_v0  ;;  %v2610_v7 = vadd.f32 %v10904_v30, %v2584_v10  ;;  %v2587_v47 = vadd.f32 %v10905_v17, %v2561_v8  ;;  %v5683_v0 = vld [vmem:[%s5884_s5 + $0x52] sm:$0xff]  ;;  %v10907_v59 = vld [vmem:[#allocation49_spill] sm:$0xff]  ;;  %v10908_v10 = vld [vmem:[#allocation52_spill] sm:$0xff] }
 0x355   : > { %v2637_v54 = vadd.f32 %v7695_v25, %v2611_v31  ;;  %v2642_v4 = vmul.f32 %v5683_v0, %v2641_v56  ;;  %v10909_v8 = vld [vmem:[#allocation56_spill] sm:$0xff]  ;;  %v5684_v31 = vld [vmem:[%s5884_s5 + $0x6a] sm:$0xff] }
 0x356   : > { %v2586_v6 = vadd.f32 %v10906_v1, %v2560_v28  ;;  %v2636_v23 = vadd.f32 %v7704_v33, %v2610_v7  ;;  %v2613_v14 = vadd.f32 %v10907_v59, %v2587_v47  ;;  %v2645_v45 = vmul.f32 %v5684_v31, %v2641_v56  ;;  %v5685_v33 = vld [vmem:[%s5884_s5 + $0x62] sm:$0xff]  ;;  %v5688_v31 = vld [vmem:[%s5884_s5 + $0x6b] sm:$0xff] }
 0x357   : > { %v8049_v2 = vpop.permute.xlu1 %2890  ;;  %v8052_v34 = vpop.permute.xlu0 %2888  ;;  %v2647_v25 = vadd.f32 %v2643_v27, %v2637_v54  ;;  %v2644_v7 = vmul.f32 %v5685_v33, %v2641_v56 }
 0x358   : > { %v2612_v11 = vadd.f32 %v10908_v10, %v2586_v6  ;;  %v2639_v17 = vadd.f32 %v10909_v8, %v2613_v14  ;;  %v2646_v28 = vadd.f32 %v2642_v4, %v2636_v23  ;;  %v2729_v6 = vstv %s5299_s21  ;;  %v5686_v23 = vld [vmem:[%s5884_s5 + $0x5b] sm:$0xff]  ;;  %s8535_s21 = sld [smem:[#allocation2 + $0xa5]] }
 0x359   : > { %v2673_v1 = vadd.f32 %v7749_v9, %v2647_v25 }
 0x35a   : > { %v2638_v16 = vadd.f32 %v10910_v50, %v2612_v11  ;;  %v2672_v47 = vadd.f32 %v7756_v15, %v2646_v28  ;;  %v2649_v59 = vadd.f32 %v2645_v45, %v2639_v17  ;;  %v2731_v15 = vmul.f32 %v5686_v23, %v2729_v6  ;;  %v5687_v11 = vld [vmem:[%s5884_s5 + $0x53] sm:$0xff]  ;;  %v10911_v17 = vld [vmem:[#allocation57_spill] sm:$0xff] }
 0x35b   : > { %v8061_v19 = vpop.permute.xlu1 %2894  ;;  %v8064_v62 = vpop.permute.xlu0 %2892  ;;  %v2699_v54 = vadd.f32 %v7788_v40, %v2673_v1  ;;  %v2730_v40 = vmul.f32 %v5687_v11, %v2729_v6  ;;  %v2733_v45 = vmul.f32 %v5688_v31, %v2729_v6 }
 0x35c   : > { %v2648_v14 = vadd.f32 %v2644_v7, %v2638_v16  ;;  %v2698_v50 = vadd.f32 %v7791_v57, %v2672_v47  ;;  %v2675_v56 = vadd.f32 %v7766_v3, %v2649_v59  ;;  %v2817_v59 = vstv %s5303_s22  ;;  %s8543_s22 = sld [smem:[#allocation2 + $0xa2]] }
 0x35d   : > { %v2725_v9 = vadd.f32 %v7823_v26, %v2699_v54 }
 0x35e   : > { %v2674_v4 = vadd.f32 %v7773_v32, %v2648_v14  ;;  %v2724_v10 = vadd.f32 %v7827_v21, %v2698_v50  ;;  %v2701_v16 = vadd.f32 %v7802_v29, %v2675_v56  ;;  %v5689_v21 = vld [vmem:[%s5884_s5 + $0x63] sm:$0xff] }
 0x35f   : > { %v8071_v61 = vpop.permute.xlu1 %2926  ;;  %v8074_v37 = vpop.permute.xlu0 %2924  ;;  %v2735_v26 = vadd.f32 %v2731_v15, %v2725_v9  ;;  %v2732_v33 = vmul.f32 %v5689_v21, %v2729_v6  ;;  %v5690_v56 = vld [vmem:[%s5884_s5 + $0x80] sm:$0xff]  ;;  %v5691_v15 = vld [vmem:[%s5884_s5 + $0x78] sm:$0xff] }
 0x360   : > { %v2700_v25 = vadd.f32 %v10911_v17, %v2674_v4  ;;  %v2727_v3 = vadd.f32 %v7842_v24, %v2701_v16  ;;  %v2734_v32 = vadd.f32 %v2730_v40, %v2724_v10  ;;  %v2819_v9 = vmul.f32 %v5690_v56, %v2817_v59  ;;  %v5692_v40 = vld [vmem:[%s5884_s5 + $0x90] sm:$0xff] }
 0x361   : > { %v2761_v1 = vadd.f32 %v7865_v51, %v2735_v26  ;;  %v2818_v4 = vmul.f32 %v5691_v15, %v2817_v59  ;;  %v2821_v16 = vmul.f32 %v5692_v40, %v2817_v59  ;;  %v2993_v15 = vstv %s5311_s24  ;;  %s8558_s24 = sld [smem:[#allocation2 + $0xa8]] }
 0x362   : > { %v2726_v28 = vadd.f32 %v7851_v48, %v2700_v25  ;;  %v2760_v47 = vadd.f32 %v7869_v55, %v2734_v32  ;;  %v2737_v24 = vadd.f32 %v2733_v45, %v2727_v3 }
 0x363   : > { %v8079_v38 = vpop.permute.xlu1 %2930  ;;  %v8084_v49 = vpop.permute.xlu0 %2928  ;;  %v2787_v54 = vadd.f32 %v7911_v18, %v2761_v1 }
 0x364   : > { %v2736_v14 = vadd.f32 %v2732_v33, %v2726_v28  ;;  %v2786_v48 = vadd.f32 %v7914_v13, %v2760_v47  ;;  %v2763_v6 = vadd.f32 %v7888_v44, %v2737_v24  ;;  %v5694_v33 = vld [vmem:[%s5884_s5 + $0x81] sm:$0xff] }
 0x365   : > { %v2813_v51 = vadd.f32 %v7951_v58, %v2787_v54 }
 0x366   : > { %v2762_v55 = vadd.f32 %v7891_v22, %v2736_v14  ;;  %v2812_v18 = vadd.f32 %v7955_v39, %v2786_v48  ;;  %v2789_v13 = vadd.f32 %v7934_v43, %v2763_v6  ;;  %v5693_v39 = vld [vmem:[%s5884_s5 + $0x88] sm:$0xff]  ;;  %v5696_v48 = vld [vmem:[%s5884_s5 + $0x91] sm:$0xff] }
 0x367   : > { %v8091_v30 = vpop.permute.xlu1 %2952  ;;  %v8095_v53 = vpop.permute.xlu0 %2950  ;;  %v2823_v58 = vadd.f32 %v2819_v9, %v2813_v51  ;;  %v2820_v3 = vmul.f32 %v5693_v39, %v2817_v59  ;;  %v5695_v59 = vld [vmem:[%s5884_s5 + $0x79] sm:$0xff] }
 0x368   : > { %v2788_v10 = vadd.f32 %v7939_v35, %v2762_v55  ;;  %v2815_v44 = vadd.f32 %v7969_v52, %v2789_v13  ;;  %v2822_v22 = vadd.f32 %v2818_v4, %v2812_v18  ;;  %v2905_v35 = vstv %s5307_s23  ;;  %s8545_s23 = sld [smem:[#allocation2 + $0x96]] }
 0x369   : > { %v2849_v26 = vadd.f32 %v7996_v41, %v2823_v58  ;;  %v2909_v6 = vmul.f32 %v5696_v48, %v2905_v35  ;;  %v5698_v58 = vld [vmem:[%s5884_s5 + $0x82] sm:$0xff] }
 0x36a   : > { %v2814_v25 = vadd.f32 %v7972_v12, %v2788_v10  ;;  %v2848_v43 = vadd.f32 %v7999_v46, %v2822_v22  ;;  %v2825_v52 = vadd.f32 %v2821_v16, %v2815_v44  ;;  %v2907_v46 = vmul.f32 %v5694_v33, %v2905_v35 }
 0x36b   : > { %v8101_v0 = vpop.permute.xlu1 %2956  ;;  %v8104_v27 = vpop.permute.xlu0 %2954  ;;  %v2875_v45 = vadd.f32 %v8027_v42, %v2849_v26  ;;  %v2906_v42 = vmul.f32 %v5695_v59, %v2905_v35  ;;  %v5700_v26 = vld [vmem:[%s5884_s5 + $0x92] sm:$0xff] }
 0x36c   : > { %v2824_v32 = vadd.f32 %v2820_v3, %v2814_v25  ;;  %v2874_v12 = vadd.f32 %v8032_v63, %v2848_v43  ;;  %v2851_v21 = vadd.f32 %v8018_v5, %v2825_v52  ;;  %v5699_v25 = vld [vmem:[%s5884_s5 + $0x7a] sm:$0xff] }
 0x36d   : > { %v2901_v41 = vadd.f32 %v8049_v2, %v2875_v45 }
 0x36e   : > { %v2850_v1 = vadd.f32 %v8021_v60, %v2824_v32  ;;  %v2900_v47 = vadd.f32 %v8052_v34, %v2874_v12  ;;  %v2877_v54 = vadd.f32 %v8039_v36, %v2851_v21  ;;  %v5697_v34 = vld [vmem:[%s5884_s5 + $0x89] sm:$0xff]  ;;  %v3081_v32 = vstv %s5315_s25  ;;  %s8610_s25 = sld [smem:[#allocation2 + $0x86]] }
 0x36f   : > { %v8113_v8 = vpop.permute.xlu1 %2978  ;;  %v8116_v57 = vpop.permute.xlu0 %2976  ;;  %v2911_v2 = vadd.f32 %v2907_v46, %v2901_v41  ;;  %v2908_v56 = vmul.f32 %v5697_v34, %v2905_v35 }
 0x370   : > { %v2876_v14 = vadd.f32 %v8043_v20, %v2850_v1  ;;  %v2903_v5 = vadd.f32 %v8061_v19, %v2877_v54  ;;  %v2910_v60 = vadd.f32 %v2906_v42, %v2900_v47  ;;  %v5702_v1 = vld [vmem:[%s5884_s5 + $0x83] sm:$0xff] }
 0x371   : > { %v2937_v55 = vadd.f32 %v8071_v61, %v2911_v2  ;;  %v2995_v61 = vmul.f32 %v5698_v58, %v2993_v15  ;;  %v3083_v47 = vmul.f32 %v5702_v1, %v3081_v32  ;;  %v5704_v2 = vld [vmem:[%s5884_s5 + $0x93] sm:$0xff] }
 0x372   : > { %v2902_v51 = vadd.f32 %v8064_v62, %v2876_v14  ;;  %v2936_v36 = vadd.f32 %v8074_v37, %v2910_v60  ;;  %v2913_v20 = vadd.f32 %v2909_v6, %v2903_v5  ;;  %v3085_v48 = vmul.f32 %v5704_v2, %v3081_v32  ;;  %v5705_v60 = vld [vmem:[%s5884_s5 + $0x8b] sm:$0xff] }
 0x373   : > { %v8123_v7 = vpop.permute.xlu1 %2982  ;;  %v8126_v29 = vpop.permute.xlu0 %2980  ;;  %v2963_v19 = vadd.f32 %v8091_v30, %v2937_v55  ;;  %v2994_v30 = vmul.f32 %v5699_v25, %v2993_v15 }
 0x374   : > { %v2912_v4 = vadd.f32 %v2908_v56, %v2902_v51  ;;  %v2962_v13 = vadd.f32 %v8095_v53, %v2936_v36  ;;  %v2939_v62 = vadd.f32 %v8079_v38, %v2913_v20  ;;  %v3169_v20 = vstv %s5319_s26  ;;  %s8612_s26 = sld [smem:[#allocation2 + $0x98]] }
 0x375   : > { %v2989_v44 = vadd.f32 %v8113_v8, %v2963_v19  ;;  %v2997_v8 = vmul.f32 %v5700_v26, %v2993_v15 }
 0x376   : > { %v2938_v37 = vadd.f32 %v8084_v49, %v2912_v4  ;;  %v2988_v16 = vadd.f32 %v8116_v57, %v2962_v13  ;;  %v2965_v22 = vadd.f32 %v8101_v0, %v2939_v62  ;;  %v5701_v49 = vld [vmem:[%s5884_s5 + $0x8a] sm:$0xff]  ;;  %v3187_v62 = vstv %s5322_s27  ;;  %s8625_s27 = sld [smem:[#allocation2 + $0x88]] }
 0x377   : > { %v8131_v50 = vpop.permute.xlu1 %3014  ;;  %v8136_v23 = vpop.permute.xlu0 %3012  ;;  %v2999_v38 = vadd.f32 %v2995_v61, %v2989_v44  ;;  %v2996_v45 = vmul.f32 %v5701_v49, %v2993_v15 }
 0x378   : > { %v2964_v53 = vadd.f32 %v8104_v27, %v2938_v37  ;;  %v2991_v3 = vadd.f32 %v8123_v7, %v2965_v22  ;;  %v2998_v52 = vadd.f32 %v2994_v30, %v2988_v16  ;;  %v3193_v37 = vstv %s5323_s28  ;;  %s8627_s28 = sld [smem:[#allocation2 + $0x9a]] }
 0x379   : > { %v3025_v57 = vadd.f32 %v8131_v50, %v2999_v38 }
 0x37a   : > { %v2990_v35 = vadd.f32 %v8126_v29, %v2964_v53  ;;  %v3024_v0 = vadd.f32 %v8136_v23, %v2998_v52  ;;  %v3001_v12 = vadd.f32 %v2997_v8, %v2991_v3  ;;  %v5703_v23 = vld [vmem:[%s5884_s5 + $0x7b] sm:$0xff]  ;;  %s10320_s5 = smov 97  }
 0x37b   : > { %v8143_v11 = vpop.permute.xlu1 %3018  ;;  %v8147_v17 = vpop.permute.xlu0 %3016  ;;  %v3082_v42 = vmul.f32 %v5703_v23, %v3081_v32 }
 0x37c   : > { %v3000_v41 = vadd.f32 %v2996_v45, %v2990_v35  ;;  %v3027_v46 = vadd.f32 %v8143_v11, %v3001_v12 }
 0x37e   : > { %v3026_v59 = vadd.f32 %v8147_v17, %v3000_v41  ;;  %v3084_v17 = vmul.f32 %v5705_v60, %v3081_v32 }
 0x37f   : > { %v8153_v31 = vpop.permute.xlu1 %3040  ;;  %v8156_v28 = vpop.permute.xlu0 %3038 }
 0x380   : > { %v3051_v7 = vadd.f32 %v8153_v31, %v3025_v57  ;;  %v3050_v33 = vadd.f32 %v8156_v28, %v3024_v0 }
 0x383   : > { %v8165_v24 = vpop.permute.xlu1 %3044  ;;  %v8168_v63 = vpop.permute.xlu0 %3042 }
 0x384   : > { %v3053_v31 = vadd.f32 %v8165_v24, %v3027_v46  ;;  %v3052_v5 = vadd.f32 %v8168_v63, %v3026_v59 }
 0x387   : > { %v3067_v9 = vpop.permute.xlu1 %3066  ;;  %v3065_v18 = vpop.permute.xlu0 %3064 }
 0x388   : > { %v3077_v29 = vadd.f32 %v3067_v9, %v3051_v7  ;;  %v3076_v50 = vadd.f32 %v3065_v18, %v3050_v33 }
 0x38a   : > { %v3087_v11 = vadd.f32 %v3083_v47, %v3077_v29  ;;  %v3086_v51 = vadd.f32 %v3082_v42, %v3076_v50 }
 0x38b   : > { %v3071_v10 = vpop.permute.xlu1 %3070  ;;  %v3069_v40 = vpop.permute.xlu0 %3068 }
 0x38c   : > { %v3079_v28 = vadd.f32 %v3071_v10, %v3053_v31  ;;  %v3078_v6 = vadd.f32 %v3069_v40, %v3052_v5 }
 0x38e   : > { %v3089_v18 = vadd.f32 %v3085_v48, %v3079_v28  ;;  %v3088_v24 = vadd.f32 %v3084_v17, %v3078_v6 }
 0x38f   : > { %v3103_v39 = vpop.permute.xlu1 %3102  ;;  %v3101_v43 = vpop.permute.xlu0 %3100 }
 0x390   : > { %v3113_v56 = vadd.f32 %v3103_v39, %v3087_v11  ;;  %v3112_v55 = vadd.f32 %v3101_v43, %v3086_v51 }
 0x393   : > { %v3107_v27 = vpop.permute.xlu1 %3106  ;;  %v3105_v21 = vpop.permute.xlu0 %3104 }
 0x394   : > { %v3115_v19 = vadd.f32 %v3107_v27, %v3089_v18  ;;  %v3114_v10 = vadd.f32 %v3105_v21, %v3088_v24 }
 0x397   : > { %v3129_v54 = vpop.permute.xlu1 %3128  ;;  %v3127_v14 = vpop.permute.xlu0 %3126 }
 0x398   : > { %v3139_v36 = vadd.f32 %v3129_v54, %v3113_v56  ;;  %v3138_v15 = vadd.f32 %v3127_v14, %v3112_v55  ;;  %v10916_v54 = vld [vmem:[#allocation54_spill] sm:$0xff] }
 0x39b   : > { %v3133_v34 = vpop.permute.xlu1 %3132  ;;  %v3131_v9 = vpop.permute.xlu0 %3130 }
 0x39c   : > { %v3141_v58 = vadd.f32 %v3133_v34, %v3115_v19  ;;  %v3140_v40 = vadd.f32 %v3131_v9, %v3114_v10 }
 0x39f   : > { %v3155_v63 = vpop.permute.xlu1 %3154  ;;  %v3153_v13 = vpop.permute.xlu0 %3152 }
 0x3a0   : > { %v3165_v4 = vadd.f32 %v3155_v63, %v3139_v36  ;;  %v3164_v44 = vadd.f32 %v3153_v13, %v3138_v15  ;;  %v10917_v63 = vld [vmem:[#allocation61_spill] sm:$0xff]  ;;  %v10918_v13 = vld [vmem:[#allocation64_spill] sm:$0xff] }
 0x3a2   : > { %v8203_v61 = vadd.f32 %v3169_v20, %v3165_v4  ;;  %v8205_v16 = vadd.f32 %v3169_v20, %v3164_v44 }
 0x3a3   : > { %v3159_v25 = vpop.permute.xlu1 %3158  ;;  %v3157_v53 = vpop.permute.xlu0 %3156 }
 0x3a4   : > { %10912 = vst [vmem:[#allocation71_spill] sm:$0xff] %v8203_v61  ;;  %10913 = vst [vmem:[#allocation70_spill] sm:$0xff] %v8205_v16  ;;  %v3189_v30 = vmul.f32 %v3187_v62, %v8203_v61  ;;  %v3167_v22 = vadd.f32 %v3159_v25, %v3141_v58  ;;  %v3188_v39 = vmul.f32 %v3187_v62, %v8205_v16  ;;  %v10921_v25 = vld [vmem:[#allocation59_spill] sm:$0xff] }
 0x3a5   : > { %v3166_v3 = vadd.f32 %v3157_v53, %v3140_v40  ;;  %v10920_v40 = vld [vmem:[#allocation65_spill] sm:$0xff]  ;;  %v10922_v53 = vld [vmem:[#allocation58_spill] sm:$0xff] }
 0x3a6   : > { %v3195_v38 = vadd.f32 %v3193_v37, %v3189_v30  ;;  %v8209_v26 = vadd.f32 %v3169_v20, %v3167_v22  ;;  %v3194_v8 = vadd.f32 %v3193_v37, %v3188_v39 }
 0x3a7   : > { %v8211_v43 = vadd.f32 %v3169_v20, %v3166_v3  ;;  %v3253_v6 = vpop.permute.xlu1 %3252  ;;  %v3250_v60 = vpop.permute.xlu0 %3249 }
 0x3a8   : > { %10914 = vst [vmem:[#allocation72_spill] sm:$0xff] %v8209_v26  ;;  %v3224_v35 = vmul.f32 1.442695, %v3195_v38  ;;  %v3191_v52 = vmul.f32 %v3187_v62, %v8209_v26  ;;  %v3222_v49 = vmul.f32 1.442695, %v3194_v8  ;;  %vm3219_vm6 = vcmp.gt.f32.partialorder %v3195_v38, 0.0 }
 0x3a9   : > { %10915 = vst [vmem:[#allocation75_spill] sm:$0xff] %v8211_v43  ;;  %v3190_v45 = vmul.f32 %v3187_v62, %v8211_v43  ;;  %vm3218_vm7 = vcmp.gt.f32.partialorder %v3194_v8, 0.0  ;;  %v3254_v19 = vsel %vm3248_vm10, %v3253_v6, %v10917_v63  ;;  %v3251_v10 = vsel %vm3248_vm10, %v3250_v60, %v10918_v13  ;;  %v10919_v62 = vld [vmem:[#allocation67_spill] sm:$0xff] }
 0x3aa   : > { %5514 = vpow2.f32 %v3224_v35  ;;  %v3197_v57 = vadd.f32 %v3193_v37, %v3191_v52  ;;  %v10924_v52 = vld [vmem:[#allocation63_spill] sm:$0xff] }
 0x3ab   : > { %5516 = vpow2.f32 %v3222_v49  ;;  %v3196_v0 = vadd.f32 %v3193_v37, %v3190_v45  ;;  %v3259_v55 = vpop.permute.xlu1 %3258  ;;  %v3256_v36 = vpop.permute.xlu0 %3255  ;;  %v10925_v45 = vld [vmem:[#allocation68_spill] sm:$0xff] }
 0x3ac   : > { %v3228_v32 = vmul.f32 1.442695, %v3197_v57  ;;  %vm3221_vm8 = vcmp.gt.f32.partialorder %v3197_v57, 0.0  ;;  %v3260_v44 = vsel %vm3248_vm10, %v3259_v55, %v10919_v62  ;;  %v3257_v37 = vsel %vm3248_vm10, %v3256_v36, %v10920_v40 }
 0x3ad   : > { %v3226_v27 = vmul.f32 1.442695, %v3196_v0  ;;  %vm3220_vm9 = vcmp.gt.f32.partialorder %v3196_v0, 0.0 }
 0x3ae   : > { %5518 = vpow2.f32 %v3228_v32  ;;  %v10926_v32 = vld [vmem:[#allocation62_spill] sm:$0xff] }
 0x3af   : > { %5520 = vpow2.f32 %v3226_v27  ;;  %v3347_v15 = vpop.permute.xlu1 %3346  ;;  %v3344_v4 = vpop.permute.xlu0 %3343 }
 0x3b0   : > { %v3348_v30 = vsel %vm3248_vm10, %v3347_v15, %v10921_v25  ;;  %v3345_v39 = vsel %vm3248_vm10, %v3344_v4, %v10922_v53 }
 0x3b3   : > { %v3353_v58 = vpop.permute.xlu1 %3352  ;;  %v3350_v22 = vpop.permute.xlu0 %3349 }
 0x3b4   : > { %v5515_v12 = vpop.eup %5514  ;;  %v3351_v49 = vsel %vm3248_vm10, %v3350_v22, %v10924_v52 }
 0x3b5   : > { %v5517_v7 = vpop.eup %5516  ;;  %v5329_v21 = vadd.f32 -1.0, %v5515_v12 }
 0x3b6   : > { %v5328_v41 = vadd.f32 -1.0, %v5517_v7  ;;  %v10927_v7 = vld [vmem:[#allocation69_spill] sm:$0xff] }
 0x3b7   : > { %v8215_v33 = vsel %vm3219_vm6, %v3195_v38, %v5329_v21  ;;  %v3446_v3 = vpop.permute.xlu1 %3445  ;;  %v10923_v38 = vld [vmem:[#allocation60_spill] sm:$0xff]  ;;  %v3443_v35 = vpop.permute.xlu0 %3442 }
 0x3b8   : > { %v5519_v46 = vpop.eup %5518  ;;  %v8217_v29 = vsel %vm3218_vm7, %v3194_v8, %v5328_v41  ;;  %v3537_v1 = vrot.slane %v8215_v33, 7  ;;  %v3729_v17 = vrot.slane %v8215_v33, 1  ;;  %v3354_v8 = vsel %vm3248_vm10, %v3353_v58, %v10923_v38  ;;  %v10928_v41 = vld [vmem:[#allocation66_spill] sm:$0xff] }
 0x3b9   : > { %v5521_v47 = vpop.eup %5520  ;;  %v5331_v59 = vadd.f32 -1.0, %v5519_v46  ;;  %v3536_v50 = vrot.slane %v8217_v29, 7  ;;  %v3728_v34 = vrot.slane %v8217_v29, 1  ;;  %v3444_v27 = vsel %vm3248_vm10, %v3443_v35, %v10926_v32 }
 0x3ba   : > { %v5330_v23 = vadd.f32 -1.0, %v5521_v47 }
 0x3bb   : > { %v8221_v42 = vsel %vm3221_vm8, %v3197_v57, %v5331_v59  ;;  %v8225_v31 = vsel %vm3243_vm4, %v3536_v50, %v3537_v1  ;;  %v8271_v18 = vsel %vm3437_vm5, %v3728_v34, %v3729_v17  ;;  %v3447_v57 = vsel %vm3248_vm10, %v3446_v3, %v10925_v45  ;;  %v3449_v12 = vpop.permute.xlu0 %3448 }
 0x3bc   : > { %v8227_v14 = vsel %vm3220_vm9, %v3196_v0, %v5330_v23  ;;  %3547 = vrot.lane.b32.xlu1 %v8225_v31, %s10322_s16  ;;  %v3539_v5 = vrot.slane %v8221_v42, 7  ;;  %v3731_v9 = vrot.slane %v8221_v42, 1  ;;  %v3452_v0 = vpop.permute.xlu1 %3451  ;;  %v3450_v46 = vsel %vm3248_vm10, %v3449_v12, %v10928_v41 }
 0x3bd   : > { %v3538_v28 = vrot.slane %v8227_v14, 7  ;;  %v3730_v51 = vrot.slane %v8227_v14, 1  ;;  %v3453_v21 = vsel %vm3248_vm10, %v3452_v0, %v10927_v7 }
 0x3be   : > { %v8235_v11 = vsel %vm3243_vm4, %v3539_v5, %v3536_v50  ;;  %v8277_v24 = vsel %vm3437_vm5, %v3731_v9, %v3728_v34 }
 0x3bf   : > { %3544 = vrot.lane.b32.xlu0 %v8235_v11, %s10322_s16  ;;  %v8241_v2 = vsel %vm3243_vm4, %v3538_v28, %v3539_v5  ;;  %v8247_v48 = vsel %vm3243_vm4, %v3537_v1, %v3538_v28  ;;  %v8264_v56 = vsel %vm3437_vm5, %v3729_v17, %v3730_v51  ;;  %v8283_v20 = vsel %vm3437_vm5, %v3730_v51, %v3731_v9 }
 0x3c0   : > { %3553 = vrot.lane.b32.xlu1 %v8241_v2, %s10322_s16  ;;  %v10929_v17 = vlaneseq  ;;  %v8342_v9 = vadd.s32 4294967295, %v10916_v54 }
 0x3c2   : > { %v8338_v34 = vand.u32 127, %v10929_v17  ;;  %vm167_vm11 = vcmp.ge.s32.totalorder %v8342_v9, 0 }
 0x3c3   : > { %3550 = vrot.lane.b32.xlu0 %v8247_v48, %s10322_s16 }
 0x3c4   : > { %3641 = vrot.lane.b32.xlu1 %v8215_v33, %s10322_s16  ;;  %10930 = vst [vmem:[#allocation73_spill] sm:$0xff] %v8338_v34  ;;  %vm195_vm3 = vcmp.lt.s32.totalorder %v8338_v34, 32 }
 0x3c5   : > { %vm8516_vm6 = vmand %vm167_vm11, %vm195_vm3 }
 0x3c7   : > { %3638 = vrot.lane.b32.xlu0 %v8217_v29, %s10322_s16 }
 0x3c8   : > { %3647 = vrot.lane.b32.xlu1 %v8221_v42, %s10322_s16 }
 0x3cb   : > { %3644 = vrot.lane.b32.xlu0 %v8227_v14, %s10322_s16 }
 0x3cc   : > { %3739 = vrot.lane.b32.xlu1 %v8264_v56, %s10322_s16 }
 0x3cf   : > { %3736 = vrot.lane.b32.xlu0 %v8271_v18, %s10322_s16 }
 0x3d0   : > { %3745 = vrot.lane.b32.xlu1 %v8277_v24, %s10322_s16 }
 0x3d3   : > { %3742 = vrot.lane.b32.xlu0 %v8283_v20, %s10322_s16 }
 0x3d4   : > { %3263 = vrot.lane.b32.xlu1 %v3254_v19, %s10322_s16  ;;  %v8347_v19 = vadd.s32 4294967295, %v8338_v34 }
 0x3d6   : > { %vm180_vm12 = vcmp.ge.s32.totalorder %v8347_v19, 0  ;;  %vm185_vm13 = vcmp.lt.s32.totalorder %v8347_v19, 32 }
 0x3d7   : > { %3261 = vrot.lane.b32.xlu0 %v3251_v10, %s10322_s16  ;;  %vm181_vm14 = vmand %vm167_vm11, %vm180_vm12 }
 0x3d8   : > { %3267 = vrot.lane.b32.xlu1 %v3260_v44, %s10322_s16  ;;  %vm8367_vm15 = vmand %vm181_vm14, %vm185_vm13 }
 0x3d9   : > { %vm8738_vm8 = vmand %vm180_vm12, %vm185_vm13 }
 0x3db   : > { %3265 = vrot.lane.b32.xlu0 %v3257_v37, %s10322_s16 }
 0x3dc   : > { %3357 = vrot.lane.b32.xlu1 %v3348_v30, %s10322_s16  ;;  %v10931_v30 = vmov 0 }
 0x3dd   : > { %v10932_v30 = vsel %vm8367_vm15, 4294967295, %v10931_v30 }
 0x3de   : > { %10933 = vst [vmem:[#allocation76_spill] sm:$0xff] %v10932_v30 }
 0x3df   : > { %3355 = vrot.lane.b32.xlu0 %v3345_v39, %s10322_s16 }
 0x3e0   : > { %3361 = vrot.lane.b32.xlu1 %v3354_v8, %s10322_s16 }
 0x3e3   : > { %3359 = vrot.lane.b32.xlu0 %v3351_v49, %s10322_s16 }
 0x3e4   : > { %3456 = vrot.lane.b32.xlu1 %v3447_v57, %s10322_s16 }
 0x3e7   : > { %3454 = vrot.lane.b32.xlu0 %v3444_v27, %s10322_s16 }
 0x3e8   : > { %3460 = vrot.lane.b32.xlu1 %v3453_v21, %s10322_s16 }
 0x3eb   : > { %3458 = vrot.lane.b32.xlu0 %v3450_v46, %s10322_s16 }
 0x42e   : > { %v3548_v1 = vpop.permute.xlu1 %3547 }
 0x42f   : > { %v3549_v47 = vsel %vm3248_vm10, %v3548_v1, %v8225_v31 }
 0x430   : > { %3558 = vrot.lane.b32.xlu1 %v3549_v47, %s10322_s16 }
 0x431   : > { %v3545_v59 = vpop.permute.xlu0 %3544 }
 0x432   : > { %v3546_v50 = vsel %vm3248_vm10, %v3545_v59, %v8235_v11  ;;  %v3554_v23 = vpop.permute.xlu1 %3553 }
 0x433   : > { %v3555_v5 = vsel %vm3248_vm10, %v3554_v23, %v8241_v2  ;;  %3556 = vrot.lane.b32.xlu0 %v3546_v50, %s10322_s16 }
 0x434   : > { %3562 = vrot.lane.b32.xlu1 %v3555_v5, %s10322_s16 }
 0x435   : > { %v3551_v28 = vpop.permute.xlu0 %3550 }
 0x436   : > { %v3552_v6 = vsel %vm3248_vm10, %v3551_v28, %v8247_v48  ;;  %v3642_v51 = vpop.permute.xlu1 %3641  ;;  %v160_v28 = vadd.s32 24, %v10916_v54 }
 0x437   : > { %v3643_v60 = vsel %vm3248_vm10, %v3642_v51, %v8215_v33  ;;  %3560 = vrot.lane.b32.xlu0 %v3552_v6, %s10322_s16 }
 0x438   : > { %3652 = vrot.lane.b32.xlu1 %v3643_v60, %s10322_s16  ;;  %v8407_v17 = vadd.s32 1, %v160_v28 }
 0x439   : > { %v3639_v55 = vpop.permute.xlu0 %3638 }
 0x43a   : > { %v3640_v36 = vsel %vm3248_vm10, %v3639_v55, %v8217_v29  ;;  %v3648_v15 = vpop.permute.xlu1 %3647  ;;  %vm250_vm0 = vcmp.lt.s32.totalorder %v8407_v17, 32 }
 0x43b   : > { %v3649_v4 = vsel %vm3248_vm10, %v3648_v15, %v8221_v42  ;;  %3650 = vrot.lane.b32.xlu0 %v3640_v36, %s10322_s16  ;;  %vm258_vm1 = vmand %vm250_vm0, %vm180_vm12 }
 0x43c   : > { %3656 = vrot.lane.b32.xlu1 %v3649_v4, %s10322_s16  ;;  %vm8420_vm2 = vmand %vm258_vm1, %vm185_vm13 }
 0x43d   : > { %v3645_v10 = vpop.permute.xlu0 %3644  ;;  %vm8567_vm7 = vmand %vm250_vm0, %vm195_vm3 }
 0x43e   : > { %v3646_v44 = vsel %vm3248_vm10, %v3645_v10, %v8227_v14  ;;  %v3740_v58 = vpop.permute.xlu1 %3739  ;;  %v3499_v16 = vsel %vm8567_vm7, %v10927_v7, 0.0 }
 0x43f   : > { %v3741_v37 = vsel %vm3248_vm10, %v3740_v58, %v8264_v56  ;;  %3654 = vrot.lane.b32.xlu0 %v3646_v44, %s10322_s16 }
 0x440   : > { %3750 = vrot.lane.b32.xlu1 %v3741_v37, %s10322_s16 }
 0x441   : > { %v3737_v22 = vpop.permute.xlu0 %3736 }
 0x442   : > { %v3738_v39 = vsel %vm3248_vm10, %v3737_v22, %v8271_v18  ;;  %v3746_v3 = vpop.permute.xlu1 %3745 }
 0x443   : > { %v3747_v8 = vsel %vm3248_vm10, %v3746_v3, %v8277_v24  ;;  %3748 = vrot.lane.b32.xlu0 %v3738_v39, %s10322_s16 }
 0x444   : > { %3754 = vrot.lane.b32.xlu1 %v3747_v8, %s10322_s16 }
 0x445   : > { %v3743_v35 = vpop.permute.xlu0 %3742 }
 0x446   : > { %v3744_v49 = vsel %vm3248_vm10, %v3743_v35, %v8283_v20  ;;  %v3264_v57 = vpop.permute.xlu1 %3263 }
 0x447   : > { %v3270_v0 = vsel %vm3248_vm10, %v3264_v57, %v10917_v63  ;;  %3752 = vrot.lane.b32.xlu0 %v3744_v49, %s10322_s16  ;;  %s8754_s16 = sld [smem:[#allocation2 + $0x94]] }
 0x448   : > { %3279 = vrot.lane.b32.xlu1 %v3270_v0, %s10320_s5 }
 0x449   : > { %v3262_v27 = vpop.permute.xlu0 %3261 }
 0x44a   : > { %v3269_v12 = vsel %vm3248_vm10, %v3262_v27, %v10918_v13  ;;  %v3268_v21 = vpop.permute.xlu1 %3267 }
 0x44b   : > { %v3272_v46 = vsel %vm3248_vm10, %v3268_v21, %v10919_v62  ;;  %3277 = vrot.lane.b32.xlu0 %v3269_v12, %s10320_s5 }
 0x44c   : > { %3283 = vrot.lane.b32.xlu1 %v3272_v46, %s10320_s5 }
 0x44d   : > { %v3266_v1 = vpop.permute.xlu0 %3265 }
 0x44e   : > { %v3271_v47 = vsel %vm3248_vm10, %v3266_v1, %v10920_v40  ;;  %v3358_v59 = vpop.permute.xlu1 %3357 }
 0x44f   : > { %3281 = vrot.lane.b32.xlu0 %v3271_v47, %s10320_s5  ;;  %v3364_v23 = vsel %vm3248_vm10, %v3358_v59, %v10921_v25 }
 0x450   : > { %3319 = vrot.lane.b32.xlu1 %v3270_v0, %s10318_s6 }
 0x451   : > { %v3356_v50 = vpop.permute.xlu0 %3355 }
 0x452   : > { %v3362_v5 = vpop.permute.xlu1 %3361  ;;  %v3363_v6 = vsel %vm3248_vm10, %v3356_v50, %v10922_v53 }
 0x453   : > { %3317 = vrot.lane.b32.xlu0 %v3269_v12, %s10318_s6  ;;  %v3366_v51 = vsel %vm3248_vm10, %v3362_v5, %v10923_v38 }
 0x454   : > { %3323 = vrot.lane.b32.xlu1 %v3272_v46, %s10318_s6 }
 0x455   : > { %v3360_v60 = vpop.permute.xlu0 %3359 }
 0x456   : > { %v3365_v55 = vsel %vm3248_vm10, %v3360_v60, %v10924_v52  ;;  %v3457_v36 = vpop.permute.xlu1 %3456 }
 0x457   : > { %3321 = vrot.lane.b32.xlu0 %v3271_v47, %s10318_s6  ;;  %v3463_v10 = vsel %vm3248_vm10, %v3457_v36, %v10925_v45 }
 0x458   : > { %3373 = vrot.lane.b32.xlu1 %v3364_v23, %s10320_s5 }
 0x459   : > { %v3455_v4 = vpop.permute.xlu0 %3454 }
 0x45a   : > { %v3461_v44 = vpop.permute.xlu1 %3460  ;;  %v3462_v58 = vsel %vm3248_vm10, %v3455_v4, %v10926_v32 }
 0x45b   : > { %3371 = vrot.lane.b32.xlu0 %v3363_v6, %s10320_s5  ;;  %v3465_v37 = vsel %vm3248_vm10, %v3461_v44, %v10927_v7 }
 0x45c   : > { %3377 = vrot.lane.b32.xlu1 %v3366_v51, %s10320_s5 }
 0x45d   : > { %v3459_v22 = vpop.permute.xlu0 %3458 }
 0x45e   : > { %v3464_v39 = vsel %vm3248_vm10, %v3459_v22, %v10928_v41 }
 0x45f   : > { %3375 = vrot.lane.b32.xlu0 %v3365_v55, %s10320_s5 }
 0x460   : > { %3409 = vrot.lane.b32.xlu1 %v3364_v23, %s10318_s6 }
 0x463   : > { %3407 = vrot.lane.b32.xlu0 %v3363_v6, %s10318_s6 }
 0x464   : > { %3413 = vrot.lane.b32.xlu1 %v3366_v51, %s10318_s6 }
 0x467   : > { %3411 = vrot.lane.b32.xlu0 %v3365_v55, %s10318_s6 }
 0x468   : > { %3472 = vrot.lane.b32.xlu1 %v3463_v10, %s10320_s5 }
 0x46b   : > { %3470 = vrot.lane.b32.xlu0 %v3462_v58, %s10320_s5 }
 0x46c   : > { %3476 = vrot.lane.b32.xlu1 %v3465_v37, %s10320_s5 }
 0x46f   : > { %3474 = vrot.lane.b32.xlu0 %v3464_v39, %s10320_s5 }
 0x470   : > { %3512 = vrot.lane.b32.xlu1 %v3463_v10, %s10318_s6 }
 0x473   : > { %3510 = vrot.lane.b32.xlu0 %v3462_v58, %s10318_s6 }
 0x474   : > { %3516 = vrot.lane.b32.xlu1 %v3465_v37, %s10318_s6 }
 0x477   : > { %3514 = vrot.lane.b32.xlu0 %v3464_v39, %s10318_s6 }
 0x4a2   : > { %v3559_v3 = vpop.permute.xlu1 %3558 }
 0x4a3   : > { %v3565_v8 = vsel %vm3248_vm10, %v3559_v3, %v8225_v31 }
 0x4a4   : > { %3574 = vrot.lane.b32.xlu1 %v3565_v8, %s10320_s5 }
 0x4a5   : > { %v3557_v35 = vpop.permute.xlu0 %3556 }
 0x4a6   : > { %v3564_v49 = vsel %vm3248_vm10, %v3557_v35, %v8235_v11  ;;  %v3563_v57 = vpop.permute.xlu1 %3562 }
 0x4a7   : > { %v3567_v0 = vsel %vm3248_vm10, %v3563_v57, %v8241_v2  ;;  %3572 = vrot.lane.b32.xlu0 %v3564_v49, %s10320_s5 }
 0x4a8   : > { %3578 = vrot.lane.b32.xlu1 %v3567_v0, %s10320_s5 }
 0x4a9   : > { %v3561_v27 = vpop.permute.xlu0 %3560 }
 0x4aa   : > { %v3566_v12 = vsel %vm3248_vm10, %v3561_v27, %v8247_v48  ;;  %v3653_v21 = vpop.permute.xlu1 %3652  ;;  %v3397_v27 = vstv %s5336_s29  ;;  %s8643_s29 = sld [smem:[#allocation2 + $0x89]] }
 0x4ab   : > { %3576 = vrot.lane.b32.xlu0 %v3566_v12, %s10320_s5  ;;  %v3659_v1 = vsel %vm3248_vm10, %v3653_v21, %v8215_v33  ;;  %v3500_v21 = vstv %s5339_s30  ;;  %v8605_v54 = vmul.f32 %v3397_v27, %v10922_v53  ;;  %v8615_v7 = vmul.f32 %v3397_v27, %v10923_v38  ;;  %s8645_s30 = sld [smem:[#allocation2 + $0x9b]] }
 0x4ac   : > { %3614 = vrot.lane.b32.xlu1 %v3565_v8, %s10318_s6 }
 0x4ad   : > { %v3651_v46 = vpop.permute.xlu0 %3650 }
 0x4ae   : > { %v3657_v47 = vpop.permute.xlu1 %3656  ;;  %v3658_v59 = vsel %vm3248_vm10, %v3651_v46, %v8217_v29  ;;  %v3888_v46 = vstv %s5357_s3  ;;  %s8655_s3 = sld [smem:[#allocation2 + $0x8b]] }
 0x4af   : > { %3612 = vrot.lane.b32.xlu0 %v3564_v49, %s10318_s6  ;;  %v3661_v50 = vsel %vm3248_vm10, %v3657_v47, %v8221_v42  ;;  %v3497_v47 = vsel %vm195_vm3, %v10925_v45, 0.0  ;;  %v3858_v45 = vstv %s5354_s7  ;;  %s8669_s7 = sld [smem:[#allocation2 + $0x9e]] }
 0x4b0   : > { %3618 = vrot.lane.b32.xlu1 %v3567_v0, %s10318_s6  ;;  %v10936_v0 = vmov 0 }
 0x4b1   : > { %v3655_v23 = vpop.permute.xlu0 %3654  ;;  %v10937_v0 = vsel %vm8516_vm6, 4294967295, %v10936_v0 }
 0x4b2   : > { %v3660_v5 = vsel %vm3248_vm10, %v3655_v23, %v8227_v14  ;;  %v3751_v28 = vpop.permute.xlu1 %3750  ;;  %10938 = vst [vmem:[#allocation79_spill] sm:$0xff] %v10937_v0 }
 0x4b3   : > { %3616 = vrot.lane.b32.xlu0 %v3566_v12, %s10318_s6  ;;  %v3757_v51 = vsel %vm3248_vm10, %v3751_v28, %v8264_v56  ;;  %v3496_v12 = vsel %vm195_vm3, %v10926_v32, 0.0  ;;  %v3303_v32 = vsel %vm8516_vm6, %v10918_v13, 0.0  ;;  %v3305_v28 = vsel %vm195_vm3, %v10920_v40, 0.0 }
 0x4b4   : > { %3668 = vrot.lane.b32.xlu1 %v3659_v1, %s10320_s5  ;;  %v3306_v13 = vsel %vm195_vm3, %v10919_v62, 0.0  ;;  %v8600_v61 = vmul.f32 %v3858_v45, %v3305_v28 }
 0x4b5   : > { %v3749_v6 = vpop.permute.xlu0 %3748 }
 0x4b6   : > { %v3755_v60 = vpop.permute.xlu1 %3754  ;;  %v3756_v55 = vsel %vm3248_vm10, %v3749_v6, %v8271_v18  ;;  %v8556_v6 = vmul.f32 %v3500_v21, %v3496_v12 }
 0x4b7   : > { %3666 = vrot.lane.b32.xlu0 %v3658_v59, %s10320_s5  ;;  %v3759_v36 = vsel %vm3248_vm10, %v3755_v60, %v8277_v24  ;;  %v8573_v60 = vmul.f32 %v3500_v21, %v3497_v47 }
 0x4b8   : > { %3672 = vrot.lane.b32.xlu1 %v3661_v50, %s10320_s5  ;;  %10939 = vst [vmem:[#allocation77_spill] sm:$0xff] %v8556_v6  ;;  %v3790_v6 = vsel %vm195_vm3, %v8271_v18, 0.0 }
 0x4b9   : > { %v3753_v4 = vpop.permute.xlu0 %3752 }
 0x4ba   : > { %v3758_v10 = vsel %vm3248_vm10, %v3753_v4, %v8283_v20  ;;  %v8489_v44 = vpop.permute.xlu1 %3279 }
 0x4bb   : > { %3670 = vrot.lane.b32.xlu0 %v3660_v5, %s10320_s5 }
 0x4bc   : > { %3704 = vrot.lane.b32.xlu1 %v3659_v1, %s10318_s6  ;;  %v3918_v1 = vstv %s5360_s8  ;;  %s8657_s8 = sld [smem:[#allocation2 + $0x9d]] }
 0x4bd   : > { %v8492_v58 = vpop.permute.xlu0 %3277  ;;  %v8571_v40 = vmul.f32 %v3918_v1, %v3496_v12  ;;  %v8575_v62 = vmul.f32 %v3918_v1, %v3497_v47  ;;  %v8589_v12 = vmul.f32 %v3858_v45, %v3303_v32  ;;  %v8593_v47 = vmul.f32 %v3858_v45, %v3306_v13 }
 0x4be   : > { %v8495_v37 = vpop.permute.xlu1 %3283 }
 0x4bf   : > { %3702 = vrot.lane.b32.xlu0 %v3658_v59, %s10318_s6  ;;  %v3498_v59 = vsel %vm195_vm3, %v10928_v41, 0.0  ;;  %v8548_v41 = vmul.f32 %v3397_v27, %v10921_v25  ;;  %10943 = vst [vmem:[#allocation74_spill] sm:$0xff] %v8571_v40  ;;  %10944 = vst [vmem:[#allocation81_spill] sm:$0xff] %v8575_v62  ;;  %v3948_v40 = vstv %s8543_s22  ;;  %s8711_s22 = sld [smem:[#allocation2 + $0xa1]] }
 0x4c0   : > { %3708 = vrot.lane.b32.xlu1 %v3661_v50, %s10318_s6  ;;  %v3307_v50 = vstv %s5333_s4  ;;  %s8667_s4 = sld [smem:[#allocation2 + $0x8c]] }
 0x4c1   : > { %v8497_v22 = vpop.permute.xlu0 %3281  ;;  %v8587_v43 = vmul.f32 %v3307_v50, %v3303_v32  ;;  %v8591_v26 = vmul.f32 %v3307_v50, %v3306_v13  ;;  %v8608_v32 = vmul.f32 %v3888_v46, %v10922_v53  ;;  %v3602_v13 = vstv %s8531_s17  ;;  %s8693_s17 = sld [smem:[#allocation2 + $0xa0]] }
 0x4c2   : > { %v8499_v39 = vpop.permute.xlu1 %3319  ;;  %v8630_v53 = vmul.f32 %v3888_v46, %v10924_v52 }
 0x4c3   : > { %3706 = vrot.lane.b32.xlu0 %v3660_v5, %s10318_s6  ;;  %v3304_v5 = vsel %vm195_vm3, %v10917_v63, 0.0  ;;  %v8561_v63 = vmul.f32 %v3888_v46, %v10921_v25  ;;  %v8581_v25 = vmul.f32 %v3918_v1, %v3498_v59 }
 0x4c4   : > { %3766 = vrot.lane.b32.xlu1 %v3757_v51, %s10320_s5  ;;  %v8583_v4 = vmul.f32 %v3307_v50, %v3304_v5 }
 0x4c5   : > { %v8501_v3 = vpop.permute.xlu0 %3317  ;;  %10946 = vst [vmem:[#allocation83_spill] sm:$0xff] %v8581_v25  ;;  %v8632_v25 = vmul.f32 %v3500_v21, %v3499_v16 }
 0x4c6   : > { %v8503_v8 = vpop.permute.xlu1 %3323 }
 0x4c7   : > { %3764 = vrot.lane.b32.xlu0 %v3756_v55, %s10320_s5  ;;  %10947 = vst [vmem:[#allocation82_spill] sm:$0xff] %v8632_v25 }
 0x4c8   : > { %3770 = vrot.lane.b32.xlu1 %v3759_v36, %s10320_s5 }
 0x4c9   : > { %v8505_v35 = vpop.permute.xlu0 %3321 }
 0x4ca   : > { %v8507_v49 = vpop.permute.xlu1 %3373 }
 0x4cb   : > { %3768 = vrot.lane.b32.xlu0 %v3758_v10, %s10320_s5  ;;  %s8746_s5 = sld [smem:[#allocation2 + $0xa4]] }
 0x4cc   : > { %3806 = vrot.lane.b32.xlu1 %v3757_v51, %s10318_s6  ;;  %v10940_v51 = vmov 0 }
 0x4cd   : > { %v8510_v57 = vpop.permute.xlu0 %3371  ;;  %v10941_v51 = vsel %vm8567_vm7, 4294967295, %v10940_v51 }
 0x4ce   : > { %v8533_v23 = vpop.permute.xlu1 %3377  ;;  %10942 = vst [vmem:[#allocation80_spill] sm:$0xff] %v10941_v51 }
 0x4cf   : > { %3804 = vrot.lane.b32.xlu0 %v3756_v55, %s10318_s6  ;;  %v8577_v55 = vmul.f32 %v3500_v21, %v3498_v59  ;;  %v8598_v59 = vmul.f32 %v3307_v50, %v3305_v28  ;;  %v8618_v50 = vmul.f32 %v3888_v46, %v10923_v38  ;;  %v3692_v28 = vstv %s8523_s14  ;;  %s8691_s14 = sld [smem:[#allocation2 + $0x8e]] }
 0x4d0   : > { %3810 = vrot.lane.b32.xlu1 %v3759_v36, %s10318_s6  ;;  %v3599_v38 = vsel %vm195_vm3, %v8225_v31, 0.0  ;;  %v8653_v21 = vstv %s8558_s24  ;;  %v8659_v31 = vmul.f32 %v3918_v1, %v3499_v16  ;;  %v8662_v18 = vmul.f32 %v3692_v28, %v8215_v33  ;;  %s8722_s24 = sld [smem:[#allocation2 + $0xa3]] }
 0x4d1   : > { %10945 = vst [vmem:[#allocation78_spill] sm:$0xff] %v8577_v55  ;;  %v8579_v36 = vpop.permute.xlu0 %3375  ;;  %v3978_v55 = vstv %s8535_s21  ;;  %10948 = vst [vmem:[#allocation84_spill] sm:$0xff] %v8653_v21  ;;  %v3601_v46 = vsel %vm195_vm3, %v8241_v2, 0.0  ;;  %v8675_v0 = vmul.f32 %v3692_v28, %v8217_v29  ;;  %v8680_v1 = vmul.f32 %v3602_v13, %v3599_v38  ;;  %s8709_s21 = sld [smem:[#allocation2 + $0x8f]] }
 0x4d2   : > { %10949 = vst [vmem:[#allocation87_spill] sm:$0xff] %v8659_v31  ;;  %10950 = vst [vmem:[#allocation85_spill] sm:$0xff] %v8662_v18  ;;  %v8678_v16 = vmul.f32 %v3978_v55, %v8217_v29  ;;  %v8682_v18 = vmul.f32 %v3948_v40, %v3599_v38  ;;  %v3600_v2 = vsel %vm195_vm3, %v8247_v48, 0.0  ;;  %v8702_v38 = vsel %vm195_vm3, %v8264_v56, 0.0 }
 0x4d3   : > { %3808 = vrot.lane.b32.xlu0 %v3758_v10, %s10318_s6  ;;  %v8585_v10 = vmul.f32 %v3858_v45, %v3304_v5  ;;  %v8602_v5 = vpop.permute.xlu1 %3409  ;;  %v8621_v45 = vmul.f32 %v3397_v27, %v10924_v52  ;;  %v3794_v27 = vstv %s8545_s23  ;;  %v3598_v52 = vsel %vm8516_vm6, %v8235_v11, 0.0  ;;  %10952 = vst [vmem:[#allocation91_spill] sm:$0xff] %v8675_v0  ;;  %10954 = vst [vmem:[#allocation92_spill] sm:$0xff] %v8680_v1  ;;  %s8720_s23 = sld [smem:[#allocation2 + $0x91]]  ;;  %s8744_s6 = sld [smem:[#allocation2 + $0x92]] }
 0x4d4   : > { %v8672_v11 = vmul.f32 %v3978_v55, %v8215_v33  ;;  %10953 = vst [vmem:[#allocation89_spill] sm:$0xff] %v8678_v16  ;;  %10955 = vst [vmem:[#allocation86_spill] sm:$0xff] %v8682_v18  ;;  %v8687_v31 = vmul.f32 %v3794_v27, %v3790_v6  ;;  %v8695_v33 = vmul.f32 %v3602_v13, %v3598_v52  ;;  %v8707_v48 = vsel %vm195_vm3, %v8283_v20, 0.0 }
 0x4d5   : > { %v8647_v62 = vpop.permute.xlu0 %3407  ;;  %v8697_v29 = vmul.f32 %v3948_v40, %v3598_v52  ;;  %10959 = vst [vmem:[#allocation94_spill] sm:$0xff] %v8702_v38  ;;  %10960 = vst [vmem:[#allocation96_spill] sm:$0xff] %v8707_v48  ;;  %v8715_v16 = vmul.f32 %v3948_v40, %v3601_v46  ;;  %v8718_v52 = vadd.s32 1, %v8338_v34  ;;  %v3793_v56 = vsel %vm8567_vm7, %v8277_v24, 0.0 }
 0x4d6   : > { %10951 = vst [vmem:[#allocation88_spill] sm:$0xff] %v8672_v11  ;;  %10956 = vst [vmem:[#allocation93_spill] sm:$0xff] %v8687_v31  ;;  %v8713_v31 = vmul.f32 %v3602_v13, %v3601_v46  ;;  %v8727_v20 = vmul.f32 %v3602_v13, %v3600_v2  ;;  %v8729_v11 = vmul.f32 %v3948_v40, %v3600_v2  ;;  %v3293_v2 = vstv %s8610_s25  ;;  %s8786_s25 = sld [smem:[#allocation2 + $0x95]] }
 0x4d7   : > { %v8689_v25 = vpop.permute.xlu1 %3413  ;;  %10957 = vst [vmem:[#allocation90_spill] sm:$0xff] %v8695_v33  ;;  %10958 = vst [vmem:[#allocation95_spill] sm:$0xff] %v8697_v29  ;;  %v8732_v0 = vmul.f32 %v8653_v21, %v3790_v6  ;;  %v8749_v24 = vmul.f32 %v3692_v28, %v8221_v42  ;;  %v8752_v6 = vmul.f32 %v3794_v27, %v8702_v38  ;;  %vm206_vm9 = vcmp.lt.s32.totalorder %v8718_v52, 32 }
 0x4d8   : > { %10961 = vst [vmem:[#allocation99_spill] sm:$0xff] %v8713_v31  ;;  %10962 = vst [vmem:[#allocation97_spill] sm:$0xff] %v8715_v16  ;;  %v8759_v19 = vmul.f32 %v3978_v55, %v8221_v42  ;;  %v8762_v40 = vmul.f32 %v3692_v28, %v8227_v14  ;;  %v8765_v13 = vmul.f32 %v3978_v55, %v8227_v14  ;;  %v3848_v42 = vstv %s8612_s26  ;;  %s8800_s26 = sld [smem:[#allocation2 + $0xa7]] }
 0x4d9   : > { %10963 = vst [vmem:[#allocation100_spill] sm:$0xff] %v8727_v20  ;;  %10964 = vst [vmem:[#allocation103_spill] sm:$0xff] %v8729_v11  ;;  %v8742_v34 = vpop.permute.xlu0 %3411  ;;  %v8768_v51 = vmul.f32 %v3794_v27, %v3793_v56  ;;  %v8774_v38 = vmul.f32 %v3794_v27, %v8707_v48  ;;  %v3290_v28 = vsel %vm8738_vm8, %v8489_v44, 0.0  ;;  %v8782_v14 = vstv %s8625_s27  ;;  %s8862_s27 = sld [smem:[#allocation2 + $0x97]] }
 0x4da   : > { %10965 = vst [vmem:[#allocation101_spill] sm:$0xff] %v8732_v0  ;;  %10968 = vst [vmem:[#allocation104_spill] sm:$0xff] %v8749_v24  ;;  %v8771_v0 = vmul.f32 %v8653_v21, %v3793_v56  ;;  %v8789_v56 = vstv %s8627_s28  ;;  %v8792_v27 = vstv %s8643_s29  ;;  %v8795_v48 = vstv %s8645_s30  ;;  %s5371_s28 = sld [smem:[#allocation2 + $0xab]]  ;;  %s5372_s29 = sld [smem:[#allocation2 + $0xad]] }
 0x4db   : > { %10969 = vst [vmem:[#allocation98_spill] sm:$0xff] %v8752_v6  ;;  %10970 = vst [vmem:[#allocation105_spill] sm:$0xff] %v8759_v19  ;;  %v8784_v55 = vpop.permute.xlu1 %3472  ;;  %v8798_v44 = vstv %s8655_s3  ;;  %v8806_v21 = vstv %s8657_s8  ;;  %v8817_v19 = vstv %s8691_s14  ;;  %v8820_v6 = vstv %s8693_s17  ;;  %s5373_s30 = sld [smem:[#allocation2 + $0xaf]]  ;;  %s11037_s3 = smov 32  }
 0x4dc   : > { %10971 = vst [vmem:[#allocation102_spill] sm:$0xff] %v8762_v40  ;;  %10972 = vst [vmem:[#allocation107_spill] sm:$0xff] %v8765_v13  ;;  %v8812_v13 = vstv %s8669_s7  ;;  %v8823_v24 = vstv %s8709_s21  ;;  %v3292_v11 = vsel %vm8738_vm8, %v8495_v37, 0.0  ;;  %v8829_v20 = vstv %s8711_s22  ;;  %s11038_s8 = smov 97   ;;  %s5386_s7 = sld [smem:[#allocation2 + $0xb4]] }
 0x4dd   : > { %10973 = vst [vmem:[#allocation106_spill] sm:$0xff] %v8768_v51  ;;  %10974 = vst [vmem:[#allocation108_spill] sm:$0xff] %v8771_v0  ;;  %v3289_v0 = vsel %vm8367_vm15, %v8492_v58, 0.0  ;;  %v3295_v51 = vmul.f32 %v3293_v2, %v3290_v28  ;;  %v8814_v40 = vpop.permute.xlu0 %3470  ;;  %v3850_v58 = vmul.f32 %v3848_v42, %v3290_v28  ;;  %v8832_v16 = vstv %s8720_s23  ;;  %s5407_s14 = sld [smem:[#allocation2 + $0xc6]]  ;;  %s5395_s17 = sld [smem:[#allocation2 + $0xbd]] }
 0x4de   : > { %10975 = vst [vmem:[#allocation111_spill] sm:$0xff] %v8774_v38  ;;  %v8809_v38 = vstv %s8667_s4  ;;  %10976 = vst [vmem:[#allocation109_spill] sm:$0xff] %v8820_v6  ;;  %v3294_v31 = vmul.f32 %v3293_v2, %v3289_v0  ;;  %v3291_v29 = vsel %vm8738_vm8, %v8497_v22, 0.0  ;;  %v10980_v33 = vmov 0  ;;  %s11039_s4 = smov 127   ;;  %s5416_s21 = sld [smem:[#allocation2 + $0xcf]] }
 0x4df   : > { %10977 = vst [vmem:[#allocation112_spill] sm:$0xff] %v8823_v24  ;;  %10978 = vst [vmem:[#allocation115_spill] sm:$0xff] %v8829_v20  ;;  %v8846_v28 = vstv %s8722_s24  ;;  %v8849_v37 = vstv %s8744_s6  ;;  %v3849_v18 = vmul.f32 %v3848_v42, %v3289_v0  ;;  %v8854_v1 = vstv %s8746_s5  ;;  %s8892_s6 = sld [smem:[#allocation2 + $0xac]]  ;;  %s8910_s5 = sld [smem:[#allocation2 + $0xa9]] }
 0x4e0   : > { %10979 = vst [vmem:[#allocation113_spill] sm:$0xff] %v8832_v16  ;;  %vm8841_vm12 = vmand %vm167_vm11, %vm206_vm9  ;;  %v8851_v16 = vpop.permute.xlu1 %3476  ;;  %v8857_v22 = vstv %s8754_s16  ;;  %v8860_v20 = vstv %s8756_s0  ;;  %v3313_v9 = vadd.f32 %v8583_v4, %v3295_v51  ;;  %v3297_v24 = vmul.f32 %v3293_v2, %v3292_v11  ;;  %s8884_s0 = sld [smem:[#allocation2 + $0xaa]]  ;;  %s8894_s16 = sld [smem:[#allocation2 + $0xae]] }
 0x4e1   : > { %v10981_v33 = vsel %vm8841_vm12, 4294967295, %v10980_v33  ;;  %10983 = vst [vmem:[#allocation110_spill] sm:$0xff] %v8846_v28  ;;  %10984 = vst [vmem:[#allocation117_spill] sm:$0xff] %v8849_v37  ;;  %v3852_v30 = vmul.f32 %v3848_v42, %v3292_v11  ;;  %v3330_v37 = vsel %vm206_vm9, %v8499_v39, 0.0  ;;  %v3864_v0 = vadd.f32 %v8585_v10, %v3850_v58  ;;  %v8879_v4 = vpop.permute.xlu0 %3474  ;;  %s5383_s22 = sld [smem:[#allocation2 + $0xb1]]  ;;  %s5404_s23 = sld [smem:[#allocation2 + $0xc3]] }
 0x4e2   : > { %10982 = vst [vmem:[#allocation116_spill] sm:$0xff] %v10981_v33  ;;  %10985 = vst [vmem:[#allocation114_spill] sm:$0xff] %v8854_v1  ;;  %v3296_v28 = vmul.f32 %v3293_v2, %v3291_v29  ;;  %v3329_v1 = vsel %vm8841_vm12, %v8501_v3, 0.0  ;;  %v3851_v6 = vmul.f32 %v3848_v42, %v3291_v29  ;;  %v3332_v51 = vsel %vm206_vm9, %v8503_v8, 0.0  ;;  %s5389_s24 = sld [smem:[#allocation2 + $0xb7]] }
 0x4e3   : > { %10986 = vst [vmem:[#allocation119_spill] sm:$0xff] %v8857_v22  ;;  %10987 = vst [vmem:[#allocation118_spill] sm:$0xff] %v8860_v20  ;;  %v8873_v22 = vstv %s8786_s25  ;;  %v3312_v20 = vadd.f32 %v8587_v43, %v3294_v31  ;;  %v8882_v11 = vstv %s8800_s26  ;;  %v3863_v39 = vadd.f32 %v8589_v12, %v3849_v18  ;;  %s5410_s25 = sld [smem:[#allocation2 + $0xc9]]  ;;  %s5392_s26 = sld [smem:[#allocation2 + $0xba]] }
 0x4e4   : > { %10988 = vst [vmem:[#allocation120_spill] sm:$0xff] %v8882_v11  ;;  %v3335_v10 = vmul.f32 %v8782_v14, %v3330_v37  ;;  %v3870_v3 = vmul.f32 %v8789_v56, %v3330_v37  ;;  %v3384_v43 = vsel %vm8738_vm8, %v8507_v49, 0.0  ;;  %v3315_v8 = vadd.f32 %v8591_v26, %v3297_v24  ;;  %v8908_v26 = vpop.permute.xlu1 %3512  ;;  %vm9006_vm11 = vmand %vm250_vm0, %vm206_vm9 }
 0x4e5   : > { %v3866_v31 = vadd.f32 %v8593_v47, %v3852_v30  ;;  %v3334_v29 = vmul.f32 %v8782_v14, %v3329_v1  ;;  %v3383_v12 = vsel %vm8738_vm8, %v8510_v57, 0.0  ;;  %v3314_v18 = vadd.f32 %v8598_v59, %v3296_v28 }
 0x4e6   : > { %v3869_v2 = vmul.f32 %v8789_v56, %v3329_v1  ;;  %v3337_v49 = vmul.f32 %v8782_v14, %v3332_v51  ;;  %v3386_v42 = vsel %vm8738_vm8, %v8533_v23, 0.0  ;;  %v3865_v30 = vadd.f32 %v8600_v61, %v3851_v6  ;;  %v8925_v6 = vpop.permute.xlu0 %3510 }
 0x4e7   : > { %v3331_v57 = vsel %vm206_vm9, %v8505_v35, 0.0  ;;  %v3389_v47 = vmul.f32 %v8792_v27, %v3384_v43  ;;  %v3880_v59 = vmul.f32 %v8795_v48, %v3384_v43  ;;  %v3339_v1 = vadd.f32 %v3335_v10, %v3313_v9 }
 0x4e8   : > { %v3874_v24 = vadd.f32 %v3870_v3, %v3864_v0  ;;  %v3388_v58 = vmul.f32 %v8792_v27, %v3383_v12  ;;  %v8920_v28 = vstv %s8862_s27  ;;  %v3338_v23 = vadd.f32 %v3334_v29, %v3312_v20  ;;  %s5413_s27 = sld [smem:[#allocation2 + $0xcc]] }
 0x4e9   : > { %10989 = vst [vmem:[#allocation123_spill] sm:$0xff] %v8920_v28  ;;  %v3872_v37 = vmul.f32 %v8789_v56, %v3332_v51  ;;  %v3879_v61 = vmul.f32 %v8795_v48, %v3383_v12  ;;  %v3391_v35 = vmul.f32 %v8792_v27, %v3386_v42  ;;  %v3873_v11 = vadd.f32 %v3869_v2, %v3863_v39  ;;  %v8933_v12 = vpop.permute.xlu1 %3516 }
 0x4ea   : > { %v3341_v43 = vadd.f32 %v3337_v49, %v3315_v8  ;;  %v3336_v9 = vmul.f32 %v8782_v14, %v3331_v57  ;;  %v3871_v0 = vmul.f32 %v8789_v56, %v3331_v57  ;;  %v3393_v10 = vadd.f32 %v3389_v47, %v3339_v1 }
 0x4eb   : > { %v3884_v3 = vadd.f32 %v3880_v59, %v3874_v24  ;;  %v3882_v20 = vmul.f32 %v8795_v48, %v3386_v42  ;;  %v3385_v51 = vsel %vm8738_vm8, %v8579_v36, 0.0  ;;  %v3392_v29 = vadd.f32 %v3388_v58, %v3338_v23 }
 0x4ec   : > { %v8936_v28 = vstv %s8884_s0  ;;  %v8939_v39 = vstv %s8892_s6  ;;  %v8942_v8 = vstv %s8894_s16  ;;  %v3876_v14 = vadd.f32 %v3872_v37, %v3866_v31  ;;  %v8956_v31 = vpop.permute.xlu0 %3514  ;;  %s5398_s0 = sld [smem:[#allocation2 + $0xc0]]  ;;  %s5419_s6 = sld [smem:[#allocation2 + $0xd2]] }
 0x4ed   : > { %v3883_v56 = vadd.f32 %v3879_v61, %v3873_v11  ;;  %v3395_v2 = vadd.f32 %v3391_v35, %v3341_v43  ;;  %v3420_v49 = vsel %vm206_vm9, %v8602_v5, 0.0  ;;  %v3340_v42 = vadd.f32 %v3336_v9, %v3314_v18  ;;  %s9583_s16 = sld [smem:[#allocation2 + $0xb0]] }
 0x4ee   : > { %v3875_v57 = vadd.f32 %v3871_v0, %v3865_v30  ;;  %v3390_v36 = vmul.f32 %v8792_v27, %v3385_v51  ;;  %v8949_v47 = vstv %s8910_s5  ;;  %v3886_v59 = vadd.f32 %v3882_v20, %v3876_v14  ;;  %s9585_s5 = sld [smem:[#allocation2 + $0xc2]] }
 0x4ef   : > { %v3403_v1 = vadd.f32 %v8548_v41, %v3393_v10  ;;  %v3894_v24 = vadd.f32 %v8561_v63, %v3884_v3  ;;  %v3419_v11 = vsel %vm206_vm9, %v8647_v62, 0.0  ;;  %v3881_v58 = vmul.f32 %v8795_v48, %v3385_v51 }
 0x4f0   : > { %v3425_v5 = vmul.f32 %v8798_v44, %v3420_v49  ;;  %v3402_v18 = vadd.f32 %v8605_v54, %v3392_v29  ;;  %v3483_v27 = vsel %vm8738_vm8, %v8784_v55, 0.0  ;;  %v3900_v41 = vmul.f32 %v8806_v21, %v3420_v49 }
 0x4f1   : > { %v3893_v63 = vadd.f32 %v8608_v32, %v3883_v56  ;;  %v3405_v23 = vadd.f32 %v8615_v7, %v3395_v2  ;;  %v3422_v62 = vsel %vm206_vm9, %v8689_v25, 0.0  ;;  %v3394_v48 = vadd.f32 %v3390_v36, %v3340_v42 }
 0x4f2   : > { %v3424_v37 = vmul.f32 %v8798_v44, %v3419_v11  ;;  %v3899_v54 = vmul.f32 %v8806_v21, %v3419_v11  ;;  %v3482_v55 = vsel %vm8738_vm8, %v8814_v40, 0.0  ;;  %v3421_v61 = vsel %vm206_vm9, %v8742_v34, 0.0 }
 0x4f3   : > { %v3488_v32 = vmul.f32 %v8809_v38, %v3483_v27  ;;  %v3910_v7 = vmul.f32 %v8812_v13, %v3483_v27  ;;  %v3485_v25 = vsel %vm8420_vm2, %v8851_v16, 0.0  ;;  %v3885_v43 = vadd.f32 %v3881_v58, %v3875_v57 }
 0x4f4   : > { %v3429_v9 = vadd.f32 %v3425_v5, %v3403_v1  ;;  %v3896_v0 = vadd.f32 %v8618_v50, %v3886_v59  ;;  %v3427_v10 = vmul.f32 %v8798_v44, %v3422_v62  ;;  %v3904_v3 = vadd.f32 %v3900_v41, %v3894_v24 }
 0x4f5   : > { %v3902_v20 = vmul.f32 %v8806_v21, %v3422_v62  ;;  %v3487_v34 = vmul.f32 %v8809_v38, %v3482_v55  ;;  %v3909_v51 = vmul.f32 %v8812_v13, %v3482_v55  ;;  %v3428_v29 = vadd.f32 %v3424_v37, %v3402_v18  ;;  %v10993_v37 = vld [vmem:[#allocation109_spill] sm:$0xff] }
 0x4f6   : > { %v3426_v14 = vmul.f32 %v8798_v44, %v3421_v61  ;;  %v3490_v16 = vmul.f32 %v8809_v38, %v3485_v25  ;;  %v3484_v56 = vsel %vm8738_vm8, %v8879_v4, 0.0  ;;  %v3903_v50 = vadd.f32 %v3899_v54, %v3893_v63  ;;  %v10992_v63 = vld [vmem:[#allocation81_spill] sm:$0xff] }
 0x4f7   : > { %v3901_v2 = vmul.f32 %v8806_v21, %v3421_v61  ;;  %v3492_v49 = vadd.f32 %v3488_v32, %v3429_v9  ;;  %v3914_v42 = vadd.f32 %v3910_v7, %v3904_v3  ;;  %v3431_v36 = vadd.f32 %v3427_v10, %v3405_v23  ;;  %v10994_v32 = vld [vmem:[#allocation77_spill] sm:$0xff] }
 0x4f8   : > { %v3404_v59 = vadd.f32 %v8621_v45, %v3394_v48  ;;  %v3895_v1 = vadd.f32 %v8630_v53, %v3885_v43  ;;  %v3912_v24 = vmul.f32 %v8812_v13, %v3485_v25  ;;  %v3491_v11 = vadd.f32 %v3487_v34, %v3428_v29 }
 0x4f9   : > { %v3913_v58 = vadd.f32 %v3909_v51, %v3903_v50  ;;  %v3489_v5 = vmul.f32 %v8809_v38, %v3484_v56  ;;  %v3523_v4 = vsel %vm206_vm9, %v8908_v26, 0.0  ;;  %v3906_v21 = vadd.f32 %v3902_v20, %v3896_v0  ;;  %v10996_v0 = vld [vmem:[#allocation82_spill] sm:$0xff]  ;;  %v10998_v51 = vld [vmem:[#allocation112_spill] sm:$0xff] }
 0x4fa   : > { %v3430_v18 = vadd.f32 %v3426_v14, %v3404_v59  ;;  %v3494_v27 = vadd.f32 %v3490_v16, %v3431_v36  ;;  %v3911_v41 = vmul.f32 %v8812_v13, %v3484_v56  ;;  %v3905_v53 = vadd.f32 %v3901_v2, %v3895_v1  ;;  %v10999_v14 = vld [vmem:[#allocation115_spill] sm:$0xff]  ;;  %v11001_v59 = vld [vmem:[#allocation78_spill] sm:$0xff] }
 0x4fb   : > { %v3506_v38 = vadd.f32 %v8573_v60, %v3492_v49  ;;  %v3924_v23 = vadd.f32 %v10992_v63, %v3914_v42  ;;  %v3522_v26 = vsel %vm206_vm9, %v8925_v6, 0.0  ;;  %v3916_v48 = vadd.f32 %v3912_v24, %v3906_v21  ;;  %v10995_v60 = vld [vmem:[#allocation74_spill] sm:$0xff]  ;;  %v11000_v2 = vld [vmem:[#allocation87_spill] sm:$0xff] }
 0x4fc   : > { %v3528_v13 = vmul.f32 %v8817_v19, %v3523_v4  ;;  %v3930_v54 = vmul.f32 %v10993_v37, %v3523_v4  ;;  %v3493_v61 = vadd.f32 %v3489_v5, %v3430_v18  ;;  %v3505_v7 = vadd.f32 %v10994_v32, %v3491_v11  ;;  %v11002_v63 = vld [vmem:[#allocation83_spill] sm:$0xff] }
 0x4fd   : > { %v3923_v25 = vadd.f32 %v10995_v60, %v3913_v58  ;;  %v3525_v43 = vsel %vm9006_vm11, %v8933_v12, 0.0  ;;  %v3915_v6 = vadd.f32 %v3911_v41, %v3905_v53  ;;  %v3527_v9 = vmul.f32 %v8817_v19, %v3522_v26 }
 0x4fe   : > { %v3508_v10 = vadd.f32 %v10996_v0, %v3494_v27  ;;  %v3524_v34 = vsel %vm206_vm9, %v8956_v31, 0.0  ;;  %v3532_v12 = vadd.f32 %v3528_v13, %v3506_v38  ;;  %v3934_v50 = vadd.f32 %v3930_v54, %v3924_v23 }
 0x4ff   : > { %v3926_v49 = vadd.f32 %v11000_v2, %v3916_v48  ;;  %v3530_v42 = vmul.f32 %v8817_v19, %v3525_v43  ;;  %v3932_v11 = vmul.f32 %v10993_v37, %v3525_v43  ;;  %v3529_v58 = vmul.f32 %v8817_v19, %v3524_v34  ;;  %v11008_v2 = vld [vmem:[#allocation95_spill] sm:$0xff] }
 0x500   : > { %v3931_v5 = vmul.f32 %v10993_v37, %v3524_v34  ;;  %v3531_v21 = vadd.f32 %v3527_v9, %v3505_v7  ;;  %v3925_v23 = vadd.f32 %v11002_v63, %v3915_v6  ;;  %v11003_v7 = vld [vmem:[#allocation92_spill] sm:$0xff] }
 0x501   : > { %v3534_v38 = vadd.f32 %v3530_v42, %v3508_v10  ;;  %v3936_v54 = vadd.f32 %v3932_v11, %v3926_v49 }
 0x516   : > { %v3575_v30 = vpop.permute.xlu1 %3574 }
 0x517   : > { %v3585_v17 = vsel %vm8738_vm8, %v3575_v30, 0.0  ;;  %v3929_v30 = vmul.f32 %v10993_v37, %v3522_v26 }
 0x518   : > { %v3590_v29 = vmul.f32 %v10998_v51, %v3585_v17  ;;  %v3940_v16 = vmul.f32 %v10999_v14, %v3585_v17 }
 0x519   : > { %v3573_v35 = vpop.permute.xlu0 %3572  ;;  %v3933_v18 = vadd.f32 %v3929_v30, %v3923_v25  ;;  %v11004_v25 = vld [vmem:[#allocation86_spill] sm:$0xff]  ;;  %v11005_v30 = vld [vmem:[#allocation113_spill] sm:$0xff] }
 0x51a   : > { %v3579_v40 = vpop.permute.xlu1 %3578  ;;  %v3584_v20 = vsel %vm8367_vm15, %v3573_v35, 0.0  ;;  %v3507_v35 = vadd.f32 %v11001_v59, %v3493_v61  ;;  %v3594_v27 = vadd.f32 %v3590_v29, %v3532_v12  ;;  %v3944_v41 = vadd.f32 %v3940_v16, %v3934_v50  ;;  %v11007_v12 = vld [vmem:[#allocation90_spill] sm:$0xff] }
 0x51b   : > { %v3589_v1 = vmul.f32 %v10998_v51, %v3584_v20  ;;  %v3939_v24 = vmul.f32 %v10999_v14, %v3584_v20  ;;  %v3587_v31 = vsel %vm8738_vm8, %v3579_v40, 0.0  ;;  %v3935_v61 = vadd.f32 %v3931_v5, %v3925_v23  ;;  %v11010_v5 = vld [vmem:[#allocation99_spill] sm:$0xff] }
 0x51c   : > { %v3592_v26 = vmul.f32 %v10998_v51, %v3587_v31  ;;  %v3942_v40 = vmul.f32 %v10999_v14, %v3587_v31  ;;  %v3533_v17 = vadd.f32 %v3529_v58, %v3507_v35  ;;  %v3608_v60 = vadd.f32 %v11003_v7, %v3594_v27 }
 0x51d   : > { %v3577_v57 = vpop.permute.xlu0 %3576  ;;  %v3593_v13 = vadd.f32 %v3589_v1, %v3531_v21  ;;  %v3943_v19 = vadd.f32 %v3939_v24, %v3933_v18  ;;  %v3954_v43 = vadd.f32 %v11004_v25, %v3944_v41  ;;  %v11011_v21 = vld [vmem:[#allocation97_spill] sm:$0xff]  ;;  %v11015_v25 = vld [vmem:[#allocation119_spill] sm:$0xff] }
 0x51e   : > { %v3615_v44 = vpop.permute.xlu1 %3614  ;;  %v3586_v4 = vsel %vm8738_vm8, %v3577_v57, 0.0  ;;  %v3596_v10 = vadd.f32 %v3592_v26, %v3534_v38  ;;  %v3946_v20 = vadd.f32 %v3942_v40, %v3936_v54  ;;  %v11012_v38 = vld [vmem:[#allocation100_spill] sm:$0xff] }
 0x51f   : > { %v3591_v37 = vmul.f32 %v10998_v51, %v3586_v4  ;;  %v3625_v57 = vsel %vm206_vm9, %v3615_v44, 0.0  ;;  %v3941_v32 = vmul.f32 %v10999_v14, %v3586_v4  ;;  %v11006_v14 = vld [vmem:[#allocation110_spill] sm:$0xff]  ;;  %v3607_v50 = vadd.f32 %v11007_v12, %v3593_v13 }
 0x520   : > { %v3630_v44 = vmul.f32 %v11005_v30, %v3625_v57  ;;  %v3960_v16 = vmul.f32 %v11006_v14, %v3625_v57  ;;  %v3953_v49 = vadd.f32 %v11008_v2, %v3943_v19  ;;  %v3610_v4 = vadd.f32 %v11010_v5, %v3596_v10 }
 0x521   : > { %v3613_v62 = vpop.permute.xlu0 %3612  ;;  %v3595_v29 = vadd.f32 %v3591_v37, %v3533_v17  ;;  %v3956_v18 = vadd.f32 %v11011_v21, %v3946_v20 }
 0x522   : > { %v3619_v55 = vpop.permute.xlu1 %3618  ;;  %v3624_v6 = vsel %vm8841_vm12, %v3613_v62, 0.0  ;;  %v3945_v62 = vadd.f32 %v3941_v32, %v3935_v61  ;;  %v3634_v58 = vadd.f32 %v3630_v44, %v3608_v60  ;;  %v11014_v32 = vld [vmem:[#allocation114_spill] sm:$0xff] }
 0x523   : > { %v3627_v34 = vsel %vm206_vm9, %v3619_v55, 0.0  ;;  %v3629_v42 = vmul.f32 %v11005_v30, %v3624_v6  ;;  %v3959_v1 = vmul.f32 %v11006_v14, %v3624_v6  ;;  %v3609_v63 = vadd.f32 %v11012_v38, %v3595_v29 }
 0x524   : > { %v3632_v55 = vmul.f32 %v11005_v30, %v3627_v34  ;;  %v3962_v24 = vmul.f32 %v11006_v14, %v3627_v34 }
 0x525   : > { %v3617_v56 = vpop.permute.xlu0 %3616  ;;  %v3633_v40 = vadd.f32 %v3629_v42, %v3607_v50  ;;  %v3963_v57 = vadd.f32 %v3959_v1, %v3953_v49 }
 0x526   : > { %v3669_v36 = vpop.permute.xlu1 %3668  ;;  %v3626_v27 = vsel %vm206_vm9, %v3617_v56, 0.0  ;;  %v3636_v54 = vadd.f32 %v3632_v55, %v3610_v4  ;;  %v3966_v17 = vadd.f32 %v3962_v24, %v3956_v18  ;;  %v11017_v24 = vld [vmem:[#allocation91_spill] sm:$0xff] }
 0x527   : > { %v3679_v9 = vsel %vm8738_vm8, %v3669_v36, 0.0  ;;  %v11009_v36 = vld [vmem:[#allocation117_spill] sm:$0xff]  ;;  %v3631_v56 = vmul.f32 %v11005_v30, %v3626_v27 }
 0x528   : > { %v3684_v59 = vmul.f32 %v11009_v36, %v3679_v9  ;;  %v3970_v7 = vmul.f32 %v11014_v32, %v3679_v9  ;;  %v3961_v9 = vmul.f32 %v11006_v14, %v3626_v27 }
 0x529   : > { %v3667_v53 = vpop.permute.xlu0 %3666  ;;  %v3635_v12 = vadd.f32 %v3631_v56, %v3609_v63 }
 0x52a   : > { %v3673_v48 = vpop.permute.xlu1 %3672  ;;  %v3678_v35 = vsel %vm8738_vm8, %v3667_v53, 0.0  ;;  %v3964_v53 = vadd.f32 %v3960_v16, %v3954_v43  ;;  %v3688_v19 = vadd.f32 %v3684_v59, %v3634_v58 }
 0x52b   : > { %v3681_v31 = vsel %vm8738_vm8, %v3673_v48, 0.0  ;;  %v3683_v23 = vmul.f32 %v11009_v36, %v3678_v35  ;;  %v11013_v48 = vld [vmem:[#allocation103_spill] sm:$0xff]  ;;  %v3969_v44 = vmul.f32 %v11014_v32, %v3678_v35 }
 0x52c   : > { %v3955_v13 = vadd.f32 %v11013_v48, %v3945_v62  ;;  %v3686_v37 = vmul.f32 %v11009_v36, %v3681_v31  ;;  %v3972_v50 = vmul.f32 %v11014_v32, %v3681_v31  ;;  %v3974_v42 = vadd.f32 %v3970_v7, %v3964_v53 }
 0x52d   : > { %v3671_v0 = vpop.permute.xlu0 %3670  ;;  %v3687_v20 = vadd.f32 %v3683_v23, %v3633_v40  ;;  %v3973_v55 = vadd.f32 %v3969_v44, %v3963_v57  ;;  %v11019_v40 = vld [vmem:[#allocation88_spill] sm:$0xff] }
 0x52e   : > { %v3705_v51 = vpop.permute.xlu1 %3704  ;;  %v3680_v60 = vsel %vm8738_vm8, %v3671_v0, 0.0  ;;  %v11016_v0 = vld [vmem:[#allocation85_spill] sm:$0xff]  ;;  %v3976_v27 = vadd.f32 %v3972_v50, %v3966_v17  ;;  %v3965_v23 = vadd.f32 %v3961_v9, %v3955_v13  ;;  %v3984_v48 = vadd.f32 %v11019_v40, %v3974_v42 }
 0x52f   : > { %v3715_v26 = vsel %vm206_vm9, %v3705_v51, 0.0  ;;  %v3690_v51 = vadd.f32 %v3686_v37, %v3636_v54  ;;  %v3698_v29 = vadd.f32 %v11016_v0, %v3688_v19  ;;  %v3685_v2 = vmul.f32 %v11009_v36, %v3680_v60  ;;  %v11018_v36 = vld [vmem:[#allocation104_spill] sm:$0xff]  ;;  %v11020_v19 = vld [vmem:[#allocation118_spill] sm:$0xff] }
 0x530   : > { %v3720_v43 = vmul.f32 %v11015_v25, %v3715_v26  ;;  %v3971_v53 = vmul.f32 %v11014_v32, %v3680_v60  ;;  %v3990_v37 = vmul.f32 %v11020_v19, %v3715_v26 }
 0x531   : > { %v3703_v11 = vpop.permute.xlu0 %3702  ;;  %v3700_v5 = vadd.f32 %v11018_v36, %v3690_v51  ;;  %v11024_v51 = vld [vmem:[#allocation105_spill] sm:$0xff] }
 0x532   : > { %v3709_v41 = vpop.permute.xlu1 %3708  ;;  %v3714_v6 = vsel %vm206_vm9, %v3703_v11, 0.0  ;;  %v3724_v59 = vadd.f32 %v3720_v43, %v3698_v29  ;;  %v3697_v11 = vadd.f32 %v11017_v24, %v3687_v20  ;;  %v11021_v43 = vld [vmem:[#allocation89_spill] sm:$0xff]  ;;  %v11023_v20 = vld [vmem:[#allocation123_spill] sm:$0xff]  ;;  %v3975_v9 = vadd.f32 %v3971_v53, %v3965_v23 }
 0x533   : > { %v3717_v34 = vsel %vm206_vm9, %v3709_v41, 0.0  ;;  %v3719_v49 = vmul.f32 %v11015_v25, %v3714_v6  ;;  %v3689_v41 = vadd.f32 %v3685_v2, %v3635_v12  ;;  %v3983_v32 = vadd.f32 %v11021_v43, %v3973_v55  ;;  %v11027_v55 = vld [vmem:[#allocation120_spill] sm:$0xff] }
 0x534   : > { %v3722_v35 = vmul.f32 %v11015_v25, %v3717_v34  ;;  %v3989_v26 = vmul.f32 %v11020_v19, %v3714_v6  ;;  %v3986_v0 = vadd.f32 %v11024_v51, %v3976_v27  ;;  %v3992_v12 = vmul.f32 %v11020_v19, %v3717_v34  ;;  %v11028_v34 = vld [vmem:[#allocation106_spill] sm:$0xff] }
 0x535   : > { %v3707_v61 = vpop.permute.xlu0 %3706  ;;  %v3723_v38 = vadd.f32 %v3719_v49, %v3697_v11  ;;  %v3994_v36 = vadd.f32 %v3990_v37, %v3984_v48  ;;  %v11029_v37 = vld [vmem:[#allocation107_spill] sm:$0xff] }
 0x536   : > { %v3767_v10 = vpop.permute.xlu1 %3766  ;;  %v3716_v4 = vsel %vm206_vm9, %v3707_v61, 0.0  ;;  %v3726_v57 = vadd.f32 %v3722_v35, %v3700_v5  ;;  %v3993_v5 = vadd.f32 %v3989_v26, %v3983_v32  ;;  %v3996_v23 = vadd.f32 %v3992_v12, %v3986_v0  ;;  %v11031_v0 = vld [vmem:[#allocation94_spill] sm:$0xff] }
 0x537   : > { %v9096_v30 = vsel %vm8738_vm8, %v3767_v10, 0.0  ;;  %v3721_v56 = vmul.f32 %v11015_v25, %v3716_v4  ;;  %v11022_v10 = vld [vmem:[#allocation98_spill] sm:$0xff] }
 0x538   : > { %v3782_v16 = vmul.f32 %v8873_v22, %v9096_v30  ;;  %v11025_v25 = vld [vmem:[#allocation102_spill] sm:$0xff] }
 0x539   : > { %v3765_v62 = vpop.permute.xlu0 %3764  ;;  %v3699_v29 = vadd.f32 %v11025_v25, %v3689_v41  ;;  %v3991_v41 = vmul.f32 %v11020_v19, %v3716_v4 }
 0x53a   : > { %v3776_v14 = vsel %vm8738_vm8, %v3765_v62, 0.0  ;;  %v3771_v1 = vpop.permute.xlu1 %3770  ;;  %v3786_v21 = vadd.f32 %v3782_v16, %v3724_v59  ;;  %v11026_v59 = vld [vmem:[#allocation93_spill] sm:$0xff] }
 0x53b   : > { %v3781_v58 = vmul.f32 %v8873_v22, %v3776_v14  ;;  %v3779_v31 = vsel %vm8420_vm2, %v3771_v1, 0.0  ;;  %v3725_v42 = vadd.f32 %v3721_v56, %v3699_v29  ;;  %v3999_v24 = vmul.f32 %v11027_v55, %v3776_v14  ;;  %v11033_v29 = vld [vmem:[#allocation101_spill] sm:$0xff] }
 0x53c   : > { %v3784_v18 = vmul.f32 %v8873_v22, %v3779_v31  ;;  %v3800_v13 = vadd.f32 %v11022_v10, %v3786_v21  ;;  %v4002_v21 = vmul.f32 %v11027_v55, %v3779_v31  ;;  %v4000_v14 = vmul.f32 %v11027_v55, %v9096_v30  ;;  %v11030_v10 = vld [vmem:[#allocation111_spill] sm:$0xff] }
 0x53d   : > { %v3769_v63 = vpop.permute.xlu0 %3768  ;;  %v3785_v7 = vadd.f32 %v3781_v58, %v3723_v38  ;;  %v4003_v31 = vadd.f32 %v3999_v24, %v3993_v5 }
 0x53e   : > { %v3807_v54 = vpop.permute.xlu1 %3806  ;;  %v3778_v61 = vsel %vm8738_vm8, %v3769_v63, 0.0  ;;  %v3788_v60 = vadd.f32 %v3784_v18, %v3726_v57  ;;  %v3985_v57 = vadd.f32 %v11029_v37, %v3975_v9  ;;  %v4006_v19 = vadd.f32 %v4002_v21, %v3996_v23 }
 0x53f   : > { %v3817_v17 = vsel %vm206_vm9, %v3807_v54, 0.0  ;;  %v3783_v50 = vmul.f32 %v8873_v22, %v3778_v61  ;;  %v3799_v35 = vadd.f32 %v11026_v59, %v3785_v7  ;;  %v4001_v56 = vmul.f32 %v11027_v55, %v3778_v61  ;;  %v11032_v61 = vld [vmem:[#allocation84_spill] sm:$0xff] }
 0x540   : > { %v3822_v44 = vmul.f32 %v11023_v20, %v3817_v17  ;;  %v3802_v58 = vadd.f32 %v11028_v34, %v3788_v60  ;;  %v3995_v43 = vadd.f32 %v3991_v41, %v3985_v57  ;;  %v4010_v25 = vmul.f32 %v11032_v61, %v11031_v0 }
 0x541   : > { %v3805_v16 = vpop.permute.xlu0 %3804  ;;  %v3787_v53 = vadd.f32 %v3783_v50, %v3725_v42  ;;  %v4020_v50 = vmul.f32 %v8949_v47, %v3817_v17  ;;  %v4034_v41 = vstv %s5372_s29  ;;  %s9601_s29 = sld [smem:[#allocation2 + $0xc4]] }
 0x542   : > { %v3826_v2 = vadd.f32 %v3822_v44, %v3800_v13  ;;  %v3816_v49 = vsel %vm206_vm9, %v3805_v16, 0.0  ;;  %v3811_v62 = vpop.permute.xlu1 %3810  ;;  %v4004_v44 = vadd.f32 %v4000_v14, %v3994_v36  ;;  %v4013_v16 = vadd.f32 %v11033_v29, %v4003_v31 }
 0x543   : > { %v3821_v1 = vmul.f32 %v11023_v20, %v3816_v49  ;;  %v3819_v6 = vsel %vm9006_vm11, %v3811_v62, 0.0  ;;  %v4019_v60 = vmul.f32 %v8949_v47, %v3816_v49  ;;  %v3801_v13 = vadd.f32 %v11030_v10, %v3787_v53  ;;  %v11034_v49 = vld [vmem:[#allocation108_spill] sm:$0xff] }
 0x544   : > { %v3832_v11 = vadd.f32 %v8936_v28, %v3826_v2  ;;  %v3824_v22 = vmul.f32 %v11023_v20, %v3819_v6  ;;  %v4022_v51 = vmul.f32 %v8949_v47, %v3819_v6  ;;  %v4005_v12 = vadd.f32 %v4001_v56, %v3995_v43 }
 0x545   : > { %v3825_v18 = vadd.f32 %v3821_v1, %v3799_v35  ;;  %v3809_v27 = vpop.permute.xlu0 %3808  ;;  %v4016_v62 = vadd.f32 %v11034_v49, %v4006_v19  ;;  %v4023_v42 = vadd.f32 %v4019_v60, %v4013_v16  ;;  %v11035_v35 = vld [vmem:[#allocation96_spill] sm:$0xff]  ;;  %v4014_v55 = vadd.f32 %v4010_v25, %v4004_v44 }
 0x546   : > { %v3838_v38 = vmul.f32 %v8939_v39, %v3832_v11  ;;  %v3828_v63 = vadd.f32 %v3824_v22, %v3802_v58  ;;  %v3818_v48 = vsel %vm206_vm9, %v3809_v27, 0.0  ;;  %v4011_v1 = vmul.f32 %v11032_v61, %v11035_v35 }
 0x547   : > { %v3831_v40 = vadd.f32 %v8936_v28, %v3825_v18  ;;  %v3823_v30 = vmul.f32 %v11023_v20, %v3818_v48  ;;  %v4026_v24 = vadd.f32 %v4022_v51, %v4016_v62  ;;  %v4021_v11 = vmul.f32 %v8949_v47, %v3818_v48 }
 0x548   : > { %v3844_v54 = vadd.f32 %v8942_v8, %v3838_v38  ;;  %v3834_v4 = vadd.f32 %v8936_v28, %v3828_v63  ;;  %v4028_v58 = vstv %s5371_s28  ;;  %v4024_v17 = vadd.f32 %v4020_v50, %v4014_v55  ;;  %s9599_s28 = sld [smem:[#allocation2 + $0xb2]] }
 0x549   : > { %v3837_v7 = vmul.f32 %v8939_v39, %v3831_v40  ;;  %v3827_v20 = vadd.f32 %v3823_v30, %v3801_v13  ;;  %v4015_v22 = vadd.f32 %v4011_v1, %v4005_v12  ;;  %v4029_v5 = vadd.f32 %v4028_v58, %v4023_v42 }
 0x54a   : > { %v4051_v32 = vmul.f32 1.442695, %v3844_v54  ;;  %v3840_v26 = vmul.f32 %v8939_v39, %v3834_v4  ;;  %v4032_v21 = vadd.f32 %v4028_v58, %v4026_v24  ;;  %v4040_v48 = vstv %s5373_s30  ;;  %s9613_s30 = sld [smem:[#allocation2 + $0xb3]] }
 0x54b   : > { %v3843_v9 = vadd.f32 %v8942_v8, %v3837_v7  ;;  %v3833_v6 = vadd.f32 %v8936_v28, %v3827_v20  ;;  %v4025_v27 = vadd.f32 %v4021_v11, %v4015_v22  ;;  %v4030_v28 = vadd.f32 %v4028_v58, %v4024_v17 }
 0x54c   : > { %5522 = vpow2.f32 %v4051_v32  ;;  %v3846_v59 = vadd.f32 %v8942_v8, %v3840_v26  ;;  %v4035_v63 = vmul.f32 %v4034_v41, %v4029_v5  ;;  %v4038_v47 = vmul.f32 %v4034_v41, %v4032_v21 }
 0x54d   : > { %v4049_v2 = vmul.f32 1.442695, %v3843_v9  ;;  %v3839_v36 = vmul.f32 %v8939_v39, %v3833_v6  ;;  %v4031_v14 = vadd.f32 %v4028_v58, %v4025_v27  ;;  %v4036_v37 = vmul.f32 %v4034_v41, %v4030_v28 }
 0x54e   : > { %v4055_v34 = vmul.f32 1.442695, %v3846_v59  ;;  %vm4046_vm13 = vcmp.gt.f32.partialorder %v3844_v54, 0.0  ;;  %v4041_v57 = vadd.f32 %v4040_v48, %v4035_v63  ;;  %vm4045_vm14 = vcmp.gt.f32.partialorder %v3843_v9, 0.0 }
 0x54f   : > { %5524 = vpow2.f32 %v4049_v2  ;;  %v3845_v18 = vadd.f32 %v8942_v8, %v3839_v36  ;;  %v4044_v8 = vadd.f32 %v4040_v48, %v4038_v47  ;;  %v4037_v4 = vmul.f32 %v4034_v41, %v4031_v14 }
 0x550   : > { %5526 = vpow2.f32 %v4055_v34  ;;  %v4042_v7 = vadd.f32 %v4040_v48, %v4036_v37  ;;  %v4069_v60 = vmul.f32 1.442695, %v4041_v57  ;;  %vm4048_vm0 = vcmp.gt.f32.partialorder %v3846_v59, 0.0 }
 0x551   : > { %v4053_v53 = vmul.f32 1.442695, %v3845_v18  ;;  %v4043_v13 = vadd.f32 %v4040_v48, %v4037_v4  ;;  %vm4047_vm1 = vcmp.gt.f32.partialorder %v3845_v18, 0.0 }
 0x552   : > { %v4071_v0 = vmul.f32 1.442695, %v4042_v7 }
 0x553   : > { %5528 = vpow2.f32 %v4053_v53  ;;  %v4073_v29 = vmul.f32 1.442695, %v4043_v13 }
 0x554   : > { %5530 = vpow2.f32 %v4069_v60 }
 0x556   : > { %v5523_v38 = vpop.eup %5522 }
 0x557   : > { %v5375_v23 = vadd.f32 -1.0, %v5523_v38 }
 0x559   : > { %v5525_v40 = vpop.eup %5524  ;;  %v9173_v39 = vsel %vm4046_vm13, %v3844_v54, %v5375_v23  ;;  %v4075_v54 = vmul.f32 1.442695, %v4044_v8  ;;  %vm4065_vm13 = vcmp.gt.f32.partialorder %v4041_v57, 0.0 }
 0x55a   : > { %v5374_v31 = vadd.f32 -1.0, %v5525_v40  ;;  %v5527_v19 = vpop.eup %5526  ;;  %v4087_v32 = vrot.slane %v9173_v39, 7  ;;  %v4279_v55 = vrot.slane %v9173_v39, 1 }
 0x55b   : > { %v5377_v30 = vadd.f32 -1.0, %v5527_v19  ;;  %5532 = vpow2.f32 %v4075_v54 }
 0x55c   : > { %v9175_v56 = vsel %vm4045_vm14, %v3843_v9, %v5374_v31  ;;  %5534 = vpow2.f32 %v4071_v0  ;;  %vm4068_vm14 = vcmp.gt.f32.partialorder %v4044_v8, 0.0 }
 0x55d   : > { %v4086_v43 = vrot.slane %v9175_v56, 7  ;;  %v9179_v10 = vsel %vm4048_vm0, %v3846_v59, %v5377_v30  ;;  %v5529_v9 = vpop.eup %5528  ;;  %5536 = vpow2.f32 %v4073_v29  ;;  %v4278_v59 = vrot.slane %v9175_v56, 1 }
 0x55e   : > { %v4089_v51 = vrot.slane %v9179_v10, 7  ;;  %v5376_v61 = vadd.f32 -1.0, %v5529_v9  ;;  %v5531_v2 = vpop.eup %5530  ;;  %v4281_v58 = vrot.slane %v9179_v10, 1  ;;  %vm4066_vm0 = vcmp.gt.f32.partialorder %v4042_v7, 0.0 }
 0x55f   : > { %v9183_v26 = vsel %vm3243_vm4, %v4086_v43, %v4087_v32  ;;  %v5378_v35 = vadd.f32 -1.0, %v5531_v2  ;;  %v9226_v34 = vsel %vm3437_vm5, %v4278_v59, %v4279_v55 }
 0x560   : > { %4097 = vrot.lane.b32.xlu1 %v9183_v26, %s11037_s3  ;;  %v9190_v25 = vsel %vm3243_vm4, %v4089_v51, %v4086_v43  ;;  %v9194_v16 = vsel %vm4047_vm1, %v3845_v18, %v5376_v61  ;;  %vm4067_vm1 = vcmp.gt.f32.partialorder %v4043_v13, 0.0  ;;  %v9241_v21 = vsel %vm3437_vm5, %v4281_v58, %v4278_v59 }
 0x561   : > { %4094 = vrot.lane.b32.xlu0 %v9190_v25, %s11037_s3  ;;  %v4088_v20 = vrot.slane %v9194_v16, 7  ;;  %v4280_v42 = vrot.slane %v9194_v16, 1  ;;  %v9229_v17 = vsel %vm4065_vm13, %v4041_v57, %v5378_v35 }
 0x562   : > { %v4380_v27 = vrot.slane %v9229_v17, 7  ;;  %v4572_v48 = vrot.slane %v9229_v17, 1 }
 0x563   : > { %v9199_v12 = vsel %vm3243_vm4, %v4088_v20, %v4089_v51  ;;  %v9203_v50 = vsel %vm3243_vm4, %v4087_v32, %v4088_v20  ;;  %v9222_v11 = vsel %vm3437_vm5, %v4279_v55, %v4280_v42  ;;  %v9245_v18 = vsel %vm3437_vm5, %v4280_v42, %v4281_v58 }
 0x564   : > { %4103 = vrot.lane.b32.xlu1 %v9199_v12, %s11037_s3 }
 0x565   : > { %4100 = vrot.lane.b32.xlu0 %v9203_v50, %s11037_s3  ;;  %v5533_v49 = vpop.eup %5532 }
 0x566   : > { %v5535_v62 = vpop.eup %5534  ;;  %v5381_v1 = vadd.f32 -1.0, %v5533_v49 }
 0x567   : > { %v5537_v6 = vpop.eup %5536  ;;  %v5379_v24 = vadd.f32 -1.0, %v5535_v62 }
 0x568   : > { %4191 = vrot.lane.b32.xlu1 %v9173_v39, %s11037_s3  ;;  %v9231_v22 = vsel %vm4068_vm14, %v4044_v8, %v5381_v1  ;;  %v5380_v36 = vadd.f32 -1.0, %v5537_v6 }
 0x569   : > { %4188 = vrot.lane.b32.xlu0 %v9175_v56, %s11037_s3  ;;  %v9237_v5 = vsel %vm4066_vm0, %v4042_v7, %v5379_v24  ;;  %v4383_v41 = vrot.slane %v9231_v22, 7  ;;  %v4575_v8 = vrot.slane %v9231_v22, 1 }
 0x56a   : > { %v9249_v28 = vsel %vm4067_vm1, %v4043_v13, %v5380_v36  ;;  %v4381_v53 = vrot.slane %v9237_v5, 7  ;;  %v4573_v37 = vrot.slane %v9237_v5, 1 }
 0x56b   : > { %v9262_v63 = vsel %vm3243_vm4, %v4383_v41, %v4380_v27  ;;  %v4382_v23 = vrot.slane %v9249_v28, 7  ;;  %v4574_v40 = vrot.slane %v9249_v28, 1  ;;  %v9307_v4 = vsel %vm3437_vm5, %v4575_v8, %v4572_v48 }
 0x56c   : > { %4197 = vrot.lane.b32.xlu1 %v9179_v10, %s11037_s3  ;;  %v9258_v38 = vsel %vm3243_vm4, %v4380_v27, %v4381_v53  ;;  %v9298_v31 = vsel %vm3437_vm5, %v4572_v48, %v4573_v37 }
 0x56d   : > { %4194 = vrot.lane.b32.xlu0 %v9194_v16, %s11037_s3  ;;  %v9271_v47 = vsel %vm3243_vm4, %v4382_v23, %v4383_v41  ;;  %v9275_v14 = vsel %vm3243_vm4, %v4381_v53, %v4382_v23  ;;  %v9294_v57 = vsel %vm3437_vm5, %v4573_v37, %v4574_v40  ;;  %v9311_v19 = vsel %vm3437_vm5, %v4574_v40, %v4575_v8 }
 0x570   : > { %4289 = vrot.lane.b32.xlu1 %v9222_v11, %s11037_s3 }
 0x571   : > { %4286 = vrot.lane.b32.xlu0 %v9226_v34, %s11037_s3 }
 0x574   : > { %4295 = vrot.lane.b32.xlu1 %v9241_v21, %s11037_s3 }
 0x575   : > { %4292 = vrot.lane.b32.xlu0 %v9245_v18, %s11037_s3 }
 0x578   : > { %4391 = vrot.lane.b32.xlu1 %v9258_v38, %s11037_s3 }
 0x579   : > { %4388 = vrot.lane.b32.xlu0 %v9262_v63, %s11037_s3 }
 0x57c   : > { %4397 = vrot.lane.b32.xlu1 %v9271_v47, %s11037_s3 }
 0x57d   : > { %4394 = vrot.lane.b32.xlu0 %v9275_v14, %s11037_s3 }
 0x580   : > { %4485 = vrot.lane.b32.xlu1 %v9237_v5, %s11037_s3 }
 0x581   : > { %4482 = vrot.lane.b32.xlu0 %v9229_v17, %s11037_s3 }
 0x584   : > { %4491 = vrot.lane.b32.xlu1 %v9231_v22, %s11037_s3 }
 0x585   : > { %4488 = vrot.lane.b32.xlu0 %v9249_v28, %s11037_s3 }
 0x588   : > { %4583 = vrot.lane.b32.xlu1 %v9294_v57, %s11037_s3 }
 0x589   : > { %4580 = vrot.lane.b32.xlu0 %v9298_v31, %s11037_s3 }
 0x58c   : > { %4589 = vrot.lane.b32.xlu1 %v9307_v4, %s11037_s3 }
 0x58d   : > { %4586 = vrot.lane.b32.xlu0 %v9311_v19, %s11037_s3 }
 0x5d2   : > { %v4098_v7 = vpop.permute.xlu1 %4097 }
 0x5d3   : > { %v4099_v30 = vsel %vm3248_vm10, %v4098_v7, %v9183_v26  ;;  %v4095_v43 = vpop.permute.xlu0 %4094 }
 0x5d4   : > { %4108 = vrot.lane.b32.xlu1 %v4099_v30, %s11037_s3  ;;  %v4096_v32 = vsel %vm3248_vm10, %v4095_v43, %v9190_v25 }
 0x5d5   : > { %4106 = vrot.lane.b32.xlu0 %v4096_v32, %s11037_s3 }
 0x5d6   : > { %v4104_v60 = vpop.permute.xlu1 %4103 }
 0x5d7   : > { %v4101_v54 = vpop.permute.xlu0 %4100  ;;  %v4105_v13 = vsel %vm3248_vm10, %v4104_v60, %v9199_v12 }
 0x5d8   : > { %v4102_v44 = vsel %vm3248_vm10, %v4101_v54, %v9203_v50  ;;  %4112 = vrot.lane.b32.xlu1 %v4105_v13, %s11037_s3 }
 0x5d9   : > { %4110 = vrot.lane.b32.xlu0 %v4102_v44, %s11037_s3 }
 0x5da   : > { %v4192_v51 = vpop.permute.xlu1 %4191 }
 0x5db   : > { %v4189_v9 = vpop.permute.xlu0 %4188  ;;  %v4193_v0 = vsel %vm3248_vm10, %v4192_v51, %v9173_v39 }
 0x5dc   : > { %v4190_v61 = vsel %vm3248_vm10, %v4189_v9, %v9175_v56  ;;  %4202 = vrot.lane.b32.xlu1 %v4193_v0, %s11037_s3 }
 0x5dd   : > { %4200 = vrot.lane.b32.xlu0 %v4190_v61, %s11037_s3 }
 0x5de   : > { %v4198_v29 = vpop.permute.xlu1 %4197 }
 0x5df   : > { %v4195_v20 = vpop.permute.xlu0 %4194  ;;  %v4199_v2 = vsel %vm3248_vm10, %v4198_v29, %v9179_v10 }
 0x5e0   : > { %v4196_v49 = vsel %vm3248_vm10, %v4195_v20, %v9194_v16  ;;  %4206 = vrot.lane.b32.xlu1 %v4199_v2, %s11037_s3 }
 0x5e1   : > { %4204 = vrot.lane.b32.xlu0 %v4196_v49, %s11037_s3 }
 0x5e2   : > { %v4290_v62 = vpop.permute.xlu1 %4289 }
 0x5e3   : > { %v4287_v42 = vpop.permute.xlu0 %4286  ;;  %v4291_v59 = vsel %vm3248_vm10, %v4290_v62, %v9222_v11 }
 0x5e4   : > { %v4288_v35 = vsel %vm3248_vm10, %v4287_v42, %v9226_v34  ;;  %4300 = vrot.lane.b32.xlu1 %v4291_v59, %s11037_s3 }
 0x5e5   : > { %4298 = vrot.lane.b32.xlu0 %v4288_v35, %s11037_s3 }
 0x5e6   : > { %v4296_v1 = vpop.permute.xlu1 %4295 }
 0x5e7   : > { %v4293_v6 = vpop.permute.xlu0 %4292  ;;  %v4297_v55 = vsel %vm3248_vm10, %v4296_v1, %v9241_v21 }
 0x5e8   : > { %v4294_v24 = vsel %vm3248_vm10, %v4293_v6, %v9245_v18  ;;  %4304 = vrot.lane.b32.xlu1 %v4297_v55, %s11037_s3 }
 0x5e9   : > { %4302 = vrot.lane.b32.xlu0 %v4294_v24, %s11037_s3 }
 0x5ea   : > { %v4392_v58 = vpop.permute.xlu1 %4391 }
 0x5eb   : > { %v4389_v36 = vpop.permute.xlu0 %4388  ;;  %v4393_v27 = vsel %vm3248_vm10, %v4392_v58, %v9258_v38 }
 0x5ec   : > { %v4390_v41 = vsel %vm3248_vm10, %v4389_v36, %v9262_v63  ;;  %4402 = vrot.lane.b32.xlu1 %v4393_v27, %s11037_s3 }
 0x5ed   : > { %4400 = vrot.lane.b32.xlu0 %v4390_v41, %s11037_s3 }
 0x5ee   : > { %v4398_v53 = vpop.permute.xlu1 %4397 }
 0x5ef   : > { %v4395_v23 = vpop.permute.xlu0 %4394  ;;  %v4399_v40 = vsel %vm3248_vm10, %v4398_v53, %v9271_v47 }
 0x5f0   : > { %v4396_v48 = vsel %vm3248_vm10, %v4395_v23, %v9275_v14  ;;  %4406 = vrot.lane.b32.xlu1 %v4399_v40, %s11037_s3 }
 0x5f1   : > { %4404 = vrot.lane.b32.xlu0 %v4396_v48, %s11037_s3 }
 0x5f2   : > { %v4486_v37 = vpop.permute.xlu1 %4485 }
 0x5f3   : > { %v4483_v8 = vpop.permute.xlu0 %4482  ;;  %v4487_v7 = vsel %vm3248_vm10, %v4486_v37, %v9237_v5 }
 0x5f4   : > { %v4484_v30 = vsel %vm3248_vm10, %v4483_v8, %v9229_v17  ;;  %4496 = vrot.lane.b32.xlu1 %v4487_v7, %s11037_s3 }
 0x5f5   : > { %4494 = vrot.lane.b32.xlu0 %v4484_v30, %s11037_s3 }
 0x5f6   : > { %v4492_v43 = vpop.permute.xlu1 %4491 }
 0x5f7   : > { %v4489_v32 = vpop.permute.xlu0 %4488  ;;  %v4493_v60 = vsel %vm3248_vm10, %v4492_v43, %v9231_v22 }
 0x5f8   : > { %v4490_v54 = vsel %vm3248_vm10, %v4489_v32, %v9249_v28  ;;  %4500 = vrot.lane.b32.xlu1 %v4493_v60, %s11037_s3 }
 0x5f9   : > { %4498 = vrot.lane.b32.xlu0 %v4490_v54, %s11037_s3 }
 0x5fa   : > { %v4584_v13 = vpop.permute.xlu1 %4583 }
 0x5fb   : > { %v4581_v44 = vpop.permute.xlu0 %4580  ;;  %v4585_v51 = vsel %vm3248_vm10, %v4584_v13, %v9294_v57 }
 0x5fc   : > { %v4582_v9 = vsel %vm3248_vm10, %v4581_v44, %v9298_v31  ;;  %4594 = vrot.lane.b32.xlu1 %v4585_v51, %s11037_s3 }
 0x5fd   : > { %4592 = vrot.lane.b32.xlu0 %v4582_v9, %s11037_s3 }
 0x5fe   : > { %v4590_v0 = vpop.permute.xlu1 %4589 }
 0x5ff   : > { %v4587_v61 = vpop.permute.xlu0 %4586  ;;  %v4591_v29 = vsel %vm3248_vm10, %v4590_v0, %v9307_v4 }
 0x600   : > { %v4588_v20 = vsel %vm3248_vm10, %v4587_v61, %v9311_v19  ;;  %4598 = vrot.lane.b32.xlu1 %v4591_v29, %s11037_s3 }
 0x601   : > { %4596 = vrot.lane.b32.xlu0 %v4588_v20, %s11037_s3  ;;  %s9615_s3 = sld [smem:[#allocation2 + $0xc5]] }
 0x646   : > { %v4109_v2 = vpop.permute.xlu1 %4108 }
 0x647   : > { %v4115_v49 = vsel %vm3248_vm10, %v4109_v2, %v9183_v26  ;;  %v4107_v62 = vpop.permute.xlu0 %4106 }
 0x648   : > { %4124 = vrot.lane.b32.xlu1 %v4115_v49, %s11038_s8  ;;  %v4114_v42 = vsel %vm3248_vm10, %v4107_v62, %v9190_v25 }
 0x649   : > { %4122 = vrot.lane.b32.xlu0 %v4114_v42, %s11038_s8 }
 0x64a   : > { %v4113_v59 = vpop.permute.xlu1 %4112 }
 0x64b   : > { %v4111_v35 = vpop.permute.xlu0 %4110  ;;  %v4117_v1 = vsel %vm3248_vm10, %v4113_v59, %v9199_v12 }
 0x64c   : > { %v4116_v6 = vsel %vm3248_vm10, %v4111_v35, %v9203_v50  ;;  %4128 = vrot.lane.b32.xlu1 %v4117_v1, %s11038_s8 }
 0x64d   : > { %4126 = vrot.lane.b32.xlu0 %v4116_v6, %s11038_s8 }
 0x64e   : > { %v4203_v55 = vpop.permute.xlu1 %4202 }
 0x64f   : > { %v4201_v24 = vpop.permute.xlu0 %4200  ;;  %v4209_v58 = vsel %vm3248_vm10, %v4203_v55, %v9173_v39 }
 0x650   : > { %4164 = vrot.lane.b32.xlu1 %v4115_v49, %s11039_s4  ;;  %v4208_v36 = vsel %vm3248_vm10, %v4201_v24, %v9175_v56 }
 0x651   : > { %4162 = vrot.lane.b32.xlu0 %v4114_v42, %s11039_s4 }
 0x652   : > { %v4207_v27 = vpop.permute.xlu1 %4206 }
 0x653   : > { %v4205_v41 = vpop.permute.xlu0 %4204  ;;  %v4211_v53 = vsel %vm3248_vm10, %v4207_v27, %v9179_v10 }
 0x654   : > { %4168 = vrot.lane.b32.xlu1 %v4117_v1, %s11039_s4  ;;  %v4210_v23 = vsel %vm3248_vm10, %v4205_v41, %v9194_v16 }
 0x655   : > { %4166 = vrot.lane.b32.xlu0 %v4116_v6, %s11039_s4 }
 0x656   : > { %v4301_v40 = vpop.permute.xlu1 %4300 }
 0x657   : > { %v4299_v48 = vpop.permute.xlu0 %4298  ;;  %v4307_v37 = vsel %vm3248_vm10, %v4301_v40, %v9222_v11  ;;  %v4242_v40 = vstv %s5386_s7  ;;  %s9639_s7 = sld [smem:[#allocation2 + $0xb6]] }
 0x658   : > { %4218 = vrot.lane.b32.xlu1 %v4209_v58, %s11038_s8  ;;  %v4306_v8 = vsel %vm3248_vm10, %v4299_v48, %v9226_v34  ;;  %v4732_v48 = vstv %s5407_s14  ;;  %s9641_s14 = sld [smem:[#allocation2 + $0xc8]] }
 0x659   : > { %4216 = vrot.lane.b32.xlu0 %v4208_v36, %s11038_s8 }
 0x65a   : > { %v4305_v7 = vpop.permute.xlu1 %4304 }
 0x65b   : > { %v4303_v30 = vpop.permute.xlu0 %4302  ;;  %v4309_v43 = vsel %vm3248_vm10, %v4305_v7, %v9241_v21  ;;  %v9489_v7 = vstv %s5395_s17  ;;  %s9651_s17 = sld [smem:[#allocation2 + $0xb8]] }
 0x65c   : > { %4222 = vrot.lane.b32.xlu1 %v4211_v53, %s11038_s8  ;;  %v4308_v32 = vsel %vm3248_vm10, %v4303_v30, %v9245_v18  ;;  %v9491_v30 = vstv %s5416_s21  ;;  %s9653_s21 = sld [smem:[#allocation2 + $0xca]] }
 0x65d   : > { %4220 = vrot.lane.b32.xlu0 %v4210_v23, %s11038_s8 }
 0x65e   : > { %v4403_v60 = vpop.permute.xlu1 %4402 }
 0x65f   : > { %v4401_v54 = vpop.permute.xlu0 %4400  ;;  %v4409_v13 = vsel %vm3248_vm10, %v4403_v60, %v9258_v38  ;;  %v9493_v60 = vstv %s5392_s26  ;;  %s9705_s26 = sld [smem:[#allocation2 + $0xbc]] }
 0x660   : > { %4254 = vrot.lane.b32.xlu1 %v4209_v58, %s11039_s4  ;;  %v4408_v44 = vsel %vm3248_vm10, %v4401_v54, %v9262_v63  ;;  %v9495_v54 = vstv %s5413_s27  ;;  %s9707_s27 = sld [smem:[#allocation2 + $0xce]] }
 0x661   : > { %4252 = vrot.lane.b32.xlu0 %v4208_v36, %s11039_s4 }
 0x662   : > { %v4407_v51 = vpop.permute.xlu1 %4406 }
 0x663   : > { %v4405_v9 = vpop.permute.xlu0 %4404  ;;  %v4411_v0 = vsel %vm3248_vm10, %v4407_v51, %v9271_v47  ;;  %v9503_v51 = vstv %s5398_s0  ;;  %s9723_s0 = sld [smem:[#allocation2 + $0xbe]] }
 0x664   : > { %4258 = vrot.lane.b32.xlu1 %v4211_v53, %s11039_s4  ;;  %v4410_v61 = vsel %vm3248_vm10, %v4405_v9, %v9275_v14  ;;  %v9505_v9 = vstv %s5419_s6  ;;  %s9725_s6 = sld [smem:[#allocation2 + $0xd0]] }
 0x665   : > { %4256 = vrot.lane.b32.xlu0 %v4210_v23, %s11039_s4 }
 0x666   : > { %v4497_v29 = vpop.permute.xlu1 %4496 }
 0x667   : > { %v4495_v20 = vpop.permute.xlu0 %4494  ;;  %v4503_v2 = vsel %vm3248_vm10, %v4497_v29, %v9237_v5  ;;  %v9511_v29 = vmul.f32 %v4242_v40, %v9175_v56 }
 0x668   : > { %4316 = vrot.lane.b32.xlu1 %v4307_v37, %s11038_s8  ;;  %v4502_v49 = vsel %vm3248_vm10, %v4495_v20, %v9229_v17  ;;  %v9515_v20 = vmul.f32 %v9489_v7, %v9237_v5 }
 0x669   : > { %4314 = vrot.lane.b32.xlu0 %v4306_v8, %s11038_s8 }
 0x66a   : > { %v4501_v62 = vpop.permute.xlu1 %4500  ;;  %11041 = vst [vmem:[#allocation121_spill] sm:$0xff] %v9515_v20  ;;  %v9792_v20 = vstv %s9653_s21  ;;  %s5435_s21 = sld [smem:[#allocation2 + $0xdc]] }
 0x66b   : > { %v4499_v42 = vpop.permute.xlu0 %4498  ;;  %v4505_v59 = vsel %vm3248_vm10, %v4501_v62, %v9231_v22  ;;  %v4343_v62 = vsel %vm8567_vm7, %v9241_v21, 0.0  ;;  %v9548_v21 = vsel %vm8567_vm7, %v9307_v4, 0.0  ;;  %11071 = vst [vmem:[#allocation154_spill] sm:$0xff] %v9792_v20 }
 0x66c   : > { %4320 = vrot.lane.b32.xlu1 %v4309_v43, %s11038_s8  ;;  %v4504_v35 = vsel %vm3248_vm10, %v4499_v42, %v9249_v28 }
 0x66d   : > { %4318 = vrot.lane.b32.xlu0 %v4308_v32, %s11038_s8 }
 0x66e   : > { %v4595_v1 = vpop.permute.xlu1 %4594 }
 0x66f   : > { %v4593_v6 = vpop.permute.xlu0 %4592  ;;  %v4601_v55 = vsel %vm3248_vm10, %v4595_v1, %v9294_v57  ;;  %v4442_v1 = vsel %vm8516_vm6, %v9262_v63, 0.0 }
 0x670   : > { %4356 = vrot.lane.b32.xlu1 %v4307_v37, %s11039_s4  ;;  %v4600_v24 = vsel %vm3248_vm10, %v4593_v6, %v9298_v31  ;;  %v4152_v37 = vstv %s5383_s22  ;;  %s9667_s22 = sld [smem:[#allocation2 + $0xb9]] }
 0x671   : > { %4354 = vrot.lane.b32.xlu0 %v4306_v8, %s11039_s4  ;;  %v4702_v8 = vstv %s5404_s23  ;;  %s9669_s23 = sld [smem:[#allocation2 + $0xcb]] }
 0x672   : > { %v4599_v58 = vpop.permute.xlu1 %4598 }
 0x673   : > { %v4597_v36 = vpop.permute.xlu0 %4596  ;;  %v4603_v27 = vsel %vm3248_vm10, %v4599_v58, %v9307_v4  ;;  %v4342_v4 = vsel %vm195_vm3, %v9245_v18, 0.0  ;;  %v9581_v18 = vsel %vm195_vm3, %v9311_v19, 0.0 }
 0x674   : > { %4360 = vrot.lane.b32.xlu1 %v4309_v43, %s11039_s4  ;;  %v4602_v41 = vsel %vm3248_vm10, %v4597_v36, %v9311_v19  ;;  %v4344_v43 = vstv %s5389_s24  ;;  %v9604_v19 = vmul.f32 %v4242_v40, %v9179_v10  ;;  %v9607_v36 = vmul.f32 %v4732_v48, %v9179_v10  ;;  %s9683_s24 = sld [smem:[#allocation2 + $0xbb]] }
 0x675   : > { %4358 = vrot.lane.b32.xlu0 %v4308_v32, %s11039_s4  ;;  %v4762_v32 = vstv %s5410_s25  ;;  %s9685_s25 = sld [smem:[#allocation2 + $0xcd]] }
 0x678   : > { %4418 = vrot.lane.b32.xlu1 %v4409_v13, %s11038_s8 }
 0x679   : > { %4416 = vrot.lane.b32.xlu0 %v4408_v44, %s11038_s8 }
 0x67c   : > { %4422 = vrot.lane.b32.xlu1 %v4411_v0, %s11038_s8 }
 0x67d   : > { %4420 = vrot.lane.b32.xlu0 %v4410_v61, %s11038_s8 }
 0x680   : > { %4458 = vrot.lane.b32.xlu1 %v4409_v13, %s11039_s4  ;;  %v9498_v13 = vmul.f32 %v4242_v40, %v9173_v39 }
 0x681   : > { %4456 = vrot.lane.b32.xlu0 %v4408_v44, %s11039_s4  ;;  %v9501_v44 = vmul.f32 %v4732_v48, %v9173_v39  ;;  %v4340_v39 = vsel %vm195_vm3, %v9226_v34, 0.0  ;;  %v9543_v34 = vsel %vm195_vm3, %v9298_v31, 0.0  ;;  %v4151_v31 = vsel %vm195_vm3, %v9199_v12, 0.0 }
 0x682   : > { %v4635_v12 = vsel %vm195_vm3, %v9294_v57, 0.0  ;;  %v9595_v58 = vmul.f32 %v4152_v37, %v4151_v31  ;;  %v9597_v57 = vmul.f32 %v4702_v8, %v4151_v31 }
 0x684   : > { %4462 = vrot.lane.b32.xlu1 %v4411_v0, %s11039_s4  ;;  %v9618_v0 = vmul.f32 %v4242_v40, %v9194_v16  ;;  %v9645_v40 = vmul.f32 %v4762_v32, %v4343_v62 }
 0x685   : > { %4460 = vrot.lane.b32.xlu0 %v4410_v61, %s11039_s4  ;;  %v4149_v61 = vsel %vm195_vm3, %v9183_v26, 0.0  ;;  %v4443_v26 = vsel %vm195_vm3, %v9258_v38, 0.0  ;;  %v4148_v38 = vsel %vm8516_vm6, %v9190_v25, 0.0  ;;  %v4445_v25 = vsel %vm195_vm3, %v9271_v47, 0.0 }
 0x686   : > { %v9556_v6 = vmul.f32 %v4152_v37, %v4149_v61  ;;  %v9558_v63 = vmul.f32 %v4702_v8, %v4149_v61  ;;  %v9587_v47 = vmul.f32 %v4152_v37, %v4148_v38  ;;  %v9621_v61 = vmul.f32 %v4732_v48, %v9194_v16  ;;  %11046 = vst [vmem:[#allocation125_spill] sm:$0xff] %v9645_v40 }
 0x687   : > { %v9643_v16 = vmul.f32 %v4344_v43, %v4343_v62  ;;  %v9659_v31 = vmul.f32 %v9495_v54, %v4443_v26  ;;  %v9665_v62 = vmul.f32 %v9495_v54, %v4442_v1  ;;  %v9811_v40 = vstv %s9685_s25 }
 0x688   : > { %4512 = vrot.lane.b32.xlu1 %v4503_v2, %s11038_s8  ;;  %11075 = vst [vmem:[#allocation157_spill] sm:$0xff] %v9811_v40 }
 0x689   : > { %4510 = vrot.lane.b32.xlu0 %v4502_v49, %s11038_s8  ;;  %11045 = vst [vmem:[#allocation127_spill] sm:$0xff] %v9643_v16  ;;  %11050 = vst [vmem:[#allocation126_spill] sm:$0xff] %v9659_v31  ;;  %v9823_v16 = vstv %s9725_s6 }
 0x68a   : > { %11052 = vst [vmem:[#allocation130_spill] sm:$0xff] %v9665_v62  ;;  %v9804_v62 = vstv %s9683_s24  ;;  %11079 = vst [vmem:[#allocation161_spill] sm:$0xff] %v9823_v16  ;;  %s148_s24 = sand.u32 1, %s5779_s10  }
 0x68b   : > { %11074 = vst [vmem:[#allocation152_spill] sm:$0xff] %v9804_v62  ;;  %s5141_s25 = sshll.u32 %s148_s24, 6 }
 0x68c   : > { %4516 = vrot.lane.b32.xlu1 %v4505_v59, %s11038_s8 }
 0x68d   : > { %4514 = vrot.lane.b32.xlu0 %v4504_v35, %s11038_s8 }
 0x690   : > { %4548 = vrot.lane.b32.xlu1 %v4503_v2, %s11039_s4  ;;  %v9519_v2 = vmul.f32 %v9491_v30, %v9237_v5 }
 0x691   : > { %4546 = vrot.lane.b32.xlu0 %v4502_v49, %s11039_s4  ;;  %v9633_v49 = vmul.f32 %v4762_v32, %v4340_v39 }
 0x692   : > { %11042 = vst [vmem:[#allocation124_spill] sm:$0xff] %v9519_v2  ;;  %v9693_v2 = vmul.f32 %v9491_v30, %v9229_v17 }
 0x694   : > { %4552 = vrot.lane.b32.xlu1 %v4505_v59, %s11039_s4  ;;  %11058 = vst [vmem:[#allocation137_spill] sm:$0xff] %v9693_v2  ;;  %v9786_v2 = vstv %s9641_s14  ;;  %s5433_s14 = sld [smem:[#allocation2 + $0xdb]] }
 0x695   : > { %4550 = vrot.lane.b32.xlu0 %v4504_v35, %s11039_s4  ;;  %v9535_v35 = vmul.f32 %v4732_v48, %v9175_v56  ;;  %v4341_v56 = vsel %vm195_vm3, %v9222_v11, 0.0  ;;  %v4444_v11 = vsel %vm195_vm3, %v9275_v14, 0.0  ;;  %v9589_v14 = vmul.f32 %v4702_v8, %v4148_v38 }
 0x696   : > { %v9627_v10 = vmul.f32 %v4344_v43, %v4341_v56  ;;  %v9647_v48 = vmul.f32 %v4344_v43, %v4342_v4 }
 0x698   : > { %4610 = vrot.lane.b32.xlu1 %v4601_v55, %s11038_s8  ;;  %11047 = vst [vmem:[#allocation128_spill] sm:$0xff] %v9647_v48 }
 0x699   : > { %4608 = vrot.lane.b32.xlu0 %v4600_v24, %s11038_s8 }
 0x69c   : > { %4614 = vrot.lane.b32.xlu1 %v4603_v27, %s11038_s8 }
 0x69d   : > { %4612 = vrot.lane.b32.xlu0 %v4602_v41, %s11038_s8  ;;  %s9623_s8 = sld [smem:[#allocation2 + $0xb5]] }
 0x6a0   : > { %4650 = vrot.lane.b32.xlu1 %v4601_v55, %s11039_s4  ;;  %v4150_v55 = vsel %vm195_vm3, %v9203_v50, 0.0 }
 0x6a1   : > { %4648 = vrot.lane.b32.xlu0 %v4600_v24, %s11039_s4 }
 0x6a4   : > { %4654 = vrot.lane.b32.xlu1 %v4603_v27, %s11039_s4  ;;  %v9609_v27 = vmul.f32 %v4152_v37, %v4150_v55  ;;  %v9629_v37 = vmul.f32 %v4762_v32, %v4341_v56  ;;  %v9649_v56 = vmul.f32 %v4762_v32, %v4342_v4  ;;  %v9675_v32 = vmul.f32 %v9495_v54, %v4445_v25 }
 0x6a5   : > { %4652 = vrot.lane.b32.xlu0 %v4602_v41, %s11039_s4  ;;  %v9611_v41 = vmul.f32 %v4702_v8, %v4150_v55  ;;  %s9625_s4 = sld [smem:[#allocation2 + $0xc7]]  ;;  %v9631_v8 = vmul.f32 %v4344_v43, %v4340_v39  ;;  %v9656_v39 = vmul.f32 %v9493_v60, %v4443_v26  ;;  %v9662_v55 = vmul.f32 %v9493_v60, %v4442_v1 }
 0x6a6   : > { %11048 = vst [vmem:[#allocation122_spill] sm:$0xff] %v9649_v56  ;;  %v9672_v43 = vmul.f32 %v9493_v60, %v4445_v25  ;;  %11054 = vst [vmem:[#allocation135_spill] sm:$0xff] %v9675_v32  ;;  %v9678_v4 = vmul.f32 %v9493_v60, %v4444_v11  ;;  %v9681_v26 = vmul.f32 %v9495_v54, %v4444_v11 }
 0x6a7   : > { %11049 = vst [vmem:[#allocation129_spill] sm:$0xff] %v9656_v39  ;;  %11051 = vst [vmem:[#allocation131_spill] sm:$0xff] %v9662_v55  ;;  %v9689_v1 = vmul.f32 %v9489_v7, %v9229_v17  ;;  %v9697_v25 = vmul.f32 %v9489_v7, %v9231_v22  ;;  %v9701_v60 = vmul.f32 %v9491_v30, %v9231_v22 }
 0x6a8   : > { %11053 = vst [vmem:[#allocation132_spill] sm:$0xff] %v9672_v43  ;;  %11055 = vst [vmem:[#allocation133_spill] sm:$0xff] %v9678_v4  ;;  %v9711_v17 = vmul.f32 %v9489_v7, %v9249_v28  ;;  %v9718_v22 = vmul.f32 %v9503_v51, %v4635_v12  ;;  %v9729_v7 = vmul.f32 %v9503_v51, %v9543_v34  ;;  %v9798_v4 = vstv %s9669_s23  ;;  %s5437_s23 = sld [smem:[#allocation2 + $0xdf]] }
 0x6a9   : > { %11056 = vst [vmem:[#allocation136_spill] sm:$0xff] %v9681_v26  ;;  %11057 = vst [vmem:[#allocation139_spill] sm:$0xff] %v9689_v1  ;;  %v9795_v26 = vstv %s9667_s22  ;;  %s5436_s22 = sld [smem:[#allocation2 + $0xdd]] }
 0x6aa   : > { %11059 = vst [vmem:[#allocation140_spill] sm:$0xff] %v9697_v25  ;;  %11060 = vst [vmem:[#allocation134_spill] sm:$0xff] %v9701_v60  ;;  %v9715_v25 = vmul.f32 %v9491_v30, %v9249_v28  ;;  %v9721_v60 = vmul.f32 %v9505_v9, %v4635_v12  ;;  %v9733_v28 = vmul.f32 %v9505_v9, %v9543_v34 }
 0x6ab   : > { %11061 = vst [vmem:[#allocation141_spill] sm:$0xff] %v9711_v17  ;;  %11063 = vst [vmem:[#allocation143_spill] sm:$0xff] %v9718_v22  ;;  %v9737_v30 = vmul.f32 %v9503_v51, %v9548_v21  ;;  %v9741_v12 = vmul.f32 %v9505_v9, %v9548_v21  ;;  %v4692_v22 = vstv %s9585_s5  ;;  %v9749_v34 = vmul.f32 %v9503_v51, %v9581_v18  ;;  %s9912_s5 = sld [smem:[#allocation2 + $0xd4]] }
 0x6ac   : > { %11062 = vst [vmem:[#allocation138_spill] sm:$0xff] %v9715_v25  ;;  %11064 = vst [vmem:[#allocation142_spill] sm:$0xff] %v9721_v60  ;;  %v4138_v60 = vstv %s9583_s16  ;;  %v9783_v17 = vstv %s9639_s7  ;;  %s9856_s16 = sld [smem:[#allocation2 + $0xc1]]  ;;  %s5432_s7 = sld [smem:[#allocation2 + $0xda]] }
 0x6ad   : > { %11065 = vst [vmem:[#allocation144_spill] sm:$0xff] %v9729_v7  ;;  %11066 = vst [vmem:[#allocation149_spill] sm:$0xff] %v9733_v28  ;;  %v9753_v28 = vmul.f32 %v9505_v9, %v9581_v18  ;;  %v9765_v7 = vstv %s9613_s30  ;;  %s9966_s30 = sld [smem:[#allocation2 + $0xd3]] }
 0x6ae   : > { %11067 = vst [vmem:[#allocation145_spill] sm:$0xff] %v9737_v30  ;;  %11068 = vst [vmem:[#allocation150_spill] sm:$0xff] %v9741_v12  ;;  %v9759_v12 = vstv %s9599_s28  ;;  %v9762_v30 = vstv %s9601_s29  ;;  %s9914_s28 = sld [smem:[#allocation2 + $0xd6]]  ;;  %s9959_s29 = sld [smem:[#allocation2 + $0xd8]] }
 0x6af   : > { %11069 = vst [vmem:[#allocation153_spill] sm:$0xff] %v9749_v34  ;;  %11070 = vst [vmem:[#allocation151_spill] sm:$0xff] %v9753_v28  ;;  %v9771_v34 = vstv %s9615_s3  ;;  %v9774_v28 = vstv %s9623_s8  ;;  %s10020_s3 = sld [smem:[#allocation2 + $0xd5]]  ;;  %s10068_s8 = sld [smem:[#allocation2 + $0xd7]] }
 0x6b0   : > { %11072 = vst [vmem:[#allocation146_spill] sm:$0xff] %v9795_v26  ;;  %11073 = vst [vmem:[#allocation155_spill] sm:$0xff] %v9798_v4  ;;  %v9814_v26 = vstv %s9705_s26  ;;  %v9820_v4 = vstv %s9723_s0  ;;  %s150_s26 = scalar_lea.vmem [#allocation5], %s5141_s25 }
 0x6b1   : > { %11076 = vst [vmem:[#allocation156_spill] sm:$0xff] %v9814_v26  ;;  %11078 = vst [vmem:[#allocation165_spill] sm:$0xff] %v9820_v4  ;;  %s5061_s0 = sshll.u32 %s150_s26, 4  ;;  %s10214_s0 = int_to_ptr.vmem [resolvable:$true] %s5061_s0 }
 0x6ba   : > { %v9485_v53 = vpop.permute.xlu1 %4124 }
 0x6bb   : > { %v9487_v23 = vpop.permute.xlu0 %4122  ;;  %v4135_v21 = vsel %vm8738_vm8, %v9485_v53, 0.0  ;;  %v9777_v53 = vstv %s9625_s4  ;;  %s10070_s4 = sld [smem:[#allocation2 + $0xd9]] }
 0x6bc   : > { %v4134_v51 = vsel %vm8367_vm15, %v9487_v23, 0.0  ;;  %v9789_v23 = vstv %s9651_s17  ;;  %v4140_v1 = vmul.f32 %v4138_v60, %v4135_v21  ;;  %v4694_v32 = vmul.f32 %v4692_v22, %v4135_v21  ;;  %s5434_s17 = sld [smem:[#allocation2 + $0xde]] }
 0x6bd   : > { %v4693_v55 = vmul.f32 %v4692_v22, %v4134_v51  ;;  %v9817_v21 = vstv %s9707_s27  ;;  %s5447_s27 = sshll.u32 %s5834_s13, 10  ;;  %s10220_s13 = scalar_lea.sflag [#allocation3], %s148_s24 }
 0x6be   : > { %v9530_v42 = vpop.permute.xlu1 %4128  ;;  %11077 = vst [vmem:[#allocation158_spill] sm:$0xff] %v9817_v21  ;;  %v4708_v3 = vadd.f32 %v9558_v63, %v4694_v32 }
 0x6bf   : > { %v9532_v59 = vpop.permute.xlu0 %4126  ;;  %v4137_v25 = vsel %vm8738_vm8, %v9530_v42, 0.0  ;;  %v4139_v42 = vmul.f32 %v4138_v60, %v4134_v51  ;;  %v9830_v51 = vstv %s9745_s1  ;;  %v4707_v16 = vadd.f32 %v9589_v14, %v4693_v55  ;;  %s9854_s1 = sld [smem:[#allocation2 + $0xd1]] }
 0x6c0   : > { %v4136_v43 = vsel %vm8738_vm8, %v9532_v59, 0.0  ;;  %v4142_v31 = vmul.f32 %v4138_v60, %v4137_v25  ;;  %v4696_v39 = vmul.f32 %v4692_v22, %v4137_v25  ;;  %v4158_v59 = vadd.f32 %v9556_v6, %v4140_v1  ;;  %11080 = vst [vmem:[#allocation166_spill] sm:$0xff] %v9830_v51 }
 0x6c1   : > { %v4141_v62 = vmul.f32 %v4138_v60, %v4136_v43  ;;  %v4157_v40 = vadd.f32 %v9587_v47, %v4139_v42  ;;  %v4695_v26 = vmul.f32 %v4692_v22, %v4136_v43 }
 0x6c2   : > { %v9591_v24 = vpop.permute.xlu1 %4164  ;;  %v4160_v6 = vadd.f32 %v9595_v58, %v4142_v31  ;;  %v4710_v1 = vadd.f32 %v9597_v57, %v4696_v39 }
 0x6c3   : > { %v9593_v50 = vpop.permute.xlu0 %4162  ;;  %v4175_v25 = vsel %vm206_vm9, %v9591_v24, 0.0  ;;  %v4159_v58 = vadd.f32 %v9609_v27, %v4141_v62 }
 0x6c4   : > { %v4174_v4 = vsel %vm8841_vm12, %v9593_v50, 0.0  ;;  %v4180_v63 = vmul.f32 %v9759_v12, %v4175_v25  ;;  %v4714_v47 = vmul.f32 %v9762_v30, %v4175_v25 }
 0x6c5   : > { %v4179_v57 = vmul.f32 %v9759_v12, %v4174_v4  ;;  %v4713_v39 = vmul.f32 %v9762_v30, %v4174_v4 }
 0x6c6   : > { %v9635_v5 = vpop.permute.xlu1 %4168  ;;  %v4184_v22 = vadd.f32 %v4180_v63, %v4158_v59 }
 0x6c7   : > { %v9637_v38 = vpop.permute.xlu0 %4166  ;;  %v4177_v50 = vsel %vm206_vm9, %v9635_v5, 0.0  ;;  %v4709_v5 = vadd.f32 %v9611_v41, %v4695_v26  ;;  %v4718_v41 = vadd.f32 %v4714_v47, %v4708_v3  ;;  %v4183_v25 = vadd.f32 %v4179_v57, %v4157_v40 }
 0x6c8   : > { %v4176_v31 = vsel %vm206_vm9, %v9637_v38, 0.0  ;;  %v4716_v26 = vmul.f32 %v9762_v30, %v4177_v50  ;;  %v9882_v57 = vstv %s9854_s1 }
 0x6c9   : > { %v4181_v42 = vmul.f32 %v9759_v12, %v4176_v31 }
 0x6ca   : > { %v4219_v54 = vpop.permute.xlu1 %4218 }
 0x6cb   : > { %v9703_v11 = vpop.permute.xlu0 %4216  ;;  %v4229_v24 = vsel %vm8738_vm8, %v4219_v54, 0.0  ;;  %v4182_v54 = vmul.f32 %v9759_v12, %v4177_v50  ;;  %v4720_v50 = vadd.f32 %v4716_v26, %v4710_v1 }
 0x6cc   : > { %v4228_v14 = vsel %vm8738_vm8, %v9703_v11, 0.0  ;;  %v4234_v55 = vmul.f32 %v9765_v7, %v4229_v24  ;;  %v4724_v43 = vmul.f32 %v9771_v34, %v4229_v24  ;;  %v4715_v24 = vmul.f32 %v9762_v30, %v4176_v31 }
 0x6cd   : > { %v4233_v27 = vmul.f32 %v9765_v7, %v4228_v14  ;;  %v4723_v62 = vmul.f32 %v9771_v34, %v4228_v14  ;;  %v4186_v59 = vadd.f32 %v4182_v54, %v4160_v6  ;;  %v9885_v30 = vstv %s9856_s16  ;;  %s10212_s16 = scalar_lea.hbm %s10263_s2, %s5447_s27 }
 0x6ce   : > { %v4223_v9 = vpop.permute.xlu1 %4222  ;;  %v4238_v14 = vadd.f32 %v4234_v55, %v4184_v22  ;;  %v4728_v33 = vadd.f32 %v4724_v43, %v4718_v41 }
 0x6cf   : > { %v4221_v18 = vpop.permute.xlu0 %4220  ;;  %v4231_v32 = vsel %vm8738_vm8, %v4223_v9, 0.0  ;;  %v4717_v9 = vadd.f32 %v4713_v39, %v4707_v16  ;;  %v4237_v3 = vadd.f32 %v4233_v27, %v4183_v25  ;;  %v4185_v16 = vadd.f32 %v4181_v42, %v4159_v58 }
 0x6d0   : > { %v4230_v4 = vsel %vm8738_vm8, %v4221_v18, 0.0  ;;  %v4236_v21 = vmul.f32 %v9765_v7, %v4231_v32  ;;  %v4726_v18 = vmul.f32 %v9771_v34, %v4231_v32  ;;  %v4719_v39 = vadd.f32 %v4715_v24, %v4709_v5 }
 0x6d1   : > { %v4235_v20 = vmul.f32 %v9765_v7, %v4230_v4  ;;  %v4727_v63 = vadd.f32 %v4723_v62, %v4717_v9  ;;  %v4725_v47 = vmul.f32 %v9771_v34, %v4230_v4  ;;  %v4248_v43 = vadd.f32 %v9498_v13, %v4238_v14 }
 0x6d2   : > { %v9806_v56 = vpop.permute.xlu1 %4254  ;;  %v4240_v31 = vadd.f32 %v4236_v21, %v4186_v59  ;;  %v4730_v6 = vadd.f32 %v4726_v18, %v4720_v50  ;;  %v4738_v1 = vadd.f32 %v9501_v44, %v4728_v33  ;;  %v4247_v32 = vadd.f32 %v9511_v29, %v4237_v3 }
 0x6d3   : > { %v9808_v48 = vpop.permute.xlu0 %4252  ;;  %v4265_v55 = vsel %vm206_vm9, %v9806_v56, 0.0  ;;  %v4239_v34 = vadd.f32 %v4235_v20, %v4185_v16  ;;  %v4729_v58 = vadd.f32 %v4725_v47, %v4719_v39  ;;  %v4737_v5 = vadd.f32 %v9535_v35, %v4727_v63 }
 0x6d4   : > { %v4264_v7 = vsel %vm206_vm9, %v9808_v48, 0.0  ;;  %v4270_v27 = vmul.f32 %v9774_v28, %v4265_v55  ;;  %v4744_v48 = vmul.f32 %v9777_v53, %v4265_v55  ;;  %v4250_v44 = vadd.f32 %v9604_v19, %v4240_v31 }
 0x6d5   : > { %v4269_v20 = vmul.f32 %v9774_v28, %v4264_v7  ;;  %v4743_v33 = vmul.f32 %v9777_v53, %v4264_v7  ;;  %v4740_v62 = vadd.f32 %v9607_v36, %v4730_v6  ;;  %v4249_v4 = vadd.f32 %v9618_v0, %v4239_v34 }
 0x6d6   : > { %v9842_v60 = vpop.permute.xlu1 %4258  ;;  %v4274_v42 = vadd.f32 %v4270_v27, %v4248_v43  ;;  %v4748_v9 = vadd.f32 %v4744_v48, %v4738_v1  ;;  %v4739_v59 = vadd.f32 %v9621_v61, %v4729_v58  ;;  %v9938_v34 = vstv %s9912_s5  ;;  %s5721_s5 = scalar_lea.vmem %s10214_s0, 1024 }
 0x6d7   : > { %v9844_v51 = vpop.permute.xlu0 %4256  ;;  %v4267_v29 = vsel %vm206_vm9, %v9842_v60, 0.0  ;;  %v4273_v24 = vadd.f32 %v4269_v20, %v4247_v32  ;;  %v4747_v14 = vadd.f32 %v4743_v33, %v4737_v5  ;;  %v9941_v43 = vstv %s9914_s28  ;;  %p5722_p9 = scmp.ne.s32.totalorder %s10214_s0, %s5721_s5  ;;  %s5795_s28 = smov [#allocation5]  }
 0x6d8   : > { %v4266_v35 = vsel %vm206_vm9, %v9844_v51, 0.0  ;;  %v4272_v36 = vmul.f32 %v9774_v28, %v4267_v29  ;;  %v4746_v0 = vmul.f32 %v9777_v53, %v4267_v29 }
 0x6d9   : > { %v4271_v25 = vmul.f32 %v9774_v28, %v4266_v35  ;;  %v4745_v18 = vmul.f32 %v9777_v53, %v4266_v35  ;;  %v11083_v35 = vld [vmem:[#allocation127_spill] sm:$0xff]  ;;  %p5723_p10 = pnand %p5722_p9, %p5851_p5 }
 0x6da   : > { %v4317_v11 = vpop.permute.xlu1 %4316  ;;  %v4276_v31 = vadd.f32 %v4272_v36, %v4250_v44  ;;  %v4750_v55 = vadd.f32 %v4746_v0, %v4740_v62 }
 0x6db   : > { %v4315_v38 = vpop.permute.xlu0 %4314  ;;  %v4327_v21 = vsel %vm8738_vm8, %v4317_v11, 0.0  ;;  %v4275_v7 = vadd.f32 %v4271_v25, %v4249_v4  ;;  %v4749_v61 = vadd.f32 %v4745_v18, %v4739_v59  ;;  %v11084_v4 = vld [vmem:[#allocation125_spill] sm:$0xff]  ;;  %p5724_p12 = pneg %p5723_p10 }
 0x6dc   : > { %v4326_v13 = vsel %vm8738_vm8, %v4315_v38, 0.0  ;;  %v4332_v11 = vmul.f32 %v9783_v17, %v4327_v21  ;;  %v4754_v19 = vmul.f32 %v9786_v2, %v4327_v21 }
 0x6dd   : > { %v4331_v38 = vmul.f32 %v9783_v17, %v4326_v13  ;;  %v4753_v60 = vmul.f32 %v9786_v2, %v4326_v13 }
 0x6de   : > { %v4321_v12 = vpop.permute.xlu1 %4320 }
 0x6df   : > { %v4319_v40 = vpop.permute.xlu0 %4318  ;;  %v4329_v22 = vsel %vm8420_vm2, %v4321_v12, 0.0  ;;  %v4336_v12 = vadd.f32 %v4332_v11, %v4274_v42  ;;  %v4335_v50 = vadd.f32 %v4331_v38, %v4273_v24  ;;  %v4757_v16 = vadd.f32 %v4753_v60, %v4747_v14 }
 0x6e0   : > { %v4328_v51 = vsel %vm8738_vm8, %v4319_v40, 0.0  ;;  %v4334_v3 = vmul.f32 %v9783_v17, %v4329_v22  ;;  %v4756_v63 = vmul.f32 %v9786_v2, %v4329_v22  ;;  %v4758_v40 = vadd.f32 %v4754_v19, %v4748_v9  ;;  %v11085_v19 = vld [vmem:[#allocation128_spill] sm:$0xff]  ;;  %v11087_v9 = vld [vmem:[#allocation155_spill] sm:$0xff] }
 0x6e1   : > { %v4333_v47 = vmul.f32 %v9783_v17, %v4328_v51  ;;  %v4755_v53 = vmul.f32 %v9786_v2, %v4328_v51  ;;  %v4350_v5 = vadd.f32 %v9627_v10, %v4336_v12  ;;  %v4349_v2 = vadd.f32 %v9631_v8, %v4335_v50 }
 0x6e2   : > { %v4357_v54 = vpop.permute.xlu1 %4356  ;;  %v4338_v17 = vadd.f32 %v4334_v3, %v4276_v31  ;;  %v4760_v1 = vadd.f32 %v4756_v63, %v4750_v55  ;;  %v4768_v21 = vadd.f32 %v9629_v37, %v4758_v40  ;;  %v4767_v27 = vadd.f32 %v9633_v49, %v4757_v16 }
 0x6e3   : > { %v4355_v56 = vpop.permute.xlu0 %4354  ;;  %v4367_v6 = vsel %vm206_vm9, %v4357_v54, 0.0  ;;  %v4337_v58 = vadd.f32 %v4333_v47, %v4275_v7  ;;  %v4759_v20 = vadd.f32 %v4755_v53, %v4749_v61 }
 0x6e4   : > { %v4366_v32 = vsel %vm206_vm9, %v4355_v56, 0.0  ;;  %v4372_v13 = vmul.f32 %v9789_v23, %v4367_v6  ;;  %v11081_v56 = vld [vmem:[#allocation154_spill] sm:$0xff]  ;;  %v4352_v62 = vadd.f32 %v11083_v35, %v4338_v17  ;;  %v4770_v11 = vadd.f32 %v11084_v4, %v4760_v1 }
 0x6e5   : > { %v4774_v29 = vmul.f32 %v11081_v56, %v4367_v6  ;;  %v4371_v10 = vmul.f32 %v9789_v23, %v4366_v32  ;;  %v4773_v37 = vmul.f32 %v11081_v56, %v4366_v32  ;;  %v4351_v38 = vadd.f32 %v11085_v19, %v4337_v58  ;;  %v11088_v58 = vld [vmem:[#allocation122_spill] sm:$0xff] }
 0x6e6   : > { %v4361_v41 = vpop.permute.xlu1 %4360  ;;  %v4376_v59 = vadd.f32 %v4372_v13, %v4350_v5  ;;  %v4769_v32 = vadd.f32 %v11088_v58, %v4759_v20  ;;  %v9993_v13 = vstv %s9966_s30  ;;  %v11092_v20 = vld [vmem:[#allocation126_spill] sm:$0xff] }
 0x6e7   : > { %v4359_v26 = vpop.permute.xlu0 %4358  ;;  %v4369_v33 = vsel %vm9006_vm11, %v4361_v41, 0.0  ;;  %v11086_v41 = vld [vmem:[#allocation146_spill] sm:$0xff]  ;;  %v4778_v3 = vadd.f32 %v4774_v29, %v4768_v21  ;;  %v4375_v63 = vadd.f32 %v4371_v10, %v4349_v2  ;;  %v4777_v12 = vadd.f32 %v4773_v37, %v4767_v27  ;;  %v11091_v10 = vld [vmem:[#allocation152_spill] sm:$0xff] }
 0x6e8   : > { %v4368_v60 = vsel %vm206_vm9, %v4359_v26, 0.0  ;;  %v4374_v22 = vmul.f32 %v9789_v23, %v4369_v33  ;;  %v4776_v51 = vmul.f32 %v11081_v56, %v4369_v33  ;;  %v9988_v21 = vstv %s9959_s29  ;;  %s5725_s29 = sshll.u32 %s5795_s28, 4  ;;  %s5726_s29 = int_to_ptr.vmem [resolvable:$false] %s5725_s29 }
 0x6e9   : > { %v4373_v47 = vmul.f32 %v9789_v23, %v4368_v60  ;;  %v4775_v40 = vmul.f32 %v11081_v56, %v4368_v60  ;;  %v11090_v56 = vld [vmem:[#allocation129_spill] sm:$0xff]  ;;  %s5727_s30 = scalar_lea.vmem %s5726_s29, 2048  ;;  %p5728_p13 = scmp.lt.s32.totalorder %s10214_s0, %s5726_s29 }
 0x6ea   : > { %v4419_v28 = vpop.permute.xlu1 %4418  ;;  %p5729_p0 = scmp.lt.s32.totalorder %s5727_s30, %s5721_s5 }
 0x6eb   : > { %v4417_v39 = vpop.permute.xlu0 %4416  ;;  %v4429_v44 = vsel %vm8738_vm8, %v4419_v28, 0.0  ;;  %v4378_v28 = vadd.f32 %v4374_v22, %v4352_v62  ;;  %v4377_v1 = vadd.f32 %v4373_v47, %v4351_v38  ;;  %v4779_v33 = vadd.f32 %v4775_v40, %v4769_v32  ;;  %v11093_v62 = vld [vmem:[#allocation131_spill] sm:$0xff]  ;;  %v11095_v22 = vld [vmem:[#allocation157_spill] sm:$0xff] }
 0x6ec   : > { %v4428_v49 = vsel %vm8367_vm15, %v4417_v39, 0.0  ;;  %v4434_v42 = vmul.f32 %v11086_v41, %v4429_v44  ;;  %v4784_v24 = vmul.f32 %v11087_v9, %v4429_v44  ;;  %v4780_v39 = vadd.f32 %v4776_v51, %v4770_v11  ;;  %v11094_v11 = vld [vmem:[#allocation130_spill] sm:$0xff]  ;;  %p5730_p1 = por %p5729_p0, %p5728_p13 }
 0x6ed   : > { %v4433_v14 = vmul.f32 %v11086_v41, %v4428_v49  ;;  %v4783_v18 = vmul.f32 %v11087_v9, %v4428_v49 }
 0x6ee   : > { %v4423_v48 = vpop.permute.xlu1 %4422  ;;  %v4438_v31 = vadd.f32 %v4434_v42, %v4376_v59  ;;  %v4788_v61 = vadd.f32 %v4784_v24, %v4778_v3  ;;  %v11098_v3 = vld [vmem:[#allocation133_spill] sm:$0xff]  ;;  %p5731_p2 = pnand %p5730_p1, %p5724_p12 }
 0x6ef   : > { %v4421_v54 = vpop.permute.xlu0 %4420  ;;  %v4431_v36 = vsel %vm8738_vm8, %v4423_v48, 0.0  ;;  %v4437_v6 = vadd.f32 %v4433_v14, %v4375_v63  ;;  %v4787_v17 = vadd.f32 %v4783_v18, %v4777_v12 }
 0x6f0   : > { %v4430_v26 = vsel %vm8738_vm8, %v4421_v54, 0.0  ;;  %v4436_v50 = vmul.f32 %v11086_v41, %v4431_v36  ;;  %v4786_v16 = vmul.f32 %v11087_v9, %v4431_v36  ;;  %v4452_v29 = vadd.f32 %v11090_v56, %v4438_v31 }
 0x6f1   : > { %v4435_v55 = vmul.f32 %v11086_v41, %v4430_v26  ;;  %v4785_v5 = vmul.f32 %v11087_v9, %v4430_v26  ;;  %v4798_v35 = vadd.f32 %v11092_v20, %v4788_v61  ;;  %v4451_v4 = vadd.f32 %v11093_v62, %v4437_v6  ;;  %v11097_v9 = vld [vmem:[#allocation135_spill] sm:$0xff] }
 0x6f2   : > { %v4459_v0 = vpop.permute.xlu1 %4458  ;;  %v4440_v2 = vadd.f32 %v4436_v50, %v4378_v28  ;;  %v4790_v27 = vadd.f32 %v4786_v16, %v4780_v39  ;;  %v4797_v19 = vadd.f32 %v11094_v11, %v4787_v17  ;;  %v11099_v50 = vld [vmem:[#allocation156_spill] sm:$0xff]  ;;  %v11100_v28 = vld [vmem:[#allocation158_spill] sm:$0xff] }
 0x6f3   : > { %v4457_v25 = vpop.permute.xlu0 %4456  ;;  %v4469_v23 = vsel %vm206_vm9, %v4459_v0, 0.0  ;;  %v4439_v44 = vadd.f32 %v4435_v55, %v4377_v1  ;;  %v4789_v60 = vadd.f32 %v4785_v5, %v4779_v33  ;;  %v11096_v0 = vld [vmem:[#allocation132_spill] sm:$0xff] }
 0x6f4   : > { %v4468_v54 = vsel %vm8841_vm12, %v4457_v25, 0.0  ;;  %v4474_v37 = vmul.f32 %v11091_v10, %v4469_v23  ;;  %v4804_v51 = vmul.f32 %v11095_v22, %v4469_v23  ;;  %v4454_v25 = vadd.f32 %v11096_v0, %v4440_v2  ;;  %v11104_v0 = vld [vmem:[#allocation121_spill] sm:$0xff] }
 0x6f5   : > { %v4473_v41 = vmul.f32 %v11091_v10, %v4468_v54  ;;  %v4803_v36 = vmul.f32 %v11095_v22, %v4468_v54  ;;  %v4800_v24 = vadd.f32 %v11097_v9, %v4790_v27  ;;  %v4453_v63 = vadd.f32 %v11098_v3, %v4439_v44  ;;  %v11105_v9 = vld [vmem:[#allocation124_spill] sm:$0xff]  ;;  %v11107_v3 = vld [vmem:[#allocation137_spill] sm:$0xff] }
 0x6f6   : > { %v4463_v7 = vpop.permute.xlu1 %4462  ;;  %v4478_v18 = vadd.f32 %v4474_v37, %v4452_v29  ;;  %v4808_v55 = vadd.f32 %v4804_v51, %v4798_v35  ;;  %v11101_v29 = vld [vmem:[#allocation136_spill] sm:$0xff] }
 0x6f7   : > { %v4461_v53 = vpop.permute.xlu0 %4460  ;;  %v4471_v38 = vsel %vm206_vm9, %v4463_v7, 0.0  ;;  %v4477_v7 = vadd.f32 %v4473_v41, %v4451_v4  ;;  %v4807_v17 = vadd.f32 %v4803_v36, %v4797_v19  ;;  %v4799_v37 = vadd.f32 %v11101_v29, %v4789_v60  ;;  %v11102_v4 = vld [vmem:[#allocation165_spill] sm:$0xff] }
 0x6f8   : > { %v4476_v26 = vmul.f32 %v11091_v10, %v4471_v38  ;;  %v4806_v59 = vmul.f32 %v11095_v22, %v4471_v38  ;;  %v4470_v40 = vsel %vm206_vm9, %v4461_v53, 0.0  ;;  %v11103_v38 = vld [vmem:[#allocation161_spill] sm:$0xff] }
 0x6f9   : > { %v4475_v5 = vmul.f32 %v11091_v10, %v4470_v40  ;;  %v4805_v2 = vmul.f32 %v11095_v22, %v4470_v40 }
 0x6fa   : > { %v4513_v8 = vpop.permute.xlu1 %4512  ;;  %v4480_v58 = vadd.f32 %v4476_v26, %v4454_v25  ;;  %v4810_v32 = vadd.f32 %v4806_v59, %v4800_v24  ;;  %v11106_v26 = vld [vmem:[#allocation139_spill] sm:$0xff] }
 0x6fb   : > { %v4511_v49 = vpop.permute.xlu0 %4510  ;;  %v4523_v42 = vsel %vm8738_vm8, %v4513_v8, 0.0  ;;  %v4479_v19 = vadd.f32 %v4475_v5, %v4453_v63  ;;  %v4809_v36 = vadd.f32 %v4805_v2, %v4799_v37 }
 0x6fc   : > { %v4522_v14 = vsel %vm8738_vm8, %v4511_v49, 0.0  ;;  %v4528_v16 = vmul.f32 %v11099_v50, %v4523_v42  ;;  %v4814_v39 = vmul.f32 %v11100_v28, %v4523_v42 }
 0x6fd   : > { %v4527_v61 = vmul.f32 %v11099_v50, %v4522_v14  ;;  %v4813_v6 = vmul.f32 %v11100_v28, %v4522_v14  ;;  %v10044_v14 = vstv %s10020_s3 }
 0x6fe   : > { %v4517_v47 = vpop.permute.xlu1 %4516  ;;  %v4532_v54 = vadd.f32 %v4528_v16, %v4478_v18  ;;  %v4818_v33 = vadd.f32 %v4814_v39, %v4808_v55 }
 0x6ff   : > { %v4515_v12 = vpop.permute.xlu0 %4514  ;;  %v4525_v31 = vsel %vm8738_vm8, %v4517_v47, 0.0  ;;  %v4531_v8 = vadd.f32 %v4527_v61, %v4477_v7  ;;  %v4817_v49 = vadd.f32 %v4813_v6, %v4807_v17 }
 0x700   : > { %v4530_v23 = vmul.f32 %v11099_v50, %v4525_v31  ;;  %v4816_v53 = vmul.f32 %v11100_v28, %v4525_v31  ;;  %v4524_v1 = vsel %vm8738_vm8, %v4515_v12, 0.0  ;;  %v4542_v25 = vadd.f32 %v11104_v0, %v4532_v54  ;;  %v11111_v54 = vld [vmem:[#allocation141_spill] sm:$0xff]  ;;  %v11113_v0 = vld [vmem:[#allocation143_spill] sm:$0xff] }
 0x701   : > { %v4529_v20 = vmul.f32 %v11099_v50, %v4524_v1  ;;  %v4815_v62 = vmul.f32 %v11100_v28, %v4524_v1  ;;  %v4828_v24 = vadd.f32 %v11105_v9, %v4818_v33  ;;  %v4541_v59 = vadd.f32 %v11106_v26, %v4531_v8  ;;  %v11108_v50 = vld [vmem:[#allocation140_spill] sm:$0xff]  ;;  %v11109_v28 = vld [vmem:[#allocation134_spill] sm:$0xff] }
 0x702   : > { %v4549_v27 = vpop.permute.xlu1 %4548  ;;  %v4534_v10 = vadd.f32 %v4530_v23, %v4480_v58  ;;  %v4820_v35 = vadd.f32 %v4816_v53, %v4810_v32  ;;  %v4827_v63 = vadd.f32 %v11107_v3, %v4817_v49  ;;  %v11110_v32 = vld [vmem:[#allocation166_spill] sm:$0xff]  ;;  %v11115_v26 = vld [vmem:[#allocation144_spill] sm:$0xff]  ;;  %v11116_v3 = vld [vmem:[#allocation149_spill] sm:$0xff] }
 0x703   : > { %v4547_v48 = vpop.permute.xlu0 %4546  ;;  %v4559_v44 = vsel %vm206_vm9, %v4549_v27, 0.0  ;;  %v4533_v18 = vadd.f32 %v4529_v20, %v4479_v19  ;;  %v4819_v12 = vadd.f32 %v4815_v62, %v4809_v36  ;;  %v11114_v9 = vld [vmem:[#allocation142_spill] sm:$0xff] }
 0x704   : > { %v4558_v56 = vsel %vm206_vm9, %v4547_v48, 0.0  ;;  %v4564_v11 = vmul.f32 %v11102_v4, %v4559_v44  ;;  %v4834_v22 = vmul.f32 %v11103_v38, %v4559_v44  ;;  %v4544_v16 = vadd.f32 %v11108_v50, %v4534_v10 }
 0x705   : > { %v4563_v51 = vmul.f32 %v11102_v4, %v4558_v56  ;;  %v4833_v41 = vmul.f32 %v11103_v38, %v4558_v56  ;;  %v4830_v39 = vadd.f32 %v11109_v28, %v4820_v35  ;;  %v4543_v33 = vadd.f32 %v11111_v54, %v4533_v18  ;;  %v11112_v56 = vld [vmem:[#allocation138_spill] sm:$0xff] }
 0x706   : > { %v4553_v42 = vpop.permute.xlu1 %4552  ;;  %v4568_v40 = vadd.f32 %v4564_v11, %v4542_v25  ;;  %v4838_v31 = vadd.f32 %v4834_v22, %v4828_v24  ;;  %v4829_v29 = vadd.f32 %v11112_v56, %v4819_v12 }
 0x707   : > { %v4551_v60 = vpop.permute.xlu0 %4550  ;;  %v4561_v47 = vsel %vm206_vm9, %v4553_v42, 0.0  ;;  %v4567_v55 = vadd.f32 %v4563_v51, %v4541_v59  ;;  %v4837_v7 = vadd.f32 %v4833_v41, %v4827_v63 }
 0x708   : > { %v4560_v61 = vsel %vm206_vm9, %v4551_v60, 0.0  ;;  %v4566_v23 = vmul.f32 %v11102_v4, %v4561_v47  ;;  %v4836_v53 = vmul.f32 %v11103_v38, %v4561_v47 }
 0x709   : > { %v4565_v44 = vmul.f32 %v11102_v4, %v4560_v61  ;;  %v4835_v37 = vmul.f32 %v11103_v38, %v4560_v61  ;;  %v11117_v61 = vld [vmem:[#allocation145_spill] sm:$0xff] }
 0x70a   : > { %v4611_v6 = vpop.permute.xlu1 %4610  ;;  %v4570_v11 = vadd.f32 %v4566_v23, %v4544_v16  ;;  %v4840_v19 = vadd.f32 %v4836_v53, %v4830_v39 }
 0x70b   : > { %v4609_v17 = vpop.permute.xlu0 %4608  ;;  %v4621_v1 = vsel %vm8738_vm8, %v4611_v6, 0.0  ;;  %v4569_v60 = vadd.f32 %v4565_v44, %v4543_v33  ;;  %v4839_v36 = vadd.f32 %v4835_v37, %v4829_v29  ;;  %v11120_v44 = vld [vmem:[#allocation151_spill] sm:$0xff] }
 0x70c   : > { %v4620_v58 = vsel %vm8738_vm8, %v4609_v17, 0.0  ;;  %v4626_v5 = vmul.f32 %v11110_v32, %v4621_v1  ;;  %v4844_v2 = vmul.f32 %v9882_v57, %v4621_v1  ;;  %v11118_v17 = vld [vmem:[#allocation150_spill] sm:$0xff] }
 0x70d   : > { %v4625_v27 = vmul.f32 %v11110_v32, %v4620_v58  ;;  %v4843_v48 = vmul.f32 %v9882_v57, %v4620_v58 }
 0x70e   : > { %v4630_v8 = vadd.f32 %v4626_v5, %v4568_v40  ;;  %v4848_v49 = vadd.f32 %v4844_v2, %v4838_v31  ;;  %v4615_v35 = vpop.permute.xlu1 %4614 }
 0x70f   : > { %v4629_v20 = vadd.f32 %v4625_v27, %v4567_v55  ;;  %v4847_v10 = vadd.f32 %v4843_v48, %v4837_v7  ;;  %v4613_v62 = vpop.permute.xlu0 %4612  ;;  %v4623_v22 = vsel %vm8420_vm2, %v4615_v35, 0.0  ;;  %v4878_v55 = vstv %s10068_s8  ;;  %v11119_v48 = vld [vmem:[#allocation153_spill] sm:$0xff] }
 0x710   : > { %v4622_v4 = vsel %vm8738_vm8, %v4613_v62, 0.0  ;;  %v4628_v38 = vmul.f32 %v11110_v32, %v4623_v22  ;;  %v4846_v51 = vmul.f32 %v9882_v57, %v4623_v22  ;;  %v4644_v25 = vadd.f32 %v11113_v0, %v4630_v8 }
 0x711   : > { %v4627_v41 = vmul.f32 %v11110_v32, %v4622_v4  ;;  %v4845_v42 = vmul.f32 %v9882_v57, %v4622_v4  ;;  %v4858_v24 = vadd.f32 %v11114_v9, %v4848_v49  ;;  %v4643_v59 = vadd.f32 %v11115_v26, %v4629_v20  ;;  %v11121_v9 = vld [vmem:[#allocation48_spill] sm:$0xff] }
 0x712   : > { %v4632_v15 = vadd.f32 %v4628_v38, %v4570_v11  ;;  %v4850_v18 = vadd.f32 %v4846_v51, %v4840_v19  ;;  %v4651_v46 = vpop.permute.xlu1 %4650  ;;  %v4857_v63 = vadd.f32 %v11116_v3, %v4847_v10  ;;  %v4884_v7 = vstv %s10070_s4 }
 0x713   : > { %v4649_v47 = vpop.permute.xlu0 %4648  ;;  %v4631_v12 = vadd.f32 %v4627_v41, %v4569_v60  ;;  %v4849_v40 = vadd.f32 %v4845_v42, %v4839_v36  ;;  %v4661_v57 = vsel %vm206_vm9, %v4651_v46, 0.0  ;;  %v11123_v46 = vld [vmem:[#allocation51_spill] sm:$0xff]  ;;  %vm5033_vm8 = vcmask 261120  }
 0x714   : > { %v4660_v50 = vsel %vm206_vm9, %v4649_v47, 0.0  ;;  %v4666_v16 = vmul.f32 %v9885_v30, %v4661_v57  ;;  %v4864_v28 = vmul.f32 %v9993_v13, %v4661_v57  ;;  %v4646_v6 = vadd.f32 %v11117_v61, %v4632_v15  ;;  %v11122_v15 = vld [vmem:[#allocation71_spill] sm:$0xff] }
 0x715   : > { %v4665_v39 = vmul.f32 %v9885_v30, %v4660_v50  ;;  %v4863_v31 = vmul.f32 %v9993_v13, %v4660_v50  ;;  %v4860_v23 = vadd.f32 %v11118_v17, %v4850_v18  ;;  %v4645_v54 = vadd.f32 %v11119_v48, %v4631_v12  ;;  %v11125_v61 = vld [vmem:[#allocation55_spill] sm:$0xff]  ;;  %v11127_v17 = vld [vmem:[#allocation53_spill] sm:$0xff] }
 0x716   : > { %v4670_v53 = vadd.f32 %v4666_v16, %v4644_v25  ;;  %v4868_v1 = vadd.f32 %v4864_v28, %v4858_v24  ;;  %v4655_v5 = vpop.permute.xlu1 %4654  ;;  %v4859_v56 = vadd.f32 %v11120_v44, %v4849_v40  ;;  %v10153_v44 = vstv %s5436_s22 }
 0x717   : > { %v4669_v58 = vadd.f32 %v4665_v39, %v4643_v59  ;;  %v4867_v32 = vadd.f32 %v4863_v31, %v4857_v63  ;;  %v4653_v2 = vpop.permute.xlu0 %4652  ;;  %v4663_v27 = vsel %vm9006_vm11, %v4655_v5, 0.0  ;;  %v11124_v59 = vld [vmem:[#allocation70_spill] sm:$0xff] }
 0x718   : > { %v4662_v33 = vsel %vm206_vm9, %v4653_v2, 0.0  ;;  %v4676_v29 = vadd.f32 %v9938_v34, %v4670_v53  ;;  %v4874_v37 = vadd.f32 %v10044_v14, %v4868_v1  ;;  %v4668_v20 = vmul.f32 %v9885_v30, %v4663_v27  ;;  %v11128_v53 = vld [vmem:[#allocation75_spill] sm:$0xff] }
 0x719   : > { %v4675_v8 = vadd.f32 %v9938_v34, %v4669_v58  ;;  %v4873_v49 = vadd.f32 %v10044_v14, %v4867_v32  ;;  %v4866_v45 = vmul.f32 %v9993_v13, %v4663_v27  ;;  %v4667_v10 = vmul.f32 %v9885_v30, %v4662_v33 }
 0x71a   : > { %v4865_v35 = vmul.f32 %v9993_v13, %v4662_v33  ;;  %v4682_v52 = vmul.f32 %v9941_v43, %v4676_v29  ;;  %v4880_v62 = vmul.f32 %v4878_v55, %v4874_v37  ;;  %v4672_v22 = vadd.f32 %v4668_v20, %v4646_v6 }
 0x71b   : > { %v4681_v11 = vmul.f32 %v9941_v43, %v4675_v8  ;;  %v4879_v19 = vmul.f32 %v4878_v55, %v4873_v49  ;;  %v4870_v4 = vadd.f32 %v4866_v45, %v4860_v23  ;;  %v4671_v38 = vadd.f32 %v4667_v10, %v4645_v54 }
 0x71c   : > { %v4869_v51 = vadd.f32 %v4865_v35, %v4859_v56  ;;  %v4688_v41 = vadd.f32 %v9988_v21, %v4682_v52  ;;  %v4886_v42 = vadd.f32 %v4884_v7, %v4880_v62  ;;  %v4678_v30 = vadd.f32 %v9938_v34, %v4672_v22 }
 0x71d   : > { %v4687_v60 = vadd.f32 %v9988_v21, %v4681_v11  ;;  %v4885_v36 = vadd.f32 %v4884_v7, %v4879_v19  ;;  %v4876_v13 = vadd.f32 %v10044_v14, %v4870_v4  ;;  %v4677_v0 = vadd.f32 %v9938_v34, %v4671_v38 }
 0x71e   : > { %v4875_v25 = vadd.f32 %v10044_v14, %v4869_v51  ;;  %v4890_v24 = vadd.f32 %v4688_v41, %v11121_v9  ;;  %v4914_v18 = vadd.f32 %v4886_v42, %v11122_v15  ;;  %v4684_v63 = vmul.f32 %v9941_v43, %v4678_v30 }
 0x71f   : > { %v4889_v26 = vadd.f32 %v4687_v60, %v11123_v46  ;;  %v10122_v3 = vadd.f32 %v4885_v36, %v11124_v59  ;;  %v4882_v47 = vmul.f32 %v4878_v55, %v4876_v13  ;;  %v4683_v12 = vmul.f32 %v9941_v43, %v4677_v0 }
 0x720   : > { %v4881_v40 = vmul.f32 %v4878_v55, %v4875_v25  ;;  %v4899_v57 = vmul.f32 1.442695, %v4890_v24  ;;  %v4923_v50 = vmul.f32 1.442695, %v4914_v18  ;;  %v4690_v16 = vadd.f32 %v9988_v21, %v4684_v63  ;;  %v11126_v55 = vld [vmem:[#allocation72_spill] sm:$0xff] }
 0x721   : > { %v4897_v34 = vmul.f32 1.442695, %v4889_v26  ;;  %v4921_v14 = vmul.f32 1.442695, %v10122_v3  ;;  %v4888_v28 = vadd.f32 %v4884_v7, %v4882_v47  ;;  %v4689_v39 = vadd.f32 %v9988_v21, %v4683_v12 }
 0x722   : > { %5538 = vpow2.f32 %v4899_v57  ;;  %v4887_v31 = vadd.f32 %v4884_v7, %v4881_v40  ;;  %v10130_v43 = vadd.f32 %v4690_v16, %v11125_v61  ;;  %v10145_v2 = vstv %s5432_s7 }
 0x723   : > { %5540 = vpow2.f32 %v4923_v50  ;;  %v10133_v6 = vadd.f32 %v4888_v28, %v11126_v55  ;;  %v10136_v23 = vadd.f32 %v4689_v39, %v11127_v17  ;;  %v10147_v27 = vstv %s5433_s14 }
 0x724   : > { %5542 = vpow2.f32 %v4897_v34  ;;  %v10139_v21 = vadd.f32 %v4887_v31, %v11128_v53  ;;  %v4903_v7 = vmul.f32 1.442695, %v10130_v43  ;;  %v10149_v54 = vstv %s5434_s17 }
 0x725   : > { %5544 = vpow2.f32 %v4921_v14  ;;  %v4927_v1 = vmul.f32 1.442695, %v10133_v6  ;;  %v4901_v58 = vmul.f32 1.442695, %v10136_v23  ;;  %v10151_v33 = vstv %s5435_s21 }
 0x726   : > { %v4925_v32 = vmul.f32 1.442695, %v10139_v21  ;;  %5546 = vpow2.f32 %v4903_v7  ;;  %v10155_v37 = vstv %s5437_s23  ;;  %vm4894_vm4 = vcmp.gt.f32.partialorder %v4890_v24, 0.0 }
 0x727   : > { %5548 = vpow2.f32 %v4927_v1  ;;  %vm4918_vm5 = vcmp.gt.f32.partialorder %v4914_v18, 0.0  ;;  %vm4893_vm10 = vcmp.gt.f32.partialorder %v4889_v26, 0.0  ;;  %vm4917_vm15 = vcmp.gt.f32.partialorder %v10122_v3, 0.0 }
 0x728   : > { %5550 = vpow2.f32 %v4901_v58  ;;  %vm4896_vm2 = vcmp.gt.f32.partialorder %v10130_v43, 0.0  ;;  %vm4920_vm3 = vcmp.gt.f32.partialorder %v10133_v6, 0.0  ;;  %vm4895_vm6 = vcmp.gt.f32.partialorder %v10136_v23, 0.0 }
 0x729   : > { %5552 = vpow2.f32 %v4925_v32  ;;  %vm4919_vm7 = vcmp.gt.f32.partialorder %v10139_v21, 0.0 }
 0x72c   : > { %v5539_v5 = vpop.eup %5538 }
 0x72d   : > { %v5541_v48 = vpop.eup %5540  ;;  %v5425_v56 = vadd.f32 -1.0, %v5539_v5 }
 0x72e   : > { %v5543_v29 = vpop.eup %5542  ;;  %v5429_v8 = vadd.f32 -1.0, %v5541_v48 }
 0x72f   : > { %v5545_v49 = vpop.eup %5544  ;;  %v4910_v20 = vsel %vm4894_vm4, %v4890_v24, %v5425_v56  ;;  %v5424_v45 = vadd.f32 -1.0, %v5543_v29 }
 0x730   : > { %v4934_v10 = vsel %vm4918_vm5, %v4914_v18, %v5429_v8  ;;  %v4940_v35 = vmul.f32 %v10145_v2, %v4910_v20  ;;  %v4966_v52 = vmul.f32 %v10151_v33, %v4910_v20  ;;  %v5428_v62 = vadd.f32 -1.0, %v5545_v49  ;;  %v5547_v4 = vpop.eup %5546 }
 0x731   : > { %v4950_v11 = vmul.f32 %v10147_v27, %v4934_v10  ;;  %v4976_v19 = vmul.f32 %v10153_v44, %v4934_v10  ;;  %v4909_v22 = vsel %vm4893_vm10, %v4889_v26, %v5424_v45  ;;  %v5549_v42 = vpop.eup %5548  ;;  %v5427_v25 = vadd.f32 -1.0, %v5547_v4 }
 0x732   : > { %v4933_v38 = vsel %vm4917_vm15, %v10122_v3, %v5428_v62  ;;  %v4939_v51 = vmul.f32 %v10145_v2, %v4909_v22  ;;  %v4965_v41 = vmul.f32 %v10151_v33, %v4909_v22  ;;  %v5551_v0 = vpop.eup %5550  ;;  %v5431_v9 = vadd.f32 -1.0, %v5549_v42 }
 0x733   : > { %v4954_v60 = vadd.f32 %v4950_v11, %v4940_v35  ;;  %v4980_v36 = vadd.f32 %v4976_v19, %v4966_v52  ;;  %v4949_v30 = vmul.f32 %v10147_v27, %v4933_v38  ;;  %v4975_v13 = vmul.f32 %v10153_v44, %v4933_v38  ;;  %v5553_v24 = vpop.eup %5552 }
 0x734   : > { %v4912_v59 = vsel %vm4896_vm2, %v10130_v43, %v5427_v25  ;;  %v4936_v3 = vsel %vm4920_vm3, %v10133_v6, %v5431_v9  ;;  %v5426_v63 = vadd.f32 -1.0, %v5551_v0  ;;  %v5430_v47 = vadd.f32 -1.0, %v5553_v24 }
 0x735   : > { %v4960_v15 = vadd.f32 %v10149_v54, %v4954_v60  ;;  %v4986_v18 = vadd.f32 %v10155_v37, %v4980_v36  ;;  %v4953_v46 = vadd.f32 %v4949_v30, %v4939_v51  ;;  %v4979_v26 = vadd.f32 %v4975_v13, %v4965_v41 }
 0x736   : > { %v4942_v50 = vmul.f32 %v10145_v2, %v4912_v59  ;;  %v4952_v34 = vmul.f32 %v10147_v27, %v4936_v3  ;;  %v4968_v14 = vmul.f32 %v10151_v33, %v4912_v59  ;;  %v4978_v16 = vmul.f32 %v10153_v44, %v4936_v3 }
 0x737   : > { %v4990_v12 = vmax.f32 %v4960_v15, %v4986_v18  ;;  %v4959_v40 = vadd.f32 %v10149_v54, %v4953_v46  ;;  %v4985_v57 = vadd.f32 %v10155_v37, %v4979_v26  ;;  %v4911_v28 = vsel %vm4895_vm6, %v10136_v23, %v5426_v63 }
 0x738   : > { %v4935_v43 = vsel %vm4919_vm7, %v10139_v21, %v5430_v47  ;;  %v4956_v55 = vadd.f32 %v4952_v34, %v4942_v50  ;;  %v4982_v6 = vadd.f32 %v4978_v16, %v4968_v14  ;;  %v4941_v17 = vmul.f32 %v10145_v2, %v4911_v28 }
 0x739   : > { %v4994_v39 = vsub.f32 %v4960_v15, %v4990_v12  ;;  %v5006_v31 = vsub.f32 %v4986_v18, %v4990_v12  ;;  %v4989_v61 = vmax.f32 %v4959_v40, %v4985_v57  ;;  %v4951_v53 = vmul.f32 %v10147_v27, %v4935_v43 }
 0x73a   : > { %v4962_v5 = vadd.f32 %v10149_v54, %v4956_v55  ;;  %v4988_v23 = vadd.f32 %v10155_v37, %v4982_v6  ;;  %v4967_v56 = vmul.f32 %v10151_v33, %v4911_v28  ;;  %v4977_v8 = vmul.f32 %v10153_v44, %v4935_v43 }
 0x73b   : > { %v4999_v7 = vmul.f32 1.442695, %v4994_v39  ;;  %v5011_v1 = vmul.f32 1.442695, %v5006_v31  ;;  %v4993_v58 = vsub.f32 %v4959_v40, %v4989_v61  ;;  %v5005_v32 = vsub.f32 %v4985_v57, %v4989_v61 }
 0x73c   : > { %v4955_v48 = vadd.f32 %v4951_v53, %v4941_v17  ;;  %v4992_v2 = vmax.f32 %v4962_v5, %v4988_v23  ;;  %v4981_v49 = vadd.f32 %v4977_v8, %v4967_v56 }
 0x73d   : > { %5554 = vpow2.f32 %v4999_v7  ;;  %v4997_v29 = vmul.f32 1.442695, %v4993_v58  ;;  %v5009_v21 = vmul.f32 1.442695, %v5005_v32 }
 0x73e   : > { %5556 = vpow2.f32 %v5011_v1  ;;  %v4961_v27 = vadd.f32 %v10149_v54, %v4955_v48  ;;  %v4996_v20 = vsub.f32 %v4962_v5, %v4992_v2  ;;  %v5008_v45 = vsub.f32 %v4988_v23, %v4992_v2 }
 0x73f   : > { %5558 = vpow2.f32 %v4997_v29  ;;  %v4987_v10 = vadd.f32 %v10155_v37, %v4981_v49 }
 0x740   : > { %5560 = vpow2.f32 %v5009_v21  ;;  %v5003_v35 = vmul.f32 1.442695, %v4996_v20  ;;  %v5015_v52 = vmul.f32 1.442695, %v5008_v45 }
 0x741   : > { %v4991_v62 = vmax.f32 %v4961_v27, %v4987_v10 }
 0x742   : > { %5562 = vpow2.f32 %v5003_v35 }
 0x743   : > { %5564 = vpow2.f32 %v5015_v52  ;;  %v4995_v33 = vsub.f32 %v4961_v27, %v4991_v62  ;;  %v5007_v11 = vsub.f32 %v4987_v10, %v4991_v62 }
 0x745   : > { %v5001_v19 = vmul.f32 1.442695, %v4995_v33  ;;  %v5013_v22 = vmul.f32 1.442695, %v5007_v11 }
 0x747   : > { %v5555_v44 = vpop.eup %5554  ;;  %5566 = vpow2.f32 %v5001_v19 }
 0x748   : > { %v5557_v4 = vpop.eup %5556  ;;  %5568 = vpow2.f32 %v5013_v22 }
 0x749   : > { %v5559_v54 = vpop.eup %5558  ;;  %v5018_v38 = vadd.f32 %v5557_v4, %v5555_v44 }
 0x74a   : > { %v5561_v51 = vpop.eup %5560 }
 0x74b   : > { %5570 = vrcp.f32 %v5018_v38  ;;  %v5017_v37 = vadd.f32 %v5561_v51, %v5559_v54 }
 0x74c   : > { %v5563_v41 = vpop.eup %5562 }
 0x74d   : > { %5572 = vrcp.f32 %v5017_v37  ;;  %v5565_v42 = vpop.eup %5564 }
 0x74e   : > { %v5020_v60 = vadd.f32 %v5565_v42, %v5563_v41 }
 0x750   : > { %5574 = vrcp.f32 %v5020_v60 }
 0x751   : > { %v5567_v36 = vpop.eup %5566 }
 0x752   : > { %v5569_v30 = vpop.eup %5568 }
 0x753   : > { %v5019_v0 = vadd.f32 %v5569_v30, %v5567_v36 }
 0x755   : > { %v5571_v13 = vpop.eup %5570  ;;  %5576 = vrcp.f32 %v5019_v0 }
 0x756   : > { %v5030_v25 = vmul.f32 %v5571_v13, %v5555_v44  ;;  %v5039_v9 = vmul.f32 %v5571_v13, %v5557_v4 }
 0x757   : > { %v5573_v24 = vpop.eup %5572 }
 0x758   : > { %5035 = vst.msk [vmem:[%s150_s26 + $0x8] sm:$0xff] %vm5033_vm8, %v5030_v25  ;;  %5439 = vst.msk [vmem:[%s150_s26 + $0x28] sm:$0xff] %vm5033_vm8, %v5039_v9  ;;  %v5029_v15 = vmul.f32 %v5573_v24, %v5559_v54  ;;  %v5038_v18 = vmul.f32 %v5573_v24, %v5561_v51 }
 0x75a   : > { %5034 = vst.msk [vmem:[%s150_s26] sm:$0xff] %vm5033_vm8, %v5029_v15  ;;  %5438 = vst.msk [vmem:[%s150_s26 + $0x20] sm:$0xff] %vm5033_vm8, %v5038_v18  ;;  %v5575_v46 = vpop.eup %5574 }
 0x75b   : > { %v5032_v26 = vmul.f32 %v5575_v46, %v5563_v41  ;;  %v5041_v59 = vmul.f32 %v5575_v46, %v5565_v42 }
 0x75d   : > { %5037 = vst.msk [vmem:[%s150_s26 + $0x18] sm:$0xff] %vm5033_vm8, %v5032_v26  ;;  %5441 = vst.msk [vmem:[%s150_s26 + $0x38] sm:$0xff] %vm5033_vm8, %v5041_v59 }
 0x75f   : > { %v5577_v3 = vpop.eup %5576 }
 0x760   : > { %v5031_v63 = vmul.f32 %v5577_v3, %v5567_v36  ;;  %v5040_v47 = vmul.f32 %v5577_v3, %v5569_v30 }
 0x762   : > { %5036 = vst.msk [vmem:[%s150_s26 + $0x10] sm:$0xff] %vm5033_vm8, %v5031_v63  ;;  %5440 = vst.msk [vmem:[%s150_s26 + $0x30] sm:$0xff] %vm5033_vm8, %v5040_v47 }
 0x763   : > { %5734 = shalt.err (!%p5731_p2)
}
 0x764   : > { %s5735_s3 = scalar_lea.hbm %s10212_s16, 1024  ;;  %s5739_s7 = scalar_lea.hbm %s10263_s2, 2048 }
 0x765   : > { %p5736_p3 = scmp.ne.s32.totalorder %s10212_s16, %s5735_s3  ;;  %p5740_p8 = scmp.lt.u32.totalorder %s10212_s16, %s10263_s2 }
 0x766   : > { %p5741_p11 = scmp.lt.u32.totalorder %s5739_s7, %s5735_s3  ;;  %p5743_p10 = scmp.lt.u32.totalorder %s5735_s3, %s10212_s16 }
 0x767   : > { %p5737_p4 = pnand %p5736_p3, %p5851_p5 }
 0x768   : > { %p5742_p9 = por %p5741_p11, %p5740_p8 }
 0x769   : > { %p5738_p7 = pneg %p5737_p4 }
 0x76a   : > { %p5744_p12 = por %p5743_p10, %p5742_p9 }
 0x76c   : > { %p5745_p13 = pnand %p5744_p12, %p5738_p7 }
 0x76e   : > { %5748 = shalt.err (!%p5745_p13)
}
 0x76f   : > { %s5796_s21 = smov 128   ;;  %s5797_s22 = smov 8  }
 0x770   : > { %5453 = dma.vmem_to_hbm [thread:$0]  (%p5851_p5), %s10214_s0, 1024, %s10212_s16, %s10220_s13, %s5796_s21, %s5796_s21, %s5797_s22  }
 0x771 PF: > { %p5465_p0 = scmp.ge.s32.totalorder %s5787_s12, 2  ;;  %s5076_s23 = sand.u32 1, %s5775_s9  }
 0x772   : > { %s5077_s24 = scalar_lea.sflag [#allocation3], %s5076_s23 }
 0x773   : > { %p5460_p1 = pnand %p5465_p0, %p5855_p6 }
 0x775   : > { %5770 = dma.done.wait (!%p5460_p1), %s5077_s24, 1024  }
 0x776   : > { %5772 = vsyncadd (!%p5460_p1), %s5077_s24, 4294966272  ;;  %p13_p2 = scmp.ge.s32.totalorder %s5838_s15, 4   ;;  %s11129_s9 = smov %s5779_s10 }
 0x777   : > { %s11130_s10 = smov %s5783_s11  ;;  %s11131_s11 = smov %s5849_s18 }
 0x778   : > { %s11132_s12 = smov %s5838_s15  ;;  %15 = sbr.rel (!%p13_p2) target bundleno = 7 (0x7), region = 72 }
 0x77f   :  { %5082 = vsyncpa [#allocation3], 1 }
 0x780   :  { %5084 = vsyncpa [#allocation3 + $0x1], 1 }
 0x781   :  { %5085 = vsyncpa [#allocation4], 1 }
 0x782   :  { %5087 = vsyncpa [#allocation4 + $0x1], 1 }

</bundles_post_ra>
